<compile_context>
chip_gen: v5e
topology: v5e:2x2
jax: 0.10.0
libtpu: 0.0.40
codegen_flags: <defaults>
</compile_context>

<pallas_src>
import functools

import jax
import jax.numpy as jnp
from jax.experimental import pallas as pl
from jax.experimental.pallas import tpu as pltpu


# ---------------------------------------------------------------------------
# Fused kernel: conv1 -> pool -> relu -> conv2 -> pool -> relu -> conv3 ->
#               pool -> relu -> linear, one batch tile per grid step.
# ---------------------------------------------------------------------------
def _fused_cifar10_kernel(p1_ref, w1_ref, b1_ref, w2_ref, b2_ref,
                          w3_ref, b3_ref, w4_ref, b4_ref, o_ref,
                          c1_ref, x2_ref, c2_ref, x3_ref, c3_ref):
    """Refs (per batch tile of BT images):
       p1_ref: (BT*1024, 27) bf16   conv1 im2col patches (9 taps x 3 channels)
       w1_ref: (27, 64)      bf16   conv1 weight, taps folded into K
       w2_ref: (9, 64, 128)  bf16   conv2 per-tap weights
       w3_ref: (9, 128, 128) bf16   conv3 per-tap weights
       w4_ref: (16, 128, 128)bf16   linear weight per spatial position (h*4+w),
                                    NHWC feature order, out padded 10 -> 128
       b*_ref: (1, Cout)     f32    biases (b4 padded to 128)
       o_ref : (BT, 128)     f32    padded logits
       c1/c2/c3: f32 VMEM conv-output scratch (pooled with strided reads)
       x2/x3  : f32 VMEM zero-halo padded inputs for conv2 / conv3"""
    BT = c1_ref.shape[0]
    f32 = jnp.float32
    bf16 = jnp.bfloat16

    def pool_relu(c_ref):
        """MaxPool2d(2,2) + ReLU over a conv-output scratch (BT, H, W, C)."""
        _, H, W, C = c_ref.shape
        even = c_ref[:, :, pl.ds(0, W // 2, stride=2), :]
        odd = c_ref[:, :, pl.ds(1, W // 2, stride=2), :]
        m = jnp.maximum(even, odd)                      # (BT, H, W//2, C)
        m = m.reshape(BT, H // 2, 2, W // 2, C)         # leading-dim split: free
        m = jnp.maximum(m[:, :, 0], m[:, :, 1])         # (BT, H//2, W//2, C)
        return jnp.maximum(m, 0.0)

    def store_padded(dst_ref, val):
        """Write val=(BT,H,W,C) at rows 1:1+H, cols 8:8+W of dst_ref and zero
        the halo strips the 3x3 taps read.  Column offsets are multiples of 8,
        so every store is sublane-tile aligned (f32 tiling is (8, 128))."""
        _, R, CW, C = dst_ref.shape
        H, W = val.shape[1], val.shape[2]
        z = functools.partial(jnp.zeros, dtype=dst_ref.dtype)
        dst_ref[:, 0:1, :, :] = z((BT, 1, CW, C))                    # top halo
        dst_ref[:, 1 + H:R, :, :] = z((BT, R - 1 - H, CW, C))        # bottom halo
        dst_ref[:, 1:1 + H, 0:8, :] = z((BT, H, 8, C))               # left halo
        dst_ref[:, 1:1 + H, 8 + W:CW, :] = z((BT, H, CW - 8 - W, C))  # right halo
        dst_ref[:, 1:1 + H, 8:8 + W, :] = val                        # interior

    def conv3x3(xp_ref, w_ref, b_ref, H, W, Cin):
        """3x3 conv over the padded scratch.  Data sits at rows 1:1+H, cols
        8:8+W, so tap (dy,dx) reads rows dy:dy+H, cols 7+dx:7+dx+W.  The
        accumulator is an f32 value (single VMEM materialization at the end)."""
        acc = None
        for k in range(9):
            dy, dx = divmod(k, 3)
            patch = xp_ref[:, dy:dy + H, 7 + dx:7 + dx + W, :]
            patch = patch.reshape(BT * H * W, Cin).astype(bf16)
            t = jnp.dot(patch, w_ref[k], preferred_element_type=f32)
            acc = t if acc is None else acc + t
        return acc + b_ref[...]                          # (BT*H*W, Cout) f32

    # ---- layer 1: single K=27 im2col matmul, then pool + relu -------------
    a1 = jnp.dot(p1_ref[...], w1_ref[...], preferred_element_type=f32)
    a1 = a1 + b1_ref[...]
    c1_ref[...] = a1.reshape(BT, 32, 32, 64)
    store_padded(x2_ref, pool_relu(c1_ref))              # (BT,16,16,64) padded

    # ---- layer 2 -----------------------------------------------------------
    a2 = conv3x3(x2_ref, w2_ref, b2_ref, 16, 16, 64)
    c2_ref[...] = a2.reshape(BT, 16, 16, 128)
    store_padded(x3_ref, pool_relu(c2_ref))              # (BT,8,8,128) padded

    # ---- layer 3 -----------------------------------------------------------
    a3 = conv3x3(x3_ref, w3_ref, b3_ref, 8, 8, 128)
    c3_ref[...] = a3.reshape(BT, 8, 8, 128)
    act3 = pool_relu(c3_ref).astype(bf16)                # (BT, 4, 4, 128)

    # ---- fused final Linear (lane-dense, out padded 10 -> 128) -------------
    y = None
    for p in range(16):
        h, w = divmod(p, 4)
        t = jnp.dot(act3[:, h, w, :], w4_ref[p], preferred_element_type=f32)
        y = t if y is None else y + t
    o_ref[...] = y + b4_ref[...]


# ---------------------------------------------------------------------------
# Wrapper: parameter re-layout (constant-folded under jit) + pallas_call.
# ---------------------------------------------------------------------------
def cifar10_net(x_nchw, params):
    B = x_nchw.shape[0]
    BT = B if B <= 8 else 8                     # batch tile per grid step
    Bp = ((B + BT - 1) // BT) * BT
    x = jnp.transpose(x_nchw, (0, 2, 3, 1)).astype(jnp.float32)     # NHWC
    if Bp != B:
        x = jnp.pad(x, ((0, Bp - B), (0, 0), (0, 0), (0, 0)))

    # conv1 im2col (Cin=3 is tiny): build (Bp*1024, 27) patches once so the
    # kernel runs one dense K=27 MXU matmul instead of nine K=3 matmuls.
    xp = jnp.pad(x, ((0, 0), (1, 1), (1, 1), (0, 0)))
    cols = [xp[:, dy:dy + 32, dx:dx + 32, :]
            for dy in range(3) for dx in range(3)]
    p1 = (jnp.concatenate(cols, axis=-1)
          .reshape(Bp * 1024, 27).astype(jnp.bfloat16))

    def taps(w):  # torch OIHW -> (9, Cin, Cout), bf16
        o, i, _, _ = w.shape
        return jnp.transpose(w, (2, 3, 1, 0)).reshape(9, i, o).astype(jnp.bfloat16)

    w1 = taps(params["w1"]).reshape(27, 64)          # taps x Cin folded into K
    b1 = params["b1"].reshape(1, 64).astype(jnp.float32)
    w2 = taps(params["w2"])                          # (9, 64, 128)
    b2 = params["b2"].reshape(1, 128).astype(jnp.float32)
    w3 = taps(params["w3"])                          # (9, 128, 128)
    b3 = params["b3"].reshape(1, 128).astype(jnp.float32)
    # Final linear: permute torch (c,h,w)-flatten columns to NHWC (h,w,c)
    # order, pre-transpose to (in, out), zero-pad out 10 -> 128 (lane dense).
    w4 = params["w4"].reshape(10, 128, 4, 4)                   # (o, c, h, w)
    w4 = jnp.transpose(w4, (2, 3, 1, 0)).reshape(16, 128, 10)  # (h*4+w, c, o)
    w4 = jnp.pad(w4, ((0, 0), (0, 0), (0, 118))).astype(jnp.bfloat16)
    b4 = jnp.pad(params["b4"], (0, 118)).reshape(1, 128).astype(jnp.float32)

    out = pl.pallas_call(
        _fused_cifar10_kernel,
        out_shape=jax.ShapeDtypeStruct((Bp, 128), jnp.float32),
        grid_spec=pltpu.PrefetchScalarGridSpec(
            num_scalar_prefetch=0,
            grid=(Bp // BT,),
            in_specs=[
                pl.BlockSpec((BT * 1024, 27), lambda b: (b, 0)),
                pl.BlockSpec((27, 64), lambda b: (0, 0)),
                pl.BlockSpec((1, 64), lambda b: (0, 0)),
                pl.BlockSpec((9, 64, 128), lambda b: (0, 0, 0)),
                pl.BlockSpec((1, 128), lambda b: (0, 0)),
                pl.BlockSpec((9, 128, 128), lambda b: (0, 0, 0)),
                pl.BlockSpec((1, 128), lambda b: (0, 0)),
                pl.BlockSpec((16, 128, 128), lambda b: (0, 0, 0)),
                pl.BlockSpec((1, 128), lambda b: (0, 0)),
            ],
            out_specs=pl.BlockSpec((BT, 128), lambda b: (b, 0)),
            scratch_shapes=[
                pltpu.VMEM((BT, 32, 32, 64), jnp.float32),    # conv1 output
                pltpu.VMEM((BT, 18, 32, 64), jnp.float32),    # padded conv2 input
                pltpu.VMEM((BT, 16, 16, 128), jnp.float32),   # conv2 output
                pltpu.VMEM((BT, 10, 24, 128), jnp.float32),   # padded conv3 input
                pltpu.VMEM((BT, 8, 8, 128), jnp.float32),     # conv3 output
            ],
        ),
        compiler_params=pltpu.CompilerParams(
            dimension_semantics=("parallel",),
            vmem_limit_bytes=32 * 1024 * 1024,
        ),
    )(p1, w1, b1, w2, b2, w3, b3, w4, b4)
    return out[:B, :10]


# ---------------------------------------------------------------------------
# Deterministic parameter init (PyTorch-style uniform(+-1/sqrt(fan_in)))
# ---------------------------------------------------------------------------
def init_params(key):
    def u(k, shape, fan_in):
        bound = 1.0 / (fan_in ** 0.5)
        return jax.random.uniform(k, shape, jnp.float32, -bound, bound)

    ks = jax.random.split(key, 8)
    return {
        "w1": u(ks[0], (64, 3, 3, 3), 3 * 9),
        "b1": u(ks[1], (64,), 3 * 9),
        "w2": u(ks[2], (128, 64, 3, 3), 64 * 9),
        "b2": u(ks[3], (128,), 64 * 9),
        "w3": u(ks[4], (128, 128, 3, 3), 128 * 9),
        "b3": u(ks[5], (128,), 128 * 9),
        "w4": u(ks[6], (10, 2048), 2048),    # torch Linear weight: (out, in)
        "b4": u(ks[7], (10,), 2048),
    }


# Pure-JAX reference (mirrors the PyTorch module exactly) for validation.
def reference_forward(x_nchw, params):
    hi = jax.lax.Precision.HIGHEST

    def conv(x, w, b):
        y = jax.lax.conv_general_dilated(
            x, w, window_strides=(1, 1), padding=((1, 1), (1, 1)),
            dimension_numbers=("NCHW", "OIHW", "NCHW"), precision=hi)
        return y + b[None, :, None, None]

    def pool(x):
        return jax.lax.reduce_window(x, -jnp.inf, jax.lax.max,
                                     (1, 1, 2, 2), (1, 1, 2, 2), "VALID")

    x = jnp.maximum(pool(conv(x_nchw, params["w1"], params["b1"])), 0.0)
    x = jnp.maximum(pool(conv(x, params["w2"], params["b2"])), 0.0)
    x = jnp.maximum(pool(conv(x, params["w3"], params["b3"])), 0.0)
    feats = x.reshape(x.shape[0], -1)
    return jnp.dot(feats, params["w4"].T, precision=hi) + params["b4"]


if __name__ == "__main__":
    key = jax.random.PRNGKey(0)
    pkey, xkey = jax.random.split(key)
    params = init_params(pkey)
    # CIFAR-10 shaped input: the Linear(128*4*4) forces 3x32x32.
    x = jax.random.normal(xkey, (2, 3, 32, 32), jnp.float32)

    fwd = jax.jit(functools.partial(cifar10_net, params=params))
    out = jax.block_until_ready(fwd(x))
    assert out.shape == (2, 10), out.shape

    ref = reference_forward(x, params)
    err = float(jnp.max(jnp.abs(out - ref)))
    # bf16 MXU operands with f32 accumulation: ~1e-2 absolute tolerance.
    assert jnp.allclose(out, ref, atol=2e-2, rtol=2e-2), ("mismatch", err)
    print("KERNEL_OK")
</pallas_src>

<mosaic_0001>
module attributes {stable_mosaic.version = 11 : i64} {
  func.func @_fused_cifar10_kernel(%arg0: i32, %arg1: memref<2048x27xbf16, #tpu.memory_space<vmem>>, %arg2: memref<27x64xbf16, #tpu.memory_space<vmem>>, %arg3: memref<1x64xf32, #tpu.memory_space<vmem>>, %arg4: memref<9x64x128xbf16, #tpu.memory_space<vmem>>, %arg5: memref<1x128xf32, #tpu.memory_space<vmem>>, %arg6: memref<9x128x128xbf16, #tpu.memory_space<vmem>>, %arg7: memref<1x128xf32, #tpu.memory_space<vmem>>, %arg8: memref<16x128x128xbf16, #tpu.memory_space<vmem>>, %arg9: memref<1x128xf32, #tpu.memory_space<vmem>>, %arg10: memref<2x128xf32, #tpu.memory_space<vmem>>, %arg11: memref<2x32x32x64xf32, #tpu.memory_space<vmem>>, %arg12: memref<2x18x32x64xf32, #tpu.memory_space<vmem>>, %arg13: memref<2x16x16x128xf32, #tpu.memory_space<vmem>>, %arg14: memref<2x10x24x128xf32, #tpu.memory_space<vmem>>, %arg15: memref<2x8x8x128xf32, #tpu.memory_space<vmem>>) attributes {dimension_semantics = [#tpu.dimension_semantics<parallel>], iteration_bounds = array<i64: 1>, scalar_prefetch = 0 : i64, scratch_operands = 5 : i64, tpu.core_type = #tpu.core_type<tc>, window_params = [{transform_indices = @transform_0, window_bounds = array<i64: 2048, 27>}, {pipeline_mode = #tpu.pipeline_mode<synchronous>, transform_indices = @transform_1, window_bounds = array<i64: 27, 64>}, {pipeline_mode = #tpu.pipeline_mode<synchronous>, transform_indices = @transform_2, window_bounds = array<i64: 1, 64>}, {pipeline_mode = #tpu.pipeline_mode<synchronous>, transform_indices = @transform_3, window_bounds = array<i64: 9, 64, 128>}, {pipeline_mode = #tpu.pipeline_mode<synchronous>, transform_indices = @transform_4, window_bounds = array<i64: 1, 128>}, {pipeline_mode = #tpu.pipeline_mode<synchronous>, transform_indices = @transform_5, window_bounds = array<i64: 9, 128, 128>}, {pipeline_mode = #tpu.pipeline_mode<synchronous>, transform_indices = @transform_6, window_bounds = array<i64: 1, 128>}, {pipeline_mode = #tpu.pipeline_mode<synchronous>, transform_indices = @transform_7, window_bounds = array<i64: 16, 128, 128>}, {pipeline_mode = #tpu.pipeline_mode<synchronous>, transform_indices = @transform_8, window_bounds = array<i64: 1, 128>}, {transform_indices = @transform_9, window_bounds = array<i64: 2, 128>}]} {
    %c0 = arith.constant 0 : index
    %c0_0 = arith.constant 0 : index
    %0 = vector.load %arg1[%c0, %c0_0] : memref<2048x27xbf16, #tpu.memory_space<vmem>>, vector<2048x27xbf16>
    %c0_1 = arith.constant 0 : index
    %c0_2 = arith.constant 0 : index
    %1 = vector.load %arg2[%c0_1, %c0_2] : memref<27x64xbf16, #tpu.memory_space<vmem>>, vector<27x64xbf16>
    %cst = arith.constant dense<0.000000e+00> : vector<2048x64xf32>
    %2 = tpu.matmul %0, %1, %cst {dimension_numbers = #tpu.dot_dimension_numbers<[1], [0], [0], [1], [0, 0, 1, 1], [], []>} : vector<2048x27xbf16>, vector<27x64xbf16>, vector<2048x64xf32> -> vector<2048x64xf32>
    %c0_3 = arith.constant 0 : index
    %c0_4 = arith.constant 0 : index
    %3 = vector.load %arg3[%c0_3, %c0_4] : memref<1x64xf32, #tpu.memory_space<vmem>>, vector<1x64xf32>
    %4 = vector.broadcast %3 : vector<1x64xf32> to vector<2048x64xf32>
    %5 = arith.addf %2, %4 : vector<2048x64xf32>
    %6 = vector.shape_cast %5 : vector<2048x64xf32> to vector<2x32x32x64xf32>
    %c0_5 = arith.constant 0 : index
    %c0_6 = arith.constant 0 : index
    %c0_7 = arith.constant 0 : index
    %c0_8 = arith.constant 0 : index
    %7 = vector.load %arg11[%c0_5, %c0_6, %c0_7, %c0_8] : memref<2x32x32x64xf32, #tpu.memory_space<vmem>>, vector<2x32x32x64xf32>
    tpu.vector_store %arg11[%c0_5, %c0_6, %c0_7, %c0_8], %6 {strides = array<i32>} : memref<2x32x32x64xf32, #tpu.memory_space<vmem>>, vector<2x32x32x64xf32>,
    %c0_9 = arith.constant 0 : index
    %c0_10 = arith.constant 0 : index
    %c0_11 = arith.constant 0 : index
    %c0_12 = arith.constant 0 : index
    %8 = tpu.strided_load %arg11[%c0_9, %c0_10, %c0_11, %c0_12] {strides = array<i32: 1, 1, 2, 1>} : memref<2x32x32x64xf32, #tpu.memory_space<vmem>>, vector<2x32x16x64xf32>
    %c0_13 = arith.constant 0 : index
    %c0_14 = arith.constant 0 : index
    %c1 = arith.constant 1 : index
    %c0_15 = arith.constant 0 : index
    %9 = tpu.strided_load %arg11[%c0_13, %c0_14, %c1, %c0_15] {strides = array<i32: 1, 1, 2, 1>} : memref<2x32x32x64xf32, #tpu.memory_space<vmem>>, vector<2x32x16x64xf32>
    %10 = arith.maximumf %8, %9 : vector<2x32x16x64xf32>
    %11 = vector.shape_cast %10 : vector<2x32x16x64xf32> to vector<2x16x2x16x64xf32>
    %12 = vector.extract_strided_slice %11 {offsets = [0, 0, 0, 0, 0], sizes = [2, 16, 1, 16, 64], strides = [1, 1, 1, 1, 1]} : vector<2x16x2x16x64xf32> to vector<2x16x1x16x64xf32>
    %13 = vector.shape_cast %12 : vector<2x16x1x16x64xf32> to vector<2x16x16x64xf32>
    %14 = vector.extract_strided_slice %11 {offsets = [0, 0, 1, 0, 0], sizes = [2, 16, 1, 16, 64], strides = [1, 1, 1, 1, 1]} : vector<2x16x2x16x64xf32> to vector<2x16x1x16x64xf32>
    %15 = vector.shape_cast %14 : vector<2x16x1x16x64xf32> to vector<2x16x16x64xf32>
    %16 = arith.maximumf %13, %15 : vector<2x16x16x64xf32>
    %cst_16 = arith.constant 0.000000e+00 : f32
    %17 = vector.broadcast %cst_16 : f32 to vector<2x16x16x64xf32>
    %18 = arith.maximumf %16, %17 : vector<2x16x16x64xf32>
    %cst_17 = arith.constant 0.000000e+00 : f32
    %19 = vector.broadcast %cst_17 : f32 to vector<2x1x32x64xf32>
    %c0_18 = arith.constant 0 : index
    %c0_19 = arith.constant 0 : index
    %c0_20 = arith.constant 0 : index
    %c0_21 = arith.constant 0 : index
    %20 = vector.load %arg12[%c0_18, %c0_19, %c0_20, %c0_21] : memref<2x18x32x64xf32, #tpu.memory_space<vmem>>, vector<2x1x32x64xf32>
    tpu.vector_store %arg12[%c0_18, %c0_19, %c0_20, %c0_21], %19 {strides = array<i32>} : memref<2x18x32x64xf32, #tpu.memory_space<vmem>>, vector<2x1x32x64xf32>,
    %cst_22 = arith.constant 0.000000e+00 : f32
    %21 = vector.broadcast %cst_22 : f32 to vector<2x1x32x64xf32>
    %c0_23 = arith.constant 0 : index
    %c17 = arith.constant 17 : index
    %c0_24 = arith.constant 0 : index
    %c0_25 = arith.constant 0 : index
    %22 = vector.load %arg12[%c0_23, %c17, %c0_24, %c0_25] : memref<2x18x32x64xf32, #tpu.memory_space<vmem>>, vector<2x1x32x64xf32>
    tpu.vector_store %arg12[%c0_23, %c17, %c0_24, %c0_25], %21 {strides = array<i32>} : memref<2x18x32x64xf32, #tpu.memory_space<vmem>>, vector<2x1x32x64xf32>,
    %cst_26 = arith.constant 0.000000e+00 : f32
    %23 = vector.broadcast %cst_26 : f32 to vector<2x16x8x64xf32>
    %c0_27 = arith.constant 0 : index
    %c1_28 = arith.constant 1 : index
    %c0_29 = arith.constant 0 : index
    %c0_30 = arith.constant 0 : index
    %24 = vector.load %arg12[%c0_27, %c1_28, %c0_29, %c0_30] : memref<2x18x32x64xf32, #tpu.memory_space<vmem>>, vector<2x16x8x64xf32>
    tpu.vector_store %arg12[%c0_27, %c1_28, %c0_29, %c0_30], %23 {strides = array<i32>} : memref<2x18x32x64xf32, #tpu.memory_space<vmem>>, vector<2x16x8x64xf32>,
    %cst_31 = arith.constant 0.000000e+00 : f32
    %25 = vector.broadcast %cst_31 : f32 to vector<2x16x8x64xf32>
    %c0_32 = arith.constant 0 : index
    %c1_33 = arith.constant 1 : index
    %c24 = arith.constant 24 : index
    %c0_34 = arith.constant 0 : index
    %26 = vector.load %arg12[%c0_32, %c1_33, %c24, %c0_34] : memref<2x18x32x64xf32, #tpu.memory_space<vmem>>, vector<2x16x8x64xf32>
    tpu.vector_store %arg12[%c0_32, %c1_33, %c24, %c0_34], %25 {strides = array<i32>} : memref<2x18x32x64xf32, #tpu.memory_space<vmem>>, vector<2x16x8x64xf32>,
    %c0_35 = arith.constant 0 : index
    %c1_36 = arith.constant 1 : index
    %c8 = arith.constant 8 : index
    %c0_37 = arith.constant 0 : index
    %27 = vector.load %arg12[%c0_35, %c1_36, %c8, %c0_37] : memref<2x18x32x64xf32, #tpu.memory_space<vmem>>, vector<2x16x16x64xf32>
    tpu.vector_store %arg12[%c0_35, %c1_36, %c8, %c0_37], %18 {strides = array<i32>} : memref<2x18x32x64xf32, #tpu.memory_space<vmem>>, vector<2x16x16x64xf32>,
    %c0_38 = arith.constant 0 : index
    %c0_39 = arith.constant 0 : index
    %c7 = arith.constant 7 : index
    %c0_40 = arith.constant 0 : index
    %28 = vector.load %arg12[%c0_38, %c0_39, %c7, %c0_40] : memref<2x18x32x64xf32, #tpu.memory_space<vmem>>, vector<2x16x16x64xf32>
    %29 = vector.shape_cast %28 : vector<2x16x16x64xf32> to vector<512x64xf32>
    %30 = arith.truncf %29 : vector<512x64xf32> to vector<512x64xbf16>
    %c0_41 = arith.constant 0 : index
    %c0_42 = arith.constant 0 : index
    %c0_43 = arith.constant 0 : index
    %31 = vector.load %arg4[%c0_41, %c0_42, %c0_43] : memref<9x64x128xbf16, #tpu.memory_space<vmem>>, vector<1x64x128xbf16>
    %32 = vector.shape_cast %31 : vector<1x64x128xbf16> to vector<64x128xbf16>
    %cst_44 = arith.constant dense<0.000000e+00> : vector<512x128xf32>
    %33 = tpu.matmul %30, %32, %cst_44 {dimension_numbers = #tpu.dot_dimension_numbers<[1], [0], [0], [1], [0, 0, 1, 1], [], []>} : vector<512x64xbf16>, vector<64x128xbf16>, vector<512x128xf32> -> vector<512x128xf32>
    %c0_45 = arith.constant 0 : index
    %c0_46 = arith.constant 0 : index
    %c8_47 = arith.constant 8 : index
    %c0_48 = arith.constant 0 : index
    %34 = vector.load %arg12[%c0_45, %c0_46, %c8_47, %c0_48] : memref<2x18x32x64xf32, #tpu.memory_space<vmem>>, vector<2x16x16x64xf32>
    %35 = vector.shape_cast %34 : vector<2x16x16x64xf32> to vector<512x64xf32>
    %36 = arith.truncf %35 : vector<512x64xf32> to vector<512x64xbf16>
    %c1_49 = arith.constant 1 : index
    %c0_50 = arith.constant 0 : index
    %c0_51 = arith.constant 0 : index
    %37 = vector.load %arg4[%c1_49, %c0_50, %c0_51] : memref<9x64x128xbf16, #tpu.memory_space<vmem>>, vector<1x64x128xbf16>
    %38 = vector.shape_cast %37 : vector<1x64x128xbf16> to vector<64x128xbf16>
    %cst_52 = arith.constant dense<0.000000e+00> : vector<512x128xf32>
    %39 = tpu.matmul %36, %38, %cst_52 {dimension_numbers = #tpu.dot_dimension_numbers<[1], [0], [0], [1], [0, 0, 1, 1], [], []>} : vector<512x64xbf16>, vector<64x128xbf16>, vector<512x128xf32> -> vector<512x128xf32>
    %40 = arith.addf %33, %39 : vector<512x128xf32>
    %c0_53 = arith.constant 0 : index
    %c0_54 = arith.constant 0 : index
    %c9 = arith.constant 9 : index
    %c0_55 = arith.constant 0 : index
    %41 = vector.load %arg12[%c0_53, %c0_54, %c9, %c0_55] : memref<2x18x32x64xf32, #tpu.memory_space<vmem>>, vector<2x16x16x64xf32>
    %42 = vector.shape_cast %41 : vector<2x16x16x64xf32> to vector<512x64xf32>
    %43 = arith.truncf %42 : vector<512x64xf32> to vector<512x64xbf16>
    %c2 = arith.constant 2 : index
    %c0_56 = arith.constant 0 : index
    %c0_57 = arith.constant 0 : index
    %44 = vector.load %arg4[%c2, %c0_56, %c0_57] : memref<9x64x128xbf16, #tpu.memory_space<vmem>>, vector<1x64x128xbf16>
    %45 = vector.shape_cast %44 : vector<1x64x128xbf16> to vector<64x128xbf16>
    %cst_58 = arith.constant dense<0.000000e+00> : vector<512x128xf32>
    %46 = tpu.matmul %43, %45, %cst_58 {dimension_numbers = #tpu.dot_dimension_numbers<[1], [0], [0], [1], [0, 0, 1, 1], [], []>} : vector<512x64xbf16>, vector<64x128xbf16>, vector<512x128xf32> -> vector<512x128xf32>
    %47 = arith.addf %40, %46 : vector<512x128xf32>
    %c0_59 = arith.constant 0 : index
    %c1_60 = arith.constant 1 : index
    %c7_61 = arith.constant 7 : index
    %c0_62 = arith.constant 0 : index
    %48 = vector.load %arg12[%c0_59, %c1_60, %c7_61, %c0_62] : memref<2x18x32x64xf32, #tpu.memory_space<vmem>>, vector<2x16x16x64xf32>
    %49 = vector.shape_cast %48 : vector<2x16x16x64xf32> to vector<512x64xf32>
    %50 = arith.truncf %49 : vector<512x64xf32> to vector<512x64xbf16>
    %c3 = arith.constant 3 : index
    %c0_63 = arith.constant 0 : index
    %c0_64 = arith.constant 0 : index
    %51 = vector.load %arg4[%c3, %c0_63, %c0_64] : memref<9x64x128xbf16, #tpu.memory_space<vmem>>, vector<1x64x128xbf16>
    %52 = vector.shape_cast %51 : vector<1x64x128xbf16> to vector<64x128xbf16>
    %cst_65 = arith.constant dense<0.000000e+00> : vector<512x128xf32>
    %53 = tpu.matmul %50, %52, %cst_65 {dimension_numbers = #tpu.dot_dimension_numbers<[1], [0], [0], [1], [0, 0, 1, 1], [], []>} : vector<512x64xbf16>, vector<64x128xbf16>, vector<512x128xf32> -> vector<512x128xf32>
    %54 = arith.addf %47, %53 : vector<512x128xf32>
    %c0_66 = arith.constant 0 : index
    %c1_67 = arith.constant 1 : index
    %c8_68 = arith.constant 8 : index
    %c0_69 = arith.constant 0 : index
    %55 = vector.load %arg12[%c0_66, %c1_67, %c8_68, %c0_69] : memref<2x18x32x64xf32, #tpu.memory_space<vmem>>, vector<2x16x16x64xf32>
    %56 = vector.shape_cast %55 : vector<2x16x16x64xf32> to vector<512x64xf32>
    %57 = arith.truncf %56 : vector<512x64xf32> to vector<512x64xbf16>
    %c4 = arith.constant 4 : index
    %c0_70 = arith.constant 0 : index
    %c0_71 = arith.constant 0 : index
    %58 = vector.load %arg4[%c4, %c0_70, %c0_71] : memref<9x64x128xbf16, #tpu.memory_space<vmem>>, vector<1x64x128xbf16>
    %59 = vector.shape_cast %58 : vector<1x64x128xbf16> to vector<64x128xbf16>
    %cst_72 = arith.constant dense<0.000000e+00> : vector<512x128xf32>
    %60 = tpu.matmul %57, %59, %cst_72 {dimension_numbers = #tpu.dot_dimension_numbers<[1], [0], [0], [1], [0, 0, 1, 1], [], []>} : vector<512x64xbf16>, vector<64x128xbf16>, vector<512x128xf32> -> vector<512x128xf32>
    %61 = arith.addf %54, %60 : vector<512x128xf32>
    %c0_73 = arith.constant 0 : index
    %c1_74 = arith.constant 1 : index
    %c9_75 = arith.constant 9 : index
    %c0_76 = arith.constant 0 : index
    %62 = vector.load %arg12[%c0_73, %c1_74, %c9_75, %c0_76] : memref<2x18x32x64xf32, #tpu.memory_space<vmem>>, vector<2x16x16x64xf32>
    %63 = vector.shape_cast %62 : vector<2x16x16x64xf32> to vector<512x64xf32>
    %64 = arith.truncf %63 : vector<512x64xf32> to vector<512x64xbf16>
    %c5 = arith.constant 5 : index
    %c0_77 = arith.constant 0 : index
    %c0_78 = arith.constant 0 : index
    %65 = vector.load %arg4[%c5, %c0_77, %c0_78] : memref<9x64x128xbf16, #tpu.memory_space<vmem>>, vector<1x64x128xbf16>
    %66 = vector.shape_cast %65 : vector<1x64x128xbf16> to vector<64x128xbf16>
    %cst_79 = arith.constant dense<0.000000e+00> : vector<512x128xf32>
    %67 = tpu.matmul %64, %66, %cst_79 {dimension_numbers = #tpu.dot_dimension_numbers<[1], [0], [0], [1], [0, 0, 1, 1], [], []>} : vector<512x64xbf16>, vector<64x128xbf16>, vector<512x128xf32> -> vector<512x128xf32>
    %68 = arith.addf %61, %67 : vector<512x128xf32>
    %c0_80 = arith.constant 0 : index
    %c2_81 = arith.constant 2 : index
    %c7_82 = arith.constant 7 : index
    %c0_83 = arith.constant 0 : index
    %69 = vector.load %arg12[%c0_80, %c2_81, %c7_82, %c0_83] : memref<2x18x32x64xf32, #tpu.memory_space<vmem>>, vector<2x16x16x64xf32>
    %70 = vector.shape_cast %69 : vector<2x16x16x64xf32> to vector<512x64xf32>
    %71 = arith.truncf %70 : vector<512x64xf32> to vector<512x64xbf16>
    %c6 = arith.constant 6 : index
    %c0_84 = arith.constant 0 : index
    %c0_85 = arith.constant 0 : index
    %72 = vector.load %arg4[%c6, %c0_84, %c0_85] : memref<9x64x128xbf16, #tpu.memory_space<vmem>>, vector<1x64x128xbf16>
    %73 = vector.shape_cast %72 : vector<1x64x128xbf16> to vector<64x128xbf16>
    %cst_86 = arith.constant dense<0.000000e+00> : vector<512x128xf32>
    %74 = tpu.matmul %71, %73, %cst_86 {dimension_numbers = #tpu.dot_dimension_numbers<[1], [0], [0], [1], [0, 0, 1, 1], [], []>} : vector<512x64xbf16>, vector<64x128xbf16>, vector<512x128xf32> -> vector<512x128xf32>
    %75 = arith.addf %68, %74 : vector<512x128xf32>
    %c0_87 = arith.constant 0 : index
    %c2_88 = arith.constant 2 : index
    %c8_89 = arith.constant 8 : index
    %c0_90 = arith.constant 0 : index
    %76 = vector.load %arg12[%c0_87, %c2_88, %c8_89, %c0_90] : memref<2x18x32x64xf32, #tpu.memory_space<vmem>>, vector<2x16x16x64xf32>
    %77 = vector.shape_cast %76 : vector<2x16x16x64xf32> to vector<512x64xf32>
    %78 = arith.truncf %77 : vector<512x64xf32> to vector<512x64xbf16>
    %c7_91 = arith.constant 7 : index
    %c0_92 = arith.constant 0 : index
    %c0_93 = arith.constant 0 : index
    %79 = vector.load %arg4[%c7_91, %c0_92, %c0_93] : memref<9x64x128xbf16, #tpu.memory_space<vmem>>, vector<1x64x128xbf16>
    %80 = vector.shape_cast %79 : vector<1x64x128xbf16> to vector<64x128xbf16>
    %cst_94 = arith.constant dense<0.000000e+00> : vector<512x128xf32>
    %81 = tpu.matmul %78, %80, %cst_94 {dimension_numbers = #tpu.dot_dimension_numbers<[1], [0], [0], [1], [0, 0, 1, 1], [], []>} : vector<512x64xbf16>, vector<64x128xbf16>, vector<512x128xf32> -> vector<512x128xf32>
    %82 = arith.addf %75, %81 : vector<512x128xf32>
    %c0_95 = arith.constant 0 : index
    %c2_96 = arith.constant 2 : index
    %c9_97 = arith.constant 9 : index
    %c0_98 = arith.constant 0 : index
    %83 = vector.load %arg12[%c0_95, %c2_96, %c9_97, %c0_98] : memref<2x18x32x64xf32, #tpu.memory_space<vmem>>, vector<2x16x16x64xf32>
    %84 = vector.shape_cast %83 : vector<2x16x16x64xf32> to vector<512x64xf32>
    %85 = arith.truncf %84 : vector<512x64xf32> to vector<512x64xbf16>
    %c8_99 = arith.constant 8 : index
    %c0_100 = arith.constant 0 : index
    %c0_101 = arith.constant 0 : index
    %86 = vector.load %arg4[%c8_99, %c0_100, %c0_101] : memref<9x64x128xbf16, #tpu.memory_space<vmem>>, vector<1x64x128xbf16>
    %87 = vector.shape_cast %86 : vector<1x64x128xbf16> to vector<64x128xbf16>
    %cst_102 = arith.constant dense<0.000000e+00> : vector<512x128xf32>
    %88 = tpu.matmul %85, %87, %cst_102 {dimension_numbers = #tpu.dot_dimension_numbers<[1], [0], [0], [1], [0, 0, 1, 1], [], []>} : vector<512x64xbf16>, vector<64x128xbf16>, vector<512x128xf32> -> vector<512x128xf32>
    %89 = arith.addf %82, %88 : vector<512x128xf32>
    %c0_103 = arith.constant 0 : index
    %c0_104 = arith.constant 0 : index
    %90 = vector.load %arg5[%c0_103, %c0_104] : memref<1x128xf32, #tpu.memory_space<vmem>>, vector<1x128xf32>
    %91 = vector.broadcast %90 : vector<1x128xf32> to vector<512x128xf32>
    %92 = arith.addf %89, %91 : vector<512x128xf32>
    %93 = vector.shape_cast %92 : vector<512x128xf32> to vector<2x16x16x128xf32>
    %c0_105 = arith.constant 0 : index
    %c0_106 = arith.constant 0 : index
    %c0_107 = arith.constant 0 : index
    %c0_108 = arith.constant 0 : index
    %94 = vector.load %arg13[%c0_105, %c0_106, %c0_107, %c0_108] : memref<2x16x16x128xf32, #tpu.memory_space<vmem>>, vector<2x16x16x128xf32>
    tpu.vector_store %arg13[%c0_105, %c0_106, %c0_107, %c0_108], %93 {strides = array<i32>} : memref<2x16x16x128xf32, #tpu.memory_space<vmem>>, vector<2x16x16x128xf32>,
    %c0_109 = arith.constant 0 : index
    %c0_110 = arith.constant 0 : index
    %c0_111 = arith.constant 0 : index
    %c0_112 = arith.constant 0 : index
    %95 = tpu.strided_load %arg13[%c0_109, %c0_110, %c0_111, %c0_112] {strides = array<i32: 1, 1, 2, 1>} : memref<2x16x16x128xf32, #tpu.memory_space<vmem>>, vector<2x16x8x128xf32>
    %c0_113 = arith.constant 0 : index
    %c0_114 = arith.constant 0 : index
    %c1_115 = arith.constant 1 : index
    %c0_116 = arith.constant 0 : index
    %96 = tpu.strided_load %arg13[%c0_113, %c0_114, %c1_115, %c0_116] {strides = array<i32: 1, 1, 2, 1>} : memref<2x16x16x128xf32, #tpu.memory_space<vmem>>, vector<2x16x8x128xf32>
    %97 = arith.maximumf %95, %96 : vector<2x16x8x128xf32>
    %98 = vector.shape_cast %97 : vector<2x16x8x128xf32> to vector<2x8x2x8x128xf32>
    %99 = vector.extract_strided_slice %98 {offsets = [0, 0, 0, 0, 0], sizes = [2, 8, 1, 8, 128], strides = [1, 1, 1, 1, 1]} : vector<2x8x2x8x128xf32> to vector<2x8x1x8x128xf32>
    %100 = vector.shape_cast %99 : vector<2x8x1x8x128xf32> to vector<2x8x8x128xf32>
    %101 = vector.extract_strided_slice %98 {offsets = [0, 0, 1, 0, 0], sizes = [2, 8, 1, 8, 128], strides = [1, 1, 1, 1, 1]} : vector<2x8x2x8x128xf32> to vector<2x8x1x8x128xf32>
    %102 = vector.shape_cast %101 : vector<2x8x1x8x128xf32> to vector<2x8x8x128xf32>
    %103 = arith.maximumf %100, %102 : vector<2x8x8x128xf32>
    %cst_117 = arith.constant 0.000000e+00 : f32
    %104 = vector.broadcast %cst_117 : f32 to vector<2x8x8x128xf32>
    %105 = arith.maximumf %103, %104 : vector<2x8x8x128xf32>
    %cst_118 = arith.constant 0.000000e+00 : f32
    %106 = vector.broadcast %cst_118 : f32 to vector<2x1x24x128xf32>
    %c0_119 = arith.constant 0 : index
    %c0_120 = arith.constant 0 : index
    %c0_121 = arith.constant 0 : index
    %c0_122 = arith.constant 0 : index
    %107 = vector.load %arg14[%c0_119, %c0_120, %c0_121, %c0_122] : memref<2x10x24x128xf32, #tpu.memory_space<vmem>>, vector<2x1x24x128xf32>
    tpu.vector_store %arg14[%c0_119, %c0_120, %c0_121, %c0_122], %106 {strides = array<i32>} : memref<2x10x24x128xf32, #tpu.memory_space<vmem>>, vector<2x1x24x128xf32>,
    %cst_123 = arith.constant 0.000000e+00 : f32
    %108 = vector.broadcast %cst_123 : f32 to vector<2x1x24x128xf32>
    %c0_124 = arith.constant 0 : index
    %c9_125 = arith.constant 9 : index
    %c0_126 = arith.constant 0 : index
    %c0_127 = arith.constant 0 : index
    %109 = vector.load %arg14[%c0_124, %c9_125, %c0_126, %c0_127] : memref<2x10x24x128xf32, #tpu.memory_space<vmem>>, vector<2x1x24x128xf32>
    tpu.vector_store %arg14[%c0_124, %c9_125, %c0_126, %c0_127], %108 {strides = array<i32>} : memref<2x10x24x128xf32, #tpu.memory_space<vmem>>, vector<2x1x24x128xf32>,
    %cst_128 = arith.constant 0.000000e+00 : f32
    %110 = vector.broadcast %cst_128 : f32 to vector<2x8x8x128xf32>
    %c0_129 = arith.constant 0 : index
    %c1_130 = arith.constant 1 : index
    %c0_131 = arith.constant 0 : index
    %c0_132 = arith.constant 0 : index
    %111 = vector.load %arg14[%c0_129, %c1_130, %c0_131, %c0_132] : memref<2x10x24x128xf32, #tpu.memory_space<vmem>>, vector<2x8x8x128xf32>
    tpu.vector_store %arg14[%c0_129, %c1_130, %c0_131, %c0_132], %110 {strides = array<i32>} : memref<2x10x24x128xf32, #tpu.memory_space<vmem>>, vector<2x8x8x128xf32>,
    %cst_133 = arith.constant 0.000000e+00 : f32
    %112 = vector.broadcast %cst_133 : f32 to vector<2x8x8x128xf32>
    %c0_134 = arith.constant 0 : index
    %c1_135 = arith.constant 1 : index
    %c16 = arith.constant 16 : index
    %c0_136 = arith.constant 0 : index
    %113 = vector.load %arg14[%c0_134, %c1_135, %c16, %c0_136] : memref<2x10x24x128xf32, #tpu.memory_space<vmem>>, vector<2x8x8x128xf32>
    tpu.vector_store %arg14[%c0_134, %c1_135, %c16, %c0_136], %112 {strides = array<i32>} : memref<2x10x24x128xf32, #tpu.memory_space<vmem>>, vector<2x8x8x128xf32>,
    %c0_137 = arith.constant 0 : index
    %c1_138 = arith.constant 1 : index
    %c8_139 = arith.constant 8 : index
    %c0_140 = arith.constant 0 : index
    %114 = vector.load %arg14[%c0_137, %c1_138, %c8_139, %c0_140] : memref<2x10x24x128xf32, #tpu.memory_space<vmem>>, vector<2x8x8x128xf32>
    tpu.vector_store %arg14[%c0_137, %c1_138, %c8_139, %c0_140], %105 {strides = array<i32>} : memref<2x10x24x128xf32, #tpu.memory_space<vmem>>, vector<2x8x8x128xf32>,
    %c0_141 = arith.constant 0 : index
    %c0_142 = arith.constant 0 : index
    %c7_143 = arith.constant 7 : index
    %c0_144 = arith.constant 0 : index
    %115 = vector.load %arg14[%c0_141, %c0_142, %c7_143, %c0_144] : memref<2x10x24x128xf32, #tpu.memory_space<vmem>>, vector<2x8x8x128xf32>
    %116 = vector.shape_cast %115 : vector<2x8x8x128xf32> to vector<128x128xf32>
    %117 = arith.truncf %116 : vector<128x128xf32> to vector<128x128xbf16>
    %c0_145 = arith.constant 0 : index
    %c0_146 = arith.constant 0 : index
    %c0_147 = arith.constant 0 : index
    %118 = vector.load %arg6[%c0_145, %c0_146, %c0_147] : memref<9x128x128xbf16, #tpu.memory_space<vmem>>, vector<1x128x128xbf16>
    %119 = vector.shape_cast %118 : vector<1x128x128xbf16> to vector<128x128xbf16>
    %cst_148 = arith.constant dense<0.000000e+00> : vector<128x128xf32>
    %120 = tpu.matmul %117, %119, %cst_148 {dimension_numbers = #tpu.dot_dimension_numbers<[1], [0], [0], [1], [0, 0, 1, 1], [], []>} : vector<128x128xbf16>, vector<128x128xbf16>, vector<128x128xf32> -> vector<128x128xf32>
    %c0_149 = arith.constant 0 : index
    %c0_150 = arith.constant 0 : index
    %c8_151 = arith.constant 8 : index
    %c0_152 = arith.constant 0 : index
    %121 = vector.load %arg14[%c0_149, %c0_150, %c8_151, %c0_152] : memref<2x10x24x128xf32, #tpu.memory_space<vmem>>, vector<2x8x8x128xf32>
    %122 = vector.shape_cast %121 : vector<2x8x8x128xf32> to vector<128x128xf32>
    %123 = arith.truncf %122 : vector<128x128xf32> to vector<128x128xbf16>
    %c1_153 = arith.constant 1 : index
    %c0_154 = arith.constant 0 : index
    %c0_155 = arith.constant 0 : index
    %124 = vector.load %arg6[%c1_153, %c0_154, %c0_155] : memref<9x128x128xbf16, #tpu.memory_space<vmem>>, vector<1x128x128xbf16>
    %125 = vector.shape_cast %124 : vector<1x128x128xbf16> to vector<128x128xbf16>
    %cst_156 = arith.constant dense<0.000000e+00> : vector<128x128xf32>
    %126 = tpu.matmul %123, %125, %cst_156 {dimension_numbers = #tpu.dot_dimension_numbers<[1], [0], [0], [1], [0, 0, 1, 1], [], []>} : vector<128x128xbf16>, vector<128x128xbf16>, vector<128x128xf32> -> vector<128x128xf32>
    %127 = arith.addf %120, %126 : vector<128x128xf32>
    %c0_157 = arith.constant 0 : index
    %c0_158 = arith.constant 0 : index
    %c9_159 = arith.constant 9 : index
    %c0_160 = arith.constant 0 : index
    %128 = vector.load %arg14[%c0_157, %c0_158, %c9_159, %c0_160] : memref<2x10x24x128xf32, #tpu.memory_space<vmem>>, vector<2x8x8x128xf32>
    %129 = vector.shape_cast %128 : vector<2x8x8x128xf32> to vector<128x128xf32>
    %130 = arith.truncf %129 : vector<128x128xf32> to vector<128x128xbf16>
    %c2_161 = arith.constant 2 : index
    %c0_162 = arith.constant 0 : index
    %c0_163 = arith.constant 0 : index
    %131 = vector.load %arg6[%c2_161, %c0_162, %c0_163] : memref<9x128x128xbf16, #tpu.memory_space<vmem>>, vector<1x128x128xbf16>
    %132 = vector.shape_cast %131 : vector<1x128x128xbf16> to vector<128x128xbf16>
    %cst_164 = arith.constant dense<0.000000e+00> : vector<128x128xf32>
    %133 = tpu.matmul %130, %132, %cst_164 {dimension_numbers = #tpu.dot_dimension_numbers<[1], [0], [0], [1], [0, 0, 1, 1], [], []>} : vector<128x128xbf16>, vector<128x128xbf16>, vector<128x128xf32> -> vector<128x128xf32>
    %134 = arith.addf %127, %133 : vector<128x128xf32>
    %c0_165 = arith.constant 0 : index
    %c1_166 = arith.constant 1 : index
    %c7_167 = arith.constant 7 : index
    %c0_168 = arith.constant 0 : index
    %135 = vector.load %arg14[%c0_165, %c1_166, %c7_167, %c0_168] : memref<2x10x24x128xf32, #tpu.memory_space<vmem>>, vector<2x8x8x128xf32>
    %136 = vector.shape_cast %135 : vector<2x8x8x128xf32> to vector<128x128xf32>
    %137 = arith.truncf %136 : vector<128x128xf32> to vector<128x128xbf16>
    %c3_169 = arith.constant 3 : index
    %c0_170 = arith.constant 0 : index
    %c0_171 = arith.constant 0 : index
    %138 = vector.load %arg6[%c3_169, %c0_170, %c0_171] : memref<9x128x128xbf16, #tpu.memory_space<vmem>>, vector<1x128x128xbf16>
    %139 = vector.shape_cast %138 : vector<1x128x128xbf16> to vector<128x128xbf16>
    %cst_172 = arith.constant dense<0.000000e+00> : vector<128x128xf32>
    %140 = tpu.matmul %137, %139, %cst_172 {dimension_numbers = #tpu.dot_dimension_numbers<[1], [0], [0], [1], [0, 0, 1, 1], [], []>} : vector<128x128xbf16>, vector<128x128xbf16>, vector<128x128xf32> -> vector<128x128xf32>
    %141 = arith.addf %134, %140 : vector<128x128xf32>
    %c0_173 = arith.constant 0 : index
    %c1_174 = arith.constant 1 : index
    %c8_175 = arith.constant 8 : index
    %c0_176 = arith.constant 0 : index
    %142 = vector.load %arg14[%c0_173, %c1_174, %c8_175, %c0_176] : memref<2x10x24x128xf32, #tpu.memory_space<vmem>>, vector<2x8x8x128xf32>
    %143 = vector.shape_cast %142 : vector<2x8x8x128xf32> to vector<128x128xf32>
    %144 = arith.truncf %143 : vector<128x128xf32> to vector<128x128xbf16>
    %c4_177 = arith.constant 4 : index
    %c0_178 = arith.constant 0 : index
    %c0_179 = arith.constant 0 : index
    %145 = vector.load %arg6[%c4_177, %c0_178, %c0_179] : memref<9x128x128xbf16, #tpu.memory_space<vmem>>, vector<1x128x128xbf16>
    %146 = vector.shape_cast %145 : vector<1x128x128xbf16> to vector<128x128xbf16>
    %cst_180 = arith.constant dense<0.000000e+00> : vector<128x128xf32>
    %147 = tpu.matmul %144, %146, %cst_180 {dimension_numbers = #tpu.dot_dimension_numbers<[1], [0], [0], [1], [0, 0, 1, 1], [], []>} : vector<128x128xbf16>, vector<128x128xbf16>, vector<128x128xf32> -> vector<128x128xf32>
    %148 = arith.addf %141, %147 : vector<128x128xf32>
    %c0_181 = arith.constant 0 : index
    %c1_182 = arith.constant 1 : index
    %c9_183 = arith.constant 9 : index
    %c0_184 = arith.constant 0 : index
    %149 = vector.load %arg14[%c0_181, %c1_182, %c9_183, %c0_184] : memref<2x10x24x128xf32, #tpu.memory_space<vmem>>, vector<2x8x8x128xf32>
    %150 = vector.shape_cast %149 : vector<2x8x8x128xf32> to vector<128x128xf32>
    %151 = arith.truncf %150 : vector<128x128xf32> to vector<128x128xbf16>
    %c5_185 = arith.constant 5 : index
    %c0_186 = arith.constant 0 : index
    %c0_187 = arith.constant 0 : index
    %152 = vector.load %arg6[%c5_185, %c0_186, %c0_187] : memref<9x128x128xbf16, #tpu.memory_space<vmem>>, vector<1x128x128xbf16>
    %153 = vector.shape_cast %152 : vector<1x128x128xbf16> to vector<128x128xbf16>
    %cst_188 = arith.constant dense<0.000000e+00> : vector<128x128xf32>
    %154 = tpu.matmul %151, %153, %cst_188 {dimension_numbers = #tpu.dot_dimension_numbers<[1], [0], [0], [1], [0, 0, 1, 1], [], []>} : vector<128x128xbf16>, vector<128x128xbf16>, vector<128x128xf32> -> vector<128x128xf32>
    %155 = arith.addf %148, %154 : vector<128x128xf32>
    %c0_189 = arith.constant 0 : index
    %c2_190 = arith.constant 2 : index
    %c7_191 = arith.constant 7 : index
    %c0_192 = arith.constant 0 : index
    %156 = vector.load %arg14[%c0_189, %c2_190, %c7_191, %c0_192] : memref<2x10x24x128xf32, #tpu.memory_space<vmem>>, vector<2x8x8x128xf32>
    %157 = vector.shape_cast %156 : vector<2x8x8x128xf32> to vector<128x128xf32>
    %158 = arith.truncf %157 : vector<128x128xf32> to vector<128x128xbf16>
    %c6_193 = arith.constant 6 : index
    %c0_194 = arith.constant 0 : index
    %c0_195 = arith.constant 0 : index
    %159 = vector.load %arg6[%c6_193, %c0_194, %c0_195] : memref<9x128x128xbf16, #tpu.memory_space<vmem>>, vector<1x128x128xbf16>
    %160 = vector.shape_cast %159 : vector<1x128x128xbf16> to vector<128x128xbf16>
    %cst_196 = arith.constant dense<0.000000e+00> : vector<128x128xf32>
    %161 = tpu.matmul %158, %160, %cst_196 {dimension_numbers = #tpu.dot_dimension_numbers<[1], [0], [0], [1], [0, 0, 1, 1], [], []>} : vector<128x128xbf16>, vector<128x128xbf16>, vector<128x128xf32> -> vector<128x128xf32>
    %162 = arith.addf %155, %161 : vector<128x128xf32>
    %c0_197 = arith.constant 0 : index
    %c2_198 = arith.constant 2 : index
    %c8_199 = arith.constant 8 : index
    %c0_200 = arith.constant 0 : index
    %163 = vector.load %arg14[%c0_197, %c2_198, %c8_199, %c0_200] : memref<2x10x24x128xf32, #tpu.memory_space<vmem>>, vector<2x8x8x128xf32>
    %164 = vector.shape_cast %163 : vector<2x8x8x128xf32> to vector<128x128xf32>
    %165 = arith.truncf %164 : vector<128x128xf32> to vector<128x128xbf16>
    %c7_201 = arith.constant 7 : index
    %c0_202 = arith.constant 0 : index
    %c0_203 = arith.constant 0 : index
    %166 = vector.load %arg6[%c7_201, %c0_202, %c0_203] : memref<9x128x128xbf16, #tpu.memory_space<vmem>>, vector<1x128x128xbf16>
    %167 = vector.shape_cast %166 : vector<1x128x128xbf16> to vector<128x128xbf16>
    %cst_204 = arith.constant dense<0.000000e+00> : vector<128x128xf32>
    %168 = tpu.matmul %165, %167, %cst_204 {dimension_numbers = #tpu.dot_dimension_numbers<[1], [0], [0], [1], [0, 0, 1, 1], [], []>} : vector<128x128xbf16>, vector<128x128xbf16>, vector<128x128xf32> -> vector<128x128xf32>
    %169 = arith.addf %162, %168 : vector<128x128xf32>
    %c0_205 = arith.constant 0 : index
    %c2_206 = arith.constant 2 : index
    %c9_207 = arith.constant 9 : index
    %c0_208 = arith.constant 0 : index
    %170 = vector.load %arg14[%c0_205, %c2_206, %c9_207, %c0_208] : memref<2x10x24x128xf32, #tpu.memory_space<vmem>>, vector<2x8x8x128xf32>
    %171 = vector.shape_cast %170 : vector<2x8x8x128xf32> to vector<128x128xf32>
    %172 = arith.truncf %171 : vector<128x128xf32> to vector<128x128xbf16>
    %c8_209 = arith.constant 8 : index
    %c0_210 = arith.constant 0 : index
    %c0_211 = arith.constant 0 : index
    %173 = vector.load %arg6[%c8_209, %c0_210, %c0_211] : memref<9x128x128xbf16, #tpu.memory_space<vmem>>, vector<1x128x128xbf16>
    %174 = vector.shape_cast %173 : vector<1x128x128xbf16> to vector<128x128xbf16>
    %cst_212 = arith.constant dense<0.000000e+00> : vector<128x128xf32>
    %175 = tpu.matmul %172, %174, %cst_212 {dimension_numbers = #tpu.dot_dimension_numbers<[1], [0], [0], [1], [0, 0, 1, 1], [], []>} : vector<128x128xbf16>, vector<128x128xbf16>, vector<128x128xf32> -> vector<128x128xf32>
    %176 = arith.addf %169, %175 : vector<128x128xf32>
    %c0_213 = arith.constant 0 : index
    %c0_214 = arith.constant 0 : index
    %177 = vector.load %arg7[%c0_213, %c0_214] : memref<1x128xf32, #tpu.memory_space<vmem>>, vector<1x128xf32>
    %178 = vector.broadcast %177 : vector<1x128xf32> to vector<128x128xf32>
    %179 = arith.addf %176, %178 : vector<128x128xf32>
    %180 = vector.shape_cast %179 : vector<128x128xf32> to vector<2x8x8x128xf32>
    %c0_215 = arith.constant 0 : index
    %c0_216 = arith.constant 0 : index
    %c0_217 = arith.constant 0 : index
    %c0_218 = arith.constant 0 : index
    %181 = vector.load %arg15[%c0_215, %c0_216, %c0_217, %c0_218] : memref<2x8x8x128xf32, #tpu.memory_space<vmem>>, vector<2x8x8x128xf32>
    tpu.vector_store %arg15[%c0_215, %c0_216, %c0_217, %c0_218], %180 {strides = array<i32>} : memref<2x8x8x128xf32, #tpu.memory_space<vmem>>, vector<2x8x8x128xf32>,
    %c0_219 = arith.constant 0 : index
    %c0_220 = arith.constant 0 : index
    %c0_221 = arith.constant 0 : index
    %c0_222 = arith.constant 0 : index
    %182 = tpu.strided_load %arg15[%c0_219, %c0_220, %c0_221, %c0_222] {strides = array<i32: 1, 1, 2, 1>} : memref<2x8x8x128xf32, #tpu.memory_space<vmem>>, vector<2x8x4x128xf32>
    %c0_223 = arith.constant 0 : index
    %c0_224 = arith.constant 0 : index
    %c1_225 = arith.constant 1 : index
    %c0_226 = arith.constant 0 : index
    %183 = tpu.strided_load %arg15[%c0_223, %c0_224, %c1_225, %c0_226] {strides = array<i32: 1, 1, 2, 1>} : memref<2x8x8x128xf32, #tpu.memory_space<vmem>>, vector<2x8x4x128xf32>
    %184 = arith.maximumf %182, %183 : vector<2x8x4x128xf32>
    %185 = vector.shape_cast %184 : vector<2x8x4x128xf32> to vector<2x4x2x4x128xf32>
    %186 = vector.extract_strided_slice %185 {offsets = [0, 0, 0, 0, 0], sizes = [2, 4, 1, 4, 128], strides = [1, 1, 1, 1, 1]} : vector<2x4x2x4x128xf32> to vector<2x4x1x4x128xf32>
    %187 = vector.shape_cast %186 : vector<2x4x1x4x128xf32> to vector<2x4x4x128xf32>
    %188 = vector.extract_strided_slice %185 {offsets = [0, 0, 1, 0, 0], sizes = [2, 4, 1, 4, 128], strides = [1, 1, 1, 1, 1]} : vector<2x4x2x4x128xf32> to vector<2x4x1x4x128xf32>
    %189 = vector.shape_cast %188 : vector<2x4x1x4x128xf32> to vector<2x4x4x128xf32>
    %190 = arith.maximumf %187, %189 : vector<2x4x4x128xf32>
    %cst_227 = arith.constant 0.000000e+00 : f32
    %191 = vector.broadcast %cst_227 : f32 to vector<2x4x4x128xf32>
    %192 = arith.maximumf %190, %191 : vector<2x4x4x128xf32>
    %193 = arith.truncf %192 : vector<2x4x4x128xf32> to vector<2x4x4x128xbf16>
    %194 = vector.extract_strided_slice %193 {offsets = [0, 0, 0, 0], sizes = [2, 1, 1, 128], strides = [1, 1, 1, 1]} : vector<2x4x4x128xbf16> to vector<2x1x1x128xbf16>
    %195 = vector.shape_cast %194 : vector<2x1x1x128xbf16> to vector<2x128xbf16>
    %c0_228 = arith.constant 0 : index
    %c0_229 = arith.constant 0 : index
    %c0_230 = arith.constant 0 : index
    %196 = vector.load %arg8[%c0_228, %c0_229, %c0_230] : memref<16x128x128xbf16, #tpu.memory_space<vmem>>, vector<1x128x128xbf16>
    %197 = vector.shape_cast %196 : vector<1x128x128xbf16> to vector<128x128xbf16>
    %cst_231 = arith.constant dense<0.000000e+00> : vector<2x128xf32>
    %198 = tpu.matmul %195, %197, %cst_231 {dimension_numbers = #tpu.dot_dimension_numbers<[1], [0], [0], [1], [0, 0, 1, 1], [], []>} : vector<2x128xbf16>, vector<128x128xbf16>, vector<2x128xf32> -> vector<2x128xf32>
    %199 = vector.extract_strided_slice %193 {offsets = [0, 0, 1, 0], sizes = [2, 1, 1, 128], strides = [1, 1, 1, 1]} : vector<2x4x4x128xbf16> to vector<2x1x1x128xbf16>
    %200 = vector.shape_cast %199 : vector<2x1x1x128xbf16> to vector<2x128xbf16>
    %c1_232 = arith.constant 1 : index
    %c0_233 = arith.constant 0 : index
    %c0_234 = arith.constant 0 : index
    %201 = vector.load %arg8[%c1_232, %c0_233, %c0_234] : memref<16x128x128xbf16, #tpu.memory_space<vmem>>, vector<1x128x128xbf16>
    %202 = vector.shape_cast %201 : vector<1x128x128xbf16> to vector<128x128xbf16>
    %cst_235 = arith.constant dense<0.000000e+00> : vector<2x128xf32>
    %203 = tpu.matmul %200, %202, %cst_235 {dimension_numbers = #tpu.dot_dimension_numbers<[1], [0], [0], [1], [0, 0, 1, 1], [], []>} : vector<2x128xbf16>, vector<128x128xbf16>, vector<2x128xf32> -> vector<2x128xf32>
    %204 = arith.addf %198, %203 : vector<2x128xf32>
    %205 = vector.extract_strided_slice %193 {offsets = [0, 0, 2, 0], sizes = [2, 1, 1, 128], strides = [1, 1, 1, 1]} : vector<2x4x4x128xbf16> to vector<2x1x1x128xbf16>
    %206 = vector.shape_cast %205 : vector<2x1x1x128xbf16> to vector<2x128xbf16>
    %c2_236 = arith.constant 2 : index
    %c0_237 = arith.constant 0 : index
    %c0_238 = arith.constant 0 : index
    %207 = vector.load %arg8[%c2_236, %c0_237, %c0_238] : memref<16x128x128xbf16, #tpu.memory_space<vmem>>, vector<1x128x128xbf16>
    %208 = vector.shape_cast %207 : vector<1x128x128xbf16> to vector<128x128xbf16>
    %cst_239 = arith.constant dense<0.000000e+00> : vector<2x128xf32>
    %209 = tpu.matmul %206, %208, %cst_239 {dimension_numbers = #tpu.dot_dimension_numbers<[1], [0], [0], [1], [0, 0, 1, 1], [], []>} : vector<2x128xbf16>, vector<128x128xbf16>, vector<2x128xf32> -> vector<2x128xf32>
    %210 = arith.addf %204, %209 : vector<2x128xf32>
    %211 = vector.extract_strided_slice %193 {offsets = [0, 0, 3, 0], sizes = [2, 1, 1, 128], strides = [1, 1, 1, 1]} : vector<2x4x4x128xbf16> to vector<2x1x1x128xbf16>
    %212 = vector.shape_cast %211 : vector<2x1x1x128xbf16> to vector<2x128xbf16>
    %c3_240 = arith.constant 3 : index
    %c0_241 = arith.constant 0 : index
    %c0_242 = arith.constant 0 : index
    %213 = vector.load %arg8[%c3_240, %c0_241, %c0_242] : memref<16x128x128xbf16, #tpu.memory_space<vmem>>, vector<1x128x128xbf16>
    %214 = vector.shape_cast %213 : vector<1x128x128xbf16> to vector<128x128xbf16>
    %cst_243 = arith.constant dense<0.000000e+00> : vector<2x128xf32>
    %215 = tpu.matmul %212, %214, %cst_243 {dimension_numbers = #tpu.dot_dimension_numbers<[1], [0], [0], [1], [0, 0, 1, 1], [], []>} : vector<2x128xbf16>, vector<128x128xbf16>, vector<2x128xf32> -> vector<2x128xf32>
    %216 = arith.addf %210, %215 : vector<2x128xf32>
    %217 = vector.extract_strided_slice %193 {offsets = [0, 1, 0, 0], sizes = [2, 1, 1, 128], strides = [1, 1, 1, 1]} : vector<2x4x4x128xbf16> to vector<2x1x1x128xbf16>
    %218 = vector.shape_cast %217 : vector<2x1x1x128xbf16> to vector<2x128xbf16>
    %c4_244 = arith.constant 4 : index
    %c0_245 = arith.constant 0 : index
    %c0_246 = arith.constant 0 : index
    %219 = vector.load %arg8[%c4_244, %c0_245, %c0_246] : memref<16x128x128xbf16, #tpu.memory_space<vmem>>, vector<1x128x128xbf16>
    %220 = vector.shape_cast %219 : vector<1x128x128xbf16> to vector<128x128xbf16>
    %cst_247 = arith.constant dense<0.000000e+00> : vector<2x128xf32>
    %221 = tpu.matmul %218, %220, %cst_247 {dimension_numbers = #tpu.dot_dimension_numbers<[1], [0], [0], [1], [0, 0, 1, 1], [], []>} : vector<2x128xbf16>, vector<128x128xbf16>, vector<2x128xf32> -> vector<2x128xf32>
    %222 = arith.addf %216, %221 : vector<2x128xf32>
    %223 = vector.extract_strided_slice %193 {offsets = [0, 1, 1, 0], sizes = [2, 1, 1, 128], strides = [1, 1, 1, 1]} : vector<2x4x4x128xbf16> to vector<2x1x1x128xbf16>
    %224 = vector.shape_cast %223 : vector<2x1x1x128xbf16> to vector<2x128xbf16>
    %c5_248 = arith.constant 5 : index
    %c0_249 = arith.constant 0 : index
    %c0_250 = arith.constant 0 : index
    %225 = vector.load %arg8[%c5_248, %c0_249, %c0_250] : memref<16x128x128xbf16, #tpu.memory_space<vmem>>, vector<1x128x128xbf16>
    %226 = vector.shape_cast %225 : vector<1x128x128xbf16> to vector<128x128xbf16>
    %cst_251 = arith.constant dense<0.000000e+00> : vector<2x128xf32>
    %227 = tpu.matmul %224, %226, %cst_251 {dimension_numbers = #tpu.dot_dimension_numbers<[1], [0], [0], [1], [0, 0, 1, 1], [], []>} : vector<2x128xbf16>, vector<128x128xbf16>, vector<2x128xf32> -> vector<2x128xf32>
    %228 = arith.addf %222, %227 : vector<2x128xf32>
    %229 = vector.extract_strided_slice %193 {offsets = [0, 1, 2, 0], sizes = [2, 1, 1, 128], strides = [1, 1, 1, 1]} : vector<2x4x4x128xbf16> to vector<2x1x1x128xbf16>
    %230 = vector.shape_cast %229 : vector<2x1x1x128xbf16> to vector<2x128xbf16>
    %c6_252 = arith.constant 6 : index
    %c0_253 = arith.constant 0 : index
    %c0_254 = arith.constant 0 : index
    %231 = vector.load %arg8[%c6_252, %c0_253, %c0_254] : memref<16x128x128xbf16, #tpu.memory_space<vmem>>, vector<1x128x128xbf16>
    %232 = vector.shape_cast %231 : vector<1x128x128xbf16> to vector<128x128xbf16>
    %cst_255 = arith.constant dense<0.000000e+00> : vector<2x128xf32>
    %233 = tpu.matmul %230, %232, %cst_255 {dimension_numbers = #tpu.dot_dimension_numbers<[1], [0], [0], [1], [0, 0, 1, 1], [], []>} : vector<2x128xbf16>, vector<128x128xbf16>, vector<2x128xf32> -> vector<2x128xf32>
    %234 = arith.addf %228, %233 : vector<2x128xf32>
    %235 = vector.extract_strided_slice %193 {offsets = [0, 1, 3, 0], sizes = [2, 1, 1, 128], strides = [1, 1, 1, 1]} : vector<2x4x4x128xbf16> to vector<2x1x1x128xbf16>
    %236 = vector.shape_cast %235 : vector<2x1x1x128xbf16> to vector<2x128xbf16>
    %c7_256 = arith.constant 7 : index
    %c0_257 = arith.constant 0 : index
    %c0_258 = arith.constant 0 : index
    %237 = vector.load %arg8[%c7_256, %c0_257, %c0_258] : memref<16x128x128xbf16, #tpu.memory_space<vmem>>, vector<1x128x128xbf16>
    %238 = vector.shape_cast %237 : vector<1x128x128xbf16> to vector<128x128xbf16>
    %cst_259 = arith.constant dense<0.000000e+00> : vector<2x128xf32>
    %239 = tpu.matmul %236, %238, %cst_259 {dimension_numbers = #tpu.dot_dimension_numbers<[1], [0], [0], [1], [0, 0, 1, 1], [], []>} : vector<2x128xbf16>, vector<128x128xbf16>, vector<2x128xf32> -> vector<2x128xf32>
    %240 = arith.addf %234, %239 : vector<2x128xf32>
    %241 = vector.extract_strided_slice %193 {offsets = [0, 2, 0, 0], sizes = [2, 1, 1, 128], strides = [1, 1, 1, 1]} : vector<2x4x4x128xbf16> to vector<2x1x1x128xbf16>
    %242 = vector.shape_cast %241 : vector<2x1x1x128xbf16> to vector<2x128xbf16>
    %c8_260 = arith.constant 8 : index
    %c0_261 = arith.constant 0 : index
    %c0_262 = arith.constant 0 : index
    %243 = vector.load %arg8[%c8_260, %c0_261, %c0_262] : memref<16x128x128xbf16, #tpu.memory_space<vmem>>, vector<1x128x128xbf16>
    %244 = vector.shape_cast %243 : vector<1x128x128xbf16> to vector<128x128xbf16>
    %cst_263 = arith.constant dense<0.000000e+00> : vector<2x128xf32>
    %245 = tpu.matmul %242, %244, %cst_263 {dimension_numbers = #tpu.dot_dimension_numbers<[1], [0], [0], [1], [0, 0, 1, 1], [], []>} : vector<2x128xbf16>, vector<128x128xbf16>, vector<2x128xf32> -> vector<2x128xf32>
    %246 = arith.addf %240, %245 : vector<2x128xf32>
    %247 = vector.extract_strided_slice %193 {offsets = [0, 2, 1, 0], sizes = [2, 1, 1, 128], strides = [1, 1, 1, 1]} : vector<2x4x4x128xbf16> to vector<2x1x1x128xbf16>
    %248 = vector.shape_cast %247 : vector<2x1x1x128xbf16> to vector<2x128xbf16>
    %c9_264 = arith.constant 9 : index
    %c0_265 = arith.constant 0 : index
    %c0_266 = arith.constant 0 : index
    %249 = vector.load %arg8[%c9_264, %c0_265, %c0_266] : memref<16x128x128xbf16, #tpu.memory_space<vmem>>, vector<1x128x128xbf16>
    %250 = vector.shape_cast %249 : vector<1x128x128xbf16> to vector<128x128xbf16>
    %cst_267 = arith.constant dense<0.000000e+00> : vector<2x128xf32>
    %251 = tpu.matmul %248, %250, %cst_267 {dimension_numbers = #tpu.dot_dimension_numbers<[1], [0], [0], [1], [0, 0, 1, 1], [], []>} : vector<2x128xbf16>, vector<128x128xbf16>, vector<2x128xf32> -> vector<2x128xf32>
    %252 = arith.addf %246, %251 : vector<2x128xf32>
    %253 = vector.extract_strided_slice %193 {offsets = [0, 2, 2, 0], sizes = [2, 1, 1, 128], strides = [1, 1, 1, 1]} : vector<2x4x4x128xbf16> to vector<2x1x1x128xbf16>
    %254 = vector.shape_cast %253 : vector<2x1x1x128xbf16> to vector<2x128xbf16>
    %c10 = arith.constant 10 : index
    %c0_268 = arith.constant 0 : index
    %c0_269 = arith.constant 0 : index
    %255 = vector.load %arg8[%c10, %c0_268, %c0_269] : memref<16x128x128xbf16, #tpu.memory_space<vmem>>, vector<1x128x128xbf16>
    %256 = vector.shape_cast %255 : vector<1x128x128xbf16> to vector<128x128xbf16>
    %cst_270 = arith.constant dense<0.000000e+00> : vector<2x128xf32>
    %257 = tpu.matmul %254, %256, %cst_270 {dimension_numbers = #tpu.dot_dimension_numbers<[1], [0], [0], [1], [0, 0, 1, 1], [], []>} : vector<2x128xbf16>, vector<128x128xbf16>, vector<2x128xf32> -> vector<2x128xf32>
    %258 = arith.addf %252, %257 : vector<2x128xf32>
    %259 = vector.extract_strided_slice %193 {offsets = [0, 2, 3, 0], sizes = [2, 1, 1, 128], strides = [1, 1, 1, 1]} : vector<2x4x4x128xbf16> to vector<2x1x1x128xbf16>
    %260 = vector.shape_cast %259 : vector<2x1x1x128xbf16> to vector<2x128xbf16>
    %c11 = arith.constant 11 : index
    %c0_271 = arith.constant 0 : index
    %c0_272 = arith.constant 0 : index
    %261 = vector.load %arg8[%c11, %c0_271, %c0_272] : memref<16x128x128xbf16, #tpu.memory_space<vmem>>, vector<1x128x128xbf16>
    %262 = vector.shape_cast %261 : vector<1x128x128xbf16> to vector<128x128xbf16>
    %cst_273 = arith.constant dense<0.000000e+00> : vector<2x128xf32>
    %263 = tpu.matmul %260, %262, %cst_273 {dimension_numbers = #tpu.dot_dimension_numbers<[1], [0], [0], [1], [0, 0, 1, 1], [], []>} : vector<2x128xbf16>, vector<128x128xbf16>, vector<2x128xf32> -> vector<2x128xf32>
    %264 = arith.addf %258, %263 : vector<2x128xf32>
    %265 = vector.extract_strided_slice %193 {offsets = [0, 3, 0, 0], sizes = [2, 1, 1, 128], strides = [1, 1, 1, 1]} : vector<2x4x4x128xbf16> to vector<2x1x1x128xbf16>
    %266 = vector.shape_cast %265 : vector<2x1x1x128xbf16> to vector<2x128xbf16>
    %c12 = arith.constant 12 : index
    %c0_274 = arith.constant 0 : index
    %c0_275 = arith.constant 0 : index
    %267 = vector.load %arg8[%c12, %c0_274, %c0_275] : memref<16x128x128xbf16, #tpu.memory_space<vmem>>, vector<1x128x128xbf16>
    %268 = vector.shape_cast %267 : vector<1x128x128xbf16> to vector<128x128xbf16>
    %cst_276 = arith.constant dense<0.000000e+00> : vector<2x128xf32>
    %269 = tpu.matmul %266, %268, %cst_276 {dimension_numbers = #tpu.dot_dimension_numbers<[1], [0], [0], [1], [0, 0, 1, 1], [], []>} : vector<2x128xbf16>, vector<128x128xbf16>, vector<2x128xf32> -> vector<2x128xf32>
    %270 = arith.addf %264, %269 : vector<2x128xf32>
    %271 = vector.extract_strided_slice %193 {offsets = [0, 3, 1, 0], sizes = [2, 1, 1, 128], strides = [1, 1, 1, 1]} : vector<2x4x4x128xbf16> to vector<2x1x1x128xbf16>
    %272 = vector.shape_cast %271 : vector<2x1x1x128xbf16> to vector<2x128xbf16>
    %c13 = arith.constant 13 : index
    %c0_277 = arith.constant 0 : index
    %c0_278 = arith.constant 0 : index
    %273 = vector.load %arg8[%c13, %c0_277, %c0_278] : memref<16x128x128xbf16, #tpu.memory_space<vmem>>, vector<1x128x128xbf16>
    %274 = vector.shape_cast %273 : vector<1x128x128xbf16> to vector<128x128xbf16>
    %cst_279 = arith.constant dense<0.000000e+00> : vector<2x128xf32>
    %275 = tpu.matmul %272, %274, %cst_279 {dimension_numbers = #tpu.dot_dimension_numbers<[1], [0], [0], [1], [0, 0, 1, 1], [], []>} : vector<2x128xbf16>, vector<128x128xbf16>, vector<2x128xf32> -> vector<2x128xf32>
    %276 = arith.addf %270, %275 : vector<2x128xf32>
    %277 = vector.extract_strided_slice %193 {offsets = [0, 3, 2, 0], sizes = [2, 1, 1, 128], strides = [1, 1, 1, 1]} : vector<2x4x4x128xbf16> to vector<2x1x1x128xbf16>
    %278 = vector.shape_cast %277 : vector<2x1x1x128xbf16> to vector<2x128xbf16>
    %c14 = arith.constant 14 : index
    %c0_280 = arith.constant 0 : index
    %c0_281 = arith.constant 0 : index
    %279 = vector.load %arg8[%c14, %c0_280, %c0_281] : memref<16x128x128xbf16, #tpu.memory_space<vmem>>, vector<1x128x128xbf16>
    %280 = vector.shape_cast %279 : vector<1x128x128xbf16> to vector<128x128xbf16>
    %cst_282 = arith.constant dense<0.000000e+00> : vector<2x128xf32>
    %281 = tpu.matmul %278, %280, %cst_282 {dimension_numbers = #tpu.dot_dimension_numbers<[1], [0], [0], [1], [0, 0, 1, 1], [], []>} : vector<2x128xbf16>, vector<128x128xbf16>, vector<2x128xf32> -> vector<2x128xf32>
    %282 = arith.addf %276, %281 : vector<2x128xf32>
    %283 = vector.extract_strided_slice %193 {offsets = [0, 3, 3, 0], sizes = [2, 1, 1, 128], strides = [1, 1, 1, 1]} : vector<2x4x4x128xbf16> to vector<2x1x1x128xbf16>
    %284 = vector.shape_cast %283 : vector<2x1x1x128xbf16> to vector<2x128xbf16>
    %c15 = arith.constant 15 : index
    %c0_283 = arith.constant 0 : index
    %c0_284 = arith.constant 0 : index
    %285 = vector.load %arg8[%c15, %c0_283, %c0_284] : memref<16x128x128xbf16, #tpu.memory_space<vmem>>, vector<1x128x128xbf16>
    %286 = vector.shape_cast %285 : vector<1x128x128xbf16> to vector<128x128xbf16>
    %cst_285 = arith.constant dense<0.000000e+00> : vector<2x128xf32>
    %287 = tpu.matmul %284, %286, %cst_285 {dimension_numbers = #tpu.dot_dimension_numbers<[1], [0], [0], [1], [0, 0, 1, 1], [], []>} : vector<2x128xbf16>, vector<128x128xbf16>, vector<2x128xf32> -> vector<2x128xf32>
    %288 = arith.addf %282, %287 : vector<2x128xf32>
    %c0_286 = arith.constant 0 : index
    %c0_287 = arith.constant 0 : index
    %289 = vector.load %arg9[%c0_286, %c0_287] : memref<1x128xf32, #tpu.memory_space<vmem>>, vector<1x128xf32>
    %290 = vector.broadcast %289 : vector<1x128xf32> to vector<2x128xf32>
    %291 = arith.addf %288, %290 : vector<2x128xf32>
    %c0_288 = arith.constant 0 : index
    %c0_289 = arith.constant 0 : index
    %292 = vector.load %arg10[%c0_288, %c0_289] : memref<2x128xf32, #tpu.memory_space<vmem>>, vector<2x128xf32>
    tpu.vector_store %arg10[%c0_288, %c0_289], %291 {strides = array<i32>} : memref<2x128xf32, #tpu.memory_space<vmem>>, vector<2x128xf32>,
    return
  }
  func.func @transform_0(%arg0: i32) -> (i32, i32) {
    %c0_i32 = arith.constant 0 : i32
    %c0_i32_0 = arith.constant 0 : i32
    return %arg0, %c0_i32 : i32, i32
  }
  func.func @transform_1(%arg0: i32) -> (i32, i32) {
    %c0_i32 = arith.constant 0 : i32
    %c0_i32_0 = arith.constant 0 : i32
    %c0_i32_1 = arith.constant 0 : i32
    return %c0_i32, %c0_i32_0 : i32, i32
  }
  func.func @transform_2(%arg0: i32) -> (i32, i32) {
    %c0_i32 = arith.constant 0 : i32
    %c0_i32_0 = arith.constant 0 : i32
    %c0_i32_1 = arith.constant 0 : i32
    return %c0_i32, %c0_i32_0 : i32, i32
  }
  func.func @transform_3(%arg0: i32) -> (i32, i32, i32) {
    %c0_i32 = arith.constant 0 : i32
    %c0_i32_0 = arith.constant 0 : i32
    %c0_i32_1 = arith.constant 0 : i32
    %c0_i32_2 = arith.constant 0 : i32
    return %c0_i32, %c0_i32_0, %c0_i32_1 : i32, i32, i32
  }
  func.func @transform_4(%arg0: i32) -> (i32, i32) {
    %c0_i32 = arith.constant 0 : i32
    %c0_i32_0 = arith.constant 0 : i32
    %c0_i32_1 = arith.constant 0 : i32
    return %c0_i32, %c0_i32_0 : i32, i32
  }
  func.func @transform_5(%arg0: i32) -> (i32, i32, i32) {
    %c0_i32 = arith.constant 0 : i32
    %c0_i32_0 = arith.constant 0 : i32
    %c0_i32_1 = arith.constant 0 : i32
    %c0_i32_2 = arith.constant 0 : i32
    return %c0_i32, %c0_i32_0, %c0_i32_1 : i32, i32, i32
  }
  func.func @transform_6(%arg0: i32) -> (i32, i32) {
    %c0_i32 = arith.constant 0 : i32
    %c0_i32_0 = arith.constant 0 : i32
    %c0_i32_1 = arith.constant 0 : i32
    return %c0_i32, %c0_i32_0 : i32, i32
  }
  func.func @transform_7(%arg0: i32) -> (i32, i32, i32) {
    %c0_i32 = arith.constant 0 : i32
    %c0_i32_0 = arith.constant 0 : i32
    %c0_i32_1 = arith.constant 0 : i32
    %c0_i32_2 = arith.constant 0 : i32
    return %c0_i32, %c0_i32_0, %c0_i32_1 : i32, i32, i32
  }
  func.func @transform_8(%arg0: i32) -> (i32, i32) {
    %c0_i32 = arith.constant 0 : i32
    %c0_i32_0 = arith.constant 0 : i32
    %c0_i32_1 = arith.constant 0 : i32
    return %c0_i32, %c0_i32_0 : i32, i32
  }
  func.func @transform_9(%arg0: i32) -> (i32, i32) {
    %c0_i32 = arith.constant 0 : i32
    %c0_i32_0 = arith.constant 0 : i32
    return %arg0, %c0_i32 : i32, i32
  }
}

</mosaic_0001>

<bundles_post_ra>
// kernel: cifar10_net.1
= control target key start
LH: loop header
LB: loop body
LE: loop exit
PB: predicated region body
PF: predicated region fallthrough
CT: control target
= control target key end

     0   :  { %vm1334_vm0 = vcmask 1044480   ;;  %vm1335_vm1 = vcmask 1045504   ;;  %v13156_v3 = vmov 65535   ;;  %s16683_s0 = inlined_call_operand.vmem [shape: bf16[2048,27], index: 0, kind: input, shape index: {}]   ;;  %s16684_s1 = inlined_call_operand.vmem [shape: bf16[27,64], index: 1, kind: input, shape index: {}]   ;;  %s16685_s2 = inlined_call_operand.vmem [shape: f32[1,64], index: 2, kind: input, shape index: {}]   ;;  %s16686_s3 = inlined_call_operand.vmem [shape: bf16[9,64,128], index: 3, kind: input, shape index: {}]   ;;  %s16687_s4 = inlined_call_operand.vmem [shape: f32[1,128], index: 4, kind: input, shape index: {}]   ;;  %s16688_s5 = inlined_call_operand.vmem [shape: bf16[9,128,128], index: 5, kind: input, shape index: {}]   ;;  %s16689_s6 = inlined_call_operand.vmem [shape: f32[1,128], index: 6, kind: input, shape index: {}]   ;;  %s16690_s7 = inlined_call_operand.vmem [shape: bf16[16,128,128], index: 7, kind: input, shape index: {}]   ;;  %s16691_s8 = inlined_call_operand.vmem [shape: f32[1,128], index: 8, kind: input, shape index: {}]   ;;  %s16692_s9 = inlined_call_operand.hbm [shape: f32[2,128], index: 9, kind: output, shape index: {}]  }
   0x1   :  { %v10938_v0 = vld [vmem:[%s16684_s1 + $0x8] sm:$0xf]  ;;  %v12869_v1 = vld [vmem:[%s16684_s1 + $0x8] sm:$0x30]  ;;  %v1336_v4 = vsel %vm1334_vm0, 4294967295, %v13156_v3 }
   0x2   :  { %v10939_v2 = vor.u32 %v12869_v1, %v10938_v0  ;;  %v1337_v5 = vsel %vm1335_vm1, %v1336_v4, 0 }
   0x4   :  { %v1339_v6 = vand.u32 %v10939_v2, %v1337_v5 }
   0x5   :  { %14 = vsyncpa [#allocation8], 0  ;;  %v12868_v7 = vld [vmem:[%s16684_s1] sm:$0xff]  ;;  %vm949_vm2 = vcmask 220160   ;;  %v12741_v9 = vld [vmem:[%s16683_s0 + $0x8] sm:$0xff]  ;;  %vm1990_vm3 = vcmask 523264  }
   0x6   :  { %1347 = vmatpush.bf16.msra.mxu0 %v1339_v6  ;;  %v12740_v8 = vld [vmem:[%s16683_s0] sm:$0xff]  ;;  %v12742_v10 = vld [vmem:[%s16683_s0 + $0x10] sm:$0xff]  ;;  %v12743_v11 = vld [vmem:[%s16683_s0 + $0x18] sm:$0xff]  ;;  %v13157_v33 = vmov 0.0   ;;  %vm9074_vm4 = vcmask 1041409   ;;  %s13158_s27 = smov [#allocation7]  }
   0x7   :  { %v12744_v12 = vld [vmem:[%s16683_s0 + $0x20] sm:$0xff]  ;;  %v12745_v13 = vld [vmem:[%s16683_s0 + $0x28] sm:$0xff]  ;;  %v12746_v14 = vld [vmem:[%s16683_s0 + $0x30] sm:$0xff]  ;;  %3015 = vst.msk [vmem:[#allocation3 + $0x8] sm:$0xff] %vm1990_vm3, %v13157_v33 }
   0x8   :  { %v12747_v15 = vld [vmem:[%s16683_s0 + $0x38] sm:$0xff]  ;;  %v13253_v16 = vld [vmem:[%s16685_s2] ss:$0 sm:$0xff]  ;;  %v12749_v22 = vld [vmem:[%s16683_s0 + $0x48] sm:$0xff]  ;;  %3016 = vst.msk [vmem:[#allocation3 + $0x10] sm:$0xff] %vm1990_vm3, %v13157_v33 }
   0x9   :  { %v12748_v17 = vld [vmem:[%s16683_s0 + $0x40] sm:$0xff]  ;;  %v12877_v25 = vld [vmem:[%s16686_s3 + $0x38] sm:$0xff]  ;;  %v12876_v28 = vld [vmem:[%s16686_s3 + $0x30] sm:$0xff]  ;;  %3014 = vst.msk [vmem:[#allocation3] sm:$0xff] %vm1990_vm3, %v13157_v33 }
   0xa   :  { %1348 = vmatpush.bf16.msra.mxu0 %v12868_v7  ;;  %v12873_v26 = vld [vmem:[%s16686_s3 + $0x18] sm:$0xff]  ;;  %3493 = vmatpush.bf16.msra.mxu1 %v12877_v25  ;;  %v12872_v29 = vld [vmem:[%s16686_s3 + $0x10] sm:$0xff]  ;;  %v12875_v34 = vld [vmem:[%s16686_s3 + $0x28] sm:$0xff]  ;;  %3017 = vst.msk [vmem:[#allocation3 + $0x18] sm:$0xff] %vm1990_vm3, %v13157_v33 }
   0xb   :  { %v12881_v27 = vld [vmem:[%s16686_s3 + $0x58] sm:$0xff]  ;;  %3782 = vmatpush.bf16.msra.mxu2 %v12873_v26  ;;  %v12880_v30 = vld [vmem:[%s16686_s3 + $0x50] sm:$0xff]  ;;  %v12871_v35 = vld [vmem:[%s16686_s3 + $0x8] sm:$0xff]  ;;  %3018 = vst.msk [vmem:[#allocation3 + $0x240] sm:$0xff] %vm1990_vm3, %v13157_v33 }
   0xc   :  { %4176 = vmatpush.bf16.msra.mxu3 %v12881_v27  ;;  %v12879_v36 = vld [vmem:[%s16686_s3 + $0x48] sm:$0xff]  ;;  %v12874_v37 = vld [vmem:[%s16686_s3 + $0x20] sm:$0xff]  ;;  %v12750_v40 = vld [vmem:[%s16683_s0 + $0x50] sm:$0xff]  ;;  %3019 = vst.msk [vmem:[#allocation3 + $0x248] sm:$0xff] %vm1990_vm3, %v13157_v33 }
   0xd   :  { %10940 = vmatmul.msk.bf16.vlgmr.msra.gmra.mxu0 %vm949_vm2, %v12740_v8  ;;  %v12870_v38 = vld [vmem:[%s16686_s3] sm:$0xff]  ;;  %3020 = vst.msk [vmem:[#allocation3 + $0x250] sm:$0xff] %vm1990_vm3, %v13157_v33  ;;  %v12751_v54 = vld [vmem:[%s16683_s0 + $0x58] sm:$0xff]  ;;  %v12753_v0 = vld [vmem:[%s16683_s0 + $0x68] sm:$0xff] }
   0xe   :  { %3494 = vmatpush.bf16.msra.mxu1 %v12876_v28  ;;  %v12878_v39 = vld [vmem:[%s16686_s3 + $0x40] sm:$0xff]  ;;  %v3264_v42 = vld [vmem:[#allocation3 + $0x8] sm:$0xff]  ;;  %3021 = vst.msk [vmem:[#allocation3 + $0x258] sm:$0xff] %vm1990_vm3, %v13157_v33  ;;  %v12754_v6 = vld [vmem:[%s16683_s0 + $0x70] sm:$0xff] }
   0xf   :  { %3783 = vmatpush.bf16.msra.mxu2 %v12872_v29  ;;  %v3265_v44 = vld [vmem:[#allocation3 + $0x10] sm:$0xff]  ;;  %3023 = vst.msk [vmem:[#allocation3 + $0x220] sm:$0xff] %vm1990_vm3, %v13157_v33  ;;  %v12752_v59 = vld [vmem:[%s16683_s0 + $0x60] sm:$0xff]  ;;  %v12755_v27 = vld [vmem:[%s16683_s0 + $0x78] sm:$0xff] }
  0x10   :  { %4177 = vmatpush.bf16.msra.mxu3 %v12880_v30  ;;  %v3328_v45 = vpack.c.bf16 %v3265_v44, %v3264_v42  ;;  %3024 = vst.msk [vmem:[#allocation3 + $0x228] sm:$0xff] %vm1990_vm3, %v13157_v33  ;;  %v3160_v46 = vld [vmem:[#allocation3 + $0x7] sm:$0xff]  ;;  %v3161_v47 = vld [vmem:[#allocation3 + $0xf] sm:$0xff] }
  0x11   :  { %3025 = vst.msk [vmem:[#allocation3 + $0x230] sm:$0xff] %vm1990_vm3, %v13157_v33  ;;  %v3947_v48 = vld [vmem:[#allocation3 + $0x9] sm:$0xff]  ;;  %v3224_v49 = vpack.c.bf16 %v3161_v47, %v3160_v46  ;;  %v3948_v50 = vld [vmem:[#allocation3 + $0x11] sm:$0xff] }
  0x12   :  { %3495 = vmatpush.bf16.msra.mxu1 %v12875_v34  ;;  %3026 = vst.msk [vmem:[#allocation3 + $0x238] sm:$0xff] %vm1990_vm3, %v13157_v33  ;;  %v4011_v52 = vpack.c.bf16 %v3948_v50, %v3947_v48 }
  0x13   :  { %3784 = vmatpush.bf16.msra.mxu2 %v12871_v35  ;;  %3027 = vst.msk [vmem:[#allocation3 + $0x460] sm:$0xff] %vm1990_vm3, %v13157_v33 }
  0x14   :  { %4178 = vmatpush.bf16.msra.mxu3 %v12879_v36  ;;  %3028 = vst.msk [vmem:[#allocation3 + $0x468] sm:$0xff] %vm1990_vm3, %v13157_v33 }
  0x15   :  { %3029 = vst.msk [vmem:[#allocation3 + $0x470] sm:$0xff] %vm1990_vm3, %v13157_v33 }
  0x16   :  { %3496 = vmatpush.bf16.msra.mxu1 %v12874_v37  ;;  %3030 = vst.msk [vmem:[#allocation3 + $0x478] sm:$0xff] %vm1990_vm3, %v13157_v33 }
  0x17   :  { %3785 = vmatpush.bf16.msra.mxu2 %v12870_v38  ;;  %3032 = vst.msk [vmem:[#allocation3 + $0x20] sm:$0xff] %vm1990_vm3, %v13157_v33 }
  0x18   :  { %4179 = vmatpush.bf16.msra.mxu3 %v12878_v39  ;;  %3033 = vst.msk [vmem:[#allocation3 + $0x40] sm:$0xff] %vm1990_vm3, %v13157_v33 }
  0x19   :  { %11092 = vmatmul.msk.bf16.vlgmr.msra.gmra.mxu1 %vm1990_vm3, %v3328_v45  ;;  %3034 = vst.msk [vmem:[#allocation3 + $0x60] sm:$0xff] %vm1990_vm3, %v13157_v33 }
  0x1a   :  { %11140 = vmatmul.msk.bf16.vlgmr.msra.gmra.mxu2 %vm1990_vm3, %v3224_v49  ;;  %3035 = vst.msk [vmem:[#allocation3 + $0x80] sm:$0xff] %vm1990_vm3, %v13157_v33  ;;  %v12756_v49 = vld [vmem:[%s16683_s0 + $0x80] sm:$0xff] }
  0x1b   :  { %11196 = vmatmul.msk.bf16.vlgmr.msra.gmra.mxu3 %vm1990_vm3, %v4011_v52  ;;  %3036 = vst.msk [vmem:[#allocation3 + $0xa0] sm:$0xff] %vm1990_vm3, %v13157_v33 }
  0x1c   :  { %3037 = vst.msk [vmem:[#allocation3 + $0xc0] sm:$0xff] %vm1990_vm3, %v13157_v33 }
  0x1d   :  { %10941 = vmatmul.msk.bf16.gmra.mxu0 %vm949_vm2, %v12741_v9  ;;  %3038 = vst.msk [vmem:[#allocation3 + $0xe0] sm:$0xff] %vm1990_vm3, %v13157_v33 }
  0x1e   :  { %3039 = vst.msk [vmem:[#allocation3 + $0x100] sm:$0xff] %vm1990_vm3, %v13157_v33 }
  0x1f   :  { %3040 = vst.msk [vmem:[#allocation3 + $0x120] sm:$0xff] %vm1990_vm3, %v13157_v33 }
  0x20   :  { %3041 = vst.msk [vmem:[#allocation3 + $0x140] sm:$0xff] %vm1990_vm3, %v13157_v33 }
  0x21   :  { %3042 = vst.msk [vmem:[#allocation3 + $0x160] sm:$0xff] %vm1990_vm3, %v13157_v33 }
  0x22   :  { %3043 = vst.msk [vmem:[#allocation3 + $0x180] sm:$0xff] %vm1990_vm3, %v13157_v33 }
  0x23   :  { %3044 = vst.msk [vmem:[#allocation3 + $0x1a0] sm:$0xff] %vm1990_vm3, %v13157_v33 }
  0x24   :  { %3045 = vst.msk [vmem:[#allocation3 + $0x1c0] sm:$0xff] %vm1990_vm3, %v13157_v33 }
  0x25   :  { %3046 = vst.msk [vmem:[#allocation3 + $0x1e0] sm:$0xff] %vm1990_vm3, %v13157_v33 }
  0x26   :  { %3047 = vst.msk [vmem:[#allocation3 + $0x200] sm:$0xff] %vm1990_vm3, %v13157_v33 }
  0x27   :  { %3048 = vst.msk [vmem:[#allocation3 + $0x260] sm:$0xff] %vm1990_vm3, %v13157_v33 }
  0x28   :  { %3049 = vst.msk [vmem:[#allocation3 + $0x280] sm:$0xff] %vm1990_vm3, %v13157_v33 }
  0x29   :  { %3050 = vst.msk [vmem:[#allocation3 + $0x2a0] sm:$0xff] %vm1990_vm3, %v13157_v33 }
  0x2a   :  { %3051 = vst.msk [vmem:[#allocation3 + $0x2c0] sm:$0xff] %vm1990_vm3, %v13157_v33 }
  0x2b   :  { %3052 = vst.msk [vmem:[#allocation3 + $0x2e0] sm:$0xff] %vm1990_vm3, %v13157_v33 }
  0x2c   :  { %3053 = vst.msk [vmem:[#allocation3 + $0x300] sm:$0xff] %vm1990_vm3, %v13157_v33 }
  0x2d   :  { %10942 = vmatmul.msk.bf16.gmra.mxu0 %vm949_vm2, %v12742_v10  ;;  %3054 = vst.msk [vmem:[#allocation3 + $0x320] sm:$0xff] %vm1990_vm3, %v13157_v33 }
  0x2e   :  { %3055 = vst.msk [vmem:[#allocation3 + $0x340] sm:$0xff] %vm1990_vm3, %v13157_v33 }
  0x2f   :  { %3056 = vst.msk [vmem:[#allocation3 + $0x360] sm:$0xff] %vm1990_vm3, %v13157_v33 }
  0x30   :  { %3057 = vst.msk [vmem:[#allocation3 + $0x380] sm:$0xff] %vm1990_vm3, %v13157_v33 }
  0x31   :  { %3058 = vst.msk [vmem:[#allocation3 + $0x3a0] sm:$0xff] %vm1990_vm3, %v13157_v33 }
  0x32   :  { %3059 = vst.msk [vmem:[#allocation3 + $0x3c0] sm:$0xff] %vm1990_vm3, %v13157_v33 }
  0x33   :  { %3060 = vst.msk [vmem:[#allocation3 + $0x3e0] sm:$0xff] %vm1990_vm3, %v13157_v33 }
  0x34   :  { %3061 = vst.msk [vmem:[#allocation3 + $0x400] sm:$0xff] %vm1990_vm3, %v13157_v33 }
  0x35   :  { %3062 = vst.msk [vmem:[#allocation3 + $0x420] sm:$0xff] %vm1990_vm3, %v13157_v33 }
  0x36   :  { %3063 = vst.msk [vmem:[#allocation3 + $0x440] sm:$0xff] %vm1990_vm3, %v13157_v33 }
  0x37   :  { %3064 = vst.msk [vmem:[#allocation3 + $0x38] sm:$0xff] %vm1990_vm3, %v13157_v33 }
  0x38   :  { %3065 = vst.msk [vmem:[#allocation3 + $0x58] sm:$0xff] %vm1990_vm3, %v13157_v33 }
  0x39   :  { %3066 = vst.msk [vmem:[#allocation3 + $0x78] sm:$0xff] %vm1990_vm3, %v13157_v33 }
  0x3a   :  { %3067 = vst.msk [vmem:[#allocation3 + $0x98] sm:$0xff] %vm1990_vm3, %v13157_v33 }
  0x3b   :  { %3068 = vst.msk [vmem:[#allocation3 + $0xb8] sm:$0xff] %vm1990_vm3, %v13157_v33 }
  0x3c   :  { %3069 = vst.msk [vmem:[#allocation3 + $0xd8] sm:$0xff] %vm1990_vm3, %v13157_v33 }
  0x3d   :  { %10943 = vmatmul.msk.bf16.gmra.mxu0 %vm949_vm2, %v12743_v11  ;;  %3070 = vst.msk [vmem:[#allocation3 + $0xf8] sm:$0xff] %vm1990_vm3, %v13157_v33 }
  0x3e   :  { %3071 = vst.msk [vmem:[#allocation3 + $0x118] sm:$0xff] %vm1990_vm3, %v13157_v33 }
  0x3f   :  { %3072 = vst.msk [vmem:[#allocation3 + $0x138] sm:$0xff] %vm1990_vm3, %v13157_v33 }
  0x40   :  { %3073 = vst.msk [vmem:[#allocation3 + $0x158] sm:$0xff] %vm1990_vm3, %v13157_v33 }
  0x41   :  { %3074 = vst.msk [vmem:[#allocation3 + $0x178] sm:$0xff] %vm1990_vm3, %v13157_v33 }
  0x42   :  { %3075 = vst.msk [vmem:[#allocation3 + $0x198] sm:$0xff] %vm1990_vm3, %v13157_v33 }
  0x43   :  { %3076 = vst.msk [vmem:[#allocation3 + $0x1b8] sm:$0xff] %vm1990_vm3, %v13157_v33 }
  0x44   :  { %3077 = vst.msk [vmem:[#allocation3 + $0x1d8] sm:$0xff] %vm1990_vm3, %v13157_v33 }
  0x45   :  { %3078 = vst.msk [vmem:[#allocation3 + $0x1f8] sm:$0xff] %vm1990_vm3, %v13157_v33 }
  0x46   :  { %3079 = vst.msk [vmem:[#allocation3 + $0x218] sm:$0xff] %vm1990_vm3, %v13157_v33 }
  0x47   :  { %3080 = vst.msk [vmem:[#allocation3 + $0x278] sm:$0xff] %vm1990_vm3, %v13157_v33 }
  0x48   :  { %3081 = vst.msk [vmem:[#allocation3 + $0x298] sm:$0xff] %vm1990_vm3, %v13157_v33 }
  0x49   :  { %3082 = vst.msk [vmem:[#allocation3 + $0x2b8] sm:$0xff] %vm1990_vm3, %v13157_v33 }
  0x4a   :  { %3083 = vst.msk [vmem:[#allocation3 + $0x2d8] sm:$0xff] %vm1990_vm3, %v13157_v33 }
  0x4b   :  { %3084 = vst.msk [vmem:[#allocation3 + $0x2f8] sm:$0xff] %vm1990_vm3, %v13157_v33 }
  0x4c   :  { %3085 = vst.msk [vmem:[#allocation3 + $0x318] sm:$0xff] %vm1990_vm3, %v13157_v33 }
  0x4d   :  { %10944 = vmatmul.msk.bf16.gmra.mxu0 %vm949_vm2, %v12744_v12  ;;  %3086 = vst.msk [vmem:[#allocation3 + $0x338] sm:$0xff] %vm1990_vm3, %v13157_v33 }
  0x4e   :  { %3087 = vst.msk [vmem:[#allocation3 + $0x358] sm:$0xff] %vm1990_vm3, %v13157_v33 }
  0x4f   :  { %3088 = vst.msk [vmem:[#allocation3 + $0x378] sm:$0xff] %vm1990_vm3, %v13157_v33 }
  0x50   :  { %3089 = vst.msk [vmem:[#allocation3 + $0x398] sm:$0xff] %vm1990_vm3, %v13157_v33 }
  0x51   :  { %3090 = vst.msk [vmem:[#allocation3 + $0x3b8] sm:$0xff] %vm1990_vm3, %v13157_v33 }
  0x52   :  { %3091 = vst.msk [vmem:[#allocation3 + $0x3d8] sm:$0xff] %vm1990_vm3, %v13157_v33 }
  0x53   :  { %3092 = vst.msk [vmem:[#allocation3 + $0x3f8] sm:$0xff] %vm1990_vm3, %v13157_v33 }
  0x54   :  { %3093 = vst.msk [vmem:[#allocation3 + $0x418] sm:$0xff] %vm1990_vm3, %v13157_v33 }
  0x55   :  { %3094 = vst.msk [vmem:[#allocation3 + $0x438] sm:$0xff] %vm1990_vm3, %v13157_v33 }
  0x56   :  { %3095 = vst.msk [vmem:[#allocation3 + $0x458] sm:$0xff] %vm1990_vm3, %v13157_v33 }
  0x57   :  { %7477 = vst [vmem:[#allocation5] sm:$0xff] %v13157_v33 }
  0x58   :  { %7478 = vst [vmem:[#allocation5 + $0x8] sm:$0xff] %v13157_v33 }
  0x59   :  { %7479 = vst [vmem:[#allocation5 + $0x10] sm:$0xff] %v13157_v33 }
  0x5a   :  { %7480 = vst [vmem:[#allocation5 + $0xf0] sm:$0xff] %v13157_v33 }
  0x5b   :  { %7481 = vst [vmem:[#allocation5 + $0xf8] sm:$0xff] %v13157_v33 }
  0x5c   :  { %7482 = vst [vmem:[#allocation5 + $0x100] sm:$0xff] %v13157_v33 }
  0x5d   :  { %10945 = vmatmul.msk.bf16.gmra.mxu0 %vm949_vm2, %v12745_v13  ;;  %7484 = vst [vmem:[#allocation5 + $0xd8] sm:$0xff] %v13157_v33 }
  0x5e   :  { %7485 = vst [vmem:[#allocation5 + $0xe0] sm:$0xff] %v13157_v33 }
  0x5f   :  { %7486 = vst [vmem:[#allocation5 + $0xe8] sm:$0xff] %v13157_v33 }
  0x60   :  { %7487 = vst [vmem:[#allocation5 + $0x1c8] sm:$0xff] %v13157_v33 }
  0x61   :  { %7488 = vst [vmem:[#allocation5 + $0x1d0] sm:$0xff] %v13157_v33 }
  0x62   :  { %7489 = vst [vmem:[#allocation5 + $0x1d8] sm:$0xff] %v13157_v33 }
  0x63   :  { %7491 = vst [vmem:[#allocation5 + $0x18] sm:$0xff] %v13157_v33 }
  0x64   :  { %7492 = vst [vmem:[#allocation5 + $0x30] sm:$0xff] %v13157_v33 }
  0x65   :  { %7493 = vst [vmem:[#allocation5 + $0x48] sm:$0xff] %v13157_v33 }
  0x66   :  { %7494 = vst [vmem:[#allocation5 + $0x60] sm:$0xff] %v13157_v33 }
  0x67   :  { %7495 = vst [vmem:[#allocation5 + $0x78] sm:$0xff] %v13157_v33 }
  0x68   :  { %7496 = vst [vmem:[#allocation5 + $0x90] sm:$0xff] %v13157_v33 }
  0x69   :  { %7497 = vst [vmem:[#allocation5 + $0xa8] sm:$0xff] %v13157_v33 }
  0x6a   :  { %7498 = vst [vmem:[#allocation5 + $0xc0] sm:$0xff] %v13157_v33 }
  0x6b   :  { %7499 = vst [vmem:[#allocation5 + $0x108] sm:$0xff] %v13157_v33 }
  0x6c   :  { %7500 = vst [vmem:[#allocation5 + $0x120] sm:$0xff] %v13157_v33 }
  0x6d   :  { %10946 = vmatmul.msk.bf16.gmra.mxu0 %vm949_vm2, %v12746_v14  ;;  %7501 = vst [vmem:[#allocation5 + $0x138] sm:$0xff] %v13157_v33 }
  0x6e   :  { %7502 = vst [vmem:[#allocation5 + $0x150] sm:$0xff] %v13157_v33 }
  0x6f   :  { %7503 = vst [vmem:[#allocation5 + $0x168] sm:$0xff] %v13157_v33 }
  0x70   :  { %7504 = vst [vmem:[#allocation5 + $0x180] sm:$0xff] %v13157_v33 }
  0x71   :  { %7505 = vst [vmem:[#allocation5 + $0x198] sm:$0xff] %v13157_v33 }
  0x72   :  { %7506 = vst [vmem:[#allocation5 + $0x1b0] sm:$0xff] %v13157_v33 }
  0x73   :  { %7507 = vst [vmem:[#allocation5 + $0x28] sm:$0xff] %v13157_v33 }
  0x74   :  { %7508 = vst [vmem:[#allocation5 + $0x40] sm:$0xff] %v13157_v33 }
  0x75   :  { %7509 = vst [vmem:[#allocation5 + $0x58] sm:$0xff] %v13157_v33 }
  0x76   :  { %7510 = vst [vmem:[#allocation5 + $0x70] sm:$0xff] %v13157_v33 }
  0x77   :  { %7511 = vst [vmem:[#allocation5 + $0x88] sm:$0xff] %v13157_v33 }
  0x78   :  { %7512 = vst [vmem:[#allocation5 + $0xa0] sm:$0xff] %v13157_v33 }
  0x79   :  { %7513 = vst [vmem:[#allocation5 + $0xb8] sm:$0xff] %v13157_v33 }
  0x7a   :  { %7514 = vst [vmem:[#allocation5 + $0xd0] sm:$0xff] %v13157_v33 }
  0x7b   :  { %7515 = vst [vmem:[#allocation5 + $0x118] sm:$0xff] %v13157_v33 }
  0x7c   :  { %7516 = vst [vmem:[#allocation5 + $0x130] sm:$0xff] %v13157_v33 }
  0x7d   :  { %10947 = vmatmul.msk.bf16.gmra.mxu0 %vm949_vm2, %v12747_v15  ;;  %7517 = vst [vmem:[#allocation5 + $0x148] sm:$0xff] %v13157_v33 }
  0x7e   :  { %7518 = vst [vmem:[#allocation5 + $0x160] sm:$0xff] %v13157_v33 }
  0x7f   :  { %7519 = vst [vmem:[#allocation5 + $0x178] sm:$0xff] %v13157_v33 }
  0x80   :  { %7520 = vst [vmem:[#allocation5 + $0x190] sm:$0xff] %v13157_v33 }
  0x81   :  { %7521 = vst [vmem:[#allocation5 + $0x1a8] sm:$0xff] %v13157_v33 }
  0x82   :  { %7522 = vst [vmem:[#allocation5 + $0x1c0] sm:$0xff] %v13157_v33 }
  0x8a   :  { %v1350_v18 = vpop.f32.mrf.mxu0 }
  0x8b   :  { %v1351_v19 = vadd.f32 %v13253_v16, %v1350_v18 }
  0x8d   :  { %1991 = vst.msk [vmem:[#allocation2] sm:$0xff] %vm1990_vm3, %v1351_v19  ;;  %10948 = vmatmul.msk.bf16.gmra.mxu0 %vm949_vm2, %v12748_v17 }
  0x92   :  { %v1352_v20 = vpop.f32.mrf.mxu0 }
  0x93   :  { %v1353_v21 = vadd.f32 %v13253_v16, %v1352_v20 }
  0x95   :  { %1992 = vst.msk [vmem:[#allocation2 + $0x8] sm:$0xff] %vm1990_vm3, %v1353_v21 }
  0x9a   :  { %v1355_v23 = vpop.f32.mrf.mxu0 }
  0x9b   :  { %v1356_v24 = vadd.f32 %v13253_v16, %v1355_v23 }
  0x9c   :  { %v2247_v7 = vld [vmem:[#allocation2] ss:$2 sm:$0xff]  ;;  %v2503_v8 = vld [vmem:[#allocation2 + $0x1] ss:$2 sm:$0xff] }
  0x9d   :  { %1993 = vst.msk [vmem:[#allocation2 + $0x10] sm:$0xff] %vm1990_vm3, %v1356_v24  ;;  %10949 = vmatmul.msk.bf16.gmra.mxu0 %vm949_vm2, %v12749_v22  ;;  %v2758_v14 = vmax.f32 %v2247_v7, %v2503_v8 }
  0xa2   :  { %v1357_v31 = vpop.f32.mrf.mxu0 }
  0xa3   :  { %v1358_v32 = vadd.f32 %v13253_v16, %v1357_v31 }
  0xa5   :  { %1994 = vst.msk [vmem:[#allocation2 + $0x18] sm:$0xff] %vm1990_vm3, %v1358_v32 }
  0xaa   :  { %v1360_v41 = vpop.f32.mrf.mxu0 }
  0xab   :  { %v1361_v43 = vadd.f32 %v13253_v16, %v1360_v41 }
  0xac   :  { %v2249_v9 = vld [vmem:[#allocation2 + $0x10] ss:$2 sm:$0xff]  ;;  %v2505_v10 = vld [vmem:[#allocation2 + $0x11] ss:$2 sm:$0xff] }
  0xad   :  { %1995 = vst.msk [vmem:[#allocation2 + $0x20] sm:$0xff] %vm1990_vm3, %v1361_v43  ;;  %10950 = vmatmul.msk.bf16.gmra.mxu0 %vm949_vm2, %v12750_v40  ;;  %v2759_v15 = vmax.f32 %v2249_v9, %v2505_v10 }
  0xb2   :  { %v1362_v51 = vpop.f32.mrf.mxu0 }
  0xb3   :  { %v1363_v53 = vadd.f32 %v13253_v16, %v1362_v51 }
  0xb5   :  { %1996 = vst.msk [vmem:[#allocation2 + $0x28] sm:$0xff] %vm1990_vm3, %v1363_v53 }
  0xba   :  { %v1365_v55 = vpop.f32.mrf.mxu0 }
  0xbb   :  { %v1366_v56 = vadd.f32 %v13253_v16, %v1365_v55 }
  0xbc   :  { %v2251_v2 = vld [vmem:[#allocation2 + $0x20] ss:$2 sm:$0xff]  ;;  %v2507_v3 = vld [vmem:[#allocation2 + $0x21] ss:$2 sm:$0xff] }
  0xbd   :  { %1997 = vst.msk [vmem:[#allocation2 + $0x30] sm:$0xff] %vm1990_vm3, %v1366_v56  ;;  %10951 = vmatmul.msk.bf16.gmra.mxu0 %vm949_vm2, %v12751_v54  ;;  %v2760_v11 = vmax.f32 %v2251_v2, %v2507_v3 }
  0xbf   :  { %v2886_v17 = vmax.f32 %v2758_v14, %v2760_v11 }
  0xc1   :  { %v2950_v21 = vmax.f32 %v2886_v17, 0.0  ;;  %v3787_v17 = vpop.f32.mrf.mxu2 }
  0xc2   :  { %v1367_v57 = vpop.f32.mrf.mxu0 }
  0xc3   :  { %v1368_v58 = vadd.f32 %v13253_v16, %v1367_v57  ;;  %3096 = vst.msk [vmem:[#allocation3 + $0x28] sm:$0xff] %vm1990_vm3, %v2950_v21 }
  0xc5   :  { %1998 = vst.msk [vmem:[#allocation2 + $0x38] sm:$0xff] %vm1990_vm3, %v1368_v58 }
  0xca   :  { %v1370_v60 = vpop.f32.mrf.mxu0  ;;  %v3266_v30 = vld [vmem:[#allocation3 + $0x28] sm:$0xff] }
  0xcb   :  { %v1371_v61 = vadd.f32 %v13253_v16, %v1370_v60  ;;  %v3162_v31 = vld [vmem:[#allocation3 + $0x27] sm:$0xff] }
  0xcc   :  { %v2253_v4 = vld [vmem:[#allocation2 + $0x30] ss:$2 sm:$0xff]  ;;  %v2509_v5 = vld [vmem:[#allocation2 + $0x31] ss:$2 sm:$0xff] }
  0xcd   :  { %1999 = vst.msk [vmem:[#allocation2 + $0x40] sm:$0xff] %vm1990_vm3, %v1371_v61  ;;  %10952 = vmatmul.msk.bf16.gmra.mxu0 %vm949_vm2, %v12752_v59  ;;  %v2761_v13 = vmax.f32 %v2253_v4, %v2509_v5 }
  0xcf   :  { %v2887_v18 = vmax.f32 %v2759_v15, %v2761_v13  ;;  %v3498_v15 = vpop.f32.mrf.mxu1 }
  0xd1   :  { %v2951_v23 = vmax.f32 %v2887_v18, 0.0  ;;  %v3788_v18 = vadd.f32 %v3787_v17, %v3498_v15 }
  0xd2   :  { %v1372_v62 = vpop.f32.mrf.mxu0 }
  0xd3   :  { %v1373_v19 = vadd.f32 %v13253_v16, %v1372_v62  ;;  %3097 = vst.msk [vmem:[#allocation3 + $0x30] sm:$0xff] %vm1990_vm3, %v2951_v23  ;;  %v12757_v62 = vld [vmem:[%s16683_s0 + $0x88] sm:$0xff]  ;;  %v12759_v23 = vld [vmem:[%s16683_s0 + $0x98] sm:$0xff] }
  0xd5   :  { %2000 = vst.msk [vmem:[#allocation2 + $0x48] sm:$0xff] %vm1990_vm3, %v1373_v19  ;;  %v4181_v19 = vpop.f32.mrf.mxu3 }
  0xd6   :  { %v13594_v21 = vadd.f32 %v4181_v19, %v3788_v18 }
  0xda   :  { %v1375_v63 = vpop.f32.mrf.mxu0  ;;  %v3267_v32 = vld [vmem:[#allocation3 + $0x30] sm:$0xff] }
  0xdb   :  { %v1376_v20 = vadd.f32 %v13253_v16, %v1375_v63  ;;  %v3163_v33 = vld [vmem:[#allocation3 + $0x2f] sm:$0xff]  ;;  %v3329_v37 = vpack.c.bf16 %v3267_v32, %v3266_v30 }
  0xdc   :  { %v3949_v34 = vld [vmem:[#allocation3 + $0x29] sm:$0xff]  ;;  %v3225_v38 = vpack.c.bf16 %v3163_v33, %v3162_v31  ;;  %v3950_v39 = vld [vmem:[#allocation3 + $0x31] sm:$0xff] }
  0xdd   :  { %10953 = vmatmul.msk.bf16.gmra.mxu0 %vm949_vm2, %v12753_v0  ;;  %2001 = vst.msk [vmem:[#allocation2 + $0x50] sm:$0xff] %vm1990_vm3, %v1376_v20  ;;  %v2255_v35 = vld [vmem:[#allocation2 + $0x40] ss:$2 sm:$0xff]  ;;  %v2511_v36 = vld [vmem:[#allocation2 + $0x41] ss:$2 sm:$0xff]  ;;  %v4012_v40 = vpack.c.bf16 %v3950_v39, %v3949_v34  ;;  %11093 = vmatmul.msk.bf16.gmra.mxu1 %vm1990_vm3, %v3329_v37 }
  0xde   :  { %11141 = vmatmul.msk.bf16.gmra.mxu2 %vm1990_vm3, %v3225_v38  ;;  %v2762_v43 = vmax.f32 %v2255_v35, %v2511_v36 }
  0xdf   :  { %11197 = vmatmul.msk.bf16.gmra.mxu3 %vm1990_vm3, %v4012_v40 }
  0xe2   :  { %v1377_v1 = vpop.f32.mrf.mxu0 }
  0xe3   :  { %v1378_v24 = vadd.f32 %v13253_v16, %v1377_v1 }
  0xe5   :  { %2002 = vst.msk [vmem:[#allocation2 + $0x58] sm:$0xff] %vm1990_vm3, %v1378_v24 }
  0xea   :  { %v1380_v12 = vpop.f32.mrf.mxu0 }
  0xeb   :  { %v1381_v25 = vadd.f32 %v13253_v16, %v1380_v12  ;;  %v12758_v12 = vld [vmem:[%s16683_s0 + $0x90] sm:$0xff] }
  0xec   :  { %v2257_v50 = vld [vmem:[#allocation2 + $0x50] ss:$2 sm:$0xff]  ;;  %v2513_v51 = vld [vmem:[#allocation2 + $0x51] ss:$2 sm:$0xff] }
  0xed   :  { %10954 = vmatmul.msk.bf16.gmra.mxu0 %vm949_vm2, %v12754_v6  ;;  %2003 = vst.msk [vmem:[#allocation2 + $0x60] sm:$0xff] %vm1990_vm3, %v1381_v25  ;;  %v2763_v56 = vmax.f32 %v2257_v50, %v2513_v51  ;;  %v12761_v50 = vld [vmem:[%s16683_s0 + $0xa8] sm:$0xff] }
  0xf2   :  { %v1382_v22 = vpop.f32.mrf.mxu0 }
  0xf3   :  { %v1383_v26 = vadd.f32 %v13253_v16, %v1382_v22 }
  0xf5   :  { %2004 = vst.msk [vmem:[#allocation2 + $0x68] sm:$0xff] %vm1990_vm3, %v1383_v26 }
  0xfa   :  { %v1385_v28 = vpop.f32.mrf.mxu0 }
  0xfb   :  { %v1386_v29 = vadd.f32 %v13253_v16, %v1385_v28  ;;  %v12760_v28 = vld [vmem:[%s16683_s0 + $0xa0] sm:$0xff] }
  0xfc   :  { %v2259_v41 = vld [vmem:[#allocation2 + $0x60] ss:$2 sm:$0xff]  ;;  %v2515_v42 = vld [vmem:[#allocation2 + $0x61] ss:$2 sm:$0xff] }
  0xfd   :  { %10955 = vmatmul.msk.bf16.gmra.mxu0 %vm949_vm2, %v12755_v27  ;;  %2005 = vst.msk [vmem:[#allocation2 + $0x70] sm:$0xff] %vm1990_vm3, %v1386_v29  ;;  %v2764_v44 = vmax.f32 %v2259_v41, %v2515_v42 }
  0xff   :  { %v2888_v47 = vmax.f32 %v2762_v43, %v2764_v44 }
 0x101   :  { %v2952_v48 = vmax.f32 %v2888_v47, 0.0 }
 0x102   :  { %v1387_v45 = vpop.f32.mrf.mxu0 }
 0x103   :  { %v1388_v46 = vadd.f32 %v13253_v16, %v1387_v45  ;;  %3098 = vst.msk [vmem:[#allocation3 + $0x48] sm:$0xff] %vm1990_vm3, %v2952_v48 }
 0x105   :  { %2006 = vst.msk [vmem:[#allocation2 + $0x78] sm:$0xff] %vm1990_vm3, %v1388_v46 }
 0x10a   :  { %v1390_v52 = vpop.f32.mrf.mxu0  ;;  %v3268_v63 = vld [vmem:[#allocation3 + $0x48] sm:$0xff] }
 0x10b   :  { %v1391_v53 = vadd.f32 %v13253_v16, %v1390_v52  ;;  %v3164_v0 = vld [vmem:[#allocation3 + $0x47] sm:$0xff] }
 0x10c   :  { %v2261_v54 = vld [vmem:[#allocation2 + $0x70] ss:$2 sm:$0xff]  ;;  %v2517_v55 = vld [vmem:[#allocation2 + $0x71] ss:$2 sm:$0xff] }
 0x10d   :  { %10956 = vmatmul.msk.bf16.gmra.mxu0 %vm949_vm2, %v12756_v49  ;;  %v2765_v57 = vmax.f32 %v2261_v54, %v2517_v55  ;;  %2007 = vst.msk [vmem:[#allocation2 + $0x80] sm:$0xff] %vm1990_vm3, %v1391_v53 }
 0x10f   :  { %v2889_v58 = vmax.f32 %v2763_v56, %v2765_v57 }
 0x111   :  { %v2953_v59 = vmax.f32 %v2889_v58, 0.0 }
 0x112   :  { %v1392_v60 = vpop.f32.mrf.mxu0 }
 0x113   :  { %v1393_v61 = vadd.f32 %v13253_v16, %v1392_v60  ;;  %3099 = vst.msk [vmem:[#allocation3 + $0x50] sm:$0xff] %vm1990_vm3, %v2953_v59 }
 0x115   :  { %2008 = vst.msk [vmem:[#allocation2 + $0x88] sm:$0xff] %vm1990_vm3, %v1393_v61 }
 0x11a   :  { %v1395_v1 = vpop.f32.mrf.mxu0  ;;  %v3269_v2 = vld [vmem:[#allocation3 + $0x50] sm:$0xff] }
 0x11b   :  { %v3165_v3 = vld [vmem:[#allocation3 + $0x4f] sm:$0xff]  ;;  %v1396_v5 = vadd.f32 %v13253_v16, %v1395_v1  ;;  %v3330_v6 = vpack.c.bf16 %v3269_v2, %v3268_v63 }
 0x11c   :  { %v3951_v4 = vld [vmem:[#allocation3 + $0x49] sm:$0xff]  ;;  %v3226_v7 = vpack.c.bf16 %v3165_v3, %v3164_v0  ;;  %v3952_v8 = vld [vmem:[#allocation3 + $0x51] sm:$0xff] }
 0x11d   :  { %10957 = vmatmul.msk.bf16.gmra.mxu0 %vm949_vm2, %v12757_v62  ;;  %v4013_v9 = vpack.c.bf16 %v3952_v8, %v3951_v4  ;;  %2009 = vst.msk [vmem:[#allocation2 + $0x90] sm:$0xff] %vm1990_vm3, %v1396_v5  ;;  %11094 = vmatmul.msk.bf16.gmra.mxu1 %vm1990_vm3, %v3330_v6  ;;  %v2263_v32 = vld [vmem:[#allocation2 + $0x80] ss:$2 sm:$0xff]  ;;  %v2519_v33 = vld [vmem:[#allocation2 + $0x81] ss:$2 sm:$0xff]  ;;  %v12762_v0 = vld [vmem:[%s16683_s0 + $0xb0] sm:$0xff]  ;;  %v13634_v4 = vpop.f32.mrf.mxu1  ;;  %v13636_v5 = vpop.f32.mrf.mxu2 }
 0x11e   :  { %11142 = vmatmul.msk.bf16.gmra.mxu2 %vm1990_vm3, %v3226_v7  ;;  %v2766_v36 = vmax.f32 %v2263_v32, %v2519_v33  ;;  %v13639_v6 = vpop.f32.mrf.mxu3  ;;  %v12763_v7 = vld [vmem:[%s16683_s0 + $0xb8] sm:$0xff] }
 0x11f   :  { %11198 = vmatmul.msk.bf16.gmra.mxu3 %vm1990_vm3, %v4013_v9 }
 0x122   :  { %v1397_v10 = vpop.f32.mrf.mxu0 }
 0x123   :  { %v1398_v11 = vadd.f32 %v13253_v16, %v1397_v10 }
 0x125   :  { %2010 = vst.msk [vmem:[#allocation2 + $0x98] sm:$0xff] %vm1990_vm3, %v1398_v11 }
 0x12a   :  { %v1400_v13 = vpop.f32.mrf.mxu0 }
 0x12b   :  { %v1401_v14 = vadd.f32 %v13253_v16, %v1400_v13 }
 0x12c   :  { %v2265_v43 = vld [vmem:[#allocation2 + $0x90] ss:$2 sm:$0xff]  ;;  %v2521_v44 = vld [vmem:[#allocation2 + $0x91] ss:$2 sm:$0xff] }
 0x12d   :  { %10958 = vmatmul.msk.bf16.gmra.mxu0 %vm949_vm2, %v12758_v12  ;;  %2011 = vst.msk [vmem:[#allocation2 + $0xa0] sm:$0xff] %vm1990_vm3, %v1401_v14  ;;  %v2767_v46 = vmax.f32 %v2265_v43, %v2521_v44  ;;  %v12765_v43 = vld [vmem:[%s16683_s0 + $0xc8] sm:$0xff] }
 0x132   :  { %v1402_v20 = vpop.f32.mrf.mxu0 }
 0x133   :  { %v1403_v22 = vadd.f32 %v13253_v16, %v1402_v20 }
 0x135   :  { %2012 = vst.msk [vmem:[#allocation2 + $0xa8] sm:$0xff] %vm1990_vm3, %v1403_v22 }
 0x13a   :  { %v1405_v24 = vpop.f32.mrf.mxu0 }
 0x13b   :  { %v1406_v25 = vadd.f32 %v13253_v16, %v1405_v24 }
 0x13c   :  { %v2267_v29 = vld [vmem:[#allocation2 + $0xa0] ss:$2 sm:$0xff]  ;;  %v2523_v30 = vld [vmem:[#allocation2 + $0xa1] ss:$2 sm:$0xff] }
 0x13d   :  { %10959 = vmatmul.msk.bf16.gmra.mxu0 %vm949_vm2, %v12759_v23  ;;  %2013 = vst.msk [vmem:[#allocation2 + $0xb0] sm:$0xff] %vm1990_vm3, %v1406_v25  ;;  %v2768_v35 = vmax.f32 %v2267_v29, %v2523_v30 }
 0x13f   :  { %v2890_v37 = vmax.f32 %v2766_v36, %v2768_v35 }
 0x141   :  { %v2954_v42 = vmax.f32 %v2890_v37, 0.0 }
 0x142   :  { %v1407_v26 = vpop.f32.mrf.mxu0 }
 0x143   :  { %v1408_v27 = vadd.f32 %v13253_v16, %v1407_v26  ;;  %3100 = vst.msk [vmem:[#allocation3 + $0x68] sm:$0xff] %vm1990_vm3, %v2954_v42 }
 0x145   :  { %2014 = vst.msk [vmem:[#allocation2 + $0xb8] sm:$0xff] %vm1990_vm3, %v1408_v27  ;;  %v12764_v27 = vld [vmem:[%s16683_s0 + $0xc0] sm:$0xff] }
 0x14a   :  { %v1410_v31 = vpop.f32.mrf.mxu0  ;;  %v3270_v52 = vld [vmem:[#allocation3 + $0x68] sm:$0xff] }
 0x14b   :  { %v1411_v34 = vadd.f32 %v13253_v16, %v1410_v31  ;;  %v3166_v53 = vld [vmem:[#allocation3 + $0x67] sm:$0xff] }
 0x14c   :  { %v2269_v39 = vld [vmem:[#allocation2 + $0xb0] ss:$2 sm:$0xff]  ;;  %v2525_v40 = vld [vmem:[#allocation2 + $0xb1] ss:$2 sm:$0xff] }
 0x14d   :  { %10960 = vmatmul.msk.bf16.gmra.mxu0 %vm949_vm2, %v12760_v28  ;;  %2015 = vst.msk [vmem:[#allocation2 + $0xc0] sm:$0xff] %vm1990_vm3, %v1411_v34  ;;  %v2769_v45 = vmax.f32 %v2269_v39, %v2525_v40 }
 0x14f   :  { %v2891_v47 = vmax.f32 %v2767_v46, %v2769_v45 }
 0x151   :  { %v2955_v51 = vmax.f32 %v2891_v47, 0.0 }
 0x152   :  { %v1412_v38 = vpop.f32.mrf.mxu0 }
 0x153   :  { %v1413_v41 = vadd.f32 %v13253_v16, %v1412_v38  ;;  %3101 = vst.msk [vmem:[#allocation3 + $0x70] sm:$0xff] %vm1990_vm3, %v2955_v51 }
 0x155   :  { %2016 = vst.msk [vmem:[#allocation2 + $0xc8] sm:$0xff] %vm1990_vm3, %v1413_v41 }
 0x15a   :  { %v1415_v48 = vpop.f32.mrf.mxu0  ;;  %v3271_v54 = vld [vmem:[#allocation3 + $0x70] sm:$0xff]  ;;  %v3503_v17 = vpop.f32.mrf.mxu1 }
 0x15b   :  { %v1416_v49 = vadd.f32 %v13253_v16, %v1415_v48  ;;  %v3167_v55 = vld [vmem:[#allocation3 + $0x6f] sm:$0xff]  ;;  %v3331_v58 = vpack.c.bf16 %v3271_v54, %v3270_v52 }
 0x15c   :  { %v3953_v56 = vld [vmem:[#allocation3 + $0x69] sm:$0xff]  ;;  %v3227_v59 = vpack.c.bf16 %v3167_v55, %v3166_v53  ;;  %v3954_v60 = vld [vmem:[#allocation3 + $0x71] sm:$0xff] }
 0x15d   :  { %2017 = vst.msk [vmem:[#allocation2 + $0xd0] sm:$0xff] %vm1990_vm3, %v1416_v49  ;;  %10961 = vmatmul.msk.bf16.gmra.mxu0 %vm949_vm2, %v12761_v50  ;;  %v4014_v62 = vpack.c.bf16 %v3954_v60, %v3953_v56  ;;  %11095 = vmatmul.msk.bf16.gmra.mxu1 %vm1990_vm3, %v3331_v58  ;;  %v2271_v8 = vld [vmem:[#allocation2 + $0xc0] ss:$2 sm:$0xff]  ;;  %v2527_v9 = vld [vmem:[#allocation2 + $0xc1] ss:$2 sm:$0xff] }
 0x15e   :  { %11143 = vmatmul.msk.bf16.gmra.mxu2 %vm1990_vm3, %v3227_v59  ;;  %v2770_v14 = vmax.f32 %v2271_v8, %v2527_v9 }
 0x15f   :  { %11199 = vmatmul.msk.bf16.gmra.mxu3 %vm1990_vm3, %v4014_v62  ;;  %v12766_v62 = vld [vmem:[%s16683_s0 + $0xd0] sm:$0xff] }
 0x161   :  { %v3792_v18 = vpop.f32.mrf.mxu2 }
 0x162   :  { %v1417_v57 = vpop.f32.mrf.mxu0  ;;  %v3793_v20 = vadd.f32 %v3792_v18, %v3503_v17  ;;  %v4186_v22 = vpop.f32.mrf.mxu3 }
 0x163   :  { %v1418_v61 = vadd.f32 %v13253_v16, %v1417_v57  ;;  %v13658_v39 = vpop.f32.mrf.mxu1 }
 0x164   :  { %v13647_v24 = vadd.f32 %v4186_v22, %v3793_v20  ;;  %v12768_v20 = vld [vmem:[%s16683_s0 + $0xe0] sm:$0xff] }
 0x165   :  { %2018 = vst.msk [vmem:[#allocation2 + $0xd8] sm:$0xff] %vm1990_vm3, %v1418_v61 }
 0x169   :  { %v13660_v40 = vpop.f32.mrf.mxu2 }
 0x16a   :  { %v1420_v63 = vpop.f32.mrf.mxu0  ;;  %v13664_v42 = vpop.f32.mrf.mxu3 }
 0x16b   :  { %v1421_v1 = vadd.f32 %v13253_v16, %v1420_v63 }
 0x16c   :  { %v2273_v28 = vld [vmem:[#allocation2 + $0xd0] ss:$2 sm:$0xff]  ;;  %v2529_v29 = vld [vmem:[#allocation2 + $0xd1] ss:$2 sm:$0xff] }
 0x16d   :  { %10962 = vmatmul.msk.bf16.gmra.mxu0 %vm949_vm2, %v12762_v0  ;;  %2019 = vst.msk [vmem:[#allocation2 + $0xe0] sm:$0xff] %vm1990_vm3, %v1421_v1  ;;  %v2771_v34 = vmax.f32 %v2273_v28, %v2529_v29 }
 0x172   :  { %v1422_v2 = vpop.f32.mrf.mxu0 }
 0x173   :  { %v1423_v3 = vadd.f32 %v13253_v16, %v1422_v2 }
 0x175   :  { %2020 = vst.msk [vmem:[#allocation2 + $0xe8] sm:$0xff] %vm1990_vm3, %v1423_v3  ;;  %v12767_v3 = vld [vmem:[%s16683_s0 + $0xd8] sm:$0xff] }
 0x17a   :  { %v1425_v10 = vpop.f32.mrf.mxu0 }
 0x17b   :  { %v1426_v11 = vadd.f32 %v13253_v16, %v1425_v10 }
 0x17c   :  { %v2275_v12 = vld [vmem:[#allocation2 + $0xe0] ss:$2 sm:$0xff]  ;;  %v2531_v13 = vld [vmem:[#allocation2 + $0xe1] ss:$2 sm:$0xff] }
 0x17d   :  { %10963 = vmatmul.msk.bf16.gmra.mxu0 %vm949_vm2, %v12763_v7  ;;  %v2772_v15 = vmax.f32 %v2275_v12, %v2531_v13  ;;  %2021 = vst.msk [vmem:[#allocation2 + $0xf0] sm:$0xff] %vm1990_vm3, %v1426_v11 }
 0x17f   :  { %v2892_v19 = vmax.f32 %v2770_v14, %v2772_v15 }
 0x181   :  { %v2956_v23 = vmax.f32 %v2892_v19, 0.0 }
 0x182   :  { %v1427_v25 = vpop.f32.mrf.mxu0 }
 0x183   :  { %v1428_v26 = vadd.f32 %v13253_v16, %v1427_v25  ;;  %3102 = vst.msk [vmem:[#allocation3 + $0x88] sm:$0xff] %vm1990_vm3, %v2956_v23 }
 0x185   :  { %2022 = vst.msk [vmem:[#allocation2 + $0xf8] sm:$0xff] %vm1990_vm3, %v1428_v26 }
 0x18a   :  { %v1430_v30 = vpop.f32.mrf.mxu0  ;;  %v3272_v44 = vld [vmem:[#allocation3 + $0x88] sm:$0xff] }
 0x18b   :  { %v1431_v31 = vadd.f32 %v13253_v16, %v1430_v30  ;;  %v3168_v45 = vld [vmem:[#allocation3 + $0x87] sm:$0xff] }
 0x18c   :  { %v2277_v32 = vld [vmem:[#allocation2 + $0xf0] ss:$2 sm:$0xff]  ;;  %v2533_v33 = vld [vmem:[#allocation2 + $0xf1] ss:$2 sm:$0xff] }
 0x18d   :  { %10964 = vmatmul.msk.bf16.gmra.mxu0 %vm949_vm2, %v12764_v27  ;;  %v2773_v35 = vmax.f32 %v2277_v32, %v2533_v33  ;;  %2023 = vst.msk [vmem:[#allocation2 + $0x100] sm:$0xff] %vm1990_vm3, %v1431_v31 }
 0x18f   :  { %v2893_v36 = vmax.f32 %v2771_v34, %v2773_v35  ;;  %v12769_v35 = vld [vmem:[%s16683_s0 + $0xe8] sm:$0xff] }
 0x191   :  { %v2957_v37 = vmax.f32 %v2893_v36, 0.0 }
 0x192   :  { %v1432_v38 = vpop.f32.mrf.mxu0 }
 0x193   :  { %v1433_v41 = vadd.f32 %v13253_v16, %v1432_v38  ;;  %3103 = vst.msk [vmem:[#allocation3 + $0x90] sm:$0xff] %vm1990_vm3, %v2957_v37 }
 0x195   :  { %2024 = vst.msk [vmem:[#allocation2 + $0x108] sm:$0xff] %vm1990_vm3, %v1433_v41 }
 0x19a   :  { %v1435_v46 = vpop.f32.mrf.mxu0  ;;  %v3273_v47 = vld [vmem:[#allocation3 + $0x90] sm:$0xff]  ;;  %v3508_v51 = vpop.f32.mrf.mxu1 }
 0x19b   :  { %v3169_v48 = vld [vmem:[#allocation3 + $0x8f] sm:$0xff]  ;;  %v1436_v50 = vadd.f32 %v13253_v16, %v1435_v46  ;;  %v3332_v52 = vpack.c.bf16 %v3273_v47, %v3272_v44 }
 0x19c   :  { %v3955_v49 = vld [vmem:[#allocation3 + $0x89] sm:$0xff]  ;;  %v3228_v53 = vpack.c.bf16 %v3169_v48, %v3168_v45  ;;  %v3956_v54 = vld [vmem:[#allocation3 + $0x91] sm:$0xff] }
 0x19d   :  { %10965 = vmatmul.msk.bf16.gmra.mxu0 %vm949_vm2, %v12765_v43  ;;  %v4015_v56 = vpack.c.bf16 %v3956_v54, %v3955_v49  ;;  %2025 = vst.msk [vmem:[#allocation2 + $0x110] sm:$0xff] %vm1990_vm3, %v1436_v50  ;;  %11096 = vmatmul.msk.bf16.gmra.mxu1 %vm1990_vm3, %v3332_v52  ;;  %v2279_v7 = vld [vmem:[#allocation2 + $0x100] ss:$2 sm:$0xff]  ;;  %v2535_v8 = vld [vmem:[#allocation2 + $0x101] ss:$2 sm:$0xff] }
 0x19e   :  { %11144 = vmatmul.msk.bf16.gmra.mxu2 %vm1990_vm3, %v3228_v53  ;;  %v2774_v13 = vmax.f32 %v2279_v7, %v2535_v8 }
 0x19f   :  { %11200 = vmatmul.msk.bf16.gmra.mxu3 %vm1990_vm3, %v4015_v56 }
 0x1a1   :  { %v3797_v55 = vpop.f32.mrf.mxu2 }
 0x1a2   :  { %v3798_v57 = vadd.f32 %v3797_v55, %v3508_v51  ;;  %v4191_v58 = vpop.f32.mrf.mxu3  ;;  %v1437_v60 = vpop.f32.mrf.mxu0 }
 0x1a3   :  { %v1438_v61 = vadd.f32 %v13253_v16, %v1437_v60  ;;  %v13715_v50 = vpop.f32.mrf.mxu1 }
 0x1a4   :  { %v13676_v59 = vadd.f32 %v4191_v58, %v3798_v57  ;;  %v12770_v57 = vld [vmem:[%s16683_s0 + $0xf0] sm:$0xff] }
 0x1a5   :  { %2026 = vst.msk [vmem:[#allocation2 + $0x118] sm:$0xff] %vm1990_vm3, %v1438_v61 }
 0x1a9   :  { %v13717_v51 = vpop.f32.mrf.mxu2 }
 0x1aa   :  { %v1440_v63 = vpop.f32.mrf.mxu0  ;;  %v13719_v52 = vpop.f32.mrf.mxu3 }
 0x1ab   :  { %v1441_v0 = vadd.f32 %v13253_v16, %v1440_v63  ;;  %v13731_v63 = vld [vmem:[%s16685_s2] ss:$0 sm:$0xff] }
 0x1ac   :  { %v2281_v22 = vld [vmem:[#allocation2 + $0x110] ss:$2 sm:$0xff]  ;;  %v2537_v23 = vld [vmem:[#allocation2 + $0x111] ss:$2 sm:$0xff] }
 0x1ad   :  { %10966 = vmatmul.msk.bf16.gmra.mxu0 %vm949_vm2, %v12766_v62  ;;  %2027 = vst.msk [vmem:[#allocation2 + $0x120] sm:$0xff] %vm1990_vm3, %v1441_v0  ;;  %v2775_v29 = vmax.f32 %v2281_v22, %v2537_v23 }
 0x1b2   :  { %v1442_v1 = vpop.f32.mrf.mxu0 }
 0x1b3   :  { %v1443_v2 = vadd.f32 %v13253_v16, %v1442_v1 }
 0x1b5   :  { %2028 = vst.msk [vmem:[#allocation2 + $0x128] sm:$0xff] %vm1990_vm3, %v1443_v2  ;;  %v12771_v2 = vld [vmem:[%s16683_s0 + $0xf8] sm:$0xff] }
 0x1ba   :  { %v1445_v9 = vpop.f32.mrf.mxu0 }
 0x1bb   :  { %v1446_v10 = vadd.f32 %v13253_v16, %v1445_v9 }
 0x1bc   :  { %v2283_v11 = vld [vmem:[#allocation2 + $0x120] ss:$2 sm:$0xff]  ;;  %v2539_v12 = vld [vmem:[#allocation2 + $0x121] ss:$2 sm:$0xff] }
 0x1bd   :  { %10967 = vmatmul.msk.bf16.gmra.mxu0 %vm949_vm2, %v12767_v3  ;;  %v2776_v14 = vmax.f32 %v2283_v11, %v2539_v12  ;;  %2029 = vst.msk [vmem:[#allocation2 + $0x130] sm:$0xff] %vm1990_vm3, %v1446_v10 }
 0x1bf   :  { %v2894_v15 = vmax.f32 %v2774_v13, %v2776_v14 }
 0x1c1   :  { %v2958_v18 = vmax.f32 %v2894_v15, 0.0 }
 0x1c2   :  { %v1447_v17 = vpop.f32.mrf.mxu0 }
 0x1c3   :  { %v1448_v19 = vadd.f32 %v13253_v16, %v1447_v17  ;;  %3104 = vst.msk [vmem:[#allocation3 + $0xa8] sm:$0xff] %vm1990_vm3, %v2958_v18 }
 0x1c5   :  { %2030 = vst.msk [vmem:[#allocation2 + $0x138] sm:$0xff] %vm1990_vm3, %v1448_v19  ;;  %v12772_v19 = vld [vmem:[%s16683_s0 + $0x100] sm:$0xff] }
 0x1ca   :  { %v1450_v25 = vpop.f32.mrf.mxu0  ;;  %v3274_v36 = vld [vmem:[#allocation3 + $0xa8] sm:$0xff] }
 0x1cb   :  { %v1451_v26 = vadd.f32 %v13253_v16, %v1450_v25  ;;  %v3170_v37 = vld [vmem:[#allocation3 + $0xa7] sm:$0xff] }
 0x1cc   :  { %v2285_v27 = vld [vmem:[#allocation2 + $0x130] ss:$2 sm:$0xff]  ;;  %v2541_v28 = vld [vmem:[#allocation2 + $0x131] ss:$2 sm:$0xff] }
 0x1cd   :  { %10968 = vmatmul.msk.bf16.gmra.mxu0 %vm949_vm2, %v12768_v20  ;;  %v2777_v30 = vmax.f32 %v2285_v27, %v2541_v28  ;;  %2031 = vst.msk [vmem:[#allocation2 + $0x140] sm:$0xff] %vm1990_vm3, %v1451_v26 }
 0x1cf   :  { %v2895_v31 = vmax.f32 %v2775_v29, %v2777_v30 }
 0x1d1   :  { %v2959_v32 = vmax.f32 %v2895_v31, 0.0 }
 0x1d2   :  { %v1452_v33 = vpop.f32.mrf.mxu0 }
 0x1d3   :  { %v1453_v34 = vadd.f32 %v13253_v16, %v1452_v33  ;;  %3105 = vst.msk [vmem:[#allocation3 + $0xb0] sm:$0xff] %vm1990_vm3, %v2959_v32 }
 0x1d5   :  { %2032 = vst.msk [vmem:[#allocation2 + $0x148] sm:$0xff] %vm1990_vm3, %v1453_v34 }
 0x1da   :  { %v1455_v38 = vpop.f32.mrf.mxu0  ;;  %v3275_v41 = vld [vmem:[#allocation3 + $0xb0] sm:$0xff]  ;;  %v3513_v55 = vpop.f32.mrf.mxu1 }
 0x1db   :  { %v3171_v43 = vld [vmem:[#allocation3 + $0xaf] sm:$0xff]  ;;  %v1456_v45 = vadd.f32 %v13253_v16, %v1455_v38  ;;  %v3333_v46 = vpack.c.bf16 %v3275_v41, %v3274_v36 }
 0x1dc   :  { %v3957_v44 = vld [vmem:[#allocation3 + $0xa9] sm:$0xff]  ;;  %v3229_v47 = vpack.c.bf16 %v3171_v43, %v3170_v37  ;;  %v3958_v48 = vld [vmem:[#allocation3 + $0xb1] sm:$0xff] }
 0x1dd   :  { %10969 = vmatmul.msk.bf16.gmra.mxu0 %vm949_vm2, %v12769_v35  ;;  %v4016_v49 = vpack.c.bf16 %v3958_v48, %v3957_v44  ;;  %2033 = vst.msk [vmem:[#allocation2 + $0x150] sm:$0xff] %vm1990_vm3, %v1456_v45  ;;  %11097 = vmatmul.msk.bf16.gmra.mxu1 %vm1990_vm3, %v3333_v46  ;;  %v2287_v3 = vld [vmem:[#allocation2 + $0x140] ss:$2 sm:$0xff]  ;;  %v2543_v7 = vld [vmem:[#allocation2 + $0x141] ss:$2 sm:$0xff] }
 0x1de   :  { %11145 = vmatmul.msk.bf16.gmra.mxu2 %vm1990_vm3, %v3229_v47  ;;  %v2778_v12 = vmax.f32 %v2287_v3, %v2543_v7  ;;  %v12773_v36 = vld [vmem:[%s16683_s0 + $0x108] sm:$0xff] }
 0x1df   :  { %11201 = vmatmul.msk.bf16.gmra.mxu3 %vm1990_vm3, %v4016_v49 }
 0x1e1   :  { %v3802_v56 = vpop.f32.mrf.mxu2 }
 0x1e2   :  { %v1457_v53 = vpop.f32.mrf.mxu0  ;;  %v3803_v58 = vadd.f32 %v3802_v56, %v3513_v55  ;;  %v4196_v60 = vpop.f32.mrf.mxu3 }
 0x1e3   :  { %v1458_v54 = vadd.f32 %v13253_v16, %v1457_v53  ;;  %v13756_v34 = vpop.f32.mrf.mxu1 }
 0x1e4   :  { %v13726_v62 = vadd.f32 %v4196_v60, %v3803_v58 }
 0x1e5   :  { %2034 = vst.msk [vmem:[#allocation2 + $0x158] sm:$0xff] %vm1990_vm3, %v1458_v54 }
 0x1e9   :  { %v13758_v35 = vpop.f32.mrf.mxu2 }
 0x1ea   :  { %v1460_v61 = vpop.f32.mrf.mxu0  ;;  %v13763_v41 = vpop.f32.mrf.mxu3 }
 0x1eb   :  { %v1461_v16 = vadd.f32 %v13731_v63, %v1460_v61 }
 0x1ec   :  { %v2289_v20 = vld [vmem:[#allocation2 + $0x150] ss:$2 sm:$0xff]  ;;  %v2545_v22 = vld [vmem:[#allocation2 + $0x151] ss:$2 sm:$0xff] }
 0x1ed   :  { %10970 = vmatmul.msk.bf16.gmra.mxu0 %vm949_vm2, %v12770_v57  ;;  %2035 = vst.msk [vmem:[#allocation2 + $0x160] sm:$0xff] %vm1990_vm3, %v1461_v16  ;;  %v2779_v28 = vmax.f32 %v2289_v20, %v2545_v22 }
 0x1f2   :  { %v1462_v0 = vpop.f32.mrf.mxu0 }
 0x1f3   :  { %v1463_v1 = vadd.f32 %v13731_v63, %v1462_v0  ;;  %v12774_v0 = vld [vmem:[%s16683_s0 + $0x110] sm:$0xff] }
 0x1f5   :  { %2036 = vst.msk [vmem:[#allocation2 + $0x168] sm:$0xff] %vm1990_vm3, %v1463_v1 }
 0x1fa   :  { %v1465_v8 = vpop.f32.mrf.mxu0 }
 0x1fb   :  { %v1466_v9 = vadd.f32 %v13731_v63, %v1465_v8  ;;  %v12775_v8 = vld [vmem:[%s16683_s0 + $0x118] sm:$0xff] }
 0x1fc   :  { %v2291_v10 = vld [vmem:[#allocation2 + $0x160] ss:$2 sm:$0xff]  ;;  %v2547_v11 = vld [vmem:[#allocation2 + $0x161] ss:$2 sm:$0xff] }
 0x1fd   :  { %10971 = vmatmul.msk.bf16.gmra.mxu0 %vm949_vm2, %v12771_v2  ;;  %v2780_v13 = vmax.f32 %v2291_v10, %v2547_v11  ;;  %2037 = vst.msk [vmem:[#allocation2 + $0x170] sm:$0xff] %vm1990_vm3, %v1466_v9 }
 0x1ff   :  { %v2896_v14 = vmax.f32 %v2778_v12, %v2780_v13 }
 0x201   :  { %v2960_v15 = vmax.f32 %v2896_v14, 0.0 }
 0x202   :  { %v1467_v17 = vpop.f32.mrf.mxu0 }
 0x203   :  { %v1468_v18 = vadd.f32 %v13731_v63, %v1467_v17  ;;  %3106 = vst.msk [vmem:[#allocation3 + $0xc8] sm:$0xff] %vm1990_vm3, %v2960_v15 }
 0x205   :  { %2038 = vst.msk [vmem:[#allocation2 + $0x178] sm:$0xff] %vm1990_vm3, %v1468_v18 }
 0x20a   :  { %v1470_v23 = vpop.f32.mrf.mxu0  ;;  %v3276_v37 = vld [vmem:[#allocation3 + $0xc8] sm:$0xff] }
 0x20b   :  { %v1471_v25 = vadd.f32 %v13731_v63, %v1470_v23  ;;  %v3172_v38 = vld [vmem:[#allocation3 + $0xc7] sm:$0xff] }
 0x20c   :  { %v2293_v26 = vld [vmem:[#allocation2 + $0x170] ss:$2 sm:$0xff]  ;;  %v2549_v27 = vld [vmem:[#allocation2 + $0x171] ss:$2 sm:$0xff]  ;;  %v12776_v23 = vld [vmem:[%s16683_s0 + $0x120] sm:$0xff] }
 0x20d   :  { %10972 = vmatmul.msk.bf16.gmra.mxu0 %vm949_vm2, %v12772_v19  ;;  %v2781_v29 = vmax.f32 %v2293_v26, %v2549_v27  ;;  %2039 = vst.msk [vmem:[#allocation2 + $0x180] sm:$0xff] %vm1990_vm3, %v1471_v25 }
 0x20f   :  { %v2897_v30 = vmax.f32 %v2779_v28, %v2781_v29 }
 0x211   :  { %v2961_v31 = vmax.f32 %v2897_v30, 0.0 }
 0x212   :  { %v1472_v32 = vpop.f32.mrf.mxu0 }
 0x213   :  { %v1473_v33 = vadd.f32 %v13731_v63, %v1472_v32  ;;  %3107 = vst.msk [vmem:[#allocation3 + $0xd0] sm:$0xff] %vm1990_vm3, %v2961_v31 }
 0x215   :  { %2040 = vst.msk [vmem:[#allocation2 + $0x188] sm:$0xff] %vm1990_vm3, %v1473_v33 }
 0x21a   :  { %v1475_v43 = vpop.f32.mrf.mxu0  ;;  %v3277_v44 = vld [vmem:[#allocation3 + $0xd0] sm:$0xff]  ;;  %v3518_v55 = vpop.f32.mrf.mxu1 }
 0x21b   :  { %v3173_v45 = vld [vmem:[#allocation3 + $0xcf] sm:$0xff]  ;;  %v1476_v47 = vadd.f32 %v13731_v63, %v1475_v43  ;;  %v3334_v48 = vpack.c.bf16 %v3277_v44, %v3276_v37 }
 0x21c   :  { %v3959_v46 = vld [vmem:[#allocation3 + $0xc9] sm:$0xff]  ;;  %v3230_v49 = vpack.c.bf16 %v3173_v45, %v3172_v38  ;;  %v3960_v53 = vld [vmem:[#allocation3 + $0xd1] sm:$0xff] }
 0x21d   :  { %10973 = vmatmul.msk.bf16.gmra.mxu0 %vm949_vm2, %v12773_v36  ;;  %v4017_v54 = vpack.c.bf16 %v3960_v53, %v3959_v46  ;;  %2041 = vst.msk [vmem:[#allocation2 + $0x190] sm:$0xff] %vm1990_vm3, %v1476_v47  ;;  %11098 = vmatmul.msk.bf16.gmra.mxu1 %vm1990_vm3, %v3334_v48  ;;  %v2295_v9 = vld [vmem:[#allocation2 + $0x180] ss:$2 sm:$0xff]  ;;  %v2551_v10 = vld [vmem:[#allocation2 + $0x181] ss:$2 sm:$0xff] }
 0x21e   :  { %11146 = vmatmul.msk.bf16.gmra.mxu2 %vm1990_vm3, %v3230_v49  ;;  %v2782_v15 = vmax.f32 %v2295_v9, %v2551_v10  ;;  %v12777_v45 = vld [vmem:[%s16683_s0 + $0x128] sm:$0xff]  ;;  %v12778_v10 = vld [vmem:[%s16683_s0 + $0x130] sm:$0xff] }
 0x21f   :  { %11202 = vmatmul.msk.bf16.gmra.mxu3 %vm1990_vm3, %v4017_v54 }
 0x221   :  { %v3807_v56 = vpop.f32.mrf.mxu2 }
 0x222   :  { %v3808_v57 = vadd.f32 %v3807_v56, %v3518_v55  ;;  %v4201_v58 = vpop.f32.mrf.mxu3  ;;  %v1477_v60 = vpop.f32.mrf.mxu0 }
 0x223   :  { %v1478_v16 = vadd.f32 %v13731_v63, %v1477_v60  ;;  %v13801_v43 = vpop.f32.mrf.mxu1 }
 0x224   :  { %v13771_v61 = vadd.f32 %v4201_v58, %v3808_v57 }
 0x225   :  { %2042 = vst.msk [vmem:[#allocation2 + $0x198] sm:$0xff] %vm1990_vm3, %v1478_v16 }
 0x229   :  { %v13803_v44 = vpop.f32.mrf.mxu2 }
 0x22a   :  { %v1480_v1 = vpop.f32.mrf.mxu0  ;;  %v13808_v48 = vpop.f32.mrf.mxu3 }
 0x22b   :  { %v1481_v2 = vadd.f32 %v13731_v63, %v1480_v1 }
 0x22c   :  { %v2297_v25 = vld [vmem:[#allocation2 + $0x190] ss:$2 sm:$0xff]  ;;  %v2553_v26 = vld [vmem:[#allocation2 + $0x191] ss:$2 sm:$0xff] }
 0x22d   :  { %10974 = vmatmul.msk.bf16.gmra.mxu0 %vm949_vm2, %v12774_v0  ;;  %2043 = vst.msk [vmem:[#allocation2 + $0x1a0] sm:$0xff] %vm1990_vm3, %v1481_v2  ;;  %v2783_v31 = vmax.f32 %v2297_v25, %v2553_v26 }
 0x232   :  { %v1482_v3 = vpop.f32.mrf.mxu0 }
 0x233   :  { %v1483_v7 = vadd.f32 %v13731_v63, %v1482_v3 }
 0x235   :  { %2044 = vst.msk [vmem:[#allocation2 + $0x1a8] sm:$0xff] %vm1990_vm3, %v1483_v7 }
 0x23a   :  { %v1485_v11 = vpop.f32.mrf.mxu0 }
 0x23b   :  { %v1486_v12 = vadd.f32 %v13731_v63, %v1485_v11 }
 0x23c   :  { %v2299_v13 = vld [vmem:[#allocation2 + $0x1a0] ss:$2 sm:$0xff]  ;;  %v2555_v14 = vld [vmem:[#allocation2 + $0x1a1] ss:$2 sm:$0xff] }
 0x23d   :  { %10975 = vmatmul.msk.bf16.gmra.mxu0 %vm949_vm2, %v12775_v8  ;;  %v2784_v17 = vmax.f32 %v2299_v13, %v2555_v14  ;;  %2045 = vst.msk [vmem:[#allocation2 + $0x1b0] sm:$0xff] %vm1990_vm3, %v1486_v12 }
 0x23f   :  { %v2898_v18 = vmax.f32 %v2782_v15, %v2784_v17  ;;  %v12779_v15 = vld [vmem:[%s16683_s0 + $0x138] sm:$0xff] }
 0x241   :  { %v2962_v19 = vmax.f32 %v2898_v18, 0.0 }
 0x242   :  { %v1487_v20 = vpop.f32.mrf.mxu0 }
 0x243   :  { %v1488_v22 = vadd.f32 %v13731_v63, %v1487_v20  ;;  %3108 = vst.msk [vmem:[#allocation3 + $0xe8] sm:$0xff] %vm1990_vm3, %v2962_v19 }
 0x245   :  { %2046 = vst.msk [vmem:[#allocation2 + $0x1b8] sm:$0xff] %vm1990_vm3, %v1488_v22 }
 0x24a   :  { %v1490_v27 = vpop.f32.mrf.mxu0  ;;  %v3278_v46 = vld [vmem:[#allocation3 + $0xe8] sm:$0xff] }
 0x24b   :  { %v1491_v28 = vadd.f32 %v13731_v63, %v1490_v27  ;;  %v3174_v47 = vld [vmem:[#allocation3 + $0xe7] sm:$0xff] }
 0x24c   :  { %v2301_v29 = vld [vmem:[#allocation2 + $0x1b0] ss:$2 sm:$0xff]  ;;  %v2557_v30 = vld [vmem:[#allocation2 + $0x1b1] ss:$2 sm:$0xff] }
 0x24d   :  { %10976 = vmatmul.msk.bf16.gmra.mxu0 %vm949_vm2, %v12776_v23  ;;  %v2785_v32 = vmax.f32 %v2301_v29, %v2557_v30  ;;  %2047 = vst.msk [vmem:[#allocation2 + $0x1c0] sm:$0xff] %vm1990_vm3, %v1491_v28 }
 0x24f   :  { %v2899_v33 = vmax.f32 %v2783_v31, %v2785_v32  ;;  %v12780_v31 = vld [vmem:[%s16683_s0 + $0x140] sm:$0xff] }
 0x251   :  { %v2963_v36 = vmax.f32 %v2899_v33, 0.0 }
 0x252   :  { %v1492_v37 = vpop.f32.mrf.mxu0 }
 0x253   :  { %v1493_v38 = vadd.f32 %v13731_v63, %v1492_v37  ;;  %3109 = vst.msk [vmem:[#allocation3 + $0xf0] sm:$0xff] %vm1990_vm3, %v2963_v36 }
 0x255   :  { %2048 = vst.msk [vmem:[#allocation2 + $0x1c8] sm:$0xff] %vm1990_vm3, %v1493_v38 }
 0x25a   :  { %v1495_v49 = vpop.f32.mrf.mxu0  ;;  %v3279_v53 = vld [vmem:[#allocation3 + $0xf0] sm:$0xff]  ;;  %v3523_v0 = vpop.f32.mrf.mxu1 }
 0x25b   :  { %v3175_v54 = vld [vmem:[#allocation3 + $0xef] sm:$0xff]  ;;  %v1496_v56 = vadd.f32 %v13731_v63, %v1495_v49  ;;  %v3335_v57 = vpack.c.bf16 %v3279_v53, %v3278_v46 }
 0x25c   :  { %v3961_v55 = vld [vmem:[#allocation3 + $0xe9] sm:$0xff]  ;;  %v3231_v58 = vpack.c.bf16 %v3175_v54, %v3174_v47  ;;  %v3962_v60 = vld [vmem:[#allocation3 + $0xf1] sm:$0xff] }
 0x25d   :  { %10977 = vmatmul.msk.bf16.gmra.mxu0 %vm949_vm2, %v12777_v45  ;;  %v4018_v16 = vpack.c.bf16 %v3962_v60, %v3961_v55  ;;  %2049 = vst.msk [vmem:[#allocation2 + $0x1d0] sm:$0xff] %vm1990_vm3, %v1496_v56  ;;  %11099 = vmatmul.msk.bf16.gmra.mxu1 %vm1990_vm3, %v3335_v57  ;;  %v2303_v17 = vld [vmem:[#allocation2 + $0x1c0] ss:$2 sm:$0xff]  ;;  %v2559_v18 = vld [vmem:[#allocation2 + $0x1c1] ss:$2 sm:$0xff] }
 0x25e   :  { %11147 = vmatmul.msk.bf16.gmra.mxu2 %vm1990_vm3, %v3231_v58  ;;  %v2786_v25 = vmax.f32 %v2303_v17, %v2559_v18  ;;  %v12781_v58 = vld [vmem:[%s16683_s0 + $0x148] sm:$0xff] }
 0x25f   :  { %11203 = vmatmul.msk.bf16.gmra.mxu3 %vm1990_vm3, %v4018_v16 }
 0x261   :  { %v3812_v1 = vpop.f32.mrf.mxu2 }
 0x262   :  { %v3813_v2 = vadd.f32 %v3812_v1, %v3523_v0  ;;  %v4206_v3 = vpop.f32.mrf.mxu3  ;;  %v1497_v7 = vpop.f32.mrf.mxu0 }
 0x263   :  { %v1498_v9 = vadd.f32 %v13731_v63, %v1497_v7  ;;  %v13846_v56 = vpop.f32.mrf.mxu1 }
 0x264   :  { %v13816_v8 = vadd.f32 %v4206_v3, %v3813_v2 }
 0x265   :  { %2050 = vst.msk [vmem:[#allocation2 + $0x1d8] sm:$0xff] %vm1990_vm3, %v1498_v9 }
 0x269   :  { %v13848_v57 = vpop.f32.mrf.mxu2 }
 0x26a   :  { %v1500_v11 = vpop.f32.mrf.mxu0  ;;  %v13853_v0 = vpop.f32.mrf.mxu3 }
 0x26b   :  { %v1501_v12 = vadd.f32 %v13731_v63, %v1500_v11 }
 0x26c   :  { %v2305_v32 = vld [vmem:[#allocation2 + $0x1d0] ss:$2 sm:$0xff]  ;;  %v2561_v33 = vld [vmem:[#allocation2 + $0x1d1] ss:$2 sm:$0xff] }
 0x26d   :  { %10978 = vmatmul.msk.bf16.gmra.mxu0 %vm949_vm2, %v12778_v10  ;;  %2051 = vst.msk [vmem:[#allocation2 + $0x1e0] sm:$0xff] %vm1990_vm3, %v1501_v12  ;;  %v2787_v46 = vmax.f32 %v2305_v32, %v2561_v33 }
 0x272   :  { %v1502_v13 = vpop.f32.mrf.mxu0 }
 0x273   :  { %v1503_v14 = vadd.f32 %v13731_v63, %v1502_v13 }
 0x275   :  { %2052 = vst.msk [vmem:[#allocation2 + $0x1e8] sm:$0xff] %vm1990_vm3, %v1503_v14 }
 0x27a   :  { %v1505_v19 = vpop.f32.mrf.mxu0 }
 0x27b   :  { %v1506_v20 = vadd.f32 %v13731_v63, %v1505_v19 }
 0x27c   :  { %v2307_v22 = vld [vmem:[#allocation2 + $0x1e0] ss:$2 sm:$0xff]  ;;  %v2563_v23 = vld [vmem:[#allocation2 + $0x1e1] ss:$2 sm:$0xff] }
 0x27d   :  { %10979 = vmatmul.msk.bf16.gmra.mxu0 %vm949_vm2, %v12779_v15  ;;  %v2788_v26 = vmax.f32 %v2307_v22, %v2563_v23  ;;  %2053 = vst.msk [vmem:[#allocation2 + $0x1f0] sm:$0xff] %vm1990_vm3, %v1506_v20  ;;  %v12782_v23 = vld [vmem:[%s16683_s0 + $0x150] sm:$0xff] }
 0x27f   :  { %v2900_v27 = vmax.f32 %v2786_v25, %v2788_v26 }
 0x281   :  { %v2964_v28 = vmax.f32 %v2900_v27, 0.0 }
 0x282   :  { %v1507_v29 = vpop.f32.mrf.mxu0 }
 0x283   :  { %v1508_v30 = vadd.f32 %v13731_v63, %v1507_v29  ;;  %3110 = vst.msk [vmem:[#allocation3 + $0x108] sm:$0xff] %vm1990_vm3, %v2964_v28  ;;  %v12783_v29 = vld [vmem:[%s16683_s0 + $0x158] sm:$0xff] }
 0x285   :  { %2054 = vst.msk [vmem:[#allocation2 + $0x1f8] sm:$0xff] %vm1990_vm3, %v1508_v30 }
 0x28a   :  { %v1510_v36 = vpop.f32.mrf.mxu0  ;;  %v3280_v60 = vld [vmem:[#allocation3 + $0x108] sm:$0xff] }
 0x28b   :  { %v1511_v37 = vadd.f32 %v13731_v63, %v1510_v36  ;;  %v3176_v16 = vld [vmem:[#allocation3 + $0x107] sm:$0xff] }
 0x28c   :  { %v2309_v38 = vld [vmem:[#allocation2 + $0x1f0] ss:$2 sm:$0xff]  ;;  %v2565_v45 = vld [vmem:[#allocation2 + $0x1f1] ss:$2 sm:$0xff] }
 0x28d   :  { %10980 = vmatmul.msk.bf16.gmra.mxu0 %vm949_vm2, %v12780_v31  ;;  %v2789_v47 = vmax.f32 %v2309_v38, %v2565_v45  ;;  %2055 = vst.msk [vmem:[#allocation2 + $0x200] sm:$0xff] %vm1990_vm3, %v1511_v37 }
 0x28f   :  { %v2901_v49 = vmax.f32 %v2787_v46, %v2789_v47 }
 0x291   :  { %v2965_v53 = vmax.f32 %v2901_v49, 0.0 }
 0x292   :  { %v1512_v54 = vpop.f32.mrf.mxu0 }
 0x293   :  { %v1513_v55 = vadd.f32 %v13731_v63, %v1512_v54  ;;  %3111 = vst.msk [vmem:[#allocation3 + $0x110] sm:$0xff] %vm1990_vm3, %v2965_v53  ;;  %v12784_v54 = vld [vmem:[%s16683_s0 + $0x160] sm:$0xff] }
 0x295   :  { %2056 = vst.msk [vmem:[#allocation2 + $0x208] sm:$0xff] %vm1990_vm3, %v1513_v55 }
 0x29a   :  { %v1515_v1 = vpop.f32.mrf.mxu0  ;;  %v3281_v2 = vld [vmem:[#allocation3 + $0x110] sm:$0xff]  ;;  %v3528_v14 = vpop.f32.mrf.mxu1 }
 0x29b   :  { %v3177_v3 = vld [vmem:[#allocation3 + $0x10f] sm:$0xff]  ;;  %v1516_v9 = vadd.f32 %v13731_v63, %v1515_v1  ;;  %v3336_v10 = vpack.c.bf16 %v3281_v2, %v3280_v60 }
 0x29c   :  { %v3963_v7 = vld [vmem:[#allocation3 + $0x109] sm:$0xff]  ;;  %v3232_v11 = vpack.c.bf16 %v3177_v3, %v3176_v16  ;;  %v3964_v12 = vld [vmem:[#allocation3 + $0x111] sm:$0xff] }
 0x29d   :  { %10981 = vmatmul.msk.bf16.gmra.mxu0 %vm949_vm2, %v12781_v58  ;;  %v4019_v13 = vpack.c.bf16 %v3964_v12, %v3963_v7  ;;  %2057 = vst.msk [vmem:[#allocation2 + $0x210] sm:$0xff] %vm1990_vm3, %v1516_v9  ;;  %11100 = vmatmul.msk.bf16.gmra.mxu1 %vm1990_vm3, %v3336_v10  ;;  %v2311_v30 = vld [vmem:[#allocation2 + $0x200] ss:$2 sm:$0xff]  ;;  %v2567_v31 = vld [vmem:[#allocation2 + $0x201] ss:$2 sm:$0xff] }
 0x29e   :  { %11148 = vmatmul.msk.bf16.gmra.mxu2 %vm1990_vm3, %v3232_v11  ;;  %v2790_v38 = vmax.f32 %v2311_v30, %v2567_v31 }
 0x29f   :  { %11204 = vmatmul.msk.bf16.gmra.mxu3 %vm1990_vm3, %v4019_v13 }
 0x2a1   :  { %v3817_v15 = vpop.f32.mrf.mxu2 }
 0x2a2   :  { %v3818_v17 = vadd.f32 %v3817_v15, %v3528_v14  ;;  %v4211_v18 = vpop.f32.mrf.mxu3  ;;  %v1517_v19 = vpop.f32.mrf.mxu0  ;;  %v12785_v15 = vld [vmem:[%s16683_s0 + $0x168] sm:$0xff] }
 0x2a3   :  { %v1518_v22 = vadd.f32 %v13731_v63, %v1517_v19  ;;  %v13891_v13 = vpop.f32.mrf.mxu1 }
 0x2a4   :  { %v13861_v20 = vadd.f32 %v4211_v18, %v3818_v17 }
 0x2a5   :  { %2058 = vst.msk [vmem:[#allocation2 + $0x218] sm:$0xff] %vm1990_vm3, %v1518_v22 }
 0x2a9   :  { %v13893_v14 = vpop.f32.mrf.mxu2 }
 0x2aa   :  { %v1520_v25 = vpop.f32.mrf.mxu0  ;;  %v13898_v19 = vpop.f32.mrf.mxu3 }
 0x2ab   :  { %v1521_v26 = vadd.f32 %v13731_v63, %v1520_v25 }
 0x2ac   :  { %v2313_v55 = vld [vmem:[#allocation2 + $0x210] ss:$2 sm:$0xff]  ;;  %v2569_v58 = vld [vmem:[#allocation2 + $0x211] ss:$2 sm:$0xff] }
 0x2ad   :  { %10982 = vmatmul.msk.bf16.gmra.mxu0 %vm949_vm2, %v12782_v23  ;;  %2059 = vst.msk [vmem:[#allocation2 + $0x220] sm:$0xff] %vm1990_vm3, %v1521_v26  ;;  %v2791_v3 = vmax.f32 %v2313_v55, %v2569_v58  ;;  %v12787_v58 = vld [vmem:[%s16683_s0 + $0x178] sm:$0xff] }
 0x2b2   :  { %v1522_v27 = vpop.f32.mrf.mxu0 }
 0x2b3   :  { %v1523_v28 = vadd.f32 %v13731_v63, %v1522_v27 }
 0x2b5   :  { %2060 = vst.msk [vmem:[#allocation2 + $0x228] sm:$0xff] %vm1990_vm3, %v1523_v28 }
 0x2ba   :  { %v1525_v32 = vpop.f32.mrf.mxu0 }
 0x2bb   :  { %v1526_v33 = vadd.f32 %v13731_v63, %v1525_v32 }
 0x2bc   :  { %v2315_v36 = vld [vmem:[#allocation2 + $0x220] ss:$2 sm:$0xff]  ;;  %v2571_v37 = vld [vmem:[#allocation2 + $0x221] ss:$2 sm:$0xff] }
 0x2bd   :  { %10983 = vmatmul.msk.bf16.gmra.mxu0 %vm949_vm2, %v12783_v29  ;;  %v2792_v45 = vmax.f32 %v2315_v36, %v2571_v37  ;;  %2061 = vst.msk [vmem:[#allocation2 + $0x230] sm:$0xff] %vm1990_vm3, %v1526_v33 }
 0x2bf   :  { %v2902_v46 = vmax.f32 %v2790_v38, %v2792_v45 }
 0x2c1   :  { %v2966_v47 = vmax.f32 %v2902_v46, 0.0 }
 0x2c2   :  { %v1527_v49 = vpop.f32.mrf.mxu0 }
 0x2c3   :  { %v1528_v53 = vadd.f32 %v13731_v63, %v1527_v49  ;;  %3112 = vst.msk [vmem:[#allocation3 + $0x128] sm:$0xff] %vm1990_vm3, %v2966_v47  ;;  %v12786_v47 = vld [vmem:[%s16683_s0 + $0x170] sm:$0xff] }
 0x2c5   :  { %2062 = vst.msk [vmem:[#allocation2 + $0x238] sm:$0xff] %vm1990_vm3, %v1528_v53 }
 0x2ca   :  { %v1530_v60 = vpop.f32.mrf.mxu0  ;;  %v3282_v17 = vld [vmem:[#allocation3 + $0x128] sm:$0xff] }
 0x2cb   :  { %v1531_v16 = vadd.f32 %v13731_v63, %v1530_v60  ;;  %v3178_v18 = vld [vmem:[#allocation3 + $0x127] sm:$0xff] }
 0x2cc   :  { %v2317_v1 = vld [vmem:[#allocation2 + $0x230] ss:$2 sm:$0xff]  ;;  %v2573_v2 = vld [vmem:[#allocation2 + $0x231] ss:$2 sm:$0xff] }
 0x2cd   :  { %10984 = vmatmul.msk.bf16.gmra.mxu0 %vm949_vm2, %v12784_v54  ;;  %v2793_v7 = vmax.f32 %v2317_v1, %v2573_v2  ;;  %2063 = vst.msk [vmem:[#allocation2 + $0x240] sm:$0xff] %vm1990_vm3, %v1531_v16 }
 0x2cf   :  { %v2903_v9 = vmax.f32 %v2791_v3, %v2793_v7 }
 0x2d1   :  { %v2967_v10 = vmax.f32 %v2903_v9, 0.0 }
 0x2d2   :  { %v1532_v11 = vpop.f32.mrf.mxu0 }
 0x2d3   :  { %v1533_v12 = vadd.f32 %v13731_v63, %v1532_v11  ;;  %3113 = vst.msk [vmem:[#allocation3 + $0x130] sm:$0xff] %vm1990_vm3, %v2967_v10 }
 0x2d5   :  { %2064 = vst.msk [vmem:[#allocation2 + $0x248] sm:$0xff] %vm1990_vm3, %v1533_v12 }
 0x2da   :  { %v1535_v22 = vpop.f32.mrf.mxu0  ;;  %v3283_v23 = vld [vmem:[#allocation3 + $0x130] sm:$0xff]  ;;  %v3533_v32 = vpop.f32.mrf.mxu1 }
 0x2db   :  { %v3179_v25 = vld [vmem:[#allocation3 + $0x12f] sm:$0xff]  ;;  %v1536_v27 = vadd.f32 %v13731_v63, %v1535_v22  ;;  %v3337_v28 = vpack.c.bf16 %v3283_v23, %v3282_v17 }
 0x2dc   :  { %v3965_v26 = vld [vmem:[#allocation3 + $0x129] sm:$0xff]  ;;  %v3233_v29 = vpack.c.bf16 %v3179_v25, %v3178_v18  ;;  %v3966_v30 = vld [vmem:[#allocation3 + $0x131] sm:$0xff]  ;;  %v12788_v18 = vld [vmem:[%s16683_s0 + $0x180] sm:$0xff] }
 0x2dd   :  { %10985 = vmatmul.msk.bf16.gmra.mxu0 %vm949_vm2, %v12785_v15  ;;  %v4020_v31 = vpack.c.bf16 %v3966_v30, %v3965_v26  ;;  %2065 = vst.msk [vmem:[#allocation2 + $0x250] sm:$0xff] %vm1990_vm3, %v1536_v27  ;;  %11101 = vmatmul.msk.bf16.gmra.mxu1 %vm1990_vm3, %v3337_v28  ;;  %v2319_v60 = vld [vmem:[#allocation2 + $0x240] ss:$2 sm:$0xff]  ;;  %v2575_v16 = vld [vmem:[#allocation2 + $0x241] ss:$2 sm:$0xff] }
 0x2de   :  { %11149 = vmatmul.msk.bf16.gmra.mxu2 %vm1990_vm3, %v3233_v29  ;;  %v2794_v9 = vmax.f32 %v2319_v60, %v2575_v16 }
 0x2df   :  { %11205 = vmatmul.msk.bf16.gmra.mxu3 %vm1990_vm3, %v4020_v31 }
 0x2e1   :  { %v3822_v33 = vpop.f32.mrf.mxu2 }
 0x2e2   :  { %v3823_v36 = vadd.f32 %v3822_v33, %v3533_v32  ;;  %v4216_v37 = vpop.f32.mrf.mxu3  ;;  %v1537_v38 = vpop.f32.mrf.mxu0 }
 0x2e3   :  { %v1538_v46 = vadd.f32 %v13731_v63, %v1537_v38 }
 0x2e4   :  { %v13906_v45 = vadd.f32 %v4216_v37, %v3823_v36  ;;  %v13936_v37 = vpop.f32.mrf.mxu1 }
 0x2e5   :  { %2066 = vst.msk [vmem:[#allocation2 + $0x258] sm:$0xff] %vm1990_vm3, %v1538_v46  ;;  %v12789_v46 = vld [vmem:[%s16683_s0 + $0x188] sm:$0xff] }
 0x2e9   :  { %v13938_v38 = vpop.f32.mrf.mxu2 }
 0x2ea   :  { %v1540_v49 = vpop.f32.mrf.mxu0 }
 0x2eb   :  { %v1541_v53 = vadd.f32 %v13731_v63, %v1540_v49 }
 0x2ec   :  { %v2321_v22 = vld [vmem:[#allocation2 + $0x250] ss:$2 sm:$0xff]  ;;  %v2577_v23 = vld [vmem:[#allocation2 + $0x251] ss:$2 sm:$0xff] }
 0x2ed   :  { %10986 = vmatmul.msk.bf16.gmra.mxu0 %vm949_vm2, %v12786_v47  ;;  %2067 = vst.msk [vmem:[#allocation2 + $0x260] sm:$0xff] %vm1990_vm3, %v1541_v53  ;;  %v2795_v29 = vmax.f32 %v2321_v22, %v2577_v23  ;;  %v13943_v53 = vpop.f32.mrf.mxu3  ;;  %v12790_v22 = vld [vmem:[%s16683_s0 + $0x190] sm:$0xff] }
 0x2f2   :  { %v1542_v54 = vpop.f32.mrf.mxu0 }
 0x2f3   :  { %v1543_v55 = vadd.f32 %v13731_v63, %v1542_v54 }
 0x2f5   :  { %2068 = vst.msk [vmem:[#allocation2 + $0x268] sm:$0xff] %vm1990_vm3, %v1543_v55 }
 0x2fa   :  { %v1545_v1 = vpop.f32.mrf.mxu0 }
 0x2fb   :  { %v1546_v2 = vadd.f32 %v13731_v63, %v1545_v1 }
 0x2fc   :  { %v2323_v3 = vld [vmem:[#allocation2 + $0x260] ss:$2 sm:$0xff]  ;;  %v2579_v7 = vld [vmem:[#allocation2 + $0x261] ss:$2 sm:$0xff] }
 0x2fd   :  { %10987 = vmatmul.msk.bf16.gmra.mxu0 %vm949_vm2, %v12787_v58  ;;  %v2796_v10 = vmax.f32 %v2323_v3, %v2579_v7  ;;  %2069 = vst.msk [vmem:[#allocation2 + $0x270] sm:$0xff] %vm1990_vm3, %v1546_v2 }
 0x2ff   :  { %v2904_v11 = vmax.f32 %v2794_v9, %v2796_v10 }
 0x301   :  { %v2968_v12 = vmax.f32 %v2904_v11, 0.0 }
 0x302   :  { %v1547_v15 = vpop.f32.mrf.mxu0 }
 0x303   :  { %v1548_v17 = vadd.f32 %v13731_v63, %v1547_v15  ;;  %3114 = vst.msk [vmem:[#allocation3 + $0x148] sm:$0xff] %vm1990_vm3, %v2968_v12 }
 0x305   :  { %2070 = vst.msk [vmem:[#allocation2 + $0x278] sm:$0xff] %vm1990_vm3, %v1548_v17 }
 0x30a   :  { %v1550_v25 = vpop.f32.mrf.mxu0  ;;  %v3284_v47 = vld [vmem:[#allocation3 + $0x148] sm:$0xff] }
 0x30b   :  { %v1551_v26 = vadd.f32 %v13731_v63, %v1550_v25  ;;  %v3180_v49 = vld [vmem:[#allocation3 + $0x147] sm:$0xff] }
 0x30c   :  { %v2325_v27 = vld [vmem:[#allocation2 + $0x270] ss:$2 sm:$0xff]  ;;  %v2581_v28 = vld [vmem:[#allocation2 + $0x271] ss:$2 sm:$0xff] }
 0x30d   :  { %10988 = vmatmul.msk.bf16.gmra.mxu0 %vm949_vm2, %v12788_v18  ;;  %v2797_v30 = vmax.f32 %v2325_v27, %v2581_v28  ;;  %2071 = vst.msk [vmem:[#allocation2 + $0x280] sm:$0xff] %vm1990_vm3, %v1551_v26  ;;  %v12791_v28 = vld [vmem:[%s16683_s0 + $0x198] sm:$0xff] }
 0x30f   :  { %v2905_v31 = vmax.f32 %v2795_v29, %v2797_v30 }
 0x311   :  { %v2969_v32 = vmax.f32 %v2905_v31, 0.0 }
 0x312   :  { %v1552_v33 = vpop.f32.mrf.mxu0 }
 0x313   :  { %v1553_v36 = vadd.f32 %v13731_v63, %v1552_v33  ;;  %3115 = vst.msk [vmem:[#allocation3 + $0x150] sm:$0xff] %vm1990_vm3, %v2969_v32 }
 0x315   :  { %2072 = vst.msk [vmem:[#allocation2 + $0x288] sm:$0xff] %vm1990_vm3, %v1553_v36 }
 0x31a   :  { %v1555_v54 = vpop.f32.mrf.mxu0  ;;  %v3285_v55 = vld [vmem:[#allocation3 + $0x150] sm:$0xff]  ;;  %v3538_v9 = vpop.f32.mrf.mxu1 }
 0x31b   :  { %v3181_v58 = vld [vmem:[#allocation3 + $0x14f] sm:$0xff]  ;;  %v1556_v16 = vadd.f32 %v13731_v63, %v1555_v54  ;;  %v3338_v1 = vpack.c.bf16 %v3285_v55, %v3284_v47 }
 0x31c   :  { %v3967_v60 = vld [vmem:[#allocation3 + $0x149] sm:$0xff]  ;;  %v3234_v2 = vpack.c.bf16 %v3181_v58, %v3180_v49  ;;  %v3968_v3 = vld [vmem:[#allocation3 + $0x151] sm:$0xff] }
 0x31d   :  { %10989 = vmatmul.msk.bf16.gmra.mxu0 %vm949_vm2, %v12789_v46  ;;  %v4021_v7 = vpack.c.bf16 %v3968_v3, %v3967_v60  ;;  %2073 = vst.msk [vmem:[#allocation2 + $0x290] sm:$0xff] %vm1990_vm3, %v1556_v16  ;;  %11102 = vmatmul.msk.bf16.gmra.mxu1 %vm1990_vm3, %v3338_v1  ;;  %v2327_v29 = vld [vmem:[#allocation2 + $0x280] ss:$2 sm:$0xff]  ;;  %v2583_v30 = vld [vmem:[#allocation2 + $0x281] ss:$2 sm:$0xff] }
 0x31e   :  { %11150 = vmatmul.msk.bf16.gmra.mxu2 %vm1990_vm3, %v3234_v2  ;;  %v2798_v46 = vmax.f32 %v2327_v29, %v2583_v30  ;;  %v12792_v60 = vld [vmem:[%s16683_s0 + $0x1a0] sm:$0xff] }
 0x31f   :  { %11206 = vmatmul.msk.bf16.gmra.mxu3 %vm1990_vm3, %v4021_v7 }
 0x321   :  { %v3827_v10 = vpop.f32.mrf.mxu2 }
 0x322   :  { %v3828_v11 = vadd.f32 %v3827_v10, %v3538_v9  ;;  %v4221_v12 = vpop.f32.mrf.mxu3  ;;  %v1557_v15 = vpop.f32.mrf.mxu0 }
 0x323   :  { %v1558_v18 = vadd.f32 %v13731_v63, %v1557_v15 }
 0x324   :  { %v13951_v17 = vadd.f32 %v4221_v12, %v3828_v11 }
 0x325   :  { %2074 = vst.msk [vmem:[#allocation2 + $0x298] sm:$0xff] %vm1990_vm3, %v1558_v18 }
 0x32a   :  { %v1560_v23 = vpop.f32.mrf.mxu0  ;;  %v13988_v29 = vpop.f32.mrf.mxu3 }
 0x32b   :  { %v1561_v25 = vadd.f32 %v13731_v63, %v1560_v23  ;;  %v13981_v23 = vpop.f32.mrf.mxu1 }
 0x32c   :  { %v2329_v16 = vld [vmem:[#allocation2 + $0x290] ss:$2 sm:$0xff]  ;;  %v2585_v1 = vld [vmem:[#allocation2 + $0x291] ss:$2 sm:$0xff] }
 0x32d   :  { %10990 = vmatmul.msk.bf16.gmra.mxu0 %vm949_vm2, %v12790_v22  ;;  %2075 = vst.msk [vmem:[#allocation2 + $0x2a0] sm:$0xff] %vm1990_vm3, %v1561_v25  ;;  %v2799_v10 = vmax.f32 %v2329_v16, %v2585_v1  ;;  %v13983_v25 = vpop.f32.mrf.mxu2 }
 0x332   :  { %v1562_v26 = vpop.f32.mrf.mxu0 }
 0x333   :  { %v1563_v27 = vadd.f32 %v13731_v63, %v1562_v26  ;;  %v12793_v26 = vld [vmem:[%s16683_s0 + $0x1a8] sm:$0xff] }
 0x335   :  { %2076 = vst.msk [vmem:[#allocation2 + $0x2a8] sm:$0xff] %vm1990_vm3, %v1563_v27 }
 0x33a   :  { %v1565_v31 = vpop.f32.mrf.mxu0 }
 0x33b   :  { %v1566_v32 = vadd.f32 %v13731_v63, %v1565_v31 }
 0x33c   :  { %v2331_v33 = vld [vmem:[#allocation2 + $0x2a0] ss:$2 sm:$0xff]  ;;  %v2587_v36 = vld [vmem:[#allocation2 + $0x2a1] ss:$2 sm:$0xff] }
 0x33d   :  { %10991 = vmatmul.msk.bf16.gmra.mxu0 %vm949_vm2, %v12791_v28  ;;  %v2800_v47 = vmax.f32 %v2331_v33, %v2587_v36  ;;  %2077 = vst.msk [vmem:[#allocation2 + $0x2b0] sm:$0xff] %vm1990_vm3, %v1566_v32 }
 0x33f   :  { %v2906_v49 = vmax.f32 %v2798_v46, %v2800_v47 }
 0x341   :  { %v2970_v54 = vmax.f32 %v2906_v49, 0.0 }
 0x342   :  { %v1567_v55 = vpop.f32.mrf.mxu0 }
 0x343   :  { %v1568_v58 = vadd.f32 %v13731_v63, %v1567_v55  ;;  %3116 = vst.msk [vmem:[#allocation3 + $0x168] sm:$0xff] %vm1990_vm3, %v2970_v54 }
 0x345   :  { %2078 = vst.msk [vmem:[#allocation2 + $0x2b8] sm:$0xff] %vm1990_vm3, %v1568_v58 }
 0x34a   :  { %v1570_v2 = vpop.f32.mrf.mxu0  ;;  %v3286_v27 = vld [vmem:[#allocation3 + $0x168] sm:$0xff] }
 0x34b   :  { %v1571_v3 = vadd.f32 %v13731_v63, %v1570_v2  ;;  %v3182_v28 = vld [vmem:[#allocation3 + $0x167] sm:$0xff] }
 0x34c   :  { %v2333_v7 = vld [vmem:[#allocation2 + $0x2b0] ss:$2 sm:$0xff]  ;;  %v2589_v9 = vld [vmem:[#allocation2 + $0x2b1] ss:$2 sm:$0xff] }
 0x34d   :  { %10992 = vmatmul.msk.bf16.gmra.mxu0 %vm949_vm2, %v12792_v60  ;;  %v2801_v11 = vmax.f32 %v2333_v7, %v2589_v9  ;;  %2079 = vst.msk [vmem:[#allocation2 + $0x2c0] sm:$0xff] %vm1990_vm3, %v1571_v3  ;;  %v12794_v7 = vld [vmem:[%s16683_s0 + $0x1b0] sm:$0xff] }
 0x34f   :  { %v2907_v12 = vmax.f32 %v2799_v10, %v2801_v11 }
 0x351   :  { %v2971_v15 = vmax.f32 %v2907_v12, 0.0 }
 0x352   :  { %v1572_v18 = vpop.f32.mrf.mxu0 }
 0x353   :  { %v1573_v22 = vadd.f32 %v13731_v63, %v1572_v18  ;;  %3117 = vst.msk [vmem:[#allocation3 + $0x170] sm:$0xff] %vm1990_vm3, %v2971_v15  ;;  %v12795_v15 = vld [vmem:[%s16683_s0 + $0x1b8] sm:$0xff] }
 0x355   :  { %2080 = vst.msk [vmem:[#allocation2 + $0x2c8] sm:$0xff] %vm1990_vm3, %v1573_v22 }
 0x35a   :  { %v1575_v30 = vpop.f32.mrf.mxu0  ;;  %v3287_v31 = vld [vmem:[#allocation3 + $0x170] sm:$0xff]  ;;  %v3543_v55 = vpop.f32.mrf.mxu1 }
 0x35b   :  { %v3183_v32 = vld [vmem:[#allocation3 + $0x16f] sm:$0xff]  ;;  %v1576_v36 = vadd.f32 %v13731_v63, %v1575_v30  ;;  %v3339_v46 = vpack.c.bf16 %v3287_v31, %v3286_v27 }
 0x35c   :  { %v3969_v33 = vld [vmem:[#allocation3 + $0x169] sm:$0xff]  ;;  %v3235_v47 = vpack.c.bf16 %v3183_v32, %v3182_v28  ;;  %v3970_v49 = vld [vmem:[#allocation3 + $0x171] sm:$0xff] }
 0x35d   :  { %10993 = vmatmul.msk.bf16.gmra.mxu0 %vm949_vm2, %v12793_v26  ;;  %v4022_v54 = vpack.c.bf16 %v3970_v49, %v3969_v33  ;;  %2081 = vst.msk [vmem:[#allocation2 + $0x2d0] sm:$0xff] %vm1990_vm3, %v1576_v36  ;;  %11103 = vmatmul.msk.bf16.gmra.mxu1 %vm1990_vm3, %v3339_v46  ;;  %v2335_v18 = vld [vmem:[#allocation2 + $0x2c0] ss:$2 sm:$0xff]  ;;  %v2591_v22 = vld [vmem:[#allocation2 + $0x2c1] ss:$2 sm:$0xff] }
 0x35e   :  { %11151 = vmatmul.msk.bf16.gmra.mxu2 %vm1990_vm3, %v3235_v47  ;;  %v2802_v31 = vmax.f32 %v2335_v18, %v2591_v22  ;;  %v12796_v49 = vld [vmem:[%s16683_s0 + $0x1c0] sm:$0xff]  ;;  %v12797_v22 = vld [vmem:[%s16683_s0 + $0x1c8] sm:$0xff] }
 0x35f   :  { %11207 = vmatmul.msk.bf16.gmra.mxu3 %vm1990_vm3, %v4022_v54 }
 0x361   :  { %v3832_v58 = vpop.f32.mrf.mxu2 }
 0x362   :  { %v3833_v60 = vadd.f32 %v3832_v58, %v3543_v55  ;;  %v4226_v16 = vpop.f32.mrf.mxu3  ;;  %v1577_v1 = vpop.f32.mrf.mxu0 }
 0x363   :  { %v1578_v3 = vadd.f32 %v13731_v63, %v1577_v1 }
 0x364   :  { %v13996_v2 = vadd.f32 %v4226_v16, %v3833_v60 }
 0x365   :  { %2082 = vst.msk [vmem:[#allocation2 + $0x2d8] sm:$0xff] %vm1990_vm3, %v1578_v3 }
 0x369   :  { %v14028_v18 = vpop.f32.mrf.mxu2 }
 0x36a   :  { %v1580_v9 = vpop.f32.mrf.mxu0 }
 0x36b   :  { %v1581_v10 = vadd.f32 %v13731_v63, %v1580_v9 }
 0x36c   :  { %v2337_v54 = vld [vmem:[#allocation2 + $0x2d0] ss:$2 sm:$0xff]  ;;  %v2593_v55 = vld [vmem:[#allocation2 + $0x2d1] ss:$2 sm:$0xff] }
 0x36d   :  { %10994 = vmatmul.msk.bf16.gmra.mxu0 %vm949_vm2, %v12794_v7  ;;  %2083 = vst.msk [vmem:[#allocation2 + $0x2e0] sm:$0xff] %vm1990_vm3, %v1581_v10  ;;  %v2803_v3 = vmax.f32 %v2337_v54, %v2593_v55 }
 0x372   :  { %v1582_v11 = vpop.f32.mrf.mxu0 }
 0x373   :  { %v1583_v12 = vadd.f32 %v13731_v63, %v1582_v11 }
 0x375   :  { %2084 = vst.msk [vmem:[#allocation2 + $0x2e8] sm:$0xff] %vm1990_vm3, %v1583_v12 }
 0x37a   :  { %v1585_v26 = vpop.f32.mrf.mxu0 }
 0x37b   :  { %v1586_v27 = vadd.f32 %v13731_v63, %v1585_v26 }
 0x37c   :  { %v2339_v28 = vld [vmem:[#allocation2 + $0x2e0] ss:$2 sm:$0xff]  ;;  %v2595_v30 = vld [vmem:[#allocation2 + $0x2e1] ss:$2 sm:$0xff] }
 0x37d   :  { %10995 = vmatmul.msk.bf16.gmra.mxu0 %vm949_vm2, %v12795_v15  ;;  %v2804_v32 = vmax.f32 %v2339_v28, %v2595_v30  ;;  %2085 = vst.msk [vmem:[#allocation2 + $0x2f0] sm:$0xff] %vm1990_vm3, %v1586_v27  ;;  %v14026_v15 = vpop.f32.mrf.mxu1  ;;  %v14033_v28 = vpop.f32.mrf.mxu3 }
 0x37f   :  { %v2908_v33 = vmax.f32 %v2802_v31, %v2804_v32 }
 0x381   :  { %v2972_v36 = vmax.f32 %v2908_v33, 0.0 }
 0x382   :  { %v1587_v46 = vpop.f32.mrf.mxu0 }
 0x383   :  { %3118 = vst.msk [vmem:[#allocation3 + $0x188] sm:$0xff] %vm1990_vm3, %v2972_v36  ;;  %v1588_v47 = vadd.f32 %v13731_v63, %v1587_v46 }
 0x385   :  { %2086 = vst.msk [vmem:[#allocation2 + $0x2f8] sm:$0xff] %vm1990_vm3, %v1588_v47 }
 0x38a   :  { %v1590_v58 = vpop.f32.mrf.mxu0  ;;  %v3288_v26 = vld [vmem:[#allocation3 + $0x188] sm:$0xff] }
 0x38b   :  { %v1591_v60 = vadd.f32 %v13731_v63, %v1590_v58  ;;  %v3184_v27 = vld [vmem:[#allocation3 + $0x187] sm:$0xff] }
 0x38c   :  { %v2341_v16 = vld [vmem:[#allocation2 + $0x2f0] ss:$2 sm:$0xff]  ;;  %v2597_v1 = vld [vmem:[#allocation2 + $0x2f1] ss:$2 sm:$0xff] }
 0x38d   :  { %10996 = vmatmul.msk.bf16.gmra.mxu0 %vm949_vm2, %v12796_v49  ;;  %v2805_v7 = vmax.f32 %v2341_v16, %v2597_v1  ;;  %2087 = vst.msk [vmem:[#allocation2 + $0x300] sm:$0xff] %vm1990_vm3, %v1591_v60 }
 0x38f   :  { %v2909_v9 = vmax.f32 %v2803_v3, %v2805_v7 }
 0x391   :  { %v2973_v10 = vmax.f32 %v2909_v9, 0.0  ;;  %v12798_v9 = vld [vmem:[%s16683_s0 + $0x1d0] sm:$0xff] }
 0x392   :  { %v1592_v11 = vpop.f32.mrf.mxu0 }
 0x393   :  { %3119 = vst.msk [vmem:[#allocation3 + $0x190] sm:$0xff] %vm1990_vm3, %v2973_v10  ;;  %v1593_v12 = vadd.f32 %v13731_v63, %v1592_v11 }
 0x395   :  { %2088 = vst.msk [vmem:[#allocation2 + $0x308] sm:$0xff] %vm1990_vm3, %v1593_v12 }
 0x39a   :  { %v1595_v30 = vpop.f32.mrf.mxu0  ;;  %v3289_v31 = vld [vmem:[#allocation3 + $0x190] sm:$0xff]  ;;  %v3548_v55 = vpop.f32.mrf.mxu1 }
 0x39b   :  { %v3185_v32 = vld [vmem:[#allocation3 + $0x18f] sm:$0xff]  ;;  %v1596_v36 = vadd.f32 %v13731_v63, %v1595_v30  ;;  %v3340_v46 = vpack.c.bf16 %v3289_v31, %v3288_v26  ;;  %v12799_v26 = vld [vmem:[%s16683_s0 + $0x1d8] sm:$0xff] }
 0x39c   :  { %v3971_v33 = vld [vmem:[#allocation3 + $0x189] sm:$0xff]  ;;  %v3236_v47 = vpack.c.bf16 %v3185_v32, %v3184_v27  ;;  %v3972_v49 = vld [vmem:[#allocation3 + $0x191] sm:$0xff] }
 0x39d   :  { %10997 = vmatmul.msk.bf16.gmra.mxu0 %vm949_vm2, %v12797_v22  ;;  %v4023_v54 = vpack.c.bf16 %v3972_v49, %v3971_v33  ;;  %2089 = vst.msk [vmem:[#allocation2 + $0x310] sm:$0xff] %vm1990_vm3, %v1596_v36  ;;  %11104 = vmatmul.msk.bf16.gmra.mxu1 %vm1990_vm3, %v3340_v46  ;;  %v2343_v27 = vld [vmem:[#allocation2 + $0x300] ss:$2 sm:$0xff]  ;;  %v2599_v30 = vld [vmem:[#allocation2 + $0x301] ss:$2 sm:$0xff] }
 0x39e   :  { %11152 = vmatmul.msk.bf16.gmra.mxu2 %vm1990_vm3, %v3236_v47  ;;  %v2806_v46 = vmax.f32 %v2343_v27, %v2599_v30 }
 0x39f   :  { %11208 = vmatmul.msk.bf16.gmra.mxu3 %vm1990_vm3, %v4023_v54 }
 0x3a1   :  { %v3837_v58 = vpop.f32.mrf.mxu2 }
 0x3a2   :  { %v3838_v60 = vadd.f32 %v3837_v58, %v3548_v55  ;;  %v4231_v16 = vpop.f32.mrf.mxu3  ;;  %v1597_v1 = vpop.f32.mrf.mxu0 }
 0x3a3   :  { %v1598_v7 = vadd.f32 %v13731_v63, %v1597_v1 }
 0x3a4   :  { %v14041_v3 = vadd.f32 %v4231_v16, %v3838_v60  ;;  %v12800_v60 = vld [vmem:[%s16683_s0 + $0x1e0] sm:$0xff] }
 0x3a5   :  { %2090 = vst.msk [vmem:[#allocation2 + $0x318] sm:$0xff] %vm1990_vm3, %v1598_v7 }
 0x3aa   :  { %v1600_v10 = vpop.f32.mrf.mxu0 }
 0x3ab   :  { %v1601_v11 = vadd.f32 %v13731_v63, %v1600_v10 }
 0x3ac   :  { %v2345_v16 = vld [vmem:[#allocation2 + $0x310] ss:$2 sm:$0xff]  ;;  %v2601_v1 = vld [vmem:[#allocation2 + $0x311] ss:$2 sm:$0xff] }
 0x3ad   :  { %10998 = vmatmul.msk.bf16.gmra.mxu0 %vm949_vm2, %v12798_v9  ;;  %2091 = vst.msk [vmem:[#allocation2 + $0x320] sm:$0xff] %vm1990_vm3, %v1601_v11  ;;  %v14068_v9 = vld [vmem:[%s16685_s2] ss:$0 sm:$0xff] }
 0x3b2   :  { %v1602_v12 = vpop.f32.mrf.mxu0 }
 0x3b3   :  { %v1603_v22 = vadd.f32 %v13731_v63, %v1602_v12 }
 0x3b5   :  { %2092 = vst.msk [vmem:[#allocation2 + $0x328] sm:$0xff] %vm1990_vm3, %v1603_v22 }
 0x3ba   :  { %v1605_v31 = vpop.f32.mrf.mxu0 }
 0x3bb   :  { %v1606_v32 = vadd.f32 %v13731_v63, %v1605_v31 }
 0x3bc   :  { %v2347_v33 = vld [vmem:[#allocation2 + $0x320] ss:$2 sm:$0xff]  ;;  %v2603_v36 = vld [vmem:[#allocation2 + $0x321] ss:$2 sm:$0xff] }
 0x3bd   :  { %10999 = vmatmul.msk.bf16.gmra.mxu0 %vm949_vm2, %v12799_v26  ;;  %v2808_v47 = vmax.f32 %v2347_v33, %v2603_v36  ;;  %2093 = vst.msk [vmem:[#allocation2 + $0x330] sm:$0xff] %vm1990_vm3, %v1606_v32  ;;  %v14076_v32 = vpop.f32.mrf.mxu1  ;;  %v14078_v33 = vpop.f32.mrf.mxu2  ;;  %v12801_v36 = vld [vmem:[%s16683_s0 + $0x1e8] sm:$0xff] }
 0x3bf   :  { %v2910_v49 = vmax.f32 %v2806_v46, %v2808_v47 }
 0x3c1   :  { %v2974_v54 = vmax.f32 %v2910_v49, 0.0  ;;  %v14083_v49 = vpop.f32.mrf.mxu3 }
 0x3c2   :  { %v1607_v55 = vpop.f32.mrf.mxu0 }
 0x3c3   :  { %3120 = vst.msk [vmem:[#allocation3 + $0x1a8] sm:$0xff] %vm1990_vm3, %v2974_v54  ;;  %v1608_v58 = vadd.f32 %v13731_v63, %v1607_v55  ;;  %v2807_v63 = vmax.f32 %v2345_v16, %v2601_v1 }
 0x3c5   :  { %2094 = vst.msk [vmem:[#allocation2 + $0x338] sm:$0xff] %vm1990_vm3, %v1608_v58 }
 0x3ca   :  { %v1610_v7 = vpop.f32.mrf.mxu0  ;;  %v3290_v46 = vld [vmem:[#allocation3 + $0x1a8] sm:$0xff] }
 0x3cb   :  { %v1611_v10 = vadd.f32 %v14068_v9, %v1610_v7  ;;  %v3186_v47 = vld [vmem:[#allocation3 + $0x1a7] sm:$0xff] }
 0x3cc   :  { %v2349_v11 = vld [vmem:[#allocation2 + $0x330] ss:$2 sm:$0xff]  ;;  %v2605_v12 = vld [vmem:[#allocation2 + $0x331] ss:$2 sm:$0xff] }
 0x3cd   :  { %11000 = vmatmul.msk.bf16.gmra.mxu0 %vm949_vm2, %v12800_v60  ;;  %v2809_v22 = vmax.f32 %v2349_v11, %v2605_v12  ;;  %2095 = vst.msk [vmem:[#allocation2 + $0x340] sm:$0xff] %vm1990_vm3, %v1611_v10 }
 0x3cf   :  { %v2911_v26 = vmax.f32 %v2807_v63, %v2809_v22 }
 0x3d1   :  { %v2975_v27 = vmax.f32 %v2911_v26, 0.0 }
 0x3d2   :  { %v1612_v30 = vpop.f32.mrf.mxu0 }
 0x3d3   :  { %3121 = vst.msk [vmem:[#allocation3 + $0x1b0] sm:$0xff] %vm1990_vm3, %v2975_v27  ;;  %v1613_v31 = vadd.f32 %v14068_v9, %v1612_v30 }
 0x3d5   :  { %2096 = vst.msk [vmem:[#allocation2 + $0x348] sm:$0xff] %vm1990_vm3, %v1613_v31 }
 0x3da   :  { %v1615_v54 = vpop.f32.mrf.mxu0  ;;  %v3291_v55 = vld [vmem:[#allocation3 + $0x1b0] sm:$0xff]  ;;  %v3553_v12 = vpop.f32.mrf.mxu1 }
 0x3db   :  { %v3187_v58 = vld [vmem:[#allocation3 + $0x1af] sm:$0xff]  ;;  %v1616_v16 = vadd.f32 %v14068_v9, %v1615_v54  ;;  %v3341_v1 = vpack.c.bf16 %v3291_v55, %v3290_v46 }
 0x3dc   :  { %v3973_v60 = vld [vmem:[#allocation3 + $0x1a9] sm:$0xff]  ;;  %v3237_v7 = vpack.c.bf16 %v3187_v58, %v3186_v47  ;;  %v3974_v10 = vld [vmem:[#allocation3 + $0x1b1] sm:$0xff] }
 0x3dd   :  { %11001 = vmatmul.msk.bf16.gmra.mxu0 %vm949_vm2, %v12801_v36  ;;  %v4024_v11 = vpack.c.bf16 %v3974_v10, %v3973_v60  ;;  %2097 = vst.msk [vmem:[#allocation2 + $0x350] sm:$0xff] %vm1990_vm3, %v1616_v16  ;;  %11105 = vmatmul.msk.bf16.gmra.mxu1 %vm1990_vm3, %v3341_v1  ;;  %v12802_v36 = vld [vmem:[%s16683_s0 + $0x1f0] sm:$0xff]  ;;  %v12803_v58 = vld [vmem:[%s16683_s0 + $0x1f8] sm:$0xff]  ;;  %v2351_v60 = vld [vmem:[#allocation2 + $0x340] ss:$2 sm:$0xff] }
 0x3de   :  { %11153 = vmatmul.msk.bf16.gmra.mxu2 %vm1990_vm3, %v3237_v7  ;;  %v2607_v16 = vld [vmem:[#allocation2 + $0x341] ss:$2 sm:$0xff] }
 0x3df   :  { %11209 = vmatmul.msk.bf16.gmra.mxu3 %vm1990_vm3, %v4024_v11 }
 0x3e1   :  { %v3842_v63 = vpop.f32.mrf.mxu2 }
 0x3e2   :  { %v3843_v22 = vadd.f32 %v3842_v63, %v3553_v12  ;;  %v4236_v26 = vpop.f32.mrf.mxu3  ;;  %v1617_v27 = vpop.f32.mrf.mxu0  ;;  %v2810_v12 = vmax.f32 %v2351_v60, %v2607_v16 }
 0x3e3   :  { %v1618_v31 = vadd.f32 %v14068_v9, %v1617_v27 }
 0x3e4   :  { %v14091_v30 = vadd.f32 %v4236_v26, %v3843_v22 }
 0x3e5   :  { %2098 = vst.msk [vmem:[#allocation2 + $0x358] sm:$0xff] %vm1990_vm3, %v1618_v31 }
 0x3ea   :  { %v1620_v46 = vpop.f32.mrf.mxu0 }
 0x3eb   :  { %v1621_v47 = vadd.f32 %v14068_v9, %v1620_v46 }
 0x3ec   :  { %v2353_v46 = vld [vmem:[#allocation2 + $0x350] ss:$2 sm:$0xff] }
 0x3ed   :  { %11002 = vmatmul.msk.bf16.gmra.mxu0 %vm949_vm2, %v12802_v36  ;;  %2099 = vst.msk [vmem:[#allocation2 + $0x360] sm:$0xff] %vm1990_vm3, %v1621_v47  ;;  %v12804_v36 = vld [vmem:[%s16683_s0 + $0x200] sm:$0xff]  ;;  %v2609_v47 = vld [vmem:[#allocation2 + $0x351] ss:$2 sm:$0xff] }
 0x3ee   :  { %v2811_v16 = vmax.f32 %v2353_v46, %v2609_v47 }
 0x3f2   :  { %v1622_v54 = vpop.f32.mrf.mxu0 }
 0x3f3   :  { %v1623_v55 = vadd.f32 %v14068_v9, %v1622_v54 }
 0x3f5   :  { %2100 = vst.msk [vmem:[#allocation2 + $0x368] sm:$0xff] %vm1990_vm3, %v1623_v55 }
 0x3fa   :  { %v1625_v1 = vpop.f32.mrf.mxu0 }
 0x3fb   :  { %v1626_v7 = vadd.f32 %v14068_v9, %v1625_v1 }
 0x3fc   :  { %v2355_v10 = vld [vmem:[#allocation2 + $0x360] ss:$2 sm:$0xff]  ;;  %v2611_v11 = vld [vmem:[#allocation2 + $0x361] ss:$2 sm:$0xff] }
 0x3fd   :  { %11003 = vmatmul.msk.bf16.gmra.mxu0 %vm949_vm2, %v12803_v58  ;;  %v2812_v63 = vmax.f32 %v2355_v10, %v2611_v11  ;;  %2101 = vst.msk [vmem:[#allocation2 + $0x370] sm:$0xff] %vm1990_vm3, %v1626_v7 }
 0x3ff   :  { %v2912_v22 = vmax.f32 %v2810_v12, %v2812_v63  ;;  %v14121_v63 = vpop.f32.mrf.mxu1 }
 0x400   :  { %16693 = vst [vmem:[#allocation10_spill] sm:$0xff] %v14121_v63 }
 0x401   :  { %v2976_v26 = vmax.f32 %v2912_v22, 0.0  ;;  %v14123_v22 = vpop.f32.mrf.mxu2 }
 0x402   :  { %v1627_v27 = vpop.f32.mrf.mxu0  ;;  %16694 = vst [vmem:[#allocation11_spill] sm:$0xff] %v14123_v22 }
 0x403   :  { %3122 = vst.msk [vmem:[#allocation3 + $0x1c8] sm:$0xff] %vm1990_vm3, %v2976_v26  ;;  %v1628_v31 = vadd.f32 %v14068_v9, %v1627_v27  ;;  %v12805_v26 = vld [vmem:[%s16683_s0 + $0x208] sm:$0xff] }
 0x405   :  { %2102 = vst.msk [vmem:[#allocation2 + $0x378] sm:$0xff] %vm1990_vm3, %v1628_v31 }
 0x40a   :  { %v1630_v54 = vpop.f32.mrf.mxu0  ;;  %v3292_v27 = vld [vmem:[#allocation3 + $0x1c8] sm:$0xff] }
 0x40b   :  { %v1631_v55 = vadd.f32 %v14068_v9, %v1630_v54  ;;  %v3188_v31 = vld [vmem:[#allocation3 + $0x1c7] sm:$0xff] }
 0x40c   :  { %v2357_v58 = vld [vmem:[#allocation2 + $0x370] ss:$2 sm:$0xff]  ;;  %v2613_v60 = vld [vmem:[#allocation2 + $0x371] ss:$2 sm:$0xff] }
 0x40d   :  { %11004 = vmatmul.msk.bf16.gmra.mxu0 %vm949_vm2, %v12804_v36  ;;  %v2813_v1 = vmax.f32 %v2357_v58, %v2613_v60  ;;  %2103 = vst.msk [vmem:[#allocation2 + $0x380] sm:$0xff] %vm1990_vm3, %v1631_v55  ;;  %v14128_v36 = vpop.f32.mrf.mxu3 }
 0x40e   :  { %16695 = vst [vmem:[#allocation12_spill] sm:$0xff] %v14128_v36 }
 0x40f   :  { %v2913_v7 = vmax.f32 %v2811_v16, %v2813_v1 }
 0x411   :  { %v2977_v10 = vmax.f32 %v2913_v7, 0.0 }
 0x412   :  { %v1632_v11 = vpop.f32.mrf.mxu0 }
 0x413   :  { %3123 = vst.msk [vmem:[#allocation3 + $0x1d0] sm:$0xff] %vm1990_vm3, %v2977_v10  ;;  %v1633_v12 = vadd.f32 %v14068_v9, %v1632_v11 }
 0x415   :  { %2104 = vst.msk [vmem:[#allocation2 + $0x388] sm:$0xff] %vm1990_vm3, %v1633_v12 }
 0x41a   :  { %v1635_v46 = vpop.f32.mrf.mxu0  ;;  %v3293_v47 = vld [vmem:[#allocation3 + $0x1d0] sm:$0xff]  ;;  %v3558_v10 = vpop.f32.mrf.mxu1 }
 0x41b   :  { %v3189_v54 = vld [vmem:[#allocation3 + $0x1cf] sm:$0xff]  ;;  %v1636_v58 = vadd.f32 %v14068_v9, %v1635_v46  ;;  %v3342_v60 = vpack.c.bf16 %v3293_v47, %v3292_v27 }
 0x41c   :  { %v3975_v55 = vld [vmem:[#allocation3 + $0x1c9] sm:$0xff]  ;;  %v3238_v16 = vpack.c.bf16 %v3189_v54, %v3188_v31  ;;  %v3976_v1 = vld [vmem:[#allocation3 + $0x1d1] sm:$0xff] }
 0x41d   :  { %11005 = vmatmul.msk.bf16.gmra.mxu0 %vm949_vm2, %v12805_v26  ;;  %v4025_v7 = vpack.c.bf16 %v3976_v1, %v3975_v55  ;;  %2105 = vst.msk [vmem:[#allocation2 + $0x390] sm:$0xff] %vm1990_vm3, %v1636_v58  ;;  %11106 = vmatmul.msk.bf16.gmra.mxu1 %vm1990_vm3, %v3342_v60  ;;  %v12806_v26 = vld [vmem:[%s16683_s0 + $0x210] sm:$0xff]  ;;  %v2615_v58 = vld [vmem:[#allocation2 + $0x381] ss:$2 sm:$0xff] }
 0x41e   :  { %11154 = vmatmul.msk.bf16.gmra.mxu2 %vm1990_vm3, %v3238_v16 }
 0x41f   :  { %11210 = vmatmul.msk.bf16.gmra.mxu3 %vm1990_vm3, %v4025_v7 }
 0x421   :  { %v3847_v11 = vpop.f32.mrf.mxu2 }
 0x422   :  { %v3848_v12 = vadd.f32 %v3847_v11, %v3558_v10  ;;  %v4241_v36 = vpop.f32.mrf.mxu3  ;;  %v1637_v22 = vpop.f32.mrf.mxu0 }
 0x423   :  { %v1638_v27 = vadd.f32 %v14068_v9, %v1637_v22  ;;  %v12807_v22 = vld [vmem:[%s16683_s0 + $0x218] sm:$0xff] }
 0x424   :  { %v14136_v46 = vadd.f32 %v4241_v36, %v3848_v12  ;;  %v2359_v36 = vld [vmem:[#allocation2 + $0x380] ss:$2 sm:$0xff] }
 0x425   :  { %2106 = vst.msk [vmem:[#allocation2 + $0x398] sm:$0xff] %vm1990_vm3, %v1638_v27  ;;  %v2814_v10 = vmax.f32 %v2359_v36, %v2615_v58 }
 0x426   :  { %16696 = vst [vmem:[#allocation13_spill] sm:$0xff] %v14136_v46 }
 0x42a   :  { %v1640_v31 = vpop.f32.mrf.mxu0 }
 0x42b   :  { %v1641_v47 = vadd.f32 %v14068_v9, %v1640_v31 }
 0x42d   :  { %11006 = vmatmul.msk.bf16.gmra.mxu0 %vm949_vm2, %v12806_v26  ;;  %2107 = vst.msk [vmem:[#allocation2 + $0x3a0] sm:$0xff] %vm1990_vm3, %v1641_v47  ;;  %v12808_v47 = vld [vmem:[%s16683_s0 + $0x220] sm:$0xff] }
 0x432   :  { %v1642_v54 = vpop.f32.mrf.mxu0 }
 0x433   :  { %v1643_v55 = vadd.f32 %v14068_v9, %v1642_v54  ;;  %v2361_v54 = vld [vmem:[#allocation2 + $0x390] ss:$2 sm:$0xff] }
 0x435   :  { %2108 = vst.msk [vmem:[#allocation2 + $0x3a8] sm:$0xff] %vm1990_vm3, %v1643_v55  ;;  %v2617_v55 = vld [vmem:[#allocation2 + $0x391] ss:$2 sm:$0xff] }
 0x43a   :  { %v1645_v60 = vpop.f32.mrf.mxu0 }
 0x43b   :  { %v1646_v16 = vadd.f32 %v14068_v9, %v1645_v60 }
 0x43c   :  { %v2363_v1 = vld [vmem:[#allocation2 + $0x3a0] ss:$2 sm:$0xff]  ;;  %v2619_v7 = vld [vmem:[#allocation2 + $0x3a1] ss:$2 sm:$0xff] }
 0x43d   :  { %11007 = vmatmul.msk.bf16.gmra.mxu0 %vm949_vm2, %v12807_v22  ;;  %v2816_v11 = vmax.f32 %v2363_v1, %v2619_v7  ;;  %2109 = vst.msk [vmem:[#allocation2 + $0x3b0] sm:$0xff] %vm1990_vm3, %v1646_v16  ;;  %v2815_v16 = vmax.f32 %v2361_v54, %v2617_v55  ;;  %v14173_v55 = vpop.f32.mrf.mxu3 }
 0x43e   :  { %16699 = vst [vmem:[#allocation16_spill] sm:$0xff] %v14173_v55 }
 0x43f   :  { %v2914_v12 = vmax.f32 %v2814_v10, %v2816_v11 }
 0x441   :  { %v2978_v27 = vmax.f32 %v2914_v12, 0.0 }
 0x442   :  { %v1647_v26 = vpop.f32.mrf.mxu0 }
 0x443   :  { %3124 = vst.msk [vmem:[#allocation3 + $0x1e8] sm:$0xff] %vm1990_vm3, %v2978_v27  ;;  %v1648_v31 = vadd.f32 %v14068_v9, %v1647_v26  ;;  %v14166_v27 = vpop.f32.mrf.mxu1  ;;  %v14168_v26 = vpop.f32.mrf.mxu2 }
 0x444   :  { %16697 = vst [vmem:[#allocation14_spill] sm:$0xff] %v14166_v27 }
 0x445   :  { %2110 = vst.msk [vmem:[#allocation2 + $0x3b8] sm:$0xff] %vm1990_vm3, %v1648_v31  ;;  %v12809_v31 = vld [vmem:[%s16683_s0 + $0x228] sm:$0xff] }
 0x446   :  { %16698 = vst [vmem:[#allocation15_spill] sm:$0xff] %v14168_v26 }
 0x44a   :  { %v1650_v22 = vpop.f32.mrf.mxu0  ;;  %v3190_v54 = vld [vmem:[#allocation3 + $0x1e7] sm:$0xff] }
 0x44b   :  { %v1651_v36 = vadd.f32 %v14068_v9, %v1650_v22 }
 0x44c   :  { %v2365_v58 = vld [vmem:[#allocation2 + $0x3b0] ss:$2 sm:$0xff]  ;;  %v2621_v60 = vld [vmem:[#allocation2 + $0x3b1] ss:$2 sm:$0xff] }
 0x44d   :  { %11008 = vmatmul.msk.bf16.gmra.mxu0 %vm949_vm2, %v12808_v47  ;;  %v2817_v1 = vmax.f32 %v2365_v58, %v2621_v60  ;;  %2111 = vst.msk [vmem:[#allocation2 + $0x3c0] sm:$0xff] %vm1990_vm3, %v1651_v36  ;;  %v3294_v47 = vld [vmem:[#allocation3 + $0x1e8] sm:$0xff] }
 0x44f   :  { %v2915_v7 = vmax.f32 %v2815_v16, %v2817_v1 }
 0x451   :  { %v2979_v10 = vmax.f32 %v2915_v7, 0.0 }
 0x452   :  { %v1652_v11 = vpop.f32.mrf.mxu0 }
 0x453   :  { %3125 = vst.msk [vmem:[#allocation3 + $0x1f0] sm:$0xff] %vm1990_vm3, %v2979_v10  ;;  %v1653_v12 = vadd.f32 %v14068_v9, %v1652_v11 }
 0x455   :  { %2112 = vst.msk [vmem:[#allocation2 + $0x3c8] sm:$0xff] %vm1990_vm3, %v1653_v12 }
 0x45a   :  { %v1655_v22 = vpop.f32.mrf.mxu0  ;;  %v3295_v36 = vld [vmem:[#allocation3 + $0x1f0] sm:$0xff]  ;;  %v3563_v12 = vpop.f32.mrf.mxu1 }
 0x45b   :  { %v3191_v58 = vld [vmem:[#allocation3 + $0x1ef] sm:$0xff]  ;;  %v1656_v16 = vadd.f32 %v14068_v9, %v1655_v22  ;;  %v3343_v1 = vpack.c.bf16 %v3295_v36, %v3294_v47 }
 0x45c   :  { %v3977_v60 = vld [vmem:[#allocation3 + $0x1e9] sm:$0xff]  ;;  %v3239_v7 = vpack.c.bf16 %v3191_v58, %v3190_v54  ;;  %v3978_v10 = vld [vmem:[#allocation3 + $0x1f1] sm:$0xff] }
 0x45d   :  { %11009 = vmatmul.msk.bf16.gmra.mxu0 %vm949_vm2, %v12809_v31  ;;  %v4026_v11 = vpack.c.bf16 %v3978_v10, %v3977_v60  ;;  %2113 = vst.msk [vmem:[#allocation2 + $0x3d0] sm:$0xff] %vm1990_vm3, %v1656_v16  ;;  %11107 = vmatmul.msk.bf16.gmra.mxu1 %vm1990_vm3, %v3343_v1  ;;  %v12810_v31 = vld [vmem:[%s16683_s0 + $0x230] sm:$0xff] }
 0x45e   :  { %11155 = vmatmul.msk.bf16.gmra.mxu2 %vm1990_vm3, %v3239_v7 }
 0x45f   :  { %11211 = vmatmul.msk.bf16.gmra.mxu3 %vm1990_vm3, %v4026_v11 }
 0x461   :  { %v3852_v55 = vpop.f32.mrf.mxu2 }
 0x462   :  { %v3853_v26 = vadd.f32 %v3852_v55, %v3563_v12  ;;  %v4246_v27 = vpop.f32.mrf.mxu3  ;;  %v1657_v46 = vpop.f32.mrf.mxu0 }
 0x463   :  { %v1658_v47 = vadd.f32 %v14068_v9, %v1657_v46  ;;  %v12811_v46 = vld [vmem:[%s16683_s0 + $0x238] sm:$0xff] }
 0x464   :  { %v14181_v22 = vadd.f32 %v4246_v27, %v3853_v26  ;;  %v2367_v27 = vld [vmem:[#allocation2 + $0x3c0] ss:$2 sm:$0xff]  ;;  %v2623_v26 = vld [vmem:[#allocation2 + $0x3c1] ss:$2 sm:$0xff] }
 0x465   :  { %2114 = vst.msk [vmem:[#allocation2 + $0x3d8] sm:$0xff] %vm1990_vm3, %v1658_v47  ;;  %v2818_v10 = vmax.f32 %v2367_v27, %v2623_v26 }
 0x466   :  { %16700 = vst [vmem:[#allocation17_spill] sm:$0xff] %v14181_v22 }
 0x46a   :  { %v1660_v54 = vpop.f32.mrf.mxu0 }
 0x46b   :  { %v1661_v36 = vadd.f32 %v14068_v9, %v1660_v54 }
 0x46d   :  { %11010 = vmatmul.msk.bf16.gmra.mxu0 %vm949_vm2, %v12810_v31  ;;  %2115 = vst.msk [vmem:[#allocation2 + $0x3e0] sm:$0xff] %vm1990_vm3, %v1661_v36  ;;  %v12812_v36 = vld [vmem:[%s16683_s0 + $0x240] sm:$0xff] }
 0x472   :  { %v1662_v55 = vpop.f32.mrf.mxu0 }
 0x473   :  { %v1663_v58 = vadd.f32 %v14068_v9, %v1662_v55  ;;  %v2369_v55 = vld [vmem:[#allocation2 + $0x3d0] ss:$2 sm:$0xff] }
 0x475   :  { %2116 = vst.msk [vmem:[#allocation2 + $0x3e8] sm:$0xff] %vm1990_vm3, %v1663_v58  ;;  %v2625_v58 = vld [vmem:[#allocation2 + $0x3d1] ss:$2 sm:$0xff] }
 0x47a   :  { %v1665_v60 = vpop.f32.mrf.mxu0 }
 0x47b   :  { %v1666_v16 = vadd.f32 %v14068_v9, %v1665_v60 }
 0x47c   :  { %v2371_v1 = vld [vmem:[#allocation2 + $0x3e0] ss:$2 sm:$0xff]  ;;  %v2627_v7 = vld [vmem:[#allocation2 + $0x3e1] ss:$2 sm:$0xff] }
 0x47d   :  { %11011 = vmatmul.msk.bf16.gmra.mxu0 %vm949_vm2, %v12811_v46  ;;  %v2820_v11 = vmax.f32 %v2371_v1, %v2627_v7  ;;  %2117 = vst.msk [vmem:[#allocation2 + $0x3f0] sm:$0xff] %vm1990_vm3, %v1666_v16  ;;  %v2819_v16 = vmax.f32 %v2369_v55, %v2625_v58 }
 0x47f   :  { %v2916_v12 = vmax.f32 %v2818_v10, %v2820_v11 }
 0x481   :  { %v2980_v47 = vmax.f32 %v2916_v12, 0.0 }
 0x482   :  { %v1667_v31 = vpop.f32.mrf.mxu0 }
 0x483   :  { %3126 = vst.msk [vmem:[#allocation3 + $0x208] sm:$0xff] %vm1990_vm3, %v2980_v47  ;;  %v1668_v54 = vadd.f32 %v14068_v9, %v1667_v31  ;;  %v14211_v47 = vpop.f32.mrf.mxu1  ;;  %v14213_v31 = vpop.f32.mrf.mxu2 }
 0x484   :  { %16701 = vst [vmem:[#allocation18_spill] sm:$0xff] %v14211_v47 }
 0x485   :  { %2118 = vst.msk [vmem:[#allocation2 + $0x3f8] sm:$0xff] %vm1990_vm3, %v1668_v54  ;;  %v12813_v54 = vld [vmem:[%s16683_s0 + $0x248] sm:$0xff] }
 0x486   :  { %16702 = vst [vmem:[#allocation19_spill] sm:$0xff] %v14213_v31 }
 0x48a   :  { %v1670_v46 = vpop.f32.mrf.mxu0 }
 0x48b   :  { %v1671_v27 = vadd.f32 %v14068_v9, %v1670_v46 }
 0x48c   :  { %v2373_v26 = vld [vmem:[#allocation2 + $0x3f0] ss:$2 sm:$0xff]  ;;  %v2629_v60 = vld [vmem:[#allocation2 + $0x3f1] ss:$2 sm:$0xff] }
 0x48d   :  { %11012 = vmatmul.msk.bf16.gmra.mxu0 %vm949_vm2, %v12812_v36  ;;  %v2821_v1 = vmax.f32 %v2373_v26, %v2629_v60  ;;  %2119 = vst.msk [vmem:[#allocation2 + $0x400] sm:$0xff] %vm1990_vm3, %v1671_v27  ;;  %v14218_v36 = vpop.f32.mrf.mxu3 }
 0x48e   :  { %16703 = vst [vmem:[#allocation20_spill] sm:$0xff] %v14218_v36 }
 0x48f   :  { %v2917_v7 = vmax.f32 %v2819_v16, %v2821_v1 }
 0x491   :  { %v2981_v10 = vmax.f32 %v2917_v7, 0.0 }
 0x492   :  { %v1672_v11 = vpop.f32.mrf.mxu0 }
 0x493   :  { %3127 = vst.msk [vmem:[#allocation3 + $0x210] sm:$0xff] %vm1990_vm3, %v2981_v10  ;;  %v1673_v12 = vadd.f32 %v14068_v9, %v1672_v11  ;;  %v12814_v10 = vld [vmem:[%s16683_s0 + $0x250] sm:$0xff] }
 0x495   :  { %2120 = vst.msk [vmem:[#allocation2 + $0x408] sm:$0xff] %vm1990_vm3, %v1673_v12 }
 0x49a   :  { %v1675_v55 = vpop.f32.mrf.mxu0  ;;  %v3568_v46 = vpop.f32.mrf.mxu1 }
 0x49b   :  { %v1676_v58 = vadd.f32 %v14068_v9, %v1675_v55 }
 0x49d   :  { %11013 = vmatmul.msk.bf16.gmra.mxu0 %vm949_vm2, %v12813_v54  ;;  %2121 = vst.msk [vmem:[#allocation2 + $0x410] sm:$0xff] %vm1990_vm3, %v1676_v58  ;;  %v3296_v58 = vld [vmem:[#allocation3 + $0x248] sm:$0xff] }
 0x4a1   :  { %v3857_v27 = vpop.f32.mrf.mxu2 }
 0x4a2   :  { %v3858_v26 = vadd.f32 %v3857_v27, %v3568_v46  ;;  %v4251_v60 = vpop.f32.mrf.mxu3  ;;  %v1677_v16 = vpop.f32.mrf.mxu0  ;;  %v3297_v46 = vld [vmem:[#allocation3 + $0x250] sm:$0xff] }
 0x4a3   :  { %v1678_v7 = vadd.f32 %v14068_v9, %v1677_v16  ;;  %v3344_v27 = vpack.c.bf16 %v3297_v46, %v3296_v58  ;;  %v3979_v16 = vld [vmem:[#allocation3 + $0x249] sm:$0xff] }
 0x4a4   :  { %v14223_v1 = vadd.f32 %v4251_v60, %v3858_v26  ;;  %v3192_v26 = vld [vmem:[#allocation3 + $0x247] sm:$0xff]  ;;  %v3193_v60 = vld [vmem:[#allocation3 + $0x24f] sm:$0xff] }
 0x4a5   :  { %2122 = vst.msk [vmem:[#allocation2 + $0x418] sm:$0xff] %vm1990_vm3, %v1678_v7  ;;  %v3240_v7 = vpack.c.bf16 %v3193_v60, %v3192_v26  ;;  %11108 = vmatmul.msk.bf16.gmra.mxu1 %vm1990_vm3, %v3344_v27 }
 0x4a6   :  { %16704 = vst [vmem:[#allocation21_spill] sm:$0xff] %v14223_v1  ;;  %v3980_v1 = vld [vmem:[#allocation3 + $0x251] sm:$0xff] }
 0x4a7   :  { %11156 = vmatmul.msk.bf16.gmra.mxu2 %vm1990_vm3, %v3240_v7 }
 0x4aa   :  { %v1680_v11 = vpop.f32.mrf.mxu0 }
 0x4ab   :  { %v1681_v12 = vadd.f32 %v14068_v9, %v1680_v11  ;;  %v4027_v11 = vpack.c.bf16 %v3980_v1, %v3979_v16 }
 0x4ac   :  { %v2633_v31 = vld [vmem:[#allocation2 + $0x411] ss:$2 sm:$0xff] }
 0x4ad   :  { %11014 = vmatmul.msk.bf16.gmra.mxu0 %vm949_vm2, %v12814_v10  ;;  %2123 = vst.msk [vmem:[#allocation2 + $0x420] sm:$0xff] %vm1990_vm3, %v1681_v12  ;;  %v12815_v10 = vld [vmem:[%s16683_s0 + $0x258] sm:$0xff]  ;;  %11212 = vmatmul.msk.bf16.gmra.mxu3 %vm1990_vm3, %v4027_v11  ;;  %v2375_v12 = vld [vmem:[#allocation2 + $0x400] ss:$2 sm:$0xff] }
 0x4ae   :  { %v12816_v11 = vld [vmem:[%s16683_s0 + $0x260] sm:$0xff] }
 0x4b2   :  { %v1682_v54 = vpop.f32.mrf.mxu0 }
 0x4b3   :  { %v1683_v55 = vadd.f32 %v14068_v9, %v1682_v54  ;;  %v2631_v54 = vld [vmem:[#allocation2 + $0x401] ss:$2 sm:$0xff] }
 0x4b4   :  { %v2822_v26 = vmax.f32 %v2375_v12, %v2631_v54 }
 0x4b5   :  { %2124 = vst.msk [vmem:[#allocation2 + $0x428] sm:$0xff] %vm1990_vm3, %v1683_v55 }
 0x4ba   :  { %v1685_v58 = vpop.f32.mrf.mxu0 }
 0x4bb   :  { %v1686_v46 = vadd.f32 %v14068_v9, %v1685_v58  ;;  %v2377_v58 = vld [vmem:[#allocation2 + $0x410] ss:$2 sm:$0xff] }
 0x4bc   :  { %v2379_v36 = vld [vmem:[#allocation2 + $0x420] ss:$2 sm:$0xff]  ;;  %v2635_v55 = vld [vmem:[#allocation2 + $0x421] ss:$2 sm:$0xff] }
 0x4bd   :  { %11015 = vmatmul.msk.bf16.gmra.mxu0 %vm949_vm2, %v12815_v10  ;;  %v2824_v27 = vmax.f32 %v2379_v36, %v2635_v55  ;;  %2125 = vst.msk [vmem:[#allocation2 + $0x430] sm:$0xff] %vm1990_vm3, %v1686_v46  ;;  %v2823_v46 = vmax.f32 %v2377_v58, %v2633_v31  ;;  %v12817_v31 = vld [vmem:[%s16683_s0 + $0x268] sm:$0xff] }
 0x4bf   :  { %v2918_v1 = vmax.f32 %v2822_v26, %v2824_v27 }
 0x4c1   :  { %v2982_v60 = vmax.f32 %v2918_v1, 0.0 }
 0x4c2   :  { %v1687_v16 = vpop.f32.mrf.mxu0 }
 0x4c3   :  { %3128 = vst.msk [vmem:[#allocation3 + $0x268] sm:$0xff] %vm1990_vm3, %v2982_v60  ;;  %v1688_v7 = vadd.f32 %v14068_v9, %v1687_v16  ;;  %v14256_v16 = vpop.f32.mrf.mxu1 }
 0x4c4   :  { %16705 = vst [vmem:[#allocation22_spill] sm:$0xff] %v14256_v16 }
 0x4c5   :  { %2126 = vst.msk [vmem:[#allocation2 + $0x438] sm:$0xff] %vm1990_vm3, %v1688_v7  ;;  %v14258_v7 = vpop.f32.mrf.mxu2 }
 0x4c6   :  { %16706 = vst [vmem:[#allocation23_spill] sm:$0xff] %v14258_v7 }
 0x4ca   :  { %v1690_v10 = vpop.f32.mrf.mxu0  ;;  %v3194_v58 = vld [vmem:[#allocation3 + $0x267] sm:$0xff] }
 0x4cb   :  { %v1691_v36 = vadd.f32 %v14068_v9, %v1690_v10  ;;  %v14263_v10 = vpop.f32.mrf.mxu3 }
 0x4cc   :  { %v2381_v12 = vld [vmem:[#allocation2 + $0x430] ss:$2 sm:$0xff]  ;;  %v2637_v54 = vld [vmem:[#allocation2 + $0x431] ss:$2 sm:$0xff]  ;;  %16707 = vst [vmem:[#allocation24_spill] sm:$0xff] %v14263_v10 }
 0x4cd   :  { %11016 = vmatmul.msk.bf16.gmra.mxu0 %vm949_vm2, %v12816_v11  ;;  %v2825_v55 = vmax.f32 %v2381_v12, %v2637_v54  ;;  %2127 = vst.msk [vmem:[#allocation2 + $0x440] sm:$0xff] %vm1990_vm3, %v1691_v36  ;;  %v3298_v11 = vld [vmem:[#allocation3 + $0x268] sm:$0xff] }
 0x4cf   :  { %v2919_v26 = vmax.f32 %v2823_v46, %v2825_v55 }
 0x4d1   :  { %v2983_v27 = vmax.f32 %v2919_v26, 0.0 }
 0x4d2   :  { %v1692_v1 = vpop.f32.mrf.mxu0 }
 0x4d3   :  { %3129 = vst.msk [vmem:[#allocation3 + $0x270] sm:$0xff] %vm1990_vm3, %v2983_v27  ;;  %v1693_v60 = vadd.f32 %v14068_v9, %v1692_v1 }
 0x4d5   :  { %2128 = vst.msk [vmem:[#allocation2 + $0x448] sm:$0xff] %vm1990_vm3, %v1693_v60 }
 0x4da   :  { %v1695_v36 = vpop.f32.mrf.mxu0  ;;  %v3299_v12 = vld [vmem:[#allocation3 + $0x270] sm:$0xff]  ;;  %v3573_v10 = vpop.f32.mrf.mxu1 }
 0x4db   :  { %v3195_v54 = vld [vmem:[#allocation3 + $0x26f] sm:$0xff]  ;;  %v1696_v55 = vadd.f32 %v14068_v9, %v1695_v36  ;;  %v3345_v26 = vpack.c.bf16 %v3299_v12, %v3298_v11 }
 0x4dc   :  { %v3981_v46 = vld [vmem:[#allocation3 + $0x269] sm:$0xff]  ;;  %v3241_v27 = vpack.c.bf16 %v3195_v54, %v3194_v58  ;;  %v3982_v1 = vld [vmem:[#allocation3 + $0x271] sm:$0xff] }
 0x4dd   :  { %11017 = vmatmul.msk.bf16.gmra.mxu0 %vm949_vm2, %v12817_v31  ;;  %v4028_v60 = vpack.c.bf16 %v3982_v1, %v3981_v46  ;;  %2129 = vst.msk [vmem:[#allocation2 + $0x450] sm:$0xff] %vm1990_vm3, %v1696_v55  ;;  %11109 = vmatmul.msk.bf16.gmra.mxu1 %vm1990_vm3, %v3345_v26  ;;  %v12818_v31 = vld [vmem:[%s16683_s0 + $0x270] sm:$0xff] }
 0x4de   :  { %11157 = vmatmul.msk.bf16.gmra.mxu2 %vm1990_vm3, %v3241_v27 }
 0x4df   :  { %11213 = vmatmul.msk.bf16.gmra.mxu3 %vm1990_vm3, %v4028_v60 }
 0x4e1   :  { %v3862_v7 = vpop.f32.mrf.mxu2 }
 0x4e2   :  { %v3863_v16 = vadd.f32 %v3862_v7, %v3573_v10  ;;  %v4256_v47 = vpop.f32.mrf.mxu3  ;;  %v1697_v22 = vpop.f32.mrf.mxu0 }
 0x4e3   :  { %v1698_v11 = vadd.f32 %v14068_v9, %v1697_v22  ;;  %v12819_v22 = vld [vmem:[%s16683_s0 + $0x278] sm:$0xff] }
 0x4e4   :  { %v14271_v36 = vadd.f32 %v4256_v47, %v3863_v16  ;;  %v2383_v47 = vld [vmem:[#allocation2 + $0x440] ss:$2 sm:$0xff]  ;;  %v2639_v16 = vld [vmem:[#allocation2 + $0x441] ss:$2 sm:$0xff] }
 0x4e5   :  { %2130 = vst.msk [vmem:[#allocation2 + $0x458] sm:$0xff] %vm1990_vm3, %v1698_v11  ;;  %v2826_v27 = vmax.f32 %v2383_v47, %v2639_v16 }
 0x4e6   :  { %16708 = vst [vmem:[#allocation25_spill] sm:$0xff] %v14271_v36 }
 0x4ea   :  { %v1700_v58 = vpop.f32.mrf.mxu0 }
 0x4eb   :  { %v1701_v12 = vadd.f32 %v14068_v9, %v1700_v58 }
 0x4ed   :  { %11018 = vmatmul.msk.bf16.gmra.mxu0 %vm949_vm2, %v12818_v31  ;;  %2131 = vst.msk [vmem:[#allocation2 + $0x460] sm:$0xff] %vm1990_vm3, %v1701_v12  ;;  %v12820_v12 = vld [vmem:[%s16683_s0 + $0x280] sm:$0xff] }
 0x4f2   :  { %v1702_v7 = vpop.f32.mrf.mxu0 }
 0x4f3   :  { %v1703_v10 = vadd.f32 %v14068_v9, %v1702_v7  ;;  %v2385_v7 = vld [vmem:[#allocation2 + $0x450] ss:$2 sm:$0xff] }
 0x4f5   :  { %2132 = vst.msk [vmem:[#allocation2 + $0x468] sm:$0xff] %vm1990_vm3, %v1703_v10  ;;  %v2641_v10 = vld [vmem:[#allocation2 + $0x451] ss:$2 sm:$0xff] }
 0x4fa   :  { %v1705_v54 = vpop.f32.mrf.mxu0 }
 0x4fb   :  { %v1706_v46 = vadd.f32 %v14068_v9, %v1705_v54 }
 0x4fc   :  { %v2387_v55 = vld [vmem:[#allocation2 + $0x460] ss:$2 sm:$0xff]  ;;  %v2643_v26 = vld [vmem:[#allocation2 + $0x461] ss:$2 sm:$0xff] }
 0x4fd   :  { %11019 = vmatmul.msk.bf16.gmra.mxu0 %vm949_vm2, %v12819_v22  ;;  %v2828_v1 = vmax.f32 %v2387_v55, %v2643_v26  ;;  %2133 = vst.msk [vmem:[#allocation2 + $0x470] sm:$0xff] %vm1990_vm3, %v1706_v46  ;;  %v2827_v46 = vmax.f32 %v2385_v7, %v2641_v10 }
 0x4ff   :  { %v2920_v60 = vmax.f32 %v2826_v27, %v2828_v1 }
 0x501   :  { %v2984_v11 = vmax.f32 %v2920_v60, 0.0 }
 0x502   :  { %v1707_v31 = vpop.f32.mrf.mxu0 }
 0x503   :  { %3130 = vst.msk [vmem:[#allocation3 + $0x288] sm:$0xff] %vm1990_vm3, %v2984_v11  ;;  %v1708_v58 = vadd.f32 %v14068_v9, %v1707_v31  ;;  %v12821_v11 = vld [vmem:[%s16683_s0 + $0x288] sm:$0xff] }
 0x505   :  { %2134 = vst.msk [vmem:[#allocation2 + $0x478] sm:$0xff] %vm1990_vm3, %v1708_v58 }
 0x50a   :  { %v1710_v22 = vpop.f32.mrf.mxu0  ;;  %v3300_v31 = vld [vmem:[#allocation3 + $0x288] sm:$0xff] }
 0x50b   :  { %v1711_v47 = vadd.f32 %v14068_v9, %v1710_v22  ;;  %v3196_v58 = vld [vmem:[#allocation3 + $0x287] sm:$0xff] }
 0x50c   :  { %v2389_v16 = vld [vmem:[#allocation2 + $0x470] ss:$2 sm:$0xff]  ;;  %v2645_v54 = vld [vmem:[#allocation2 + $0x471] ss:$2 sm:$0xff] }
 0x50d   :  { %11020 = vmatmul.msk.bf16.gmra.mxu0 %vm949_vm2, %v12820_v12  ;;  %v2829_v55 = vmax.f32 %v2389_v16, %v2645_v54  ;;  %2135 = vst.msk [vmem:[#allocation2 + $0x480] sm:$0xff] %vm1990_vm3, %v1711_v47 }
 0x50f   :  { %v2921_v26 = vmax.f32 %v2827_v46, %v2829_v55 }
 0x511   :  { %v2985_v27 = vmax.f32 %v2921_v26, 0.0 }
 0x512   :  { %v1712_v1 = vpop.f32.mrf.mxu0 }
 0x513   :  { %3131 = vst.msk [vmem:[#allocation3 + $0x290] sm:$0xff] %vm1990_vm3, %v2985_v27  ;;  %v1713_v60 = vadd.f32 %v14068_v9, %v1712_v1  ;;  %v12822_v1 = vld [vmem:[%s16683_s0 + $0x290] sm:$0xff] }
 0x515   :  { %2136 = vst.msk [vmem:[#allocation2 + $0x488] sm:$0xff] %vm1990_vm3, %v1713_v60 }
 0x51a   :  { %v1715_v12 = vpop.f32.mrf.mxu0  ;;  %v3301_v7 = vld [vmem:[#allocation3 + $0x290] sm:$0xff] }
 0x51b   :  { %v3197_v10 = vld [vmem:[#allocation3 + $0x28f] sm:$0xff]  ;;  %v1716_v47 = vadd.f32 %v14068_v9, %v1715_v12  ;;  %v3346_v16 = vpack.c.bf16 %v3301_v7, %v3300_v31  ;;  %v14318_v31 = vpop.f32.mrf.mxu1 }
 0x51c   :  { %v3983_v22 = vld [vmem:[#allocation3 + $0x289] sm:$0xff]  ;;  %v3242_v54 = vpack.c.bf16 %v3197_v10, %v3196_v58  ;;  %v3984_v46 = vld [vmem:[#allocation3 + $0x291] sm:$0xff]  ;;  %16709 = vst [vmem:[#allocation26_spill] sm:$0xff] %v14318_v31  ;;  %v14320_v58 = vpop.f32.mrf.mxu2  ;;  %v14323_v10 = vpop.f32.mrf.mxu3 }
 0x51d   :  { %11021 = vmatmul.msk.bf16.gmra.mxu0 %vm949_vm2, %v12821_v11  ;;  %v4029_v55 = vpack.c.bf16 %v3984_v46, %v3983_v22  ;;  %2137 = vst.msk [vmem:[#allocation2 + $0x490] sm:$0xff] %vm1990_vm3, %v1716_v47  ;;  %11110 = vmatmul.msk.bf16.gmra.mxu1 %vm1990_vm3, %v3346_v16  ;;  %v12823_v22 = vld [vmem:[%s16683_s0 + $0x298] sm:$0xff]  ;;  %v2391_v16 = vld [vmem:[#allocation2 + $0x480] ss:$2 sm:$0xff] }
 0x51e   :  { %11158 = vmatmul.msk.bf16.gmra.mxu2 %vm1990_vm3, %v3242_v54  ;;  %16710 = vst [vmem:[#allocation27_spill] sm:$0xff] %v14320_v58  ;;  %v2647_v54 = vld [vmem:[#allocation2 + $0x481] ss:$2 sm:$0xff] }
 0x51f   :  { %11214 = vmatmul.msk.bf16.gmra.mxu3 %vm1990_vm3, %v4029_v55  ;;  %16711 = vst [vmem:[#allocation28_spill] sm:$0xff] %v14323_v10 }
 0x522   :  { %v1717_v26 = vpop.f32.mrf.mxu0 }
 0x523   :  { %v1718_v27 = vadd.f32 %v14068_v9, %v1717_v26  ;;  %v3578_v47 = vpop.f32.mrf.mxu1 }
 0x525   :  { %2138 = vst.msk [vmem:[#allocation2 + $0x498] sm:$0xff] %vm1990_vm3, %v1718_v27 }
 0x52a   :  { %v1720_v60 = vpop.f32.mrf.mxu0  ;;  %v3867_v55 = vpop.f32.mrf.mxu2 }
 0x52b   :  { %v1721_v11 = vadd.f32 %v14068_v9, %v1720_v60  ;;  %v3868_v27 = vadd.f32 %v3867_v55, %v3578_v47 }
 0x52c   :  { %v2393_v47 = vld [vmem:[#allocation2 + $0x490] ss:$2 sm:$0xff] }
 0x52d   :  { %11022 = vmatmul.msk.bf16.gmra.mxu0 %vm949_vm2, %v12822_v1  ;;  %2139 = vst.msk [vmem:[#allocation2 + $0x4a0] sm:$0xff] %vm1990_vm3, %v1721_v11 }
 0x530   :  { %v4261_v11 = vpop.f32.mrf.mxu3 }
 0x532   :  { %v1722_v12 = vpop.f32.mrf.mxu0 }
 0x533   :  { %v1723_v7 = vadd.f32 %v14068_v9, %v1722_v12  ;;  %v2830_v12 = vmax.f32 %v2391_v16, %v2647_v54  ;;  %v2649_v16 = vld [vmem:[#allocation2 + $0x491] ss:$2 sm:$0xff] }
 0x535   :  { %2140 = vst.msk [vmem:[#allocation2 + $0x4a8] sm:$0xff] %vm1990_vm3, %v1723_v7  ;;  %v14332_v7 = vadd.f32 %v4261_v11, %v3868_v27 }
 0x537   :  { %16712 = vst [vmem:[#allocation29_spill] sm:$0xff] %v14332_v7 }
 0x538   :  { %v14350_v11 = vpop.f32.mrf.mxu3 }
 0x539   :  { %16715 = vst [vmem:[#allocation32_spill] sm:$0xff] %v14350_v11 }
 0x53a   :  { %v1725_v46 = vpop.f32.mrf.mxu0 }
 0x53b   :  { %v1726_v26 = vadd.f32 %v14068_v9, %v1725_v46 }
 0x53c   :  { %v2395_v1 = vld [vmem:[#allocation2 + $0x4a0] ss:$2 sm:$0xff]  ;;  %v2651_v60 = vld [vmem:[#allocation2 + $0x4a1] ss:$2 sm:$0xff] }
 0x53d   :  { %11023 = vmatmul.msk.bf16.gmra.mxu0 %vm949_vm2, %v12823_v22  ;;  %v2832_v10 = vmax.f32 %v2395_v1, %v2651_v60  ;;  %2141 = vst.msk [vmem:[#allocation2 + $0x4b0] sm:$0xff] %vm1990_vm3, %v1726_v26  ;;  %v12824_v22 = vld [vmem:[%s16683_s0 + $0x2a0] sm:$0xff]  ;;  %v14346_v1 = vpop.f32.mrf.mxu1  ;;  %v14348_v60 = vpop.f32.mrf.mxu2 }
 0x53e   :  { %16713 = vst [vmem:[#allocation30_spill] sm:$0xff] %v14346_v1 }
 0x53f   :  { %v2922_v58 = vmax.f32 %v2830_v12, %v2832_v10  ;;  %16714 = vst [vmem:[#allocation31_spill] sm:$0xff] %v14348_v60  ;;  %v12825_v12 = vld [vmem:[%s16683_s0 + $0x2a8] sm:$0xff] }
 0x541   :  { %v2986_v31 = vmax.f32 %v2922_v58, 0.0  ;;  %v2831_v58 = vmax.f32 %v2393_v47, %v2649_v16 }
 0x542   :  { %v1727_v36 = vpop.f32.mrf.mxu0 }
 0x543   :  { %3132 = vst.msk [vmem:[#allocation3 + $0x2a8] sm:$0xff] %vm1990_vm3, %v2986_v31  ;;  %v1728_v63 = vadd.f32 %v14068_v9, %v1727_v36 }
 0x545   :  { %2142 = vst.msk [vmem:[#allocation2 + $0x4b8] sm:$0xff] %vm1990_vm3, %v1728_v63 }
 0x54a   :  { %v1730_v54 = vpop.f32.mrf.mxu0  ;;  %v3198_v47 = vld [vmem:[#allocation3 + $0x2a7] sm:$0xff] }
 0x54b   :  { %v1731_v46 = vadd.f32 %v14068_v9, %v1730_v54 }
 0x54c   :  { %v2397_v55 = vld [vmem:[#allocation2 + $0x4b0] ss:$2 sm:$0xff]  ;;  %v2653_v26 = vld [vmem:[#allocation2 + $0x4b1] ss:$2 sm:$0xff] }
 0x54d   :  { %11024 = vmatmul.msk.bf16.gmra.mxu0 %vm949_vm2, %v12824_v22  ;;  %v2833_v10 = vmax.f32 %v2397_v55, %v2653_v26  ;;  %2143 = vst.msk [vmem:[#allocation2 + $0x4c0] sm:$0xff] %vm1990_vm3, %v1731_v46  ;;  %v3302_v22 = vld [vmem:[#allocation3 + $0x2a8] sm:$0xff] }
 0x54f   :  { %v2923_v36 = vmax.f32 %v2831_v58, %v2833_v10 }
 0x551   :  { %v2987_v31 = vmax.f32 %v2923_v36, 0.0 }
 0x552   :  { %v1732_v63 = vpop.f32.mrf.mxu0 }
 0x553   :  { %3133 = vst.msk [vmem:[#allocation3 + $0x2b0] sm:$0xff] %vm1990_vm3, %v2987_v31  ;;  %v1733_v27 = vadd.f32 %v14068_v9, %v1732_v63 }
 0x555   :  { %2144 = vst.msk [vmem:[#allocation2 + $0x4c8] sm:$0xff] %vm1990_vm3, %v1733_v27 }
 0x55a   :  { %v1735_v16 = vpop.f32.mrf.mxu0  ;;  %v3303_v54 = vld [vmem:[#allocation3 + $0x2b0] sm:$0xff]  ;;  %v3583_v63 = vpop.f32.mrf.mxu1 }
 0x55b   :  { %v3199_v46 = vld [vmem:[#allocation3 + $0x2af] sm:$0xff]  ;;  %v1736_v26 = vadd.f32 %v14068_v9, %v1735_v16  ;;  %v3347_v58 = vpack.c.bf16 %v3303_v54, %v3302_v22 }
 0x55c   :  { %v3985_v55 = vld [vmem:[#allocation3 + $0x2a9] sm:$0xff]  ;;  %v3243_v10 = vpack.c.bf16 %v3199_v46, %v3198_v47  ;;  %v3986_v36 = vld [vmem:[#allocation3 + $0x2b1] sm:$0xff] }
 0x55d   :  { %11025 = vmatmul.msk.bf16.gmra.mxu0 %vm949_vm2, %v12825_v12  ;;  %v4030_v31 = vpack.c.bf16 %v3986_v36, %v3985_v55  ;;  %2145 = vst.msk [vmem:[#allocation2 + $0x4d0] sm:$0xff] %vm1990_vm3, %v1736_v26  ;;  %11111 = vmatmul.msk.bf16.gmra.mxu1 %vm1990_vm3, %v3347_v58  ;;  %v12826_v12 = vld [vmem:[%s16683_s0 + $0x2b0] sm:$0xff] }
 0x55e   :  { %11159 = vmatmul.msk.bf16.gmra.mxu2 %vm1990_vm3, %v3243_v10 }
 0x55f   :  { %11215 = vmatmul.msk.bf16.gmra.mxu3 %vm1990_vm3, %v4030_v31 }
 0x561   :  { %v3872_v27 = vpop.f32.mrf.mxu2 }
 0x562   :  { %v3873_v11 = vadd.f32 %v3872_v27, %v3583_v63  ;;  %v4266_v60 = vpop.f32.mrf.mxu3  ;;  %v1737_v1 = vpop.f32.mrf.mxu0 }
 0x563   :  { %v1738_v22 = vadd.f32 %v14068_v9, %v1737_v1  ;;  %v12827_v1 = vld [vmem:[%s16683_s0 + $0x2b8] sm:$0xff] }
 0x564   :  { %v14361_v16 = vadd.f32 %v4266_v60, %v3873_v11  ;;  %v2399_v60 = vld [vmem:[#allocation2 + $0x4c0] ss:$2 sm:$0xff]  ;;  %v2655_v11 = vld [vmem:[#allocation2 + $0x4c1] ss:$2 sm:$0xff] }
 0x565   :  { %2146 = vst.msk [vmem:[#allocation2 + $0x4d8] sm:$0xff] %vm1990_vm3, %v1738_v22  ;;  %v2834_v31 = vmax.f32 %v2399_v60, %v2655_v11 }
 0x566   :  { %16716 = vst [vmem:[#allocation33_spill] sm:$0xff] %v14361_v16 }
 0x56a   :  { %v1740_v47 = vpop.f32.mrf.mxu0 }
 0x56b   :  { %v1741_v54 = vadd.f32 %v14068_v9, %v1740_v47 }
 0x56d   :  { %11026 = vmatmul.msk.bf16.gmra.mxu0 %vm949_vm2, %v12826_v12  ;;  %2147 = vst.msk [vmem:[#allocation2 + $0x4e0] sm:$0xff] %vm1990_vm3, %v1741_v54  ;;  %v12828_v54 = vld [vmem:[%s16683_s0 + $0x2c0] sm:$0xff] }
 0x572   :  { %v1742_v46 = vpop.f32.mrf.mxu0 }
 0x573   :  { %v1743_v55 = vadd.f32 %v14068_v9, %v1742_v46  ;;  %v2401_v46 = vld [vmem:[#allocation2 + $0x4d0] ss:$2 sm:$0xff] }
 0x575   :  { %2148 = vst.msk [vmem:[#allocation2 + $0x4e8] sm:$0xff] %vm1990_vm3, %v1743_v55  ;;  %v2657_v55 = vld [vmem:[#allocation2 + $0x4d1] ss:$2 sm:$0xff] }
 0x57a   :  { %v1745_v26 = vpop.f32.mrf.mxu0 }
 0x57b   :  { %v1746_v58 = vadd.f32 %v14068_v9, %v1745_v26 }
 0x57c   :  { %v2403_v10 = vld [vmem:[#allocation2 + $0x4e0] ss:$2 sm:$0xff]  ;;  %v2659_v36 = vld [vmem:[#allocation2 + $0x4e1] ss:$2 sm:$0xff] }
 0x57d   :  { %11027 = vmatmul.msk.bf16.gmra.mxu0 %vm949_vm2, %v12827_v1  ;;  %v2836_v63 = vmax.f32 %v2403_v10, %v2659_v36  ;;  %2149 = vst.msk [vmem:[#allocation2 + $0x4f0] sm:$0xff] %vm1990_vm3, %v1746_v58  ;;  %v2835_v58 = vmax.f32 %v2401_v46, %v2657_v55  ;;  %v14398_v55 = vpop.f32.mrf.mxu3 }
 0x57e   :  { %16719 = vst [vmem:[#allocation36_spill] sm:$0xff] %v14398_v55 }
 0x57f   :  { %v2924_v27 = vmax.f32 %v2834_v31, %v2836_v63 }
 0x581   :  { %v2988_v22 = vmax.f32 %v2924_v27, 0.0 }
 0x582   :  { %v1747_v12 = vpop.f32.mrf.mxu0 }
 0x583   :  { %3134 = vst.msk [vmem:[#allocation3 + $0x2c8] sm:$0xff] %vm1990_vm3, %v2988_v22  ;;  %v1748_v47 = vadd.f32 %v14068_v9, %v1747_v12  ;;  %v14391_v22 = vpop.f32.mrf.mxu1  ;;  %v14393_v12 = vpop.f32.mrf.mxu2 }
 0x584   :  { %16717 = vst [vmem:[#allocation34_spill] sm:$0xff] %v14391_v22 }
 0x585   :  { %2150 = vst.msk [vmem:[#allocation2 + $0x4f8] sm:$0xff] %vm1990_vm3, %v1748_v47  ;;  %v12829_v47 = vld [vmem:[%s16683_s0 + $0x2c8] sm:$0xff] }
 0x586   :  { %16718 = vst [vmem:[#allocation35_spill] sm:$0xff] %v14393_v12 }
 0x58a   :  { %v1750_v1 = vpop.f32.mrf.mxu0  ;;  %v3200_v46 = vld [vmem:[#allocation3 + $0x2c7] sm:$0xff] }
 0x58b   :  { %v1751_v60 = vadd.f32 %v14068_v9, %v1750_v1 }
 0x58c   :  { %v2405_v11 = vld [vmem:[#allocation2 + $0x4f0] ss:$2 sm:$0xff]  ;;  %v2661_v26 = vld [vmem:[#allocation2 + $0x4f1] ss:$2 sm:$0xff] }
 0x58d   :  { %11028 = vmatmul.msk.bf16.gmra.mxu0 %vm949_vm2, %v12828_v54  ;;  %v2837_v10 = vmax.f32 %v2405_v11, %v2661_v26  ;;  %2151 = vst.msk [vmem:[#allocation2 + $0x500] sm:$0xff] %vm1990_vm3, %v1751_v60  ;;  %v3304_v54 = vld [vmem:[#allocation3 + $0x2c8] sm:$0xff] }
 0x58f   :  { %v2925_v36 = vmax.f32 %v2835_v58, %v2837_v10 }
 0x591   :  { %v2989_v31 = vmax.f32 %v2925_v36, 0.0 }
 0x592   :  { %v1752_v63 = vpop.f32.mrf.mxu0 }
 0x593   :  { %3135 = vst.msk [vmem:[#allocation3 + $0x2d0] sm:$0xff] %vm1990_vm3, %v2989_v31  ;;  %v1753_v27 = vadd.f32 %v14068_v9, %v1752_v63  ;;  %v14403_v9 = vld [vmem:[%s16685_s2] ss:$0 sm:$0xff] }
 0x595   :  { %2152 = vst.msk [vmem:[#allocation2 + $0x508] sm:$0xff] %vm1990_vm3, %v1753_v27 }
 0x59a   :  { %v1755_v1 = vpop.f32.mrf.mxu0  ;;  %v3305_v60 = vld [vmem:[#allocation3 + $0x2d0] sm:$0xff]  ;;  %v3588_v27 = vpop.f32.mrf.mxu1 }
 0x59b   :  { %v3201_v11 = vld [vmem:[#allocation3 + $0x2cf] sm:$0xff]  ;;  %v1756_v58 = vadd.f32 %v14403_v9, %v1755_v1  ;;  %v3348_v10 = vpack.c.bf16 %v3305_v60, %v3304_v54 }
 0x59c   :  { %v3987_v26 = vld [vmem:[#allocation3 + $0x2c9] sm:$0xff]  ;;  %v3244_v36 = vpack.c.bf16 %v3201_v11, %v3200_v46  ;;  %v3988_v31 = vld [vmem:[#allocation3 + $0x2d1] sm:$0xff] }
 0x59d   :  { %11029 = vmatmul.msk.bf16.gmra.mxu0 %vm949_vm2, %v12829_v47  ;;  %v4031_v63 = vpack.c.bf16 %v3988_v31, %v3987_v26  ;;  %2153 = vst.msk [vmem:[#allocation2 + $0x510] sm:$0xff] %vm1990_vm3, %v1756_v58  ;;  %11112 = vmatmul.msk.bf16.gmra.mxu1 %vm1990_vm3, %v3348_v10  ;;  %v12830_v47 = vld [vmem:[%s16683_s0 + $0x2d0] sm:$0xff] }
 0x59e   :  { %11160 = vmatmul.msk.bf16.gmra.mxu2 %vm1990_vm3, %v3244_v36 }
 0x59f   :  { %11216 = vmatmul.msk.bf16.gmra.mxu3 %vm1990_vm3, %v4031_v63 }
 0x5a1   :  { %v3877_v55 = vpop.f32.mrf.mxu2 }
 0x5a2   :  { %v3878_v12 = vadd.f32 %v3877_v55, %v3588_v27  ;;  %v4271_v22 = vpop.f32.mrf.mxu3  ;;  %v1757_v16 = vpop.f32.mrf.mxu0 }
 0x5a3   :  { %v1758_v54 = vadd.f32 %v14403_v9, %v1757_v16  ;;  %v12831_v16 = vld [vmem:[%s16683_s0 + $0x2d8] sm:$0xff] }
 0x5a4   :  { %v14411_v1 = vadd.f32 %v4271_v22, %v3878_v12  ;;  %v2407_v22 = vld [vmem:[#allocation2 + $0x500] ss:$2 sm:$0xff]  ;;  %v2663_v12 = vld [vmem:[#allocation2 + $0x501] ss:$2 sm:$0xff] }
 0x5a5   :  { %2154 = vst.msk [vmem:[#allocation2 + $0x518] sm:$0xff] %vm1990_vm3, %v1758_v54  ;;  %v2838_v31 = vmax.f32 %v2407_v22, %v2663_v12 }
 0x5a6   :  { %16720 = vst [vmem:[#allocation37_spill] sm:$0xff] %v14411_v1 }
 0x5aa   :  { %v1760_v46 = vpop.f32.mrf.mxu0 }
 0x5ab   :  { %v1761_v60 = vadd.f32 %v14403_v9, %v1760_v46 }
 0x5ad   :  { %11030 = vmatmul.msk.bf16.gmra.mxu0 %vm949_vm2, %v12830_v47  ;;  %2155 = vst.msk [vmem:[#allocation2 + $0x520] sm:$0xff] %vm1990_vm3, %v1761_v60  ;;  %v12832_v60 = vld [vmem:[%s16683_s0 + $0x2e0] sm:$0xff] }
 0x5b2   :  { %v1762_v55 = vpop.f32.mrf.mxu0 }
 0x5b3   :  { %v1763_v11 = vadd.f32 %v14403_v9, %v1762_v55  ;;  %v2409_v55 = vld [vmem:[#allocation2 + $0x510] ss:$2 sm:$0xff] }
 0x5b5   :  { %2156 = vst.msk [vmem:[#allocation2 + $0x528] sm:$0xff] %vm1990_vm3, %v1763_v11  ;;  %v2665_v11 = vld [vmem:[#allocation2 + $0x511] ss:$2 sm:$0xff] }
 0x5ba   :  { %v1765_v26 = vpop.f32.mrf.mxu0 }
 0x5bb   :  { %v1766_v58 = vadd.f32 %v14403_v9, %v1765_v26 }
 0x5bc   :  { %v2411_v10 = vld [vmem:[#allocation2 + $0x520] ss:$2 sm:$0xff]  ;;  %v2667_v36 = vld [vmem:[#allocation2 + $0x521] ss:$2 sm:$0xff] }
 0x5bd   :  { %11031 = vmatmul.msk.bf16.gmra.mxu0 %vm949_vm2, %v12831_v16  ;;  %v2840_v63 = vmax.f32 %v2411_v10, %v2667_v36  ;;  %2157 = vst.msk [vmem:[#allocation2 + $0x530] sm:$0xff] %vm1990_vm3, %v1766_v58  ;;  %v2839_v58 = vmax.f32 %v2409_v55, %v2665_v11  ;;  %v14448_v11 = vpop.f32.mrf.mxu3 }
 0x5be   :  { %16723 = vst [vmem:[#allocation40_spill] sm:$0xff] %v14448_v11 }
 0x5bf   :  { %v2926_v27 = vmax.f32 %v2838_v31, %v2840_v63 }
 0x5c1   :  { %v2990_v54 = vmax.f32 %v2926_v27, 0.0 }
 0x5c2   :  { %v1767_v47 = vpop.f32.mrf.mxu0 }
 0x5c3   :  { %3136 = vst.msk [vmem:[#allocation3 + $0x2e8] sm:$0xff] %vm1990_vm3, %v2990_v54  ;;  %v1768_v46 = vadd.f32 %v14403_v9, %v1767_v47  ;;  %v14441_v54 = vpop.f32.mrf.mxu1  ;;  %v14443_v47 = vpop.f32.mrf.mxu2 }
 0x5c4   :  { %16721 = vst [vmem:[#allocation38_spill] sm:$0xff] %v14441_v54 }
 0x5c5   :  { %2158 = vst.msk [vmem:[#allocation2 + $0x538] sm:$0xff] %vm1990_vm3, %v1768_v46  ;;  %v12833_v46 = vld [vmem:[%s16683_s0 + $0x2e8] sm:$0xff] }
 0x5c6   :  { %16722 = vst [vmem:[#allocation39_spill] sm:$0xff] %v14443_v47 }
 0x5ca   :  { %v1770_v16 = vpop.f32.mrf.mxu0  ;;  %v3202_v55 = vld [vmem:[#allocation3 + $0x2e7] sm:$0xff] }
 0x5cb   :  { %v1771_v22 = vadd.f32 %v14403_v9, %v1770_v16 }
 0x5cc   :  { %v2413_v12 = vld [vmem:[#allocation2 + $0x530] ss:$2 sm:$0xff]  ;;  %v2669_v26 = vld [vmem:[#allocation2 + $0x531] ss:$2 sm:$0xff] }
 0x5cd   :  { %11032 = vmatmul.msk.bf16.gmra.mxu0 %vm949_vm2, %v12832_v60  ;;  %v2841_v10 = vmax.f32 %v2413_v12, %v2669_v26  ;;  %2159 = vst.msk [vmem:[#allocation2 + $0x540] sm:$0xff] %vm1990_vm3, %v1771_v22  ;;  %v3306_v60 = vld [vmem:[#allocation3 + $0x2e8] sm:$0xff] }
 0x5cf   :  { %v2927_v36 = vmax.f32 %v2839_v58, %v2841_v10 }
 0x5d1   :  { %v2991_v31 = vmax.f32 %v2927_v36, 0.0 }
 0x5d2   :  { %v1772_v63 = vpop.f32.mrf.mxu0 }
 0x5d3   :  { %3137 = vst.msk [vmem:[#allocation3 + $0x2f0] sm:$0xff] %vm1990_vm3, %v2991_v31  ;;  %v1773_v27 = vadd.f32 %v14403_v9, %v1772_v63 }
 0x5d5   :  { %2160 = vst.msk [vmem:[#allocation2 + $0x548] sm:$0xff] %vm1990_vm3, %v1773_v27 }
 0x5da   :  { %v1775_v16 = vpop.f32.mrf.mxu0  ;;  %v3307_v22 = vld [vmem:[#allocation3 + $0x2f0] sm:$0xff]  ;;  %v3593_v27 = vpop.f32.mrf.mxu1 }
 0x5db   :  { %v3203_v12 = vld [vmem:[#allocation3 + $0x2ef] sm:$0xff]  ;;  %v1776_v58 = vadd.f32 %v14403_v9, %v1775_v16  ;;  %v3349_v10 = vpack.c.bf16 %v3307_v22, %v3306_v60 }
 0x5dc   :  { %v3989_v26 = vld [vmem:[#allocation3 + $0x2e9] sm:$0xff]  ;;  %v3245_v36 = vpack.c.bf16 %v3203_v12, %v3202_v55  ;;  %v3990_v31 = vld [vmem:[#allocation3 + $0x2f1] sm:$0xff] }
 0x5dd   :  { %11033 = vmatmul.msk.bf16.gmra.mxu0 %vm949_vm2, %v12833_v46  ;;  %v4032_v63 = vpack.c.bf16 %v3990_v31, %v3989_v26  ;;  %2161 = vst.msk [vmem:[#allocation2 + $0x550] sm:$0xff] %vm1990_vm3, %v1776_v58  ;;  %11113 = vmatmul.msk.bf16.gmra.mxu1 %vm1990_vm3, %v3349_v10  ;;  %v12834_v46 = vld [vmem:[%s16683_s0 + $0x2f0] sm:$0xff] }
 0x5de   :  { %11161 = vmatmul.msk.bf16.gmra.mxu2 %vm1990_vm3, %v3245_v36 }
 0x5df   :  { %11217 = vmatmul.msk.bf16.gmra.mxu3 %vm1990_vm3, %v4032_v63 }
 0x5e1   :  { %v3882_v11 = vpop.f32.mrf.mxu2 }
 0x5e2   :  { %v3883_v47 = vadd.f32 %v3882_v11, %v3593_v27  ;;  %v4276_v54 = vpop.f32.mrf.mxu3  ;;  %v1777_v1 = vpop.f32.mrf.mxu0 }
 0x5e3   :  { %v1778_v60 = vadd.f32 %v14403_v9, %v1777_v1  ;;  %v12835_v1 = vld [vmem:[%s16683_s0 + $0x2f8] sm:$0xff] }
 0x5e4   :  { %v14456_v16 = vadd.f32 %v4276_v54, %v3883_v47  ;;  %v2415_v54 = vld [vmem:[#allocation2 + $0x540] ss:$2 sm:$0xff]  ;;  %v2671_v47 = vld [vmem:[#allocation2 + $0x541] ss:$2 sm:$0xff] }
 0x5e5   :  { %2162 = vst.msk [vmem:[#allocation2 + $0x558] sm:$0xff] %vm1990_vm3, %v1778_v60  ;;  %v2842_v31 = vmax.f32 %v2415_v54, %v2671_v47 }
 0x5e6   :  { %16724 = vst [vmem:[#allocation41_spill] sm:$0xff] %v14456_v16 }
 0x5ea   :  { %v1780_v55 = vpop.f32.mrf.mxu0 }
 0x5eb   :  { %v1781_v22 = vadd.f32 %v14403_v9, %v1780_v55 }
 0x5ed   :  { %11034 = vmatmul.msk.bf16.gmra.mxu0 %vm949_vm2, %v12834_v46  ;;  %2163 = vst.msk [vmem:[#allocation2 + $0x560] sm:$0xff] %vm1990_vm3, %v1781_v22  ;;  %v12836_v22 = vld [vmem:[%s16683_s0 + $0x300] sm:$0xff] }
 0x5f2   :  { %v1782_v11 = vpop.f32.mrf.mxu0 }
 0x5f3   :  { %v1783_v12 = vadd.f32 %v14403_v9, %v1782_v11  ;;  %v2417_v11 = vld [vmem:[#allocation2 + $0x550] ss:$2 sm:$0xff] }
 0x5f5   :  { %2164 = vst.msk [vmem:[#allocation2 + $0x568] sm:$0xff] %vm1990_vm3, %v1783_v12  ;;  %v2673_v12 = vld [vmem:[#allocation2 + $0x551] ss:$2 sm:$0xff] }
 0x5fa   :  { %v1785_v26 = vpop.f32.mrf.mxu0 }
 0x5fb   :  { %v1786_v58 = vadd.f32 %v14403_v9, %v1785_v26 }
 0x5fc   :  { %v2419_v10 = vld [vmem:[#allocation2 + $0x560] ss:$2 sm:$0xff]  ;;  %v2675_v36 = vld [vmem:[#allocation2 + $0x561] ss:$2 sm:$0xff] }
 0x5fd   :  { %11035 = vmatmul.msk.bf16.gmra.mxu0 %vm949_vm2, %v12835_v1  ;;  %v2844_v63 = vmax.f32 %v2419_v10, %v2675_v36  ;;  %2165 = vst.msk [vmem:[#allocation2 + $0x570] sm:$0xff] %vm1990_vm3, %v1786_v58  ;;  %v2843_v58 = vmax.f32 %v2417_v11, %v2673_v12  ;;  %v14493_v12 = vpop.f32.mrf.mxu3 }
 0x5fe   :  { %16727 = vst [vmem:[#allocation44_spill] sm:$0xff] %v14493_v12 }
 0x5ff   :  { %v2928_v27 = vmax.f32 %v2842_v31, %v2844_v63 }
 0x601   :  { %v2992_v60 = vmax.f32 %v2928_v27, 0.0 }
 0x602   :  { %v1787_v46 = vpop.f32.mrf.mxu0 }
 0x603   :  { %3138 = vst.msk [vmem:[#allocation3 + $0x308] sm:$0xff] %vm1990_vm3, %v2992_v60  ;;  %v1788_v55 = vadd.f32 %v14403_v9, %v1787_v46  ;;  %v14486_v60 = vpop.f32.mrf.mxu1  ;;  %v14488_v46 = vpop.f32.mrf.mxu2 }
 0x604   :  { %16725 = vst [vmem:[#allocation42_spill] sm:$0xff] %v14486_v60 }
 0x605   :  { %2166 = vst.msk [vmem:[#allocation2 + $0x578] sm:$0xff] %vm1990_vm3, %v1788_v55  ;;  %v12837_v55 = vld [vmem:[%s16683_s0 + $0x308] sm:$0xff] }
 0x606   :  { %16726 = vst [vmem:[#allocation43_spill] sm:$0xff] %v14488_v46 }
 0x60a   :  { %v1790_v1 = vpop.f32.mrf.mxu0  ;;  %v3204_v11 = vld [vmem:[#allocation3 + $0x307] sm:$0xff] }
 0x60b   :  { %v1791_v54 = vadd.f32 %v14403_v9, %v1790_v1 }
 0x60c   :  { %v2421_v47 = vld [vmem:[#allocation2 + $0x570] ss:$2 sm:$0xff]  ;;  %v2677_v26 = vld [vmem:[#allocation2 + $0x571] ss:$2 sm:$0xff] }
 0x60d   :  { %11036 = vmatmul.msk.bf16.gmra.mxu0 %vm949_vm2, %v12836_v22  ;;  %v2845_v10 = vmax.f32 %v2421_v47, %v2677_v26  ;;  %2167 = vst.msk [vmem:[#allocation2 + $0x580] sm:$0xff] %vm1990_vm3, %v1791_v54  ;;  %v3308_v22 = vld [vmem:[#allocation3 + $0x308] sm:$0xff] }
 0x60f   :  { %v2929_v36 = vmax.f32 %v2843_v58, %v2845_v10 }
 0x611   :  { %v2993_v31 = vmax.f32 %v2929_v36, 0.0 }
 0x612   :  { %v1792_v63 = vpop.f32.mrf.mxu0 }
 0x613   :  { %3139 = vst.msk [vmem:[#allocation3 + $0x310] sm:$0xff] %vm1990_vm3, %v2993_v31  ;;  %v1793_v27 = vadd.f32 %v14403_v9, %v1792_v63 }
 0x615   :  { %2168 = vst.msk [vmem:[#allocation2 + $0x588] sm:$0xff] %vm1990_vm3, %v1793_v27 }
 0x61a   :  { %v1795_v1 = vpop.f32.mrf.mxu0  ;;  %v3309_v54 = vld [vmem:[#allocation3 + $0x310] sm:$0xff]  ;;  %v3598_v27 = vpop.f32.mrf.mxu1 }
 0x61b   :  { %v3205_v47 = vld [vmem:[#allocation3 + $0x30f] sm:$0xff]  ;;  %v1796_v58 = vadd.f32 %v14403_v9, %v1795_v1  ;;  %v3350_v10 = vpack.c.bf16 %v3309_v54, %v3308_v22 }
 0x61c   :  { %v3991_v26 = vld [vmem:[#allocation3 + $0x309] sm:$0xff]  ;;  %v3246_v36 = vpack.c.bf16 %v3205_v47, %v3204_v11  ;;  %v3992_v31 = vld [vmem:[#allocation3 + $0x311] sm:$0xff] }
 0x61d   :  { %11037 = vmatmul.msk.bf16.gmra.mxu0 %vm949_vm2, %v12837_v55  ;;  %v4033_v63 = vpack.c.bf16 %v3992_v31, %v3991_v26  ;;  %2169 = vst.msk [vmem:[#allocation2 + $0x590] sm:$0xff] %vm1990_vm3, %v1796_v58  ;;  %11114 = vmatmul.msk.bf16.gmra.mxu1 %vm1990_vm3, %v3350_v10  ;;  %v12838_v55 = vld [vmem:[%s16683_s0 + $0x310] sm:$0xff] }
 0x61e   :  { %11162 = vmatmul.msk.bf16.gmra.mxu2 %vm1990_vm3, %v3246_v36 }
 0x61f   :  { %11218 = vmatmul.msk.bf16.gmra.mxu3 %vm1990_vm3, %v4033_v63 }
 0x621   :  { %v3887_v12 = vpop.f32.mrf.mxu2 }
 0x622   :  { %v3888_v46 = vadd.f32 %v3887_v12, %v3598_v27  ;;  %v4281_v60 = vpop.f32.mrf.mxu3  ;;  %v1797_v16 = vpop.f32.mrf.mxu0 }
 0x623   :  { %v1798_v22 = vadd.f32 %v14403_v9, %v1797_v16  ;;  %v12839_v16 = vld [vmem:[%s16683_s0 + $0x318] sm:$0xff] }
 0x624   :  { %v14501_v1 = vadd.f32 %v4281_v60, %v3888_v46  ;;  %v2423_v60 = vld [vmem:[#allocation2 + $0x580] ss:$2 sm:$0xff]  ;;  %v2679_v46 = vld [vmem:[#allocation2 + $0x581] ss:$2 sm:$0xff] }
 0x625   :  { %2170 = vst.msk [vmem:[#allocation2 + $0x598] sm:$0xff] %vm1990_vm3, %v1798_v22  ;;  %v2846_v31 = vmax.f32 %v2423_v60, %v2679_v46 }
 0x626   :  { %16728 = vst [vmem:[#allocation45_spill] sm:$0xff] %v14501_v1 }
 0x62a   :  { %v1800_v11 = vpop.f32.mrf.mxu0 }
 0x62b   :  { %v1801_v54 = vadd.f32 %v14403_v9, %v1800_v11 }
 0x62d   :  { %11038 = vmatmul.msk.bf16.gmra.mxu0 %vm949_vm2, %v12838_v55  ;;  %2171 = vst.msk [vmem:[#allocation2 + $0x5a0] sm:$0xff] %vm1990_vm3, %v1801_v54  ;;  %v12840_v54 = vld [vmem:[%s16683_s0 + $0x320] sm:$0xff] }
 0x632   :  { %v1802_v12 = vpop.f32.mrf.mxu0 }
 0x633   :  { %v1803_v47 = vadd.f32 %v14403_v9, %v1802_v12  ;;  %v2425_v12 = vld [vmem:[#allocation2 + $0x590] ss:$2 sm:$0xff] }
 0x635   :  { %2172 = vst.msk [vmem:[#allocation2 + $0x5a8] sm:$0xff] %vm1990_vm3, %v1803_v47  ;;  %v2681_v47 = vld [vmem:[#allocation2 + $0x591] ss:$2 sm:$0xff] }
 0x63a   :  { %v1805_v26 = vpop.f32.mrf.mxu0 }
 0x63b   :  { %v1806_v58 = vadd.f32 %v14403_v9, %v1805_v26 }
 0x63c   :  { %v2427_v10 = vld [vmem:[#allocation2 + $0x5a0] ss:$2 sm:$0xff]  ;;  %v2683_v36 = vld [vmem:[#allocation2 + $0x5a1] ss:$2 sm:$0xff] }
 0x63d   :  { %11039 = vmatmul.msk.bf16.gmra.mxu0 %vm949_vm2, %v12839_v16  ;;  %v2848_v63 = vmax.f32 %v2427_v10, %v2683_v36  ;;  %2173 = vst.msk [vmem:[#allocation2 + $0x5b0] sm:$0xff] %vm1990_vm3, %v1806_v58  ;;  %v2847_v58 = vmax.f32 %v2425_v12, %v2681_v47  ;;  %v14538_v47 = vpop.f32.mrf.mxu3 }
 0x63e   :  { %16731 = vst [vmem:[#allocation48_spill] sm:$0xff] %v14538_v47 }
 0x63f   :  { %v2930_v27 = vmax.f32 %v2846_v31, %v2848_v63 }
 0x641   :  { %v2994_v22 = vmax.f32 %v2930_v27, 0.0 }
 0x642   :  { %v1807_v55 = vpop.f32.mrf.mxu0 }
 0x643   :  { %3140 = vst.msk [vmem:[#allocation3 + $0x328] sm:$0xff] %vm1990_vm3, %v2994_v22  ;;  %v1808_v11 = vadd.f32 %v14403_v9, %v1807_v55  ;;  %v14531_v22 = vpop.f32.mrf.mxu1  ;;  %v14533_v55 = vpop.f32.mrf.mxu2 }
 0x644   :  { %16729 = vst [vmem:[#allocation46_spill] sm:$0xff] %v14531_v22 }
 0x645   :  { %2174 = vst.msk [vmem:[#allocation2 + $0x5b8] sm:$0xff] %vm1990_vm3, %v1808_v11  ;;  %v12841_v11 = vld [vmem:[%s16683_s0 + $0x328] sm:$0xff] }
 0x646   :  { %16730 = vst [vmem:[#allocation47_spill] sm:$0xff] %v14533_v55 }
 0x64a   :  { %v1810_v16 = vpop.f32.mrf.mxu0  ;;  %v3206_v12 = vld [vmem:[#allocation3 + $0x327] sm:$0xff] }
 0x64b   :  { %v1811_v60 = vadd.f32 %v14403_v9, %v1810_v16 }
 0x64c   :  { %v2429_v46 = vld [vmem:[#allocation2 + $0x5b0] ss:$2 sm:$0xff]  ;;  %v2685_v26 = vld [vmem:[#allocation2 + $0x5b1] ss:$2 sm:$0xff] }
 0x64d   :  { %11040 = vmatmul.msk.bf16.gmra.mxu0 %vm949_vm2, %v12840_v54  ;;  %v2849_v10 = vmax.f32 %v2429_v46, %v2685_v26  ;;  %2175 = vst.msk [vmem:[#allocation2 + $0x5c0] sm:$0xff] %vm1990_vm3, %v1811_v60  ;;  %v3310_v54 = vld [vmem:[#allocation3 + $0x328] sm:$0xff] }
 0x64f   :  { %v2931_v36 = vmax.f32 %v2847_v58, %v2849_v10 }
 0x651   :  { %v2995_v31 = vmax.f32 %v2931_v36, 0.0 }
 0x652   :  { %v1812_v63 = vpop.f32.mrf.mxu0 }
 0x653   :  { %3141 = vst.msk [vmem:[#allocation3 + $0x330] sm:$0xff] %vm1990_vm3, %v2995_v31  ;;  %v1813_v27 = vadd.f32 %v14403_v9, %v1812_v63 }
 0x655   :  { %2176 = vst.msk [vmem:[#allocation2 + $0x5c8] sm:$0xff] %vm1990_vm3, %v1813_v27 }
 0x65a   :  { %v1815_v16 = vpop.f32.mrf.mxu0  ;;  %v3311_v60 = vld [vmem:[#allocation3 + $0x330] sm:$0xff]  ;;  %v3603_v27 = vpop.f32.mrf.mxu1 }
 0x65b   :  { %v3207_v46 = vld [vmem:[#allocation3 + $0x32f] sm:$0xff]  ;;  %v1816_v58 = vadd.f32 %v14403_v9, %v1815_v16  ;;  %v3351_v10 = vpack.c.bf16 %v3311_v60, %v3310_v54 }
 0x65c   :  { %v3993_v26 = vld [vmem:[#allocation3 + $0x329] sm:$0xff]  ;;  %v3247_v36 = vpack.c.bf16 %v3207_v46, %v3206_v12  ;;  %v3994_v31 = vld [vmem:[#allocation3 + $0x331] sm:$0xff] }
 0x65d   :  { %11041 = vmatmul.msk.bf16.gmra.mxu0 %vm949_vm2, %v12841_v11  ;;  %v4034_v63 = vpack.c.bf16 %v3994_v31, %v3993_v26  ;;  %2177 = vst.msk [vmem:[#allocation2 + $0x5d0] sm:$0xff] %vm1990_vm3, %v1816_v58  ;;  %11115 = vmatmul.msk.bf16.gmra.mxu1 %vm1990_vm3, %v3351_v10  ;;  %v12842_v11 = vld [vmem:[%s16683_s0 + $0x330] sm:$0xff]  ;;  %v12843_v26 = vld [vmem:[%s16683_s0 + $0x338] sm:$0xff]  ;;  %v2431_v58 = vld [vmem:[#allocation2 + $0x5c0] ss:$2 sm:$0xff] }
 0x65e   :  { %11163 = vmatmul.msk.bf16.gmra.mxu2 %vm1990_vm3, %v3247_v36  ;;  %v2687_v10 = vld [vmem:[#allocation2 + $0x5c1] ss:$2 sm:$0xff] }
 0x65f   :  { %11219 = vmatmul.msk.bf16.gmra.mxu3 %vm1990_vm3, %v4034_v63 }
 0x661   :  { %v3892_v47 = vpop.f32.mrf.mxu2 }
 0x662   :  { %v3893_v55 = vadd.f32 %v3892_v47, %v3603_v27  ;;  %v4286_v22 = vpop.f32.mrf.mxu3  ;;  %v1817_v1 = vpop.f32.mrf.mxu0 }
 0x663   :  { %v1818_v54 = vadd.f32 %v14403_v9, %v1817_v1  ;;  %v12889_v1 = vld [vmem:[%s16686_s3 + $0x98] sm:$0xff] }
 0x664   :  { %v14546_v16 = vadd.f32 %v4286_v22, %v3893_v55  ;;  %v12893_v22 = vld [vmem:[%s16686_s3 + $0xb8] sm:$0xff]  ;;  %5092 = vmatpush.bf16.msrb.mxu2 %v12889_v1  ;;  %v12844_v1 = vld [vmem:[%s16683_s0 + $0x340] sm:$0xff] }
 0x665   :  { %2178 = vst.msk [vmem:[#allocation2 + $0x5d8] sm:$0xff] %vm1990_vm3, %v1818_v54  ;;  %v12885_v55 = vld [vmem:[%s16686_s3 + $0x78] sm:$0xff]  ;;  %5550 = vmatpush.bf16.msrb.mxu3 %v12893_v22  ;;  %v2850_v54 = vmax.f32 %v2431_v58, %v2687_v10 }
 0x666   :  { %16732 = vst [vmem:[#allocation49_spill] sm:$0xff] %v14546_v16  ;;  %4634 = vmatpush.bf16.msrb.mxu1 %v12885_v55 }
 0x66a   :  { %v1820_v12 = vpop.f32.mrf.mxu0 }
 0x66b   :  { %v1821_v60 = vadd.f32 %v14403_v9, %v1820_v12 }
 0x66c   :  { %v2433_v22 = vld [vmem:[#allocation2 + $0x5d0] ss:$2 sm:$0xff]  ;;  %v2689_v55 = vld [vmem:[#allocation2 + $0x5d1] ss:$2 sm:$0xff] }
 0x66d   :  { %11042 = vmatmul.msk.bf16.gmra.mxu0 %vm949_vm2, %v12842_v11  ;;  %2179 = vst.msk [vmem:[#allocation2 + $0x5e0] sm:$0xff] %vm1990_vm3, %v1821_v60 }
 0x672   :  { %v1822_v47 = vpop.f32.mrf.mxu0 }
 0x673   :  { %v1823_v46 = vadd.f32 %v14403_v9, %v1822_v47 }
 0x675   :  { %2180 = vst.msk [vmem:[#allocation2 + $0x5e8] sm:$0xff] %vm1990_vm3, %v1823_v46 }
 0x67a   :  { %v1825_v36 = vpop.f32.mrf.mxu0 }
 0x67b   :  { %v1826_v31 = vadd.f32 %v14403_v9, %v1825_v36 }
 0x67c   :  { %v2435_v63 = vld [vmem:[#allocation2 + $0x5e0] ss:$2 sm:$0xff]  ;;  %v2691_v27 = vld [vmem:[#allocation2 + $0x5e1] ss:$2 sm:$0xff] }
 0x67d   :  { %11043 = vmatmul.msk.bf16.gmra.mxu0 %vm949_vm2, %v12843_v26  ;;  %v2852_v11 = vmax.f32 %v2435_v63, %v2691_v27  ;;  %2181 = vst.msk [vmem:[#allocation2 + $0x5f0] sm:$0xff] %vm1990_vm3, %v1826_v31  ;;  %v2851_v31 = vmax.f32 %v2433_v22, %v2689_v55  ;;  %v14592_v55 = vpop.f32.mrf.mxu3 }
 0x67e   :  { %16735 = vst [vmem:[#allocation52_spill] sm:$0xff] %v14592_v55 }
 0x67f   :  { %v2932_v12 = vmax.f32 %v2850_v54, %v2852_v11 }
 0x681   :  { %v2996_v60 = vmax.f32 %v2932_v12, 0.0 }
 0x682   :  { %v1827_v47 = vpop.f32.mrf.mxu0 }
 0x683   :  { %3142 = vst.msk [vmem:[#allocation3 + $0x348] sm:$0xff] %vm1990_vm3, %v2996_v60  ;;  %v1828_v46 = vadd.f32 %v14403_v9, %v1827_v47  ;;  %v14585_v60 = vpop.f32.mrf.mxu1  ;;  %v14587_v47 = vpop.f32.mrf.mxu2 }
 0x684   :  { %16733 = vst [vmem:[#allocation50_spill] sm:$0xff] %v14585_v60 }
 0x685   :  { %2182 = vst.msk [vmem:[#allocation2 + $0x5f8] sm:$0xff] %vm1990_vm3, %v1828_v46  ;;  %v12845_v46 = vld [vmem:[%s16683_s0 + $0x348] sm:$0xff] }
 0x686   :  { %16734 = vst [vmem:[#allocation51_spill] sm:$0xff] %v14587_v47 }
 0x68a   :  { %v1830_v26 = vpop.f32.mrf.mxu0  ;;  %v3208_v22 = vld [vmem:[#allocation3 + $0x347] sm:$0xff] }
 0x68b   :  { %v1831_v58 = vadd.f32 %v14403_v9, %v1830_v26 }
 0x68c   :  { %v2437_v10 = vld [vmem:[#allocation2 + $0x5f0] ss:$2 sm:$0xff]  ;;  %v2693_v36 = vld [vmem:[#allocation2 + $0x5f1] ss:$2 sm:$0xff] }
 0x68d   :  { %11044 = vmatmul.msk.bf16.gmra.mxu0 %vm949_vm2, %v12844_v1  ;;  %v2853_v63 = vmax.f32 %v2437_v10, %v2693_v36  ;;  %2183 = vst.msk [vmem:[#allocation2 + $0x600] sm:$0xff] %vm1990_vm3, %v1831_v58  ;;  %v3312_v1 = vld [vmem:[#allocation3 + $0x348] sm:$0xff] }
 0x68f   :  { %v2933_v27 = vmax.f32 %v2851_v31, %v2853_v63 }
 0x691   :  { %v2997_v54 = vmax.f32 %v2933_v27, 0.0 }
 0x692   :  { %v1832_v11 = vpop.f32.mrf.mxu0 }
 0x693   :  { %3143 = vst.msk [vmem:[#allocation3 + $0x350] sm:$0xff] %vm1990_vm3, %v2997_v54  ;;  %v1833_v12 = vadd.f32 %v14403_v9, %v1832_v11 }
 0x695   :  { %2184 = vst.msk [vmem:[#allocation2 + $0x608] sm:$0xff] %vm1990_vm3, %v1833_v12 }
 0x69a   :  { %v1835_v26 = vpop.f32.mrf.mxu0  ;;  %v3313_v58 = vld [vmem:[#allocation3 + $0x350] sm:$0xff]  ;;  %v3608_v12 = vpop.f32.mrf.mxu1 }
 0x69b   :  { %v3209_v10 = vld [vmem:[#allocation3 + $0x34f] sm:$0xff]  ;;  %v1836_v31 = vadd.f32 %v14403_v9, %v1835_v26  ;;  %v3352_v63 = vpack.c.bf16 %v3313_v58, %v3312_v1 }
 0x69c   :  { %v3995_v36 = vld [vmem:[#allocation3 + $0x349] sm:$0xff]  ;;  %v3248_v27 = vpack.c.bf16 %v3209_v10, %v3208_v22  ;;  %v3996_v54 = vld [vmem:[#allocation3 + $0x351] sm:$0xff] }
 0x69d   :  { %11045 = vmatmul.msk.bf16.gmra.mxu0 %vm949_vm2, %v12845_v46  ;;  %v4035_v11 = vpack.c.bf16 %v3996_v54, %v3995_v36  ;;  %2185 = vst.msk [vmem:[#allocation2 + $0x610] sm:$0xff] %vm1990_vm3, %v1836_v31  ;;  %11116 = vmatmul.msk.bf16.gmra.mxu1 %vm1990_vm3, %v3352_v63  ;;  %v13081_v46 = vld [vmem:[%s16690_s7 + $0x338] sm:$0xff]  ;;  %v12846_v22 = vld [vmem:[%s16683_s0 + $0x350] sm:$0xff]  ;;  %v2439_v10 = vld [vmem:[#allocation2 + $0x600] ss:$2 sm:$0xff] }
 0x69e   :  { %11164 = vmatmul.msk.bf16.gmra.mxu2 %vm1990_vm3, %v3248_v27  ;;  %10133 = vmatpush.bf16.msrb.mxu0 %v13081_v46  ;;  %v2695_v36 = vld [vmem:[#allocation2 + $0x601] ss:$2 sm:$0xff] }
 0x69f   :  { %11220 = vmatmul.msk.bf16.gmra.mxu3 %vm1990_vm3, %v4035_v11  ;;  %v2854_v11 = vmax.f32 %v2439_v10, %v2695_v36 }
 0x6a1   :  { %v3897_v55 = vpop.f32.mrf.mxu2 }
 0x6a2   :  { %v3898_v47 = vadd.f32 %v3897_v55, %v3608_v12  ;;  %v4291_v60 = vpop.f32.mrf.mxu3  ;;  %v1837_v16 = vpop.f32.mrf.mxu0 }
 0x6a3   :  { %v1838_v1 = vadd.f32 %v14403_v9, %v1837_v16 }
 0x6a4   :  { %v14600_v26 = vadd.f32 %v4291_v60, %v3898_v47  ;;  %v12847_v47 = vld [vmem:[%s16683_s0 + $0x358] sm:$0xff] }
 0x6a5   :  { %2186 = vst.msk [vmem:[#allocation2 + $0x618] sm:$0xff] %vm1990_vm3, %v1838_v1 }
 0x6a6   :  { %16736 = vst [vmem:[#allocation53_spill] sm:$0xff] %v14600_v26 }
 0x6aa   :  { %v1840_v58 = vpop.f32.mrf.mxu0 }
 0x6ab   :  { %v1841_v55 = vadd.f32 %v14403_v9, %v1840_v58 }
 0x6ad   :  { %11046 = vmatmul.msk.bf16.gmra.mxu0 %vm949_vm2, %v12846_v22  ;;  %2187 = vst.msk [vmem:[#allocation2 + $0x620] sm:$0xff] %vm1990_vm3, %v1841_v55  ;;  %v12848_v55 = vld [vmem:[%s16683_s0 + $0x360] sm:$0xff] }
 0x6b2   :  { %v1842_v60 = vpop.f32.mrf.mxu0 }
 0x6b3   :  { %v1843_v16 = vadd.f32 %v14403_v9, %v1842_v60  ;;  %v2441_v60 = vld [vmem:[#allocation2 + $0x610] ss:$2 sm:$0xff] }
 0x6b5   :  { %2188 = vst.msk [vmem:[#allocation2 + $0x628] sm:$0xff] %vm1990_vm3, %v1843_v16  ;;  %v2697_v16 = vld [vmem:[#allocation2 + $0x611] ss:$2 sm:$0xff] }
 0x6ba   :  { %v1845_v31 = vpop.f32.mrf.mxu0 }
 0x6bb   :  { %v1846_v63 = vadd.f32 %v14403_v9, %v1845_v31 }
 0x6bc   :  { %v2443_v27 = vld [vmem:[#allocation2 + $0x620] ss:$2 sm:$0xff]  ;;  %v2699_v54 = vld [vmem:[#allocation2 + $0x621] ss:$2 sm:$0xff] }
 0x6bd   :  { %11047 = vmatmul.msk.bf16.gmra.mxu0 %vm949_vm2, %v12847_v47  ;;  %v2856_v12 = vmax.f32 %v2443_v27, %v2699_v54  ;;  %2189 = vst.msk [vmem:[#allocation2 + $0x630] sm:$0xff] %vm1990_vm3, %v1846_v63  ;;  %v2855_v63 = vmax.f32 %v2441_v60, %v2697_v16  ;;  %v14640_v16 = vpop.f32.mrf.mxu3 }
 0x6be   :  { %16739 = vst [vmem:[#allocation56_spill] sm:$0xff] %v14640_v16 }
 0x6bf   :  { %v2934_v1 = vmax.f32 %v2854_v11, %v2856_v12 }
 0x6c1   :  { %v2998_v46 = vmax.f32 %v2934_v1, 0.0 }
 0x6c2   :  { %v1847_v22 = vpop.f32.mrf.mxu0 }
 0x6c3   :  { %3144 = vst.msk [vmem:[#allocation3 + $0x368] sm:$0xff] %vm1990_vm3, %v2998_v46  ;;  %v1848_v58 = vadd.f32 %v14403_v9, %v1847_v22  ;;  %v14633_v46 = vpop.f32.mrf.mxu1  ;;  %v14635_v22 = vpop.f32.mrf.mxu2 }
 0x6c4   :  { %16737 = vst [vmem:[#allocation54_spill] sm:$0xff] %v14633_v46 }
 0x6c5   :  { %2190 = vst.msk [vmem:[#allocation2 + $0x638] sm:$0xff] %vm1990_vm3, %v1848_v58  ;;  %v12849_v58 = vld [vmem:[%s16683_s0 + $0x368] sm:$0xff] }
 0x6c6   :  { %16738 = vst [vmem:[#allocation55_spill] sm:$0xff] %v14635_v22 }
 0x6ca   :  { %v1850_v47 = vpop.f32.mrf.mxu0  ;;  %v3210_v60 = vld [vmem:[#allocation3 + $0x367] sm:$0xff] }
 0x6cb   :  { %v1851_v10 = vadd.f32 %v14403_v9, %v1850_v47 }
 0x6cc   :  { %v2445_v36 = vld [vmem:[#allocation2 + $0x630] ss:$2 sm:$0xff]  ;;  %v2701_v31 = vld [vmem:[#allocation2 + $0x631] ss:$2 sm:$0xff] }
 0x6cd   :  { %11048 = vmatmul.msk.bf16.gmra.mxu0 %vm949_vm2, %v12848_v55  ;;  %v2857_v27 = vmax.f32 %v2445_v36, %v2701_v31  ;;  %2191 = vst.msk [vmem:[#allocation2 + $0x640] sm:$0xff] %vm1990_vm3, %v1851_v10  ;;  %v3314_v55 = vld [vmem:[#allocation3 + $0x368] sm:$0xff] }
 0x6cf   :  { %v2935_v54 = vmax.f32 %v2855_v63, %v2857_v27 }
 0x6d1   :  { %v2999_v11 = vmax.f32 %v2935_v54, 0.0 }
 0x6d2   :  { %v1852_v12 = vpop.f32.mrf.mxu0 }
 0x6d3   :  { %3145 = vst.msk [vmem:[#allocation3 + $0x370] sm:$0xff] %vm1990_vm3, %v2999_v11  ;;  %v1853_v1 = vadd.f32 %v14403_v9, %v1852_v12 }
 0x6d5   :  { %2192 = vst.msk [vmem:[#allocation2 + $0x648] sm:$0xff] %vm1990_vm3, %v1853_v1 }
 0x6da   :  { %v1855_v47 = vpop.f32.mrf.mxu0  ;;  %v3315_v10 = vld [vmem:[#allocation3 + $0x370] sm:$0xff]  ;;  %v3613_v1 = vpop.f32.mrf.mxu1 }
 0x6db   :  { %v3211_v36 = vld [vmem:[#allocation3 + $0x36f] sm:$0xff]  ;;  %v1856_v63 = vadd.f32 %v14403_v9, %v1855_v47  ;;  %v3353_v27 = vpack.c.bf16 %v3315_v10, %v3314_v55 }
 0x6dc   :  { %v3997_v31 = vld [vmem:[#allocation3 + $0x369] sm:$0xff]  ;;  %v3249_v54 = vpack.c.bf16 %v3211_v36, %v3210_v60  ;;  %v3998_v11 = vld [vmem:[#allocation3 + $0x371] sm:$0xff] }
 0x6dd   :  { %11049 = vmatmul.msk.bf16.gmra.mxu0 %vm949_vm2, %v12849_v58  ;;  %v4036_v12 = vpack.c.bf16 %v3998_v11, %v3997_v31  ;;  %2193 = vst.msk [vmem:[#allocation2 + $0x650] sm:$0xff] %vm1990_vm3, %v1856_v63  ;;  %11117 = vmatmul.msk.bf16.gmra.mxu1 %vm1990_vm3, %v3353_v27  ;;  %v12850_v58 = vld [vmem:[%s16683_s0 + $0x370] sm:$0xff]  ;;  %v12851_v31 = vld [vmem:[%s16683_s0 + $0x378] sm:$0xff]  ;;  %v2447_v63 = vld [vmem:[#allocation2 + $0x640] ss:$2 sm:$0xff] }
 0x6de   :  { %11165 = vmatmul.msk.bf16.gmra.mxu2 %vm1990_vm3, %v3249_v54  ;;  %v2703_v27 = vld [vmem:[#allocation2 + $0x641] ss:$2 sm:$0xff] }
 0x6df   :  { %11221 = vmatmul.msk.bf16.gmra.mxu3 %vm1990_vm3, %v4036_v12 }
 0x6e1   :  { %v3902_v16 = vpop.f32.mrf.mxu2 }
 0x6e2   :  { %v3903_v22 = vadd.f32 %v3902_v16, %v3613_v1  ;;  %v4296_v46 = vpop.f32.mrf.mxu3  ;;  %v1857_v26 = vpop.f32.mrf.mxu0 }
 0x6e3   :  { %v1858_v55 = vadd.f32 %v14403_v9, %v1857_v26  ;;  %v12888_v26 = vld [vmem:[%s16686_s3 + $0x90] sm:$0xff] }
 0x6e4   :  { %v14648_v47 = vadd.f32 %v4296_v46, %v3903_v22  ;;  %v12892_v46 = vld [vmem:[%s16686_s3 + $0xb0] sm:$0xff]  ;;  %5093 = vmatpush.bf16.msrb.mxu2 %v12888_v26  ;;  %v12852_v26 = vld [vmem:[%s16683_s0 + $0x380] sm:$0xff] }
 0x6e5   :  { %2194 = vst.msk [vmem:[#allocation2 + $0x658] sm:$0xff] %vm1990_vm3, %v1858_v55  ;;  %v12884_v22 = vld [vmem:[%s16686_s3 + $0x70] sm:$0xff]  ;;  %5551 = vmatpush.bf16.msrb.mxu3 %v12892_v46  ;;  %v2858_v55 = vmax.f32 %v2447_v63, %v2703_v27 }
 0x6e6   :  { %16740 = vst [vmem:[#allocation57_spill] sm:$0xff] %v14648_v47  ;;  %4635 = vmatpush.bf16.msrb.mxu1 %v12884_v22 }
 0x6ea   :  { %v1860_v60 = vpop.f32.mrf.mxu0 }
 0x6eb   :  { %v1861_v10 = vadd.f32 %v14403_v9, %v1860_v60 }
 0x6ec   :  { %v2449_v46 = vld [vmem:[#allocation2 + $0x650] ss:$2 sm:$0xff]  ;;  %v2705_v22 = vld [vmem:[#allocation2 + $0x651] ss:$2 sm:$0xff] }
 0x6ed   :  { %11050 = vmatmul.msk.bf16.gmra.mxu0 %vm949_vm2, %v12850_v58  ;;  %2195 = vst.msk [vmem:[#allocation2 + $0x660] sm:$0xff] %vm1990_vm3, %v1861_v10 }
 0x6f2   :  { %v1862_v16 = vpop.f32.mrf.mxu0 }
 0x6f3   :  { %v1863_v36 = vadd.f32 %v14403_v9, %v1862_v16 }
 0x6f5   :  { %2196 = vst.msk [vmem:[#allocation2 + $0x668] sm:$0xff] %vm1990_vm3, %v1863_v36 }
 0x6fa   :  { %v1865_v54 = vpop.f32.mrf.mxu0 }
 0x6fb   :  { %v1866_v11 = vadd.f32 %v14403_v9, %v1865_v54 }
 0x6fc   :  { %v2451_v12 = vld [vmem:[#allocation2 + $0x660] ss:$2 sm:$0xff]  ;;  %v2707_v1 = vld [vmem:[#allocation2 + $0x661] ss:$2 sm:$0xff] }
 0x6fd   :  { %11051 = vmatmul.msk.bf16.gmra.mxu0 %vm949_vm2, %v12851_v31  ;;  %v2860_v58 = vmax.f32 %v2451_v12, %v2707_v1  ;;  %2197 = vst.msk [vmem:[#allocation2 + $0x670] sm:$0xff] %vm1990_vm3, %v1866_v11  ;;  %v2859_v11 = vmax.f32 %v2449_v46, %v2705_v22  ;;  %v14694_v22 = vpop.f32.mrf.mxu3 }
 0x6fe   :  { %16743 = vst [vmem:[#allocation60_spill] sm:$0xff] %v14694_v22 }
 0x6ff   :  { %v2936_v60 = vmax.f32 %v2858_v55, %v2860_v58 }
 0x701   :  { %v3000_v10 = vmax.f32 %v2936_v60, 0.0 }
 0x702   :  { %v1867_v16 = vpop.f32.mrf.mxu0 }
 0x703   :  { %3146 = vst.msk [vmem:[#allocation3 + $0x388] sm:$0xff] %vm1990_vm3, %v3000_v10  ;;  %v1868_v36 = vadd.f32 %v14403_v9, %v1867_v16  ;;  %v14687_v10 = vpop.f32.mrf.mxu1  ;;  %v14689_v16 = vpop.f32.mrf.mxu2 }
 0x704   :  { %16741 = vst [vmem:[#allocation58_spill] sm:$0xff] %v14687_v10 }
 0x705   :  { %2198 = vst.msk [vmem:[#allocation2 + $0x678] sm:$0xff] %vm1990_vm3, %v1868_v36  ;;  %v12853_v36 = vld [vmem:[%s16683_s0 + $0x388] sm:$0xff] }
 0x706   :  { %16742 = vst [vmem:[#allocation59_spill] sm:$0xff] %v14689_v16 }
 0x70a   :  { %v1870_v31 = vpop.f32.mrf.mxu0  ;;  %v3212_v46 = vld [vmem:[#allocation3 + $0x387] sm:$0xff] }
 0x70b   :  { %v1871_v63 = vadd.f32 %v14403_v9, %v1870_v31 }
 0x70c   :  { %v2453_v27 = vld [vmem:[#allocation2 + $0x670] ss:$2 sm:$0xff]  ;;  %v2709_v54 = vld [vmem:[#allocation2 + $0x671] ss:$2 sm:$0xff] }
 0x70d   :  { %11052 = vmatmul.msk.bf16.gmra.mxu0 %vm949_vm2, %v12852_v26  ;;  %v2861_v12 = vmax.f32 %v2453_v27, %v2709_v54  ;;  %2199 = vst.msk [vmem:[#allocation2 + $0x680] sm:$0xff] %vm1990_vm3, %v1871_v63  ;;  %v3316_v26 = vld [vmem:[#allocation3 + $0x388] sm:$0xff] }
 0x70f   :  { %v2937_v1 = vmax.f32 %v2859_v11, %v2861_v12 }
 0x711   :  { %v3001_v55 = vmax.f32 %v2937_v1, 0.0 }
 0x712   :  { %v1872_v58 = vpop.f32.mrf.mxu0 }
 0x713   :  { %3147 = vst.msk [vmem:[#allocation3 + $0x390] sm:$0xff] %vm1990_vm3, %v3001_v55  ;;  %v1873_v60 = vadd.f32 %v14403_v9, %v1872_v58 }
 0x715   :  { %2200 = vst.msk [vmem:[#allocation2 + $0x688] sm:$0xff] %vm1990_vm3, %v1873_v60 }
 0x71a   :  { %v1875_v31 = vpop.f32.mrf.mxu0  ;;  %v3317_v63 = vld [vmem:[#allocation3 + $0x390] sm:$0xff]  ;;  %v3618_v60 = vpop.f32.mrf.mxu1 }
 0x71b   :  { %v3213_v27 = vld [vmem:[#allocation3 + $0x38f] sm:$0xff]  ;;  %v1876_v11 = vadd.f32 %v14403_v9, %v1875_v31  ;;  %v3354_v12 = vpack.c.bf16 %v3317_v63, %v3316_v26 }
 0x71c   :  { %v3999_v54 = vld [vmem:[#allocation3 + $0x389] sm:$0xff]  ;;  %v3250_v1 = vpack.c.bf16 %v3213_v27, %v3212_v46  ;;  %v4000_v55 = vld [vmem:[#allocation3 + $0x391] sm:$0xff] }
 0x71d   :  { %11053 = vmatmul.msk.bf16.gmra.mxu0 %vm949_vm2, %v12853_v36  ;;  %v4037_v58 = vpack.c.bf16 %v4000_v55, %v3999_v54  ;;  %2201 = vst.msk [vmem:[#allocation2 + $0x690] sm:$0xff] %vm1990_vm3, %v1876_v11  ;;  %11118 = vmatmul.msk.bf16.gmra.mxu1 %vm1990_vm3, %v3354_v12  ;;  %v12854_v36 = vld [vmem:[%s16683_s0 + $0x390] sm:$0xff] }
 0x71e   :  { %11166 = vmatmul.msk.bf16.gmra.mxu2 %vm1990_vm3, %v3250_v1 }
 0x71f   :  { %11222 = vmatmul.msk.bf16.gmra.mxu3 %vm1990_vm3, %v4037_v58 }
 0x721   :  { %v3907_v22 = vpop.f32.mrf.mxu2 }
 0x722   :  { %v3908_v16 = vadd.f32 %v3907_v22, %v3618_v60  ;;  %v4301_v10 = vpop.f32.mrf.mxu3  ;;  %v1877_v47 = vpop.f32.mrf.mxu0 }
 0x723   :  { %v1878_v26 = vadd.f32 %v14403_v9, %v1877_v47  ;;  %v12855_v47 = vld [vmem:[%s16683_s0 + $0x398] sm:$0xff] }
 0x724   :  { %v14702_v31 = vadd.f32 %v4301_v10, %v3908_v16  ;;  %v2455_v10 = vld [vmem:[#allocation2 + $0x680] ss:$2 sm:$0xff]  ;;  %v2711_v16 = vld [vmem:[#allocation2 + $0x681] ss:$2 sm:$0xff] }
 0x725   :  { %2202 = vst.msk [vmem:[#allocation2 + $0x698] sm:$0xff] %vm1990_vm3, %v1878_v26  ;;  %v2862_v55 = vmax.f32 %v2455_v10, %v2711_v16 }
 0x726   :  { %16744 = vst [vmem:[#allocation61_spill] sm:$0xff] %v14702_v31 }
 0x72a   :  { %v1880_v46 = vpop.f32.mrf.mxu0 }
 0x72b   :  { %v1881_v63 = vadd.f32 %v14403_v9, %v1880_v46 }
 0x72d   :  { %11054 = vmatmul.msk.bf16.gmra.mxu0 %vm949_vm2, %v12854_v36  ;;  %2203 = vst.msk [vmem:[#allocation2 + $0x6a0] sm:$0xff] %vm1990_vm3, %v1881_v63  ;;  %v12856_v63 = vld [vmem:[%s16683_s0 + $0x3a0] sm:$0xff] }
 0x732   :  { %v1882_v22 = vpop.f32.mrf.mxu0 }
 0x733   :  { %v1883_v27 = vadd.f32 %v14403_v9, %v1882_v22  ;;  %v2457_v22 = vld [vmem:[#allocation2 + $0x690] ss:$2 sm:$0xff] }
 0x735   :  { %2204 = vst.msk [vmem:[#allocation2 + $0x6a8] sm:$0xff] %vm1990_vm3, %v1883_v27  ;;  %v2713_v27 = vld [vmem:[#allocation2 + $0x691] ss:$2 sm:$0xff] }
 0x73a   :  { %v1885_v54 = vpop.f32.mrf.mxu0 }
 0x73b   :  { %v1886_v11 = vadd.f32 %v14403_v9, %v1885_v54 }
 0x73c   :  { %v2459_v12 = vld [vmem:[#allocation2 + $0x6a0] ss:$2 sm:$0xff]  ;;  %v2715_v1 = vld [vmem:[#allocation2 + $0x6a1] ss:$2 sm:$0xff] }
 0x73d   :  { %11055 = vmatmul.msk.bf16.gmra.mxu0 %vm949_vm2, %v12855_v47  ;;  %v2864_v58 = vmax.f32 %v2459_v12, %v2715_v1  ;;  %2205 = vst.msk [vmem:[#allocation2 + $0x6b0] sm:$0xff] %vm1990_vm3, %v1886_v11  ;;  %v2863_v11 = vmax.f32 %v2457_v22, %v2713_v27  ;;  %v14739_v27 = vpop.f32.mrf.mxu3 }
 0x73e   :  { %16747 = vst [vmem:[#allocation64_spill] sm:$0xff] %v14739_v27 }
 0x73f   :  { %v2938_v60 = vmax.f32 %v2862_v55, %v2864_v58 }
 0x741   :  { %v3002_v26 = vmax.f32 %v2938_v60, 0.0 }
 0x742   :  { %v1887_v36 = vpop.f32.mrf.mxu0 }
 0x743   :  { %3148 = vst.msk [vmem:[#allocation3 + $0x3a8] sm:$0xff] %vm1990_vm3, %v3002_v26  ;;  %v1888_v46 = vadd.f32 %v14403_v9, %v1887_v36  ;;  %v14732_v26 = vpop.f32.mrf.mxu1  ;;  %v14734_v36 = vpop.f32.mrf.mxu2 }
 0x744   :  { %16745 = vst [vmem:[#allocation62_spill] sm:$0xff] %v14732_v26 }
 0x745   :  { %2206 = vst.msk [vmem:[#allocation2 + $0x6b8] sm:$0xff] %vm1990_vm3, %v1888_v46  ;;  %v12857_v46 = vld [vmem:[%s16683_s0 + $0x3a8] sm:$0xff] }
 0x746   :  { %16746 = vst [vmem:[#allocation63_spill] sm:$0xff] %v14734_v36 }
 0x74a   :  { %v1890_v47 = vpop.f32.mrf.mxu0  ;;  %v3214_v22 = vld [vmem:[#allocation3 + $0x3a7] sm:$0xff] }
 0x74b   :  { %v1891_v10 = vadd.f32 %v14403_v9, %v1890_v47 }
 0x74c   :  { %v2461_v16 = vld [vmem:[#allocation2 + $0x6b0] ss:$2 sm:$0xff]  ;;  %v2717_v54 = vld [vmem:[#allocation2 + $0x6b1] ss:$2 sm:$0xff] }
 0x74d   :  { %11056 = vmatmul.msk.bf16.gmra.mxu0 %vm949_vm2, %v12856_v63  ;;  %v2865_v12 = vmax.f32 %v2461_v16, %v2717_v54  ;;  %2207 = vst.msk [vmem:[#allocation2 + $0x6c0] sm:$0xff] %vm1990_vm3, %v1891_v10  ;;  %v3318_v63 = vld [vmem:[#allocation3 + $0x3a8] sm:$0xff] }
 0x74f   :  { %v2939_v1 = vmax.f32 %v2863_v11, %v2865_v12 }
 0x751   :  { %v3003_v55 = vmax.f32 %v2939_v1, 0.0 }
 0x752   :  { %v1892_v58 = vpop.f32.mrf.mxu0 }
 0x753   :  { %3149 = vst.msk [vmem:[#allocation3 + $0x3b0] sm:$0xff] %vm1990_vm3, %v3003_v55  ;;  %v1893_v60 = vadd.f32 %v14403_v9, %v1892_v58 }
 0x755   :  { %2208 = vst.msk [vmem:[#allocation2 + $0x6c8] sm:$0xff] %vm1990_vm3, %v1893_v60 }
 0x75a   :  { %v1895_v47 = vpop.f32.mrf.mxu0  ;;  %v3319_v10 = vld [vmem:[#allocation3 + $0x3b0] sm:$0xff]  ;;  %v3623_v60 = vpop.f32.mrf.mxu1 }
 0x75b   :  { %v3215_v16 = vld [vmem:[#allocation3 + $0x3af] sm:$0xff]  ;;  %v1896_v11 = vadd.f32 %v14403_v9, %v1895_v47  ;;  %v3355_v12 = vpack.c.bf16 %v3319_v10, %v3318_v63 }
 0x75c   :  { %v4001_v54 = vld [vmem:[#allocation3 + $0x3a9] sm:$0xff]  ;;  %v3251_v1 = vpack.c.bf16 %v3215_v16, %v3214_v22  ;;  %v4002_v55 = vld [vmem:[#allocation3 + $0x3b1] sm:$0xff] }
 0x75d   :  { %11057 = vmatmul.msk.bf16.gmra.mxu0 %vm949_vm2, %v12857_v46  ;;  %v4038_v58 = vpack.c.bf16 %v4002_v55, %v4001_v54  ;;  %2209 = vst.msk [vmem:[#allocation2 + $0x6d0] sm:$0xff] %vm1990_vm3, %v1896_v11  ;;  %11119 = vmatmul.msk.bf16.gmra.mxu1 %vm1990_vm3, %v3355_v12  ;;  %v14752_v46 = vld [vmem:[%s16685_s2] ss:$0 sm:$0xff]  ;;  %v12858_v22 = vld [vmem:[%s16683_s0 + $0x3b0] sm:$0xff]  ;;  %v12891_v10 = vld [vmem:[%s16686_s3 + $0xa8] sm:$0xff] }
 0x75e   :  { %11167 = vmatmul.msk.bf16.gmra.mxu2 %vm1990_vm3, %v3251_v1  ;;  %v12883_v16 = vld [vmem:[%s16686_s3 + $0x68] sm:$0xff]  ;;  %5552 = vmatpush.bf16.msrb.mxu3 %v12891_v10  ;;  %v12859_v54 = vld [vmem:[%s16683_s0 + $0x3b8] sm:$0xff] }
 0x75f   :  { %11223 = vmatmul.msk.bf16.gmra.mxu3 %vm1990_vm3, %v4038_v58  ;;  %4636 = vmatpush.bf16.msrb.mxu1 %v12883_v16  ;;  %v2463_v11 = vld [vmem:[#allocation2 + $0x6c0] ss:$2 sm:$0xff]  ;;  %v2719_v12 = vld [vmem:[#allocation2 + $0x6c1] ss:$2 sm:$0xff] }
 0x761   :  { %v3912_v27 = vpop.f32.mrf.mxu2 }
 0x762   :  { %v3913_v36 = vadd.f32 %v3912_v27, %v3623_v60  ;;  %v4306_v26 = vpop.f32.mrf.mxu3  ;;  %v1897_v31 = vpop.f32.mrf.mxu0 }
 0x763   :  { %v1898_v63 = vadd.f32 %v14752_v46, %v1897_v31  ;;  %v12887_v31 = vld [vmem:[%s16686_s3 + $0x88] sm:$0xff] }
 0x764   :  { %v14747_v9 = vadd.f32 %v4306_v26, %v3913_v36  ;;  %5094 = vmatpush.bf16.msrb.mxu2 %v12887_v31  ;;  %v12860_v31 = vld [vmem:[%s16683_s0 + $0x3c0] sm:$0xff] }
 0x765   :  { %2210 = vst.msk [vmem:[#allocation2 + $0x6d8] sm:$0xff] %vm1990_vm3, %v1898_v63  ;;  %v2866_v63 = vmax.f32 %v2463_v11, %v2719_v12 }
 0x766   :  { %16748 = vst [vmem:[#allocation65_spill] sm:$0xff] %v14747_v9 }
 0x76a   :  { %v1900_v47 = vpop.f32.mrf.mxu0 }
 0x76b   :  { %v1901_v27 = vadd.f32 %v14752_v46, %v1900_v47 }
 0x76c   :  { %v2465_v10 = vld [vmem:[#allocation2 + $0x6d0] ss:$2 sm:$0xff]  ;;  %v2721_v16 = vld [vmem:[#allocation2 + $0x6d1] ss:$2 sm:$0xff] }
 0x76d   :  { %11058 = vmatmul.msk.bf16.gmra.mxu0 %vm949_vm2, %v12858_v22  ;;  %2211 = vst.msk [vmem:[#allocation2 + $0x6e0] sm:$0xff] %vm1990_vm3, %v1901_v27 }
 0x772   :  { %v1902_v26 = vpop.f32.mrf.mxu0 }
 0x773   :  { %v1903_v36 = vadd.f32 %v14752_v46, %v1902_v26 }
 0x775   :  { %2212 = vst.msk [vmem:[#allocation2 + $0x6e8] sm:$0xff] %vm1990_vm3, %v1903_v36 }
 0x77a   :  { %v1905_v1 = vpop.f32.mrf.mxu0 }
 0x77b   :  { %v1906_v55 = vadd.f32 %v14752_v46, %v1905_v1 }
 0x77c   :  { %v2467_v58 = vld [vmem:[#allocation2 + $0x6e0] ss:$2 sm:$0xff]  ;;  %v2723_v60 = vld [vmem:[#allocation2 + $0x6e1] ss:$2 sm:$0xff] }
 0x77d   :  { %11059 = vmatmul.msk.bf16.gmra.mxu0 %vm949_vm2, %v12859_v54  ;;  %v2868_v22 = vmax.f32 %v2467_v58, %v2723_v60  ;;  %2213 = vst.msk [vmem:[#allocation2 + $0x6f0] sm:$0xff] %vm1990_vm3, %v1906_v55  ;;  %v2867_v55 = vmax.f32 %v2465_v10, %v2721_v16  ;;  %v14798_v16 = vpop.f32.mrf.mxu3 }
 0x77e   :  { %16751 = vst [vmem:[#allocation68_spill] sm:$0xff] %v14798_v16 }
 0x77f   :  { %v2940_v47 = vmax.f32 %v2866_v63, %v2868_v22 }
 0x781   :  { %v3004_v27 = vmax.f32 %v2940_v47, 0.0 }
 0x782   :  { %v1907_v26 = vpop.f32.mrf.mxu0 }
 0x783   :  { %3150 = vst.msk [vmem:[#allocation3 + $0x3c8] sm:$0xff] %vm1990_vm3, %v3004_v27  ;;  %v1908_v36 = vadd.f32 %v14752_v46, %v1907_v26  ;;  %v14791_v27 = vpop.f32.mrf.mxu1  ;;  %v14793_v26 = vpop.f32.mrf.mxu2 }
 0x784   :  { %16749 = vst [vmem:[#allocation66_spill] sm:$0xff] %v14791_v27 }
 0x785   :  { %2214 = vst.msk [vmem:[#allocation2 + $0x6f8] sm:$0xff] %vm1990_vm3, %v1908_v36  ;;  %v12861_v36 = vld [vmem:[%s16683_s0 + $0x3c8] sm:$0xff] }
 0x786   :  { %16750 = vst [vmem:[#allocation67_spill] sm:$0xff] %v14793_v26 }
 0x78a   :  { %v1910_v54 = vpop.f32.mrf.mxu0  ;;  %v3216_v10 = vld [vmem:[#allocation3 + $0x3c7] sm:$0xff] }
 0x78b   :  { %v1911_v11 = vadd.f32 %v14752_v46, %v1910_v54 }
 0x78c   :  { %v2469_v12 = vld [vmem:[#allocation2 + $0x6f0] ss:$2 sm:$0xff]  ;;  %v2725_v1 = vld [vmem:[#allocation2 + $0x6f1] ss:$2 sm:$0xff] }
 0x78d   :  { %11060 = vmatmul.msk.bf16.gmra.mxu0 %vm949_vm2, %v12860_v31  ;;  %v2869_v58 = vmax.f32 %v2469_v12, %v2725_v1  ;;  %2215 = vst.msk [vmem:[#allocation2 + $0x700] sm:$0xff] %vm1990_vm3, %v1911_v11  ;;  %v3320_v31 = vld [vmem:[#allocation3 + $0x3c8] sm:$0xff] }
 0x78f   :  { %v2941_v60 = vmax.f32 %v2867_v55, %v2869_v58 }
 0x791   :  { %v3005_v63 = vmax.f32 %v2941_v60, 0.0 }
 0x792   :  { %v1912_v22 = vpop.f32.mrf.mxu0 }
 0x793   :  { %3151 = vst.msk [vmem:[#allocation3 + $0x3d0] sm:$0xff] %vm1990_vm3, %v3005_v63  ;;  %v1913_v47 = vadd.f32 %v14752_v46, %v1912_v22 }
 0x795   :  { %2216 = vst.msk [vmem:[#allocation2 + $0x708] sm:$0xff] %vm1990_vm3, %v1913_v47 }
 0x79a   :  { %v1915_v54 = vpop.f32.mrf.mxu0  ;;  %v3321_v11 = vld [vmem:[#allocation3 + $0x3d0] sm:$0xff]  ;;  %v3628_v47 = vpop.f32.mrf.mxu1 }
 0x79b   :  { %v3217_v12 = vld [vmem:[#allocation3 + $0x3cf] sm:$0xff]  ;;  %v1916_v55 = vadd.f32 %v14752_v46, %v1915_v54  ;;  %v3356_v58 = vpack.c.bf16 %v3321_v11, %v3320_v31 }
 0x79c   :  { %v4003_v1 = vld [vmem:[#allocation3 + $0x3c9] sm:$0xff]  ;;  %v3252_v60 = vpack.c.bf16 %v3217_v12, %v3216_v10  ;;  %v4004_v63 = vld [vmem:[#allocation3 + $0x3d1] sm:$0xff] }
 0x79d   :  { %11061 = vmatmul.msk.bf16.gmra.mxu0 %vm949_vm2, %v12861_v36  ;;  %v4039_v22 = vpack.c.bf16 %v4004_v63, %v4003_v1  ;;  %2217 = vst.msk [vmem:[#allocation2 + $0x710] sm:$0xff] %vm1990_vm3, %v1916_v55  ;;  %11120 = vmatmul.msk.bf16.gmra.mxu1 %vm1990_vm3, %v3356_v58  ;;  %v13080_v36 = vld [vmem:[%s16690_s7 + $0x330] sm:$0xff]  ;;  %v2471_v12 = vld [vmem:[#allocation2 + $0x700] ss:$2 sm:$0xff]  ;;  %v2727_v1 = vld [vmem:[#allocation2 + $0x701] ss:$2 sm:$0xff] }
 0x79e   :  { %11168 = vmatmul.msk.bf16.gmra.mxu2 %vm1990_vm3, %v3252_v60  ;;  %10134 = vmatpush.bf16.msrb.mxu0 %v13080_v36  ;;  %v12862_v10 = vld [vmem:[%s16683_s0 + $0x3d0] sm:$0xff] }
 0x79f   :  { %11224 = vmatmul.msk.bf16.gmra.mxu3 %vm1990_vm3, %v4039_v22  ;;  %v2870_v22 = vmax.f32 %v2471_v12, %v2727_v1 }
 0x7a1   :  { %v3917_v16 = vpop.f32.mrf.mxu2 }
 0x7a2   :  { %v3918_v26 = vadd.f32 %v3917_v16, %v3628_v47  ;;  %v4311_v27 = vpop.f32.mrf.mxu3  ;;  %v1917_v9 = vpop.f32.mrf.mxu0 }
 0x7a3   :  { %v1918_v31 = vadd.f32 %v14752_v46, %v1917_v9 }
 0x7a4   :  { %v14806_v54 = vadd.f32 %v4311_v27, %v3918_v26  ;;  %v12863_v26 = vld [vmem:[%s16683_s0 + $0x3d8] sm:$0xff] }
 0x7a5   :  { %2218 = vst.msk [vmem:[#allocation2 + $0x718] sm:$0xff] %vm1990_vm3, %v1918_v31 }
 0x7a6   :  { %16752 = vst [vmem:[#allocation69_spill] sm:$0xff] %v14806_v54 }
 0x7aa   :  { %v1920_v11 = vpop.f32.mrf.mxu0 }
 0x7ab   :  { %v1921_v16 = vadd.f32 %v14752_v46, %v1920_v11 }
 0x7ad   :  { %11062 = vmatmul.msk.bf16.gmra.mxu0 %vm949_vm2, %v12862_v10  ;;  %2219 = vst.msk [vmem:[#allocation2 + $0x720] sm:$0xff] %vm1990_vm3, %v1921_v16  ;;  %v2473_v16 = vld [vmem:[#allocation2 + $0x710] ss:$2 sm:$0xff] }
 0x7b2   :  { %v1922_v27 = vpop.f32.mrf.mxu0 }
 0x7b3   :  { %v1923_v9 = vadd.f32 %v14752_v46, %v1922_v27  ;;  %v2729_v27 = vld [vmem:[#allocation2 + $0x711] ss:$2 sm:$0xff] }
 0x7b4   :  { %v2871_v12 = vmax.f32 %v2473_v16, %v2729_v27 }
 0x7b5   :  { %2220 = vst.msk [vmem:[#allocation2 + $0x728] sm:$0xff] %vm1990_vm3, %v1923_v9 }
 0x7ba   :  { %v1925_v55 = vpop.f32.mrf.mxu0 }
 0x7bb   :  { %v1926_v58 = vadd.f32 %v14752_v46, %v1925_v55 }
 0x7bc   :  { %v2475_v60 = vld [vmem:[#allocation2 + $0x720] ss:$2 sm:$0xff]  ;;  %v2731_v63 = vld [vmem:[#allocation2 + $0x721] ss:$2 sm:$0xff] }
 0x7bd   :  { %11063 = vmatmul.msk.bf16.gmra.mxu0 %vm949_vm2, %v12863_v26  ;;  %v2872_v47 = vmax.f32 %v2475_v60, %v2731_v63  ;;  %2221 = vst.msk [vmem:[#allocation2 + $0x730] sm:$0xff] %vm1990_vm3, %v1926_v58 }
 0x7bf   :  { %v2942_v31 = vmax.f32 %v2870_v22, %v2872_v47  ;;  %v14835_v47 = vpop.f32.mrf.mxu1 }
 0x7c0   :  { %16753 = vst [vmem:[#allocation70_spill] sm:$0xff] %v14835_v47 }
 0x7c1   :  { %v3006_v36 = vmax.f32 %v2942_v31, 0.0  ;;  %v14837_v31 = vpop.f32.mrf.mxu2 }
 0x7c2   :  { %v1927_v10 = vpop.f32.mrf.mxu0  ;;  %16754 = vst [vmem:[#allocation71_spill] sm:$0xff] %v14837_v31 }
 0x7c3   :  { %3152 = vst.msk [vmem:[#allocation3 + $0x3e8] sm:$0xff] %vm1990_vm3, %v3006_v36  ;;  %v1928_v11 = vadd.f32 %v14752_v46, %v1927_v10 }
 0x7c5   :  { %2222 = vst.msk [vmem:[#allocation2 + $0x738] sm:$0xff] %vm1990_vm3, %v1928_v11  ;;  %v14839_v11 = vpop.f32.mrf.mxu3 }
 0x7c6   :  { %16755 = vst [vmem:[#allocation72_spill] sm:$0xff] %v14839_v11 }
 0x7ca   :  { %v1930_v9 = vpop.f32.mrf.mxu0  ;;  %v3322_v36 = vld [vmem:[#allocation3 + $0x3e8] sm:$0xff] }
 0x7cb   :  { %v1931_v55 = vadd.f32 %v14752_v46, %v1930_v9  ;;  %v3218_v10 = vld [vmem:[#allocation3 + $0x3e7] sm:$0xff] }
 0x7cc   :  { %v2477_v54 = vld [vmem:[#allocation2 + $0x730] ss:$2 sm:$0xff]  ;;  %v2733_v26 = vld [vmem:[#allocation2 + $0x731] ss:$2 sm:$0xff] }
 0x7cd   :  { %v2873_v1 = vmax.f32 %v2477_v54, %v2733_v26  ;;  %2223 = vst.msk [vmem:[#allocation2 + $0x740] sm:$0xff] %vm1990_vm3, %v1931_v55 }
 0x7cf   :  { %v2943_v58 = vmax.f32 %v2871_v12, %v2873_v1 }
 0x7d1   :  { %v3007_v60 = vmax.f32 %v2943_v58, 0.0 }
 0x7d2   :  { %v1932_v63 = vpop.f32.mrf.mxu0 }
 0x7d3   :  { %3153 = vst.msk [vmem:[#allocation3 + $0x3f0] sm:$0xff] %vm1990_vm3, %v3007_v60  ;;  %v1933_v22 = vadd.f32 %v14752_v46, %v1932_v63 }
 0x7d5   :  { %2224 = vst.msk [vmem:[#allocation2 + $0x748] sm:$0xff] %vm1990_vm3, %v1933_v22 }
 0x7da   :  { %v1935_v54 = vpop.f32.mrf.mxu0  ;;  %v3323_v16 = vld [vmem:[#allocation3 + $0x3f0] sm:$0xff]  ;;  %v3633_v60 = vpop.f32.mrf.mxu1 }
 0x7db   :  { %v3219_v27 = vld [vmem:[#allocation3 + $0x3ef] sm:$0xff]  ;;  %v1936_v55 = vadd.f32 %v14752_v46, %v1935_v54  ;;  %v3357_v26 = vpack.c.bf16 %v3323_v16, %v3322_v36 }
 0x7dc   :  { %v4005_v9 = vld [vmem:[#allocation3 + $0x3e9] sm:$0xff]  ;;  %v3253_v12 = vpack.c.bf16 %v3219_v27, %v3218_v10  ;;  %v4006_v1 = vld [vmem:[#allocation3 + $0x3f1] sm:$0xff] }
 0x7dd   :  { %v4040_v58 = vpack.c.bf16 %v4006_v1, %v4005_v9  ;;  %2225 = vst.msk [vmem:[#allocation2 + $0x750] sm:$0xff] %vm1990_vm3, %v1936_v55  ;;  %11121 = vmatmul.msk.bf16.gmra.mxu1 %vm1990_vm3, %v3357_v26  ;;  %v12886_v9 = vld [vmem:[%s16686_s3 + $0x80] sm:$0xff] }
 0x7de   :  { %11169 = vmatmul.msk.bf16.gmra.mxu2 %vm1990_vm3, %v3253_v12  ;;  %v2479_v55 = vld [vmem:[#allocation2 + $0x740] ss:$2 sm:$0xff]  ;;  %v2735_v26 = vld [vmem:[#allocation2 + $0x741] ss:$2 sm:$0xff] }
 0x7df   :  { %11225 = vmatmul.msk.bf16.gmra.mxu3 %vm1990_vm3, %v4040_v58  ;;  %5095 = vmatpush.bf16.msrb.mxu2 %v12886_v9 }
 0x7e1   :  { %v3922_v63 = vpop.f32.mrf.mxu2 }
 0x7e2   :  { %v3923_v22 = vadd.f32 %v3922_v63, %v3633_v60  ;;  %v4316_v11 = vpop.f32.mrf.mxu3  ;;  %v1937_v31 = vpop.f32.mrf.mxu0  ;;  %v2874_v63 = vmax.f32 %v2479_v55, %v2735_v26 }
 0x7e3   :  { %v1938_v36 = vadd.f32 %v14752_v46, %v1937_v31  ;;  %v12882_v31 = vld [vmem:[%s16686_s3 + $0x60] sm:$0xff] }
 0x7e4   :  { %v14846_v47 = vadd.f32 %v4316_v11, %v3923_v22  ;;  %v12890_v11 = vld [vmem:[%s16686_s3 + $0xa0] sm:$0xff]  ;;  %4637 = vmatpush.bf16.msrb.mxu1 %v12882_v31 }
 0x7e5   :  { %2226 = vst.msk [vmem:[#allocation2 + $0x758] sm:$0xff] %vm1990_vm3, %v1938_v36  ;;  %5553 = vmatpush.bf16.msrb.mxu3 %v12890_v11 }
 0x7e6   :  { %16756 = vst [vmem:[#allocation73_spill] sm:$0xff] %v14846_v47 }
 0x7ea   :  { %v1940_v10 = vpop.f32.mrf.mxu0 }
 0x7eb   :  { %v1941_v54 = vadd.f32 %v14752_v46, %v1940_v10 }
 0x7ec   :  { %v2737_v9 = vld [vmem:[#allocation2 + $0x751] ss:$2 sm:$0xff] }
 0x7ed   :  { %2227 = vst.msk [vmem:[#allocation2 + $0x760] sm:$0xff] %vm1990_vm3, %v1941_v54 }
 0x7f2   :  { %v1942_v16 = vpop.f32.mrf.mxu0 }
 0x7f3   :  { %v1943_v27 = vadd.f32 %v14752_v46, %v1942_v16 }
 0x7f5   :  { %2228 = vst.msk [vmem:[#allocation2 + $0x768] sm:$0xff] %vm1990_vm3, %v1943_v27  ;;  %v2481_v27 = vld [vmem:[#allocation2 + $0x750] ss:$2 sm:$0xff] }
 0x7f6   :  { %v2875_v55 = vmax.f32 %v2481_v27, %v2737_v9 }
 0x7fa   :  { %v1945_v12 = vpop.f32.mrf.mxu0 }
 0x7fb   :  { %v1946_v1 = vadd.f32 %v14752_v46, %v1945_v12 }
 0x7fc   :  { %v2483_v58 = vld [vmem:[#allocation2 + $0x760] ss:$2 sm:$0xff]  ;;  %v2739_v60 = vld [vmem:[#allocation2 + $0x761] ss:$2 sm:$0xff] }
 0x7fd   :  { %v2876_v22 = vmax.f32 %v2483_v58, %v2739_v60  ;;  %2229 = vst.msk [vmem:[#allocation2 + $0x770] sm:$0xff] %vm1990_vm3, %v1946_v1 }
 0x7ff   :  { %v2944_v36 = vmax.f32 %v2874_v63, %v2876_v22  ;;  %v14873_v22 = vpop.f32.mrf.mxu1 }
 0x800   :  { %16757 = vst [vmem:[#allocation74_spill] sm:$0xff] %v14873_v22 }
 0x801   :  { %v3008_v10 = vmax.f32 %v2944_v36, 0.0  ;;  %v14875_v36 = vpop.f32.mrf.mxu2 }
 0x802   :  { %v1947_v54 = vpop.f32.mrf.mxu0  ;;  %16758 = vst [vmem:[#allocation75_spill] sm:$0xff] %v14875_v36 }
 0x803   :  { %3154 = vst.msk [vmem:[#allocation3 + $0x408] sm:$0xff] %vm1990_vm3, %v3008_v10  ;;  %v1948_v16 = vadd.f32 %v14752_v46, %v1947_v54 }
 0x805   :  { %2230 = vst.msk [vmem:[#allocation2 + $0x778] sm:$0xff] %vm1990_vm3, %v1948_v16  ;;  %v14877_v16 = vpop.f32.mrf.mxu3 }
 0x806   :  { %16759 = vst [vmem:[#allocation76_spill] sm:$0xff] %v14877_v16 }
 0x80a   :  { %v1950_v11 = vpop.f32.mrf.mxu0  ;;  %v3324_v10 = vld [vmem:[#allocation3 + $0x408] sm:$0xff] }
 0x80b   :  { %v1951_v31 = vadd.f32 %v14752_v46, %v1950_v11  ;;  %v3220_v54 = vld [vmem:[#allocation3 + $0x407] sm:$0xff] }
 0x80c   :  { %v2485_v12 = vld [vmem:[#allocation2 + $0x770] ss:$2 sm:$0xff]  ;;  %v2741_v47 = vld [vmem:[#allocation2 + $0x771] ss:$2 sm:$0xff] }
 0x80d   :  { %v2877_v26 = vmax.f32 %v2485_v12, %v2741_v47  ;;  %2231 = vst.msk [vmem:[#allocation2 + $0x780] sm:$0xff] %vm1990_vm3, %v1951_v31 }
 0x80f   :  { %v2945_v1 = vmax.f32 %v2875_v55, %v2877_v26 }
 0x811   :  { %v3009_v58 = vmax.f32 %v2945_v1, 0.0 }
 0x812   :  { %v1952_v60 = vpop.f32.mrf.mxu0 }
 0x813   :  { %3155 = vst.msk [vmem:[#allocation3 + $0x410] sm:$0xff] %vm1990_vm3, %v3009_v58  ;;  %v1953_v63 = vadd.f32 %v14752_v46, %v1952_v60 }
 0x815   :  { %2232 = vst.msk [vmem:[#allocation2 + $0x788] sm:$0xff] %vm1990_vm3, %v1953_v63 }
 0x81a   :  { %v1955_v47 = vpop.f32.mrf.mxu0  ;;  %v3325_v27 = vld [vmem:[#allocation3 + $0x410] sm:$0xff]  ;;  %v3638_v58 = vpop.f32.mrf.mxu1 }
 0x81b   :  { %v3221_v9 = vld [vmem:[#allocation3 + $0x40f] sm:$0xff]  ;;  %v1956_v31 = vadd.f32 %v14752_v46, %v1955_v47  ;;  %v3358_v12 = vpack.c.bf16 %v3325_v27, %v3324_v10 }
 0x81c   :  { %v4007_v11 = vld [vmem:[#allocation3 + $0x409] sm:$0xff]  ;;  %v3254_v55 = vpack.c.bf16 %v3221_v9, %v3220_v54  ;;  %v4008_v26 = vld [vmem:[#allocation3 + $0x411] sm:$0xff] }
 0x81d   :  { %v4041_v1 = vpack.c.bf16 %v4008_v26, %v4007_v11  ;;  %2233 = vst.msk [vmem:[#allocation2 + $0x790] sm:$0xff] %vm1990_vm3, %v1956_v31  ;;  %11122 = vmatmul.msk.bf16.gmra.mxu1 %vm1990_vm3, %v3358_v12  ;;  %v2487_v11 = vld [vmem:[#allocation2 + $0x780] ss:$2 sm:$0xff]  ;;  %v2743_v31 = vld [vmem:[#allocation2 + $0x781] ss:$2 sm:$0xff] }
 0x81e   :  { %11170 = vmatmul.msk.bf16.gmra.mxu2 %vm1990_vm3, %v3254_v55 }
 0x81f   :  { %11226 = vmatmul.msk.bf16.gmra.mxu3 %vm1990_vm3, %v4041_v1 }
 0x821   :  { %v3927_v60 = vpop.f32.mrf.mxu2 }
 0x822   :  { %v3928_v63 = vadd.f32 %v3927_v60, %v3638_v58  ;;  %v4321_v16 = vpop.f32.mrf.mxu3  ;;  %v1957_v36 = vpop.f32.mrf.mxu0 }
 0x823   :  { %v1958_v10 = vadd.f32 %v14752_v46, %v1957_v36  ;;  %v2878_v36 = vmax.f32 %v2487_v11, %v2743_v31  ;;  %v14898_v31 = vpop.f32.mrf.mxu1 }
 0x824   :  { %v14884_v22 = vadd.f32 %v4321_v16, %v3928_v63  ;;  %16761 = vst [vmem:[#allocation78_spill] sm:$0xff] %v14898_v31 }
 0x825   :  { %2234 = vst.msk [vmem:[#allocation2 + $0x798] sm:$0xff] %vm1990_vm3, %v1958_v10 }
 0x826   :  { %16760 = vst [vmem:[#allocation77_spill] sm:$0xff] %v14884_v22 }
 0x82a   :  { %v1960_v54 = vpop.f32.mrf.mxu0 }
 0x82b   :  { %v1961_v47 = vadd.f32 %v14752_v46, %v1960_v54 }
 0x82c   :  { %v2489_v54 = vld [vmem:[#allocation2 + $0x790] ss:$2 sm:$0xff] }
 0x82d   :  { %2235 = vst.msk [vmem:[#allocation2 + $0x7a0] sm:$0xff] %vm1990_vm3, %v1961_v47  ;;  %v2745_v47 = vld [vmem:[#allocation2 + $0x791] ss:$2 sm:$0xff] }
 0x832   :  { %v1962_v27 = vpop.f32.mrf.mxu0 }
 0x833   :  { %v1963_v9 = vadd.f32 %v14752_v46, %v1962_v27 }
 0x835   :  { %2236 = vst.msk [vmem:[#allocation2 + $0x7a8] sm:$0xff] %vm1990_vm3, %v1963_v9 }
 0x83a   :  { %v1965_v12 = vpop.f32.mrf.mxu0 }
 0x83b   :  { %v1966_v16 = vadd.f32 %v14752_v46, %v1965_v12  ;;  %v2879_v12 = vmax.f32 %v2489_v54, %v2745_v47  ;;  %v12897_v47 = vld [vmem:[%s16686_s3 + $0xd8] sm:$0xff] }
 0x83c   :  { %v2491_v55 = vld [vmem:[#allocation2 + $0x7a0] ss:$2 sm:$0xff]  ;;  %v2747_v26 = vld [vmem:[#allocation2 + $0x7a1] ss:$2 sm:$0xff]  ;;  %6009 = vmatpush.bf16.msra.mxu1 %v12897_v47 }
 0x83d   :  { %v2880_v1 = vmax.f32 %v2491_v55, %v2747_v26  ;;  %2237 = vst.msk [vmem:[#allocation2 + $0x7b0] sm:$0xff] %vm1990_vm3, %v1966_v16  ;;  %v14900_v16 = vpop.f32.mrf.mxu2  ;;  %v5323_v47 = vld [vmem:[#allocation3 + $0x49] sm:$0xff] }
 0x83e   :  { %16762 = vst [vmem:[#allocation79_spill] sm:$0xff] %v14900_v16 }
 0x83f   :  { %v2946_v58 = vmax.f32 %v2878_v36, %v2880_v1  ;;  %v14902_v36 = vpop.f32.mrf.mxu3 }
 0x840   :  { %16763 = vst [vmem:[#allocation80_spill] sm:$0xff] %v14902_v36 }
 0x841   :  { %v3010_v60 = vmax.f32 %v2946_v58, 0.0 }
 0x842   :  { %v1967_v63 = vpop.f32.mrf.mxu0 }
 0x843   :  { %3156 = vst.msk [vmem:[#allocation3 + $0x428] sm:$0xff] %vm1990_vm3, %v3010_v60  ;;  %v1968_v10 = vadd.f32 %v14752_v46, %v1967_v63 }
 0x845   :  { %2238 = vst.msk [vmem:[#allocation2 + $0x7b8] sm:$0xff] %vm1990_vm3, %v1968_v10 }
 0x84a   :  { %v3326_v55 = vld [vmem:[#allocation3 + $0x428] sm:$0xff] }
 0x84b   :  { %v3222_v26 = vld [vmem:[#allocation3 + $0x427] sm:$0xff] }
 0x84c   :  { %v2493_v27 = vld [vmem:[#allocation2 + $0x7b0] ss:$2 sm:$0xff]  ;;  %v2749_v9 = vld [vmem:[#allocation2 + $0x7b1] ss:$2 sm:$0xff] }
 0x84d   :  { %v2881_v22 = vmax.f32 %v2493_v27, %v2749_v9 }
 0x84f   :  { %v2947_v7 = vmax.f32 %v2879_v12, %v2881_v22  ;;  %v12905_v22 = vld [vmem:[%s16686_s3 + $0x118] sm:$0xff] }
 0x850   :  { %6925 = vmatpush.bf16.msra.mxu3 %v12905_v22  ;;  %v4866_v22 = vld [vmem:[#allocation3 + $0x50] sm:$0xff] }
 0x851   :  { %v3011_v11 = vmax.f32 %v2947_v7, 0.0  ;;  %v12901_v7 = vld [vmem:[%s16686_s3 + $0xf8] sm:$0xff] }
 0x852   :  { %6467 = vmatpush.bf16.msra.mxu2 %v12901_v7  ;;  %v4408_v7 = vld [vmem:[#allocation3 + $0x4f] sm:$0xff] }
 0x853   :  { %3157 = vst.msk [vmem:[#allocation3 + $0x430] sm:$0xff] %vm1990_vm3, %v3011_v11 }
 0x85a   :  { %v3327_v46 = vld [vmem:[#allocation3 + $0x430] sm:$0xff]  ;;  %v3643_v27 = vpop.f32.mrf.mxu1 }
 0x85b   :  { %v3223_v1 = vld [vmem:[#allocation3 + $0x42f] sm:$0xff]  ;;  %v3359_v60 = vpack.c.bf16 %v3327_v46, %v3326_v55 }
 0x85c   :  { %v4009_v58 = vld [vmem:[#allocation3 + $0x429] sm:$0xff]  ;;  %v3255_v63 = vpack.c.bf16 %v3223_v1, %v3222_v26  ;;  %v4010_v10 = vld [vmem:[#allocation3 + $0x431] sm:$0xff] }
 0x85d   :  { %v4042_v54 = vpack.c.bf16 %v4010_v10, %v4009_v58  ;;  %11123 = vmatmul.msk.bf16.gmra.mxu1 %vm1990_vm3, %v3359_v60  ;;  %v4406_v26 = vld [vmem:[#allocation3 + $0x2f] sm:$0xff]  ;;  %v4405_v60 = vld [vmem:[#allocation3 + $0x27] sm:$0xff] }
 0x85e   :  { %11171 = vmatmul.msk.bf16.gmra.mxu2 %vm1990_vm3, %v3255_v63  ;;  %v4864_v46 = vld [vmem:[#allocation3 + $0x30] sm:$0xff]  ;;  %v4863_v63 = vld [vmem:[#allocation3 + $0x28] sm:$0xff]  ;;  %v4469_v10 = vpack.c.bf16 %v4406_v26, %v4405_v60 }
 0x85f   :  { %11227 = vmatmul.msk.bf16.gmra.mxu3 %vm1990_vm3, %v4042_v54  ;;  %v5321_v1 = vld [vmem:[#allocation3 + $0x29] sm:$0xff]  ;;  %v5322_v58 = vld [vmem:[#allocation3 + $0x31] sm:$0xff]  ;;  %v4927_v54 = vpack.c.bf16 %v4864_v46, %v4863_v63 }
 0x860   :  { %v5385_v36 = vpack.c.bf16 %v5322_v58, %v5321_v1  ;;  %v4410_v26 = vld [vmem:[#allocation3 + $0x6f] sm:$0xff] }
 0x861   :  { %v3932_v9 = vpop.f32.mrf.mxu2  ;;  %v4868_v46 = vld [vmem:[#allocation3 + $0x70] sm:$0xff]  ;;  %v4867_v60 = vld [vmem:[#allocation3 + $0x68] sm:$0xff] }
 0x862   :  { %v3933_v12 = vadd.f32 %v3932_v9, %v3643_v27  ;;  %v4326_v11 = vpop.f32.mrf.mxu3  ;;  %v5324_v27 = vld [vmem:[#allocation3 + $0x51] sm:$0xff]  ;;  %v4407_v9 = vld [vmem:[#allocation3 + $0x47] sm:$0xff] }
 0x863   :  { %v5386_v16 = vpack.c.bf16 %v5324_v27, %v5323_v47  ;;  %v5325_v1 = vld [vmem:[#allocation3 + $0x69] sm:$0xff]  ;;  %v5326_v58 = vld [vmem:[#allocation3 + $0x71] sm:$0xff] }
 0x864   :  { %v14916_v55 = vadd.f32 %v4326_v11, %v3933_v12  ;;  %v4865_v12 = vld [vmem:[#allocation3 + $0x48] sm:$0xff]  ;;  %v4470_v11 = vpack.c.bf16 %v4408_v7, %v4407_v9  ;;  %v14927_v7 = vpop.f32.mrf.mxu1  ;;  %v5328_v27 = vld [vmem:[#allocation3 + $0x91] sm:$0xff] }
 0x865   :  { %16765 = vst [vmem:[#allocation82_spill] sm:$0xff] %v14927_v7  ;;  %v5327_v47 = vld [vmem:[#allocation3 + $0x89] sm:$0xff] }
 0x866   :  { %16764 = vst [vmem:[#allocation81_spill] sm:$0xff] %v14916_v55  ;;  %v4928_v55 = vpack.c.bf16 %v4866_v22, %v4865_v12  ;;  %v4870_v22 = vld [vmem:[#allocation3 + $0x90] sm:$0xff]  ;;  %v4411_v12 = vld [vmem:[#allocation3 + $0x87] sm:$0xff] }
 0x86a   :  { %v14931_v9 = vpop.f32.mrf.mxu3 }
 0x86b   :  { %16767 = vst [vmem:[#allocation84_spill] sm:$0xff] %v14931_v9 }
 0x86d   :  { %11252 = vmatmul.msk.bf16.vlgmr.msrb.gmra.mxu1 %vm1990_vm3, %v4469_v10  ;;  %v4929_v10 = vpack.c.bf16 %v4868_v46, %v4867_v60 }
 0x86e   :  { %11308 = vmatmul.msk.bf16.vlgmr.msrb.gmra.mxu2 %vm1990_vm3, %v4927_v54  ;;  %v5387_v54 = vpack.c.bf16 %v5326_v58, %v5325_v1  ;;  %v5388_v1 = vpack.c.bf16 %v5328_v27, %v5327_v47  ;;  %v13079_v58 = vld [vmem:[%s16690_s7 + $0x328] sm:$0xff]  ;;  %v5330_v27 = vld [vmem:[#allocation3 + $0xb1] sm:$0xff] }
 0x86f   :  { %11364 = vmatmul.msk.bf16.vlgmr.msrb.gmra.mxu3 %vm1990_vm3, %v5385_v36  ;;  %v4409_v36 = vld [vmem:[#allocation3 + $0x67] sm:$0xff]  ;;  %10135 = vmatpush.bf16.msrb.mxu0 %v13079_v58  ;;  %v4416_v58 = vld [vmem:[#allocation3 + $0xcf] sm:$0xff] }
 0x870   :  { %v4471_v63 = vpack.c.bf16 %v4410_v26, %v4409_v36  ;;  %v5329_v47 = vld [vmem:[#allocation3 + $0xa9] sm:$0xff] }
 0x87d   :  { %11253 = vmatmul.msk.bf16.gmra.mxu1 %vm1990_vm3, %v4470_v11  ;;  %v4869_v11 = vld [vmem:[#allocation3 + $0x88] sm:$0xff] }
 0x87e   :  { %11309 = vmatmul.msk.bf16.gmra.mxu2 %vm1990_vm3, %v4928_v55  ;;  %v14929_v55 = vpop.f32.mrf.mxu2  ;;  %v4930_v46 = vpack.c.bf16 %v4870_v22, %v4869_v11  ;;  %v4872_v22 = vld [vmem:[#allocation3 + $0xb0] sm:$0xff]  ;;  %v4871_v11 = vld [vmem:[#allocation3 + $0xa8] sm:$0xff] }
 0x87f   :  { %11365 = vmatmul.msk.bf16.gmra.mxu3 %vm1990_vm3, %v5386_v16  ;;  %16766 = vst [vmem:[#allocation83_spill] sm:$0xff] %v14929_v55  ;;  %v4412_v16 = vld [vmem:[#allocation3 + $0x8f] sm:$0xff] }
 0x880   :  { %v4472_v26 = vpack.c.bf16 %v4412_v16, %v4411_v12  ;;  %v4414_v16 = vld [vmem:[#allocation3 + $0xaf] sm:$0xff]  ;;  %v4413_v12 = vld [vmem:[#allocation3 + $0xa7] sm:$0xff] }
 0x88d   :  { %11254 = vmatmul.msk.bf16.gmra.mxu1 %vm1990_vm3, %v4471_v63 }
 0x88e   :  { %11310 = vmatmul.msk.bf16.gmra.mxu2 %vm1990_vm3, %v4929_v10 }
 0x88f   :  { %11366 = vmatmul.msk.bf16.gmra.mxu3 %vm1990_vm3, %v5387_v54 }
 0x89a   :  { %v3648_v36 = vpop.f32.mrf.mxu1 }
 0x89d   :  { %11255 = vmatmul.msk.bf16.gmra.mxu1 %vm1990_vm3, %v4472_v26  ;;  %v4473_v26 = vpack.c.bf16 %v4414_v16, %v4413_v12  ;;  %v4418_v16 = vld [vmem:[#allocation3 + $0xef] sm:$0xff]  ;;  %v4417_v12 = vld [vmem:[#allocation3 + $0xe7] sm:$0xff] }
 0x89e   :  { %11311 = vmatmul.msk.bf16.gmra.mxu2 %vm1990_vm3, %v4930_v46  ;;  %v4931_v46 = vpack.c.bf16 %v4872_v22, %v4871_v11  ;;  %v4876_v22 = vld [vmem:[#allocation3 + $0xf0] sm:$0xff]  ;;  %v4875_v11 = vld [vmem:[#allocation3 + $0xe8] sm:$0xff] }
 0x89f   :  { %11367 = vmatmul.msk.bf16.gmra.mxu3 %vm1990_vm3, %v5388_v1  ;;  %v5389_v1 = vpack.c.bf16 %v5330_v27, %v5329_v47  ;;  %v5333_v47 = vld [vmem:[#allocation3 + $0xe9] sm:$0xff]  ;;  %v5334_v27 = vld [vmem:[#allocation3 + $0xf1] sm:$0xff] }
 0x8a1   :  { %v3937_v60 = vpop.f32.mrf.mxu2 }
 0x8a2   :  { %v3938_v63 = vadd.f32 %v3937_v60, %v3648_v36  ;;  %v4331_v10 = vpop.f32.mrf.mxu3  ;;  %v4874_v36 = vld [vmem:[#allocation3 + $0xd0] sm:$0xff] }
 0x8a3   :  { %v5331_v60 = vld [vmem:[#allocation3 + $0xc9] sm:$0xff] }
 0x8a4   :  { %v14939_v54 = vadd.f32 %v4331_v10, %v3938_v63  ;;  %v5332_v63 = vld [vmem:[#allocation3 + $0xd1] sm:$0xff]  ;;  %v4415_v10 = vld [vmem:[#allocation3 + $0xc7] sm:$0xff] }
 0x8a5   :  { %v4474_v9 = vpack.c.bf16 %v4416_v58, %v4415_v10  ;;  %v5390_v7 = vpack.c.bf16 %v5332_v63, %v5331_v60  ;;  %v5336_v60 = vld [vmem:[#allocation3 + $0x111] sm:$0xff]  ;;  %v4419_v10 = vld [vmem:[#allocation3 + $0x107] sm:$0xff] }
 0x8a6   :  { %16768 = vst [vmem:[#allocation85_spill] sm:$0xff] %v14939_v54  ;;  %v4873_v54 = vld [vmem:[#allocation3 + $0xc8] sm:$0xff] }
 0x8a7   :  { %v4932_v55 = vpack.c.bf16 %v4874_v36, %v4873_v54  ;;  %v4878_v54 = vld [vmem:[#allocation3 + $0x110] sm:$0xff] }
 0x8a8   :  { %v5335_v36 = vld [vmem:[#allocation3 + $0x109] sm:$0xff] }
 0x8aa   :  { %v14954_v58 = vpop.f32.mrf.mxu3 }
 0x8ab   :  { %16771 = vst [vmem:[#allocation88_spill] sm:$0xff] %v14954_v58  ;;  %v12900_v58 = vld [vmem:[%s16686_s3 + $0xf0] sm:$0xff] }
 0x8ac   :  { %6468 = vmatpush.bf16.msra.mxu2 %v12900_v58  ;;  %v12904_v58 = vld [vmem:[%s16686_s3 + $0x110] sm:$0xff] }
 0x8ad   :  { %11256 = vmatmul.msk.bf16.gmra.mxu1 %vm1990_vm3, %v4473_v26  ;;  %v4475_v26 = vpack.c.bf16 %v4418_v16, %v4417_v12  ;;  %v4877_v16 = vld [vmem:[#allocation3 + $0x108] sm:$0xff]  ;;  %6926 = vmatpush.bf16.msra.mxu3 %v12904_v58 }
 0x8ae   :  { %11312 = vmatmul.msk.bf16.gmra.mxu2 %vm1990_vm3, %v4931_v46  ;;  %v4933_v46 = vpack.c.bf16 %v4876_v22, %v4875_v11 }
 0x8af   :  { %11368 = vmatmul.msk.bf16.gmra.mxu3 %vm1990_vm3, %v5389_v1  ;;  %v5391_v1 = vpack.c.bf16 %v5334_v27, %v5333_v47  ;;  %v4934_v47 = vpack.c.bf16 %v4878_v54, %v4877_v16  ;;  %v5392_v27 = vpack.c.bf16 %v5336_v60, %v5335_v36  ;;  %v4422_v54 = vld [vmem:[#allocation3 + $0x12f] sm:$0xff] }
 0x8b0   :  { %v4880_v36 = vld [vmem:[#allocation3 + $0x130] sm:$0xff] }
 0x8b1   :  { %v5337_v16 = vld [vmem:[#allocation3 + $0x129] sm:$0xff] }
 0x8bd   :  { %11257 = vmatmul.msk.bf16.gmra.mxu1 %vm1990_vm3, %v4474_v9  ;;  %v14950_v9 = vpop.f32.mrf.mxu1 }
 0x8be   :  { %11313 = vmatmul.msk.bf16.gmra.mxu2 %vm1990_vm3, %v4932_v55  ;;  %16769 = vst [vmem:[#allocation86_spill] sm:$0xff] %v14950_v9  ;;  %v14952_v55 = vpop.f32.mrf.mxu2  ;;  %v4881_v9 = vld [vmem:[#allocation3 + $0x148] sm:$0xff] }
 0x8bf   :  { %11369 = vmatmul.msk.bf16.gmra.mxu3 %vm1990_vm3, %v5390_v7  ;;  %16770 = vst [vmem:[#allocation87_spill] sm:$0xff] %v14952_v55  ;;  %v4420_v7 = vld [vmem:[#allocation3 + $0x10f] sm:$0xff] }
 0x8c0   :  { %v4476_v22 = vpack.c.bf16 %v4420_v7, %v4419_v10  ;;  %v4879_v55 = vld [vmem:[#allocation3 + $0x128] sm:$0xff] }
 0x8cd   :  { %11258 = vmatmul.msk.bf16.gmra.mxu1 %vm1990_vm3, %v4475_v26 }
 0x8ce   :  { %11314 = vmatmul.msk.bf16.gmra.mxu2 %vm1990_vm3, %v4933_v46 }
 0x8cf   :  { %11370 = vmatmul.msk.bf16.gmra.mxu3 %vm1990_vm3, %v5391_v1 }
 0x8da   :  { %v3653_v63 = vpop.f32.mrf.mxu1 }
 0x8dd   :  { %11259 = vmatmul.msk.bf16.gmra.mxu1 %vm1990_vm3, %v4476_v22  ;;  %v5338_v22 = vld [vmem:[#allocation3 + $0x131] sm:$0xff] }
 0x8de   :  { %11315 = vmatmul.msk.bf16.gmra.mxu2 %vm1990_vm3, %v4934_v47 }
 0x8df   :  { %11371 = vmatmul.msk.bf16.gmra.mxu3 %vm1990_vm3, %v5392_v27  ;;  %v4421_v27 = vld [vmem:[#allocation3 + $0x127] sm:$0xff] }
 0x8e1   :  { %v3942_v12 = vpop.f32.mrf.mxu2 }
 0x8e2   :  { %v3943_v11 = vadd.f32 %v3942_v12, %v3653_v63  ;;  %v4336_v26 = vpop.f32.mrf.mxu3  ;;  %v3655_v46 = vpop.f32.mrf.mxu1 }
 0x8e4   :  { %v14959_v1 = vadd.f32 %v4336_v26, %v3943_v11  ;;  %v4477_v11 = vpack.c.bf16 %v4422_v54, %v4421_v27  ;;  %v4935_v26 = vpack.c.bf16 %v4880_v36, %v4879_v55  ;;  %v3790_v55 = vadd.f32 %v13636_v5, %v13634_v4  ;;  %v4424_v27 = vld [vmem:[#allocation3 + $0x14f] sm:$0xff] }
 0x8e6   :  { %16772 = vst [vmem:[#allocation89_spill] sm:$0xff] %v14959_v1  ;;  %v4423_v1 = vld [vmem:[#allocation3 + $0x147] sm:$0xff] }
 0x8e7   :  { %v4478_v5 = vpack.c.bf16 %v4424_v27, %v4423_v1 }
 0x8e9   :  { %v3944_v7 = vpop.f32.mrf.mxu2 }
 0x8ea   :  { %v3945_v60 = vadd.f32 %v3944_v7, %v3655_v46  ;;  %v4338_v10 = vpop.f32.mrf.mxu3  ;;  %v4639_v47 = vpop.f32.mrf.mxu1  ;;  %v12896_v46 = vld [vmem:[%s16686_s3 + $0xd0] sm:$0xff]  ;;  %v5393_v7 = vpack.c.bf16 %v5338_v22, %v5337_v16 }
 0x8eb   :  { %v4799_v12 = vadd.f32 %v4639_v47, %v13594_v21  ;;  %6010 = vmatpush.bf16.msra.mxu1 %v12896_v46  ;;  %v4342_v47 = vadd.f32 %v13639_v6, %v3790_v55  ;;  %v5340_v46 = vld [vmem:[#allocation3 + $0x151] sm:$0xff]  ;;  %v3795_v55 = vadd.f32 %v13660_v40, %v13658_v39 }
 0x8ec   :  { %v14964_v63 = vadd.f32 %v4338_v10, %v3945_v60 }
 0x8ed   :  { %11260 = vmatmul.msk.bf16.gmra.mxu1 %vm1990_vm3, %v4477_v11  ;;  %v4882_v11 = vld [vmem:[#allocation3 + $0x150] sm:$0xff] }
 0x8ee   :  { %16773 = vst [vmem:[#allocation90_spill] sm:$0xff] %v14964_v63  ;;  %11316 = vmatmul.msk.bf16.gmra.mxu2 %vm1990_vm3, %v4935_v26 }
 0x8ef   :  { %11372 = vmatmul.msk.bf16.gmra.mxu3 %vm1990_vm3, %v5393_v7  ;;  %v5339_v7 = vld [vmem:[#allocation3 + $0x149] sm:$0xff] }
 0x8f1   :  { %v5097_v21 = vpop.f32.mrf.mxu2 }
 0x8f2   :  { %v5257_v54 = vadd.f32 %v5097_v21, %v4799_v12  ;;  %v5555_v36 = vpop.f32.mrf.mxu3  ;;  %v4641_v60 = vpop.f32.mrf.mxu1  ;;  %v4936_v12 = vpack.c.bf16 %v4882_v11, %v4881_v9  ;;  %v5394_v21 = vpack.c.bf16 %v5340_v46, %v5339_v7  ;;  %v5341_v11 = vld [vmem:[#allocation3 + $0x169] sm:$0xff] }
 0x8f3   :  { %v4800_v16 = vadd.f32 %v4641_v60, %v4342_v47  ;;  %v4426_v47 = vld [vmem:[#allocation3 + $0x16f] sm:$0xff]  ;;  %v4425_v46 = vld [vmem:[#allocation3 + $0x167] sm:$0xff] }
 0x8f4   :  { %v14978_v10 = vadd.f32 %v5555_v36, %v5257_v54  ;;  %v4479_v40 = vpack.c.bf16 %v4426_v47, %v4425_v46 }
 0x8f9   :  { %v5099_v22 = vpop.f32.mrf.mxu2 }
 0x8fa   :  { %v5258_v26 = vadd.f32 %v5099_v22, %v4800_v16  ;;  %v5557_v63 = vpop.f32.mrf.mxu3  ;;  %v4644_v58 = vpop.f32.mrf.mxu1  ;;  %v4884_v16 = vld [vmem:[#allocation3 + $0x170] sm:$0xff] }
 0x8fb   :  { %v4801_v4 = vadd.f32 %v4644_v58, %v13647_v24  ;;  %v4344_v24 = vadd.f32 %v13664_v42, %v3795_v55  ;;  %v4883_v58 = vld [vmem:[#allocation3 + $0x168] sm:$0xff] }
 0x8fc   :  { %v14981_v31 = vadd.f32 %v5557_v63, %v5258_v26  ;;  %v5342_v26 = vld [vmem:[#allocation3 + $0x171] sm:$0xff] }
 0x8fd   :  { %11261 = vmatmul.msk.bf16.gmra.mxu1 %vm1990_vm3, %v4478_v5 }
 0x8fe   :  { %11317 = vmatmul.msk.bf16.gmra.mxu2 %vm1990_vm3, %v4936_v12  ;;  %v5395_v12 = vpack.c.bf16 %v5342_v26, %v5341_v11  ;;  %v4427_v26 = vld [vmem:[#allocation3 + $0x187] sm:$0xff] }
 0x8ff   :  { %11373 = vmatmul.msk.bf16.gmra.mxu3 %vm1990_vm3, %v5394_v21  ;;  %v3800_v21 = vadd.f32 %v13717_v51, %v13715_v50 }
 0x901   :  { %v5102_v6 = vpop.f32.mrf.mxu2 }
 0x902   :  { %v5259_v54 = vadd.f32 %v5102_v6, %v4801_v4  ;;  %v5560_v36 = vpop.f32.mrf.mxu3  ;;  %v4646_v60 = vpop.f32.mrf.mxu1  ;;  %v4937_v4 = vpack.c.bf16 %v4884_v16, %v4883_v58 }
 0x903   :  { %v4802_v1 = vadd.f32 %v4646_v60, %v4344_v24 }
 0x904   :  { %v14989_v63 = vadd.f32 %v5560_v36, %v5259_v54 }
 0x909   :  { %v5104_v9 = vpop.f32.mrf.mxu2 }
 0x90a   :  { %v5260_v22 = vadd.f32 %v5104_v9, %v4802_v1  ;;  %v5562_v27 = vpop.f32.mrf.mxu3  ;;  %v4649_v7 = vpop.f32.mrf.mxu1  ;;  %v4428_v1 = vld [vmem:[#allocation3 + $0x18f] sm:$0xff] }
 0x90b   :  { %v4803_v39 = vadd.f32 %v4649_v7, %v13676_v59  ;;  %v4346_v59 = vadd.f32 %v13719_v52, %v3800_v21  ;;  %v4886_v9 = vld [vmem:[#allocation3 + $0x190] sm:$0xff]  ;;  %v4885_v7 = vld [vmem:[#allocation3 + $0x188] sm:$0xff]  ;;  %v4480_v51 = vpack.c.bf16 %v4428_v1, %v4427_v26 }
 0x90c   :  { %v14992_v5 = vadd.f32 %v5562_v27, %v5260_v22  ;;  %v5343_v22 = vld [vmem:[#allocation3 + $0x189] sm:$0xff]  ;;  %v5344_v27 = vld [vmem:[#allocation3 + $0x191] sm:$0xff]  ;;  %v4938_v58 = vpack.c.bf16 %v4886_v9, %v4885_v7  ;;  %v3810_v7 = vadd.f32 %v13803_v44, %v13801_v43 }
 0x90d   :  { %11262 = vmatmul.msk.bf16.gmra.mxu1 %vm1990_vm3, %v4479_v40  ;;  %v3805_v40 = vadd.f32 %v13758_v35, %v13756_v34  ;;  %v5345_v1 = vld [vmem:[#allocation3 + $0x1a9] sm:$0xff]  ;;  %v5346_v9 = vld [vmem:[#allocation3 + $0x1b1] sm:$0xff] }
 0x90e   :  { %11318 = vmatmul.msk.bf16.gmra.mxu2 %vm1990_vm3, %v4937_v4  ;;  %v5397_v26 = vpack.c.bf16 %v5346_v9, %v5345_v1  ;;  %v5347_v43 = vld [vmem:[#allocation3 + $0x1c9] sm:$0xff]  ;;  %v5348_v44 = vld [vmem:[#allocation3 + $0x1d1] sm:$0xff] }
 0x90f   :  { %11374 = vmatmul.msk.bf16.gmra.mxu3 %vm1990_vm3, %v5395_v12 }
 0x911   :  { %v5107_v42 = vpop.f32.mrf.mxu2 }
 0x912   :  { %v5261_v6 = vadd.f32 %v5107_v42, %v4803_v39  ;;  %v5565_v55 = vpop.f32.mrf.mxu3  ;;  %v4651_v54 = vpop.f32.mrf.mxu1  ;;  %v5396_v39 = vpack.c.bf16 %v5344_v27, %v5343_v22  ;;  %v4887_v22 = vld [vmem:[#allocation3 + $0x1a8] sm:$0xff] }
 0x913   :  { %v4804_v60 = vadd.f32 %v4651_v54, %v4346_v59  ;;  %v4430_v54 = vld [vmem:[#allocation3 + $0x1af] sm:$0xff] }
 0x914   :  { %v15000_v36 = vadd.f32 %v5565_v55, %v5261_v6  ;;  %v4888_v59 = vld [vmem:[#allocation3 + $0x1b0] sm:$0xff] }
 0x919   :  { %v5109_v24 = vpop.f32.mrf.mxu2 }
 0x91a   :  { %v5262_v47 = vadd.f32 %v5109_v24, %v4804_v60  ;;  %v5567_v16 = vpop.f32.mrf.mxu3  ;;  %v4654_v11 = vpop.f32.mrf.mxu1 }
 0x91b   :  { %v4805_v50 = vadd.f32 %v4654_v11, %v13726_v62  ;;  %v4348_v62 = vadd.f32 %v13763_v41, %v3805_v40  ;;  %v4939_v11 = vpack.c.bf16 %v4888_v59, %v4887_v22  ;;  %v4889_v59 = vld [vmem:[#allocation3 + $0x1c8] sm:$0xff] }
 0x91c   :  { %v15003_v46 = vadd.f32 %v5567_v16, %v5262_v47  ;;  %v4429_v16 = vld [vmem:[#allocation3 + $0x1a7] sm:$0xff] }
 0x91d   :  { %11263 = vmatmul.msk.bf16.gmra.mxu1 %vm1990_vm3, %v4480_v51  ;;  %v4481_v35 = vpack.c.bf16 %v4430_v54, %v4429_v16  ;;  %v4431_v54 = vld [vmem:[#allocation3 + $0x1c7] sm:$0xff]  ;;  %v3815_v16 = vadd.f32 %v13848_v57, %v13846_v56  ;;  %v5350_v57 = vld [vmem:[#allocation3 + $0x1f1] sm:$0xff] }
 0x91e   :  { %11319 = vmatmul.msk.bf16.gmra.mxu2 %vm1990_vm3, %v4938_v58  ;;  %v5349_v56 = vld [vmem:[#allocation3 + $0x1e9] sm:$0xff] }
 0x91f   :  { %11375 = vmatmul.msk.bf16.gmra.mxu3 %vm1990_vm3, %v5396_v39 }
 0x921   :  { %v5112_v52 = vpop.f32.mrf.mxu2 }
 0x922   :  { %v5263_v4 = vadd.f32 %v5112_v52, %v4805_v50  ;;  %v5570_v12 = vpop.f32.mrf.mxu3  ;;  %v4656_v42 = vpop.f32.mrf.mxu1  ;;  %v4350_v52 = vadd.f32 %v13808_v48, %v3810_v7  ;;  %v5398_v48 = vpack.c.bf16 %v5348_v44, %v5347_v43  ;;  %v3820_v44 = vadd.f32 %v13893_v14, %v13891_v13  ;;  %v5351_v13 = vld [vmem:[#allocation3 + $0x209] sm:$0xff]  ;;  %v5352_v14 = vld [vmem:[#allocation3 + $0x211] sm:$0xff] }
 0x923   :  { %v4806_v6 = vadd.f32 %v4656_v42, %v4348_v62  ;;  %v4890_v42 = vld [vmem:[#allocation3 + $0x1d0] sm:$0xff] }
 0x924   :  { %v15011_v21 = vadd.f32 %v5570_v12, %v5263_v4  ;;  %v4432_v12 = vld [vmem:[#allocation3 + $0x1cf] sm:$0xff]  ;;  %v4940_v9 = vpack.c.bf16 %v4890_v42, %v4889_v59 }
 0x925   :  { %v4482_v1 = vpack.c.bf16 %v4432_v12, %v4431_v54 }
 0x929   :  { %v5114_v55 = vpop.f32.mrf.mxu2 }
 0x92a   :  { %v5264_v60 = vadd.f32 %v5114_v55, %v4806_v6  ;;  %v5572_v24 = vpop.f32.mrf.mxu3  ;;  %v4659_v47 = vpop.f32.mrf.mxu1 }
 0x92b   :  { %v4807_v34 = vadd.f32 %v4659_v47, %v13771_v61  ;;  %v12864_v61 = vld [vmem:[%s16683_s0 + $0x3e0] sm:$0xff] }
 0x92c   :  { %v15014_v27 = vadd.f32 %v5572_v24, %v5264_v60  ;;  %11064 = vmatmul.msk.bf16.gmra.mxu0 %vm949_vm2, %v12864_v61 }
 0x92d   :  { %11264 = vmatmul.msk.bf16.gmra.mxu1 %vm1990_vm3, %v4481_v35 }
 0x92e   :  { %11320 = vmatmul.msk.bf16.gmra.mxu2 %vm1990_vm3, %v4939_v11 }
 0x92f   :  { %11376 = vmatmul.msk.bf16.gmra.mxu3 %vm1990_vm3, %v5397_v26  ;;  %v4352_v26 = vadd.f32 %v13853_v0, %v3815_v16  ;;  %v5399_v0 = vpack.c.bf16 %v5350_v57, %v5349_v56  ;;  %v4894_v16 = vld [vmem:[#allocation3 + $0x210] sm:$0xff] }
 0x931   :  { %v5117_v41 = vpop.f32.mrf.mxu2 }
 0x932   :  { %v5265_v50 = vadd.f32 %v5117_v41, %v4807_v34  ;;  %v5575_v51 = vpop.f32.mrf.mxu3  ;;  %v4661_v58 = vpop.f32.mrf.mxu1 }
 0x933   :  { %v4808_v40 = vadd.f32 %v4661_v58, %v4350_v52 }
 0x934   :  { %v15022_v39 = vadd.f32 %v5575_v51, %v5265_v50  ;;  %v4434_v50 = vld [vmem:[#allocation3 + $0x1ef] sm:$0xff] }
 0x935   :  { %v4892_v51 = vld [vmem:[#allocation3 + $0x1f0] sm:$0xff] }
 0x939   :  { %v5119_v4 = vpop.f32.mrf.mxu2 }
 0x93a   :  { %v5266_v62 = vadd.f32 %v5119_v4, %v4808_v40  ;;  %v5577_v6 = vpop.f32.mrf.mxu3  ;;  %v4664_v55 = vpop.f32.mrf.mxu1  ;;  %v4433_v40 = vld [vmem:[#allocation3 + $0x1e7] sm:$0xff] }
 0x93b   :  { %v4809_v24 = vadd.f32 %v4664_v55, %v13816_v8  ;;  %v12865_v8 = vld [vmem:[%s16683_s0 + $0x3e8] sm:$0xff] }
 0x93c   :  { %v15029_v60 = vadd.f32 %v5577_v6, %v5266_v62  ;;  %11065 = vmatmul.msk.bf16.gmra.mxu0 %vm949_vm2, %v12865_v8  ;;  %v4891_v4 = vld [vmem:[#allocation3 + $0x1e8] sm:$0xff]  ;;  %v4483_v62 = vpack.c.bf16 %v4434_v50, %v4433_v40 }
 0x93d   :  { %11265 = vmatmul.msk.bf16.gmra.mxu1 %vm1990_vm3, %v4482_v1  ;;  %v4941_v6 = vpack.c.bf16 %v4892_v51, %v4891_v4  ;;  %v4354_v1 = vadd.f32 %v13898_v19, %v3820_v44  ;;  %v4435_v8 = vld [vmem:[#allocation3 + $0x207] sm:$0xff]  ;;  %v5400_v19 = vpack.c.bf16 %v5352_v14, %v5351_v13 }
 0x93e   :  { %11321 = vmatmul.msk.bf16.gmra.mxu2 %vm1990_vm3, %v4940_v9  ;;  %v12899_v4 = vld [vmem:[%s16686_s3 + $0xe8] sm:$0xff] }
 0x93f   :  { %11377 = vmatmul.msk.bf16.gmra.mxu3 %vm1990_vm3, %v5398_v48  ;;  %6469 = vmatpush.bf16.msra.mxu2 %v12899_v4  ;;  %v5353_v44 = vld [vmem:[#allocation3 + $0x269] sm:$0xff] }
 0x940   :  { %v4897_v4 = vld [vmem:[#allocation3 + $0x288] sm:$0xff] }
 0x941   :  { %v5122_v47 = vpop.f32.mrf.mxu2 }
 0x942   :  { %v5267_v22 = vadd.f32 %v5122_v47, %v4809_v24  ;;  %v5580_v34 = vpop.f32.mrf.mxu3  ;;  %v4666_v35 = vpop.f32.mrf.mxu1  ;;  %v4436_v47 = vld [vmem:[#allocation3 + $0x20f] sm:$0xff] }
 0x943   :  { %v4810_v41 = vadd.f32 %v4666_v35, %v4352_v26  ;;  %v4893_v26 = vld [vmem:[#allocation3 + $0x208] sm:$0xff]  ;;  %v4484_v50 = vpack.c.bf16 %v4436_v47, %v4435_v8 }
 0x944   :  { %v15037_v11 = vadd.f32 %v5580_v34, %v5267_v22  ;;  %v4942_v51 = vpack.c.bf16 %v4894_v16, %v4893_v26  ;;  %v12903_v47 = vld [vmem:[%s16686_s3 + $0x108] sm:$0xff] }
 0x945   :  { %v12895_v16 = vld [vmem:[%s16686_s3 + $0xc8] sm:$0xff]  ;;  %6927 = vmatpush.bf16.msra.mxu3 %v12903_v47  ;;  %v5358_v47 = vld [vmem:[#allocation3 + $0x2b1] sm:$0xff] }
 0x946   :  { %6011 = vmatpush.bf16.msra.mxu1 %v12895_v16 }
 0x949   :  { %v5124_v7 = vpop.f32.mrf.mxu2 }
 0x94a   :  { %v5268_v58 = vadd.f32 %v5124_v7, %v4810_v41  ;;  %v5582_v61 = vpop.f32.mrf.mxu3  ;;  %v4669_v52 = vpop.f32.mrf.mxu1 }
 0x94b   :  { %v4811_v42 = vadd.f32 %v4669_v52, %v13861_v20  ;;  %v12866_v20 = vld [vmem:[%s16683_s0 + $0x3f0] sm:$0xff] }
 0x94c   :  { %v15044_v12 = vadd.f32 %v5582_v61, %v5268_v58  ;;  %11066 = vmatmul.msk.bf16.gmra.mxu0 %vm949_vm2, %v12866_v20  ;;  %v3825_v61 = vadd.f32 %v13938_v38, %v13936_v37  ;;  %v4438_v38 = vld [vmem:[#allocation3 + $0x26f] sm:$0xff] }
 0x94d   :  { %11266 = vmatmul.msk.bf16.gmra.mxu1 %vm1990_vm3, %v4483_v62  ;;  %v4895_v20 = vld [vmem:[#allocation3 + $0x268] sm:$0xff] }
 0x94e   :  { %11322 = vmatmul.msk.bf16.gmra.mxu2 %vm1990_vm3, %v4941_v6  ;;  %v4896_v6 = vld [vmem:[#allocation3 + $0x270] sm:$0xff] }
 0x94f   :  { %11378 = vmatmul.msk.bf16.gmra.mxu3 %vm1990_vm3, %v5399_v0 }
 0x951   :  { %v5127_v43 = vpop.f32.mrf.mxu2 }
 0x952   :  { %v5269_v55 = vadd.f32 %v5127_v43, %v4811_v42  ;;  %v5585_v54 = vpop.f32.mrf.mxu3  ;;  %v4671_v59 = vpop.f32.mrf.mxu1  ;;  %v4356_v42 = vadd.f32 %v13943_v53, %v3825_v61  ;;  %v4943_v53 = vpack.c.bf16 %v4896_v6, %v4895_v20  ;;  %v4900_v20 = vld [vmem:[#allocation3 + $0x2b0] sm:$0xff] }
 0x953   :  { %v4812_v9 = vadd.f32 %v4671_v59, %v4354_v1  ;;  %v4437_v59 = vld [vmem:[#allocation3 + $0x267] sm:$0xff] }
 0x954   :  { %v15052_v24 = vadd.f32 %v5585_v54, %v5269_v55  ;;  %v5354_v55 = vld [vmem:[#allocation3 + $0x271] sm:$0xff] }
 0x959   :  { %v5129_v48 = vpop.f32.mrf.mxu2 }
 0x95a   :  { %v5270_v22 = vadd.f32 %v5129_v48, %v4812_v9  ;;  %v5587_v34 = vpop.f32.mrf.mxu3  ;;  %v4674_v35 = vpop.f32.mrf.mxu1  ;;  %v4485_v48 = vpack.c.bf16 %v4438_v38, %v4437_v59  ;;  %v3835_v38 = vadd.f32 %v14028_v18, %v14026_v15  ;;  %v4442_v59 = vld [vmem:[#allocation3 + $0x2af] sm:$0xff] }
 0x95b   :  { %v4813_v7 = vadd.f32 %v4674_v35, %v13906_v45  ;;  %v12867_v45 = vld [vmem:[%s16683_s0 + $0x3f8] sm:$0xff] }
 0x95c   :  { %v15059_v41 = vadd.f32 %v5587_v34, %v5270_v22  ;;  %11067 = vmatmul.msk.bf16.gmra.mxu0 %vm949_vm2, %v12867_v45  ;;  %v5401_v22 = vpack.c.bf16 %v5354_v55, %v5353_v44  ;;  %v3830_v34 = vadd.f32 %v13983_v25, %v13981_v23  ;;  %v4439_v45 = vld [vmem:[#allocation3 + $0x287] sm:$0xff] }
 0x95d   :  { %11267 = vmatmul.msk.bf16.gmra.mxu1 %vm1990_vm3, %v4484_v50 }
 0x95e   :  { %11323 = vmatmul.msk.bf16.gmra.mxu2 %vm1990_vm3, %v4942_v51  ;;  %v4358_v26 = vadd.f32 %v13988_v29, %v3830_v34  ;;  %v4440_v51 = vld [vmem:[#allocation3 + $0x28f] sm:$0xff] }
 0x95f   :  { %11379 = vmatmul.msk.bf16.gmra.mxu3 %vm1990_vm3, %v5400_v19  ;;  %v4898_v19 = vld [vmem:[#allocation3 + $0x290] sm:$0xff]  ;;  %v4486_v25 = vpack.c.bf16 %v4440_v51, %v4439_v45 }
 0x960   :  { %v5359_v45 = vld [vmem:[#allocation3 + $0x2c9] sm:$0xff] }
 0x961   :  { %v5132_v58 = vpop.f32.mrf.mxu2 }
 0x962   :  { %v5271_v56 = vadd.f32 %v5132_v58, %v4813_v7  ;;  %v5590_v57 = vpop.f32.mrf.mxu3  ;;  %v4676_v52 = vpop.f32.mrf.mxu1 }
 0x963   :  { %v4814_v62 = vadd.f32 %v4676_v52, %v4356_v42 }
 0x964   :  { %v15067_v40 = vadd.f32 %v5590_v57, %v5271_v56  ;;  %v5355_v56 = vld [vmem:[#allocation3 + $0x289] sm:$0xff]  ;;  %v5356_v57 = vld [vmem:[#allocation3 + $0x291] sm:$0xff] }
 0x969   :  { %v5134_v37 = vpop.f32.mrf.mxu2 }
 0x96a   :  { %v5272_v0 = vadd.f32 %v5134_v37, %v4814_v62  ;;  %v5592_v43 = vpop.f32.mrf.mxu3  ;;  %v4679_v54 = vpop.f32.mrf.mxu1  ;;  %v4944_v62 = vpack.c.bf16 %v4898_v19, %v4897_v4  ;;  %v5402_v37 = vpack.c.bf16 %v5356_v57, %v5355_v56  ;;  %v4902_v56 = vld [vmem:[#allocation3 + $0x2d0] sm:$0xff] }
 0x96b   :  { %v4815_v9 = vadd.f32 %v4679_v54, %v13951_v17  ;;  %v5360_v4 = vld [vmem:[#allocation3 + $0x2d1] sm:$0xff] }
 0x96c   :  { %v15077_v1 = vadd.f32 %v5592_v43, %v5272_v0 }
 0x96d   :  { %11268 = vmatmul.msk.bf16.gmra.mxu1 %vm1990_vm3, %v4485_v48 }
 0x96e   :  { %11324 = vmatmul.msk.bf16.gmra.mxu2 %vm1990_vm3, %v4943_v53  ;;  %v5357_v53 = vld [vmem:[#allocation3 + $0x2a9] sm:$0xff] }
 0x96f   :  { %11380 = vmatmul.msk.bf16.gmra.mxu3 %vm1990_vm3, %v5401_v22  ;;  %v4441_v22 = vld [vmem:[#allocation3 + $0x2a7] sm:$0xff] }
 0x970   :  { %v4487_v18 = vpack.c.bf16 %v4442_v59, %v4441_v22 }
 0x971   :  { %v5137_v17 = vpop.f32.mrf.mxu2 }
 0x972   :  { %v5273_v13 = vadd.f32 %v5137_v17, %v4815_v9  ;;  %v5595_v14 = vpop.f32.mrf.mxu3  ;;  %v4681_v35 = vpop.f32.mrf.mxu1  ;;  %v4899_v17 = vld [vmem:[#allocation3 + $0x2a8] sm:$0xff] }
 0x973   :  { %v4816_v7 = vadd.f32 %v4681_v35, %v4358_v26  ;;  %v3840_v35 = vadd.f32 %v14078_v33, %v14076_v32 }
 0x974   :  { %v15091_v8 = vadd.f32 %v5595_v14, %v5273_v13  ;;  %v4945_v13 = vpack.c.bf16 %v4900_v20, %v4899_v17  ;;  %v5403_v14 = vpack.c.bf16 %v5358_v47, %v5357_v53  ;;  %v16776_v20 = vld [vmem:[#allocation12_spill] sm:$0xff] }
 0x975   :  { %v4446_v47 = vld [vmem:[#allocation3 + $0x2ef] sm:$0xff] }
 0x979   :  { %v5139_v50 = vpop.f32.mrf.mxu2 }
 0x97a   :  { %v5274_v58 = vadd.f32 %v5139_v50, %v4816_v7  ;;  %v5597_v61 = vpop.f32.mrf.mxu3  ;;  %v4684_v52 = vpop.f32.mrf.mxu1 }
 0x97b   :  { %v4817_v23 = vadd.f32 %v4684_v52, %v13996_v2  ;;  %v4360_v2 = vadd.f32 %v14033_v28, %v3835_v38  ;;  %v5404_v38 = vpack.c.bf16 %v5360_v4, %v5359_v45 }
 0x97c   :  { %v15094_v42 = vadd.f32 %v5597_v61, %v5274_v58  ;;  %v4444_v61 = vld [vmem:[#allocation3 + $0x2cf] sm:$0xff] }
 0x97d   :  { %11269 = vmatmul.msk.bf16.gmra.mxu1 %vm1990_vm3, %v4486_v25  ;;  %v4443_v25 = vld [vmem:[#allocation3 + $0x2c7] sm:$0xff] }
 0x97e   :  { %11325 = vmatmul.msk.bf16.gmra.mxu2 %vm1990_vm3, %v4944_v62  ;;  %v4901_v62 = vld [vmem:[#allocation3 + $0x2c8] sm:$0xff]  ;;  %v4488_v33 = vpack.c.bf16 %v4444_v61, %v4443_v25 }
 0x97f   :  { %11381 = vmatmul.msk.bf16.gmra.mxu3 %vm1990_vm3, %v5402_v37  ;;  %v16778_v61 = vld [vmem:[#allocation14_spill] sm:$0xff] }
 0x981   :  { %v5142_v29 = vpop.f32.mrf.mxu2 }
 0x982   :  { %v5275_v6 = vadd.f32 %v5142_v29, %v4817_v23  ;;  %v5600_v0 = vpop.f32.mrf.mxu3  ;;  %v4686_v43 = vpop.f32.mrf.mxu1  ;;  %v4946_v29 = vpack.c.bf16 %v4902_v56, %v4901_v62  ;;  %v16779_v56 = vld [vmem:[#allocation15_spill] sm:$0xff]  ;;  %v15143_v62 = vld [vmem:[%s16685_s2] ss:$0 sm:$0xff] }
 0x983   :  { %v4818_v55 = vadd.f32 %v4686_v43, %v4360_v2  ;;  %v16775_v43 = vld [vmem:[#allocation11_spill] sm:$0xff] }
 0x984   :  { %v15102_v44 = vadd.f32 %v5600_v0, %v5275_v6  ;;  %v16774_v0 = vld [vmem:[#allocation10_spill] sm:$0xff] }
 0x985   :  { %v3845_v2 = vadd.f32 %v16775_v43, %v16774_v0  ;;  %v4906_v0 = vld [vmem:[#allocation3 + $0x310] sm:$0xff] }
 0x989   :  { %v5144_v54 = vpop.f32.mrf.mxu2 }
 0x98a   :  { %v5276_v9 = vadd.f32 %v5144_v54, %v4818_v55  ;;  %v5602_v48 = vpop.f32.mrf.mxu3  ;;  %v4689_v16 = vpop.f32.mrf.mxu1 }
 0x98b   :  { %v4819_v15 = vadd.f32 %v4689_v16, %v14041_v3  ;;  %v4362_v3 = vadd.f32 %v14083_v49, %v3840_v35  ;;  %v13078_v49 = vld [vmem:[%s16690_s7 + $0x320] sm:$0xff]  ;;  %v4904_v16 = vld [vmem:[#allocation3 + $0x2f0] sm:$0xff] }
 0x98c   :  { %v15105_v34 = vadd.f32 %v5602_v48, %v5276_v9  ;;  %10136 = vmatpush.bf16.msrb.mxu0 %v13078_v49  ;;  %v4364_v9 = vadd.f32 %v16776_v20, %v3845_v2  ;;  %v4447_v20 = vld [vmem:[#allocation3 + $0x307] sm:$0xff] }
 0x98d   :  { %11270 = vmatmul.msk.bf16.gmra.mxu1 %vm1990_vm3, %v4487_v18  ;;  %v5362_v18 = vld [vmem:[#allocation3 + $0x2f1] sm:$0xff] }
 0x98e   :  { %11326 = vmatmul.msk.bf16.gmra.mxu2 %vm1990_vm3, %v4945_v13 }
 0x98f   :  { %11382 = vmatmul.msk.bf16.gmra.mxu3 %vm1990_vm3, %v5403_v14  ;;  %v4445_v14 = vld [vmem:[#allocation3 + $0x2e7] sm:$0xff] }
 0x991   :  { %v5147_v28 = vpop.f32.mrf.mxu2 }
 0x992   :  { %v5277_v26 = vadd.f32 %v5147_v28, %v4819_v15  ;;  %v5605_v7 = vpop.f32.mrf.mxu3  ;;  %v4691_v50 = vpop.f32.mrf.mxu1  ;;  %v5361_v15 = vld [vmem:[#allocation3 + $0x2e9] sm:$0xff] }
 0x993   :  { %v4820_v19 = vadd.f32 %v4691_v50, %v4362_v3  ;;  %v4903_v28 = vld [vmem:[#allocation3 + $0x2e8] sm:$0xff]  ;;  %v4489_v50 = vpack.c.bf16 %v4446_v47, %v4445_v14 }
 0x994   :  { %v15113_v51 = vadd.f32 %v5605_v7, %v5277_v26  ;;  %v16777_v26 = vld [vmem:[#allocation13_spill] sm:$0xff]  ;;  %v4947_v3 = vpack.c.bf16 %v4904_v16, %v4903_v28  ;;  %v16782_v14 = vld [vmem:[#allocation18_spill] sm:$0xff]  ;;  %v16783_v28 = vld [vmem:[#allocation19_spill] sm:$0xff] }
 0x999   :  { %v5149_v58 = vpop.f32.mrf.mxu2 }
 0x99a   :  { %v5278_v57 = vadd.f32 %v5149_v58, %v4820_v19  ;;  %v5607_v52 = vpop.f32.mrf.mxu3  ;;  %v4694_v23 = vpop.f32.mrf.mxu1  ;;  %v5405_v19 = vpack.c.bf16 %v5362_v18, %v5361_v15 }
 0x99b   :  { %v4821_v32 = vadd.f32 %v4694_v23, %v14091_v30 }
 0x99c   :  { %v15116_v37 = vadd.f32 %v5607_v52, %v5278_v57  ;;  %v3850_v57 = vadd.f32 %v16779_v56, %v16778_v61  ;;  %v16784_v56 = vld [vmem:[#allocation20_spill] sm:$0xff] }
 0x99d   :  { %11271 = vmatmul.msk.bf16.gmra.mxu1 %vm1990_vm3, %v4488_v33  ;;  %v16780_v33 = vld [vmem:[#allocation16_spill] sm:$0xff] }
 0x99e   :  { %11327 = vmatmul.msk.bf16.gmra.mxu2 %vm1990_vm3, %v4946_v29  ;;  %v4366_v29 = vadd.f32 %v16780_v33, %v3850_v57 }
 0x99f   :  { %11383 = vmatmul.msk.bf16.gmra.mxu3 %vm1990_vm3, %v5404_v38 }
 0x9a1   :  { %v5152_v6 = vpop.f32.mrf.mxu2 }
 0x9a2   :  { %v5279_v55 = vadd.f32 %v5152_v6, %v4821_v32  ;;  %v5610_v30 = vpop.f32.mrf.mxu3  ;;  %v4696_v54 = vpop.f32.mrf.mxu1  ;;  %v4448_v6 = vld [vmem:[#allocation3 + $0x30f] sm:$0xff] }
 0x9a3   :  { %v4822_v48 = vadd.f32 %v4696_v54, %v4364_v9  ;;  %v4905_v9 = vld [vmem:[#allocation3 + $0x308] sm:$0xff]  ;;  %v4490_v16 = vpack.c.bf16 %v4448_v6, %v4447_v20 }
 0x9a4   :  { %v15127_v59 = vadd.f32 %v5610_v30, %v5279_v55  ;;  %v5363_v55 = vld [vmem:[#allocation3 + $0x309] sm:$0xff]  ;;  %v5364_v30 = vld [vmem:[#allocation3 + $0x311] sm:$0xff] }
 0x9a5   :  { %v5406_v15 = vpack.c.bf16 %v5364_v30, %v5363_v55  ;;  %v4449_v6 = vld [vmem:[#allocation3 + $0x327] sm:$0xff] }
 0x9a9   :  { %v5154_v53 = vpop.f32.mrf.mxu2  ;;  %v1970_v25 = vpop.f32.mrf.mxu0 }
 0x9aa   :  { %v5280_v22 = vadd.f32 %v5154_v53, %v4822_v48  ;;  %v5612_v17 = vpop.f32.mrf.mxu3  ;;  %v4699_v13 = vpop.f32.mrf.mxu1  ;;  %v1971_v32 = vadd.f32 %v15143_v62, %v1970_v25  ;;  %v16781_v53 = vld [vmem:[#allocation17_spill] sm:$0xff]  ;;  %v4908_v25 = vld [vmem:[#allocation3 + $0x330] sm:$0xff] }
 0x9ab   :  { %v4823_v7 = vadd.f32 %v4699_v13, %v16777_v26  ;;  %v3855_v26 = vadd.f32 %v16783_v28, %v16782_v14 }
 0x9ac   :  { %v15130_v35 = vadd.f32 %v5612_v17, %v5280_v22  ;;  %2239 = vst.msk [vmem:[#allocation2 + $0x7c0] sm:$0xff] %vm1990_vm3, %v1971_v32  ;;  %v4948_v22 = vpack.c.bf16 %v4906_v0, %v4905_v9  ;;  %v4907_v0 = vld [vmem:[#allocation3 + $0x328] sm:$0xff] }
 0x9ad   :  { %11272 = vmatmul.msk.bf16.gmra.mxu1 %vm1990_vm3, %v4489_v50  ;;  %v4368_v57 = vadd.f32 %v16784_v56, %v3855_v26  ;;  %v4910_v56 = vld [vmem:[#allocation3 + $0x350] sm:$0xff] }
 0x9ae   :  { %11328 = vmatmul.msk.bf16.gmra.mxu2 %vm1990_vm3, %v4947_v3 }
 0x9af   :  { %11384 = vmatmul.msk.bf16.gmra.mxu3 %vm1990_vm3, %v5405_v19 }
 0x9b1   :  { %v5157_v58 = vpop.f32.mrf.mxu2  ;;  %v1972_v17 = vpop.f32.mrf.mxu0 }
 0x9b2   :  { %v5281_v52 = vadd.f32 %v5157_v58, %v4823_v7  ;;  %v5615_v45 = vpop.f32.mrf.mxu3  ;;  %v4701_v4 = vpop.f32.mrf.mxu1  ;;  %v1973_v18 = vadd.f32 %v15143_v62, %v1972_v17 }
 0x9b3   :  { %v4824_v38 = vadd.f32 %v4701_v4, %v4366_v29  ;;  %v4450_v4 = vld [vmem:[#allocation3 + $0x32f] sm:$0xff] }
 0x9b4   :  { %v15138_v23 = vadd.f32 %v5615_v45, %v5281_v52  ;;  %2240 = vst.msk [vmem:[#allocation2 + $0x7c8] sm:$0xff] %vm1990_vm3, %v1973_v18  ;;  %v5365_v29 = vld [vmem:[#allocation3 + $0x329] sm:$0xff]  ;;  %v4491_v30 = vpack.c.bf16 %v4450_v4, %v4449_v6  ;;  %v5368_v4 = vld [vmem:[#allocation3 + $0x351] sm:$0xff] }
 0x9b9   :  { %v5159_v49 = vpop.f32.mrf.mxu2  ;;  %v1975_v58 = vpop.f32.mrf.mxu0 }
 0x9ba   :  { %v5282_v43 = vadd.f32 %v5159_v49, %v4824_v38  ;;  %v5617_v2 = vpop.f32.mrf.mxu3  ;;  %v4704_v54 = vpop.f32.mrf.mxu1  ;;  %v1976_v61 = vadd.f32 %v15143_v62, %v1975_v58  ;;  %v5366_v38 = vld [vmem:[#allocation3 + $0x331] sm:$0xff] }
 0x9bb   :  { %v4825_v47 = vadd.f32 %v4704_v54, %v16781_v53  ;;  %v4949_v54 = vpack.c.bf16 %v4908_v25, %v4907_v0  ;;  %v5407_v9 = vpack.c.bf16 %v5366_v38, %v5365_v29  ;;  %v16789_v38 = vld [vmem:[#allocation25_spill] sm:$0xff] }
 0x9bc   :  { %v15148_v48 = vadd.f32 %v5617_v2, %v5282_v43  ;;  %2241 = vst.msk [vmem:[#allocation2 + $0x7d0] sm:$0xff] %vm1990_vm3, %v1976_v61  ;;  %v16785_v2 = vld [vmem:[#allocation21_spill] sm:$0xff]  ;;  %v4452_v61 = vld [vmem:[#allocation3 + $0x34f] sm:$0xff] }
 0x9bd   :  { %11273 = vmatmul.msk.bf16.gmra.mxu1 %vm1990_vm3, %v4490_v16  ;;  %v16786_v16 = vld [vmem:[#allocation22_spill] sm:$0xff] }
 0x9be   :  { %11329 = vmatmul.msk.bf16.gmra.mxu2 %vm1990_vm3, %v4948_v22  ;;  %v16787_v22 = vld [vmem:[#allocation23_spill] sm:$0xff] }
 0x9bf   :  { %11385 = vmatmul.msk.bf16.gmra.mxu3 %vm1990_vm3, %v5406_v15  ;;  %v3860_v17 = vadd.f32 %v16787_v22, %v16786_v16  ;;  %v2751_v16 = vld [vmem:[#allocation2 + $0x7c1] ss:$2 sm:$0xff] }
 0x9c1   :  { %v5162_v13 = vpop.f32.mrf.mxu2  ;;  %v1977_v20 = vpop.f32.mrf.mxu0 }
 0x9c2   :  { %v5283_v7 = vadd.f32 %v5162_v13, %v4825_v47  ;;  %v5620_v50 = vpop.f32.mrf.mxu3  ;;  %v4706_v3 = vpop.f32.mrf.mxu1  ;;  %v1978_v53 = vadd.f32 %v15143_v62, %v1977_v20  ;;  %v16790_v20 = vld [vmem:[#allocation26_spill] sm:$0xff] }
 0x9c3   :  { %v4826_v52 = vadd.f32 %v4706_v3, %v4368_v57 }
 0x9c4   :  { %v15158_v19 = vadd.f32 %v5620_v50, %v5283_v7  ;;  %2242 = vst.msk [vmem:[#allocation2 + $0x7d8] sm:$0xff] %vm1990_vm3, %v1978_v53  ;;  %v16788_v7 = vld [vmem:[#allocation24_spill] sm:$0xff] }
 0x9c5   :  { %v4370_v50 = vadd.f32 %v16788_v7, %v3860_v17 }
 0x9c9   :  { %v5164_v45 = vpop.f32.mrf.mxu2  ;;  %v1980_v28 = vpop.f32.mrf.mxu0 }
 0x9ca   :  { %v5284_v32 = vadd.f32 %v5164_v45, %v4826_v52  ;;  %v5622_v33 = vpop.f32.mrf.mxu3  ;;  %v4709_v49 = vpop.f32.mrf.mxu1  ;;  %v1981_v26 = vadd.f32 %v15143_v62, %v1980_v28  ;;  %v5367_v45 = vld [vmem:[#allocation3 + $0x349] sm:$0xff]  ;;  %v12898_v28 = vld [vmem:[%s16686_s3 + $0xe0] sm:$0xff] }
 0x9cb   :  { %v4827_v55 = vadd.f32 %v4709_v49, %v16785_v2  ;;  %6470 = vmatpush.bf16.msra.mxu2 %v12898_v28  ;;  %v16794_v28 = vld [vmem:[#allocation30_spill] sm:$0xff] }
 0x9cc   :  { %v15163_v43 = vadd.f32 %v5622_v33, %v5284_v32  ;;  %2243 = vst.msk [vmem:[#allocation2 + $0x7e0] sm:$0xff] %vm1990_vm3, %v1981_v26  ;;  %v4451_v32 = vld [vmem:[#allocation3 + $0x347] sm:$0xff] }
 0x9cd   :  { %11274 = vmatmul.msk.bf16.gmra.mxu1 %vm1990_vm3, %v4491_v30  ;;  %v4909_v33 = vld [vmem:[#allocation3 + $0x348] sm:$0xff]  ;;  %v4492_v6 = vpack.c.bf16 %v4452_v61, %v4451_v32 }
 0x9ce   :  { %11330 = vmatmul.msk.bf16.gmra.mxu2 %vm1990_vm3, %v4949_v54  ;;  %v4950_v0 = vpack.c.bf16 %v4910_v56, %v4909_v33 }
 0x9cf   :  { %11386 = vmatmul.msk.bf16.gmra.mxu3 %vm1990_vm3, %v5407_v9  ;;  %v16791_v9 = vld [vmem:[#allocation27_spill] sm:$0xff] }
 0x9d0   :  { %v3865_v53 = vadd.f32 %v16791_v9, %v16790_v20 }
 0x9d1   :  { %v5167_v47 = vpop.f32.mrf.mxu2  ;;  %v1982_v2 = vpop.f32.mrf.mxu0 }
 0x9d2   :  { %v5285_v15 = vadd.f32 %v5167_v47, %v4827_v55  ;;  %v5625_v18 = vpop.f32.mrf.mxu3  ;;  %v4711_v13 = vpop.f32.mrf.mxu1  ;;  %v5408_v55 = vpack.c.bf16 %v5368_v4, %v5367_v45  ;;  %v1983_v30 = vadd.f32 %v15143_v62, %v1982_v2  ;;  %v2495_v47 = vld [vmem:[#allocation2 + $0x7c0] ss:$2 sm:$0xff]  ;;  %v4454_v45 = vld [vmem:[#allocation3 + $0x36f] sm:$0xff] }
 0x9d3   :  { %v4828_v3 = vadd.f32 %v4711_v13, %v4370_v50  ;;  %v2882_v26 = vmax.f32 %v2495_v47, %v2751_v16  ;;  %v16792_v50 = vld [vmem:[#allocation28_spill] sm:$0xff]  ;;  %v4911_v2 = vld [vmem:[#allocation3 + $0x368] sm:$0xff]  ;;  %v12902_v47 = vld [vmem:[%s16686_s3 + $0x100] sm:$0xff] }
 0x9d4   :  { %v15173_v14 = vadd.f32 %v5625_v18, %v5285_v15  ;;  %2244 = vst.msk [vmem:[#allocation2 + $0x7e8] sm:$0xff] %vm1990_vm3, %v1983_v30  ;;  %v4912_v4 = vld [vmem:[#allocation3 + $0x370] sm:$0xff]  ;;  %6928 = vmatpush.bf16.msra.mxu3 %v12902_v47  ;;  %v4913_v47 = vld [vmem:[#allocation3 + $0x388] sm:$0xff] }
 0x9d9   :  { %v5169_v58 = vpop.f32.mrf.mxu2  ;;  %v1985_v13 = vpop.f32.mrf.mxu0 }
 0x9da   :  { %v5286_v57 = vadd.f32 %v5169_v58, %v4828_v3  ;;  %v5627_v52 = vpop.f32.mrf.mxu3  ;;  %v4714_v25 = vpop.f32.mrf.mxu1  ;;  %v1986_v7 = vadd.f32 %v15143_v62, %v1985_v13  ;;  %v4372_v3 = vadd.f32 %v16792_v50, %v3865_v53  ;;  %v4951_v53 = vpack.c.bf16 %v4912_v4, %v4911_v2  ;;  %v2497_v50 = vld [vmem:[#allocation2 + $0x7d0] ss:$2 sm:$0xff] }
 0x9db   :  { %v4829_v49 = vadd.f32 %v4714_v25, %v16789_v38  ;;  %v2499_v58 = vld [vmem:[#allocation2 + $0x7e0] ss:$2 sm:$0xff]  ;;  %v2755_v61 = vld [vmem:[#allocation2 + $0x7e1] ss:$2 sm:$0xff] }
 0x9dc   :  { %v15178_v29 = vadd.f32 %v5627_v52, %v5286_v57  ;;  %v2884_v56 = vmax.f32 %v2499_v58, %v2755_v61  ;;  %2245 = vst.msk [vmem:[#allocation2 + $0x7f0] sm:$0xff] %vm1990_vm3, %v1986_v7  ;;  %v5369_v38 = vld [vmem:[#allocation3 + $0x369] sm:$0xff] }
 0x9dd   :  { %11275 = vmatmul.msk.bf16.gmra.mxu1 %vm1990_vm3, %v4492_v6 }
 0x9de   :  { %11331 = vmatmul.msk.bf16.gmra.mxu2 %vm1990_vm3, %v4950_v0  ;;  %v2948_v25 = vmax.f32 %v2882_v26, %v2884_v56  ;;  %v4453_v0 = vld [vmem:[#allocation3 + $0x367] sm:$0xff] }
 0x9df   :  { %11387 = vmatmul.msk.bf16.gmra.mxu3 %vm1990_vm3, %v5408_v55  ;;  %v4493_v9 = vpack.c.bf16 %v4454_v45, %v4453_v0  ;;  %v16795_v26 = vld [vmem:[#allocation31_spill] sm:$0xff] }
 0x9e0   :  { %v3012_v55 = vmax.f32 %v2948_v25, 0.0  ;;  %v3870_v7 = vadd.f32 %v16795_v26, %v16794_v28 }
 0x9e1   :  { %v5172_v54 = vpop.f32.mrf.mxu2  ;;  %v1987_v16 = vpop.f32.mrf.mxu0 }
 0x9e2   :  { %v5287_v22 = vadd.f32 %v5172_v54, %v4829_v49  ;;  %v5630_v17 = vpop.f32.mrf.mxu3  ;;  %v4716_v15 = vpop.f32.mrf.mxu1  ;;  %v5370_v49 = vld [vmem:[#allocation3 + $0x371] sm:$0xff]  ;;  %v16793_v54 = vld [vmem:[#allocation29_spill] sm:$0xff]  ;;  %3158 = vst.msk [vmem:[#allocation3 + $0x448] sm:$0xff] %vm1990_vm3, %v3012_v55 }
 0x9e3   :  { %v4830_v57 = vadd.f32 %v4716_v15, %v4372_v3  ;;  %v1988_v15 = vadd.f32 %v15143_v62, %v1987_v16  ;;  %v2753_v3 = vld [vmem:[#allocation2 + $0x7d1] ss:$2 sm:$0xff] }
 0x9e4   :  { %v15188_v18 = vadd.f32 %v5630_v17, %v5287_v22  ;;  %v12894_v22 = vld [vmem:[%s16686_s3 + $0xc0] sm:$0xff]  ;;  %v5409_v17 = vpack.c.bf16 %v5370_v49, %v5369_v38  ;;  %v4456_v49 = vld [vmem:[#allocation3 + $0x38f] sm:$0xff]  ;;  %s10411_s3 = sshll.u32 %s16692_s9, 4  ;;  %s10412_s3 = int_to_ptr.hbm [resolvable:$true] %s10411_s3 }
 0x9e5   :  { %2246 = vst.msk [vmem:[#allocation2 + $0x7f8] sm:$0xff] %vm1990_vm3, %v1988_v15  ;;  %6012 = vmatpush.bf16.msra.mxu1 %v12894_v22 }
 0x9e9   :  { %v5174_v52 = vpop.f32.mrf.mxu2 }
 0x9ea   :  { %v5288_v32 = vadd.f32 %v5174_v52, %v4830_v57  ;;  %v5632_v33 = vpop.f32.mrf.mxu3  ;;  %v4719_v6 = vpop.f32.mrf.mxu1  ;;  %v2883_v57 = vmax.f32 %v2497_v50, %v2753_v3  ;;  %v16796_v52 = vld [vmem:[#allocation32_spill] sm:$0xff]  ;;  %v16798_v50 = vld [vmem:[#allocation34_spill] sm:$0xff]  ;;  %v16799_v3 = vld [vmem:[#allocation35_spill] sm:$0xff] }
 0x9eb   :  { %v4831_v20 = vadd.f32 %v4719_v6, %v16793_v54  ;;  %v4374_v45 = vadd.f32 %v16796_v52, %v3870_v7  ;;  %v4914_v6 = vld [vmem:[#allocation3 + $0x390] sm:$0xff] }
 0x9ec   :  { %v15196_v30 = vadd.f32 %v5632_v33, %v5288_v32  ;;  %v2501_v4 = vld [vmem:[#allocation2 + $0x7f0] ss:$2 sm:$0xff]  ;;  %v2757_v25 = vld [vmem:[#allocation2 + $0x7f1] ss:$2 sm:$0xff]  ;;  %v4952_v28 = vpack.c.bf16 %v4914_v6, %v4913_v47 }
 0x9ed   :  { %11276 = vmatmul.msk.bf16.gmra.mxu1 %vm1990_vm3, %v4493_v9  ;;  %v2885_v32 = vmax.f32 %v2501_v4, %v2757_v25  ;;  %v5371_v54 = vld [vmem:[#allocation3 + $0x389] sm:$0xff]  ;;  %v5372_v9 = vld [vmem:[#allocation3 + $0x391] sm:$0xff] }
 0x9ee   :  { %11332 = vmatmul.msk.bf16.gmra.mxu2 %vm1990_vm3, %v4951_v53  ;;  %v4455_v53 = vld [vmem:[#allocation3 + $0x387] sm:$0xff]  ;;  %v5410_v26 = vpack.c.bf16 %v5372_v9, %v5371_v54 }
 0x9ef   :  { %11388 = vmatmul.msk.bf16.gmra.mxu3 %vm1990_vm3, %v5409_v17  ;;  %v2949_v0 = vmax.f32 %v2883_v57, %v2885_v32  ;;  %v16797_v17 = vld [vmem:[#allocation33_spill] sm:$0xff]  ;;  %v4457_v54 = vld [vmem:[#allocation3 + $0x3a7] sm:$0xff] }
 0x9f0   :  { %v4915_v9 = vld [vmem:[#allocation3 + $0x3a8] sm:$0xff] }
 0x9f1   :  { %v5177_v13 = vpop.f32.mrf.mxu2  ;;  %v3013_v16 = vmax.f32 %v2949_v0, 0.0  ;;  %v5373_v0 = vld [vmem:[#allocation3 + $0x3a9] sm:$0xff] }
 0x9f2   :  { %v5289_v58 = vadd.f32 %v5177_v13, %v4831_v20  ;;  %v5635_v61 = vpop.f32.mrf.mxu3  ;;  %v4721_v56 = vpop.f32.mrf.mxu1  ;;  %v4494_v13 = vpack.c.bf16 %v4456_v49, %v4455_v53  ;;  %v16801_v53 = vld [vmem:[#allocation37_spill] sm:$0xff] }
 0x9f3   :  { %v4832_v33 = vadd.f32 %v4721_v56, %v4374_v45  ;;  %3159 = vst.msk [vmem:[#allocation3 + $0x450] sm:$0xff] %vm1990_vm3, %v3013_v16  ;;  %v16800_v45 = vld [vmem:[#allocation36_spill] sm:$0xff] }
 0x9f4   :  { %v15213_v62 = vadd.f32 %v5635_v61, %v5289_v58  ;;  %v3875_v58 = vadd.f32 %v16799_v3, %v16798_v50 }
 0x9f6   :  { %v4376_v4 = vadd.f32 %v16800_v45, %v3875_v58 }
 0x9f9   :  { %v5179_v38 = vpop.f32.mrf.mxu2 }
 0x9fa   :  { %v5290_v2 = vadd.f32 %v5179_v38, %v4832_v33  ;;  %v5637_v55 = vpop.f32.mrf.mxu3  ;;  %v4724_v20 = vpop.f32.mrf.mxu1  ;;  %v4458_v33 = vld [vmem:[#allocation3 + $0x3af] sm:$0xff] }
 0x9fb   :  { %v4833_v15 = vadd.f32 %v4724_v20, %v16797_v17  ;;  %v4916_v38 = vld [vmem:[#allocation3 + $0x3b0] sm:$0xff]  ;;  %v4495_v16 = vpack.c.bf16 %v4458_v33, %v4457_v54 }
 0x9fc   :  { %v15216_v22 = vadd.f32 %v5637_v55, %v5290_v2  ;;  %v5374_v2 = vld [vmem:[#allocation3 + $0x3b1] sm:$0xff]  ;;  %v4953_v17 = vpack.c.bf16 %v4916_v38, %v4915_v9  ;;  %v16805_v9 = vld [vmem:[#allocation41_spill] sm:$0xff] }
 0x9fd   :  { %11277 = vmatmul.msk.bf16.gmra.mxu1 %vm1990_vm3, %v4494_v13 }
 0x9fe   :  { %11333 = vmatmul.msk.bf16.gmra.mxu2 %vm1990_vm3, %v4952_v28  ;;  %v16802_v28 = vld [vmem:[#allocation38_spill] sm:$0xff] }
 0x9ff   :  { %11389 = vmatmul.msk.bf16.gmra.mxu3 %vm1990_vm3, %v5410_v26  ;;  %v16803_v26 = vld [vmem:[#allocation39_spill] sm:$0xff] }
 0xa01   :  { %v5182_v7 = vpop.f32.mrf.mxu2 }
 0xa02   :  { %v5291_v61 = vadd.f32 %v5182_v7, %v4833_v15  ;;  %v5640_v56 = vpop.f32.mrf.mxu3  ;;  %v4726_v57 = vpop.f32.mrf.mxu1  ;;  %v5411_v15 = vpack.c.bf16 %v5374_v2, %v5373_v0  ;;  %v3880_v7 = vadd.f32 %v16803_v26, %v16802_v28  ;;  %v4459_v2 = vld [vmem:[#allocation3 + $0x3c7] sm:$0xff] }
 0xa03   :  { %v4834_v25 = vadd.f32 %v4726_v57, %v4376_v4  ;;  %v16807_v28 = vld [vmem:[#allocation43_spill] sm:$0xff] }
 0xa04   :  { %v15225_v52 = vadd.f32 %v5640_v56, %v5291_v61  ;;  %v16804_v56 = vld [vmem:[#allocation40_spill] sm:$0xff] }
 0xa05   :  { %v4378_v57 = vadd.f32 %v16804_v56, %v3880_v7  ;;  %v16808_v56 = vld [vmem:[#allocation44_spill] sm:$0xff] }
 0xa09   :  { %v5184_v32 = vpop.f32.mrf.mxu2 }
 0xa0a   :  { %v5292_v49 = vadd.f32 %v5184_v32, %v4834_v25  ;;  %v5642_v6 = vpop.f32.mrf.mxu3  ;;  %v4729_v55 = vpop.f32.mrf.mxu1  ;;  %v4460_v25 = vld [vmem:[#allocation3 + $0x3cf] sm:$0xff] }
 0xa0b   :  { %v4835_v47 = vadd.f32 %v4729_v55, %v16801_v53  ;;  %v4918_v32 = vld [vmem:[#allocation3 + $0x3d0] sm:$0xff]  ;;  %v4917_v55 = vld [vmem:[#allocation3 + $0x3c8] sm:$0xff] }
 0xa0c   :  { %v15228_v20 = vadd.f32 %v5642_v6, %v5292_v49  ;;  %v5375_v49 = vld [vmem:[#allocation3 + $0x3c9] sm:$0xff]  ;;  %v5376_v6 = vld [vmem:[#allocation3 + $0x3d1] sm:$0xff] }
 0xa0d   :  { %11278 = vmatmul.msk.bf16.gmra.mxu1 %vm1990_vm3, %v4495_v16  ;;  %v4954_v16 = vpack.c.bf16 %v4918_v32, %v4917_v55  ;;  %v4920_v32 = vld [vmem:[#allocation3 + $0x3f0] sm:$0xff]  ;;  %v4919_v55 = vld [vmem:[#allocation3 + $0x3e8] sm:$0xff] }
 0xa0e   :  { %11334 = vmatmul.msk.bf16.gmra.mxu2 %vm1990_vm3, %v4953_v17  ;;  %v5412_v17 = vpack.c.bf16 %v5376_v6, %v5375_v49  ;;  %v5377_v49 = vld [vmem:[#allocation3 + $0x3e9] sm:$0xff]  ;;  %v5378_v6 = vld [vmem:[#allocation3 + $0x3f1] sm:$0xff] }
 0xa0f   :  { %11390 = vmatmul.msk.bf16.gmra.mxu3 %vm1990_vm3, %v5411_v15 }
 0xa11   :  { %v5187_v13 = vpop.f32.mrf.mxu2 }
 0xa12   :  { %v5293_v50 = vadd.f32 %v5187_v13, %v4835_v47  ;;  %v5645_v3 = vpop.f32.mrf.mxu3  ;;  %v4731_v58 = vpop.f32.mrf.mxu1  ;;  %v4496_v47 = vpack.c.bf16 %v4460_v25, %v4459_v2  ;;  %v16806_v13 = vld [vmem:[#allocation42_spill] sm:$0xff]  ;;  %v4462_v25 = vld [vmem:[#allocation3 + $0x3ef] sm:$0xff] }
 0xa13   :  { %v4836_v45 = vadd.f32 %v4731_v58, %v4378_v57  ;;  %v3885_v26 = vadd.f32 %v16807_v28, %v16806_v13  ;;  %v4461_v2 = vld [vmem:[#allocation3 + $0x3e7] sm:$0xff] }
 0xa14   :  { %v15236_v61 = vadd.f32 %v5645_v3, %v5293_v50  ;;  %v16810_v28 = vld [vmem:[#allocation46_spill] sm:$0xff] }
 0xa15   :  { %v4380_v57 = vadd.f32 %v16808_v56, %v3885_v26  ;;  %v16811_v26 = vld [vmem:[#allocation47_spill] sm:$0xff] }
 0xa19   :  { %v5189_v4 = vpop.f32.mrf.mxu2 }
 0xa1a   :  { %v5294_v33 = vadd.f32 %v5189_v4, %v4836_v45  ;;  %v5647_v38 = vpop.f32.mrf.mxu3  ;;  %v4734_v0 = vpop.f32.mrf.mxu1 }
 0xa1b   :  { %v4837_v53 = vadd.f32 %v4734_v0, %v16805_v9 }
 0xa1c   :  { %v15239_v54 = vadd.f32 %v5647_v38, %v5294_v33 }
 0xa1d   :  { %11279 = vmatmul.msk.bf16.gmra.mxu1 %vm1990_vm3, %v4496_v47 }
 0xa1e   :  { %11335 = vmatmul.msk.bf16.gmra.mxu2 %vm1990_vm3, %v4954_v16  ;;  %v4497_v16 = vpack.c.bf16 %v4462_v25, %v4461_v2  ;;  %v5380_v2 = vld [vmem:[#allocation3 + $0x411] sm:$0xff] }
 0xa1f   :  { %11391 = vmatmul.msk.bf16.gmra.mxu3 %vm1990_vm3, %v5412_v17  ;;  %v4955_v17 = vpack.c.bf16 %v4920_v32, %v4919_v55 }
 0xa21   :  { %v5192_v15 = vpop.f32.mrf.mxu2 }
 0xa22   :  { %v5295_v7 = vadd.f32 %v5192_v15, %v4837_v53  ;;  %v5650_v50 = vpop.f32.mrf.mxu3  ;;  %v4736_v3 = vpop.f32.mrf.mxu1  ;;  %v16809_v53 = vld [vmem:[#allocation45_spill] sm:$0xff]  ;;  %v5413_v15 = vpack.c.bf16 %v5378_v6, %v5377_v49 }
 0xa23   :  { %v4838_v45 = vadd.f32 %v4736_v3, %v4380_v57 }
 0xa24   :  { %v15247_v58 = vadd.f32 %v5650_v50, %v5295_v7  ;;  %v3890_v7 = vadd.f32 %v16811_v26, %v16810_v28 }
 0xa29   :  { %v5194_v4 = vpop.f32.mrf.mxu2 }
 0xa2a   :  { %v5296_v33 = vadd.f32 %v5194_v4, %v4838_v45  ;;  %v5652_v38 = vpop.f32.mrf.mxu3  ;;  %v4739_v0 = vpop.f32.mrf.mxu1  ;;  %v16812_v45 = vld [vmem:[#allocation48_spill] sm:$0xff] }
 0xa2b   :  { %v4839_v47 = vadd.f32 %v4739_v0, %v16809_v53  ;;  %v4382_v4 = vadd.f32 %v16812_v45, %v3890_v7  ;;  %v5379_v0 = vld [vmem:[#allocation3 + $0x409] sm:$0xff] }
 0xa2c   :  { %v15250_v9 = vadd.f32 %v5652_v38, %v5296_v33  ;;  %v4464_v33 = vld [vmem:[#allocation3 + $0x40f] sm:$0xff]  ;;  %v4463_v53 = vld [vmem:[#allocation3 + $0x407] sm:$0xff]  ;;  %v5414_v26 = vpack.c.bf16 %v5380_v2, %v5379_v0 }
 0xa2d   :  { %11280 = vmatmul.msk.bf16.gmra.mxu1 %vm1990_vm3, %v4497_v16  ;;  %v4922_v38 = vld [vmem:[#allocation3 + $0x410] sm:$0xff]  ;;  %v4921_v16 = vld [vmem:[#allocation3 + $0x408] sm:$0xff] }
 0xa2e   :  { %11336 = vmatmul.msk.bf16.gmra.mxu2 %vm1990_vm3, %v4955_v17  ;;  %v4956_v28 = vpack.c.bf16 %v4922_v38, %v4921_v16  ;;  %v4466_v0 = vld [vmem:[#allocation3 + $0x42f] sm:$0xff] }
 0xa2f   :  { %11392 = vmatmul.msk.bf16.gmra.mxu3 %vm1990_vm3, %v5413_v15  ;;  %v4924_v2 = vld [vmem:[#allocation3 + $0x430] sm:$0xff] }
 0xa30   :  { %v5381_v16 = vld [vmem:[#allocation3 + $0x429] sm:$0xff] }
 0xa31   :  { %v5197_v13 = vpop.f32.mrf.mxu2 }
 0xa32   :  { %v5297_v50 = vadd.f32 %v5197_v13, %v4839_v47  ;;  %v5655_v3 = vpop.f32.mrf.mxu3  ;;  %v4741_v56 = vpop.f32.mrf.mxu1  ;;  %v16814_v47 = vld [vmem:[#allocation49_spill] sm:$0xff]  ;;  %v4498_v13 = vpack.c.bf16 %v4464_v33, %v4463_v53 }
 0xa33   :  { %v4840_v25 = vadd.f32 %v4741_v56, %v4382_v4 }
 0xa34   :  { %v15258_v57 = vadd.f32 %v5655_v3, %v5297_v50  ;;  %v16815_v50 = vld [vmem:[#allocation50_spill] sm:$0xff]  ;;  %v16816_v3 = vld [vmem:[#allocation51_spill] sm:$0xff] }
 0xa35   :  { %v3895_v56 = vadd.f32 %v16816_v3, %v16815_v50 }
 0xa39   :  { %v5199_v32 = vpop.f32.mrf.mxu2 }
 0xa3a   :  { %v5298_v49 = vadd.f32 %v5199_v32, %v4840_v25  ;;  %v5657_v6 = vpop.f32.mrf.mxu3  ;;  %v4744_v55 = vpop.f32.mrf.mxu1 }
 0xa3b   :  { %v4841_v15 = vadd.f32 %v4744_v55, %v16814_v47  ;;  %v5382_v47 = vld [vmem:[#allocation3 + $0x431] sm:$0xff] }
 0xa3c   :  { %v15261_v17 = vadd.f32 %v5657_v6, %v5298_v49  ;;  %v16818_v49 = vld [vmem:[#allocation52_spill] sm:$0xff] }
 0xa3d   :  { %11281 = vmatmul.msk.bf16.gmra.mxu1 %vm1990_vm3, %v4498_v13  ;;  %v4384_v6 = vadd.f32 %v16818_v49, %v3895_v56 }
 0xa3e   :  { %16813 = vst [vmem:[#allocation10_spill] sm:$0xff] %v15261_v17  ;;  %11337 = vmatmul.msk.bf16.gmra.mxu2 %vm1990_vm3, %v4956_v28  ;;  %v4465_v28 = vld [vmem:[#allocation3 + $0x427] sm:$0xff] }
 0xa3f   :  { %11393 = vmatmul.msk.bf16.gmra.mxu3 %vm1990_vm3, %v5414_v26  ;;  %v4923_v26 = vld [vmem:[#allocation3 + $0x428] sm:$0xff]  ;;  %v4499_v50 = vpack.c.bf16 %v4466_v0, %v4465_v28 }
 0xa40   :  { %v4957_v3 = vpack.c.bf16 %v4924_v2, %v4923_v26  ;;  %v4467_v2 = vld [vmem:[#allocation3 + $0x447] sm:$0xff]  ;;  %v4926_v26 = vld [vmem:[#allocation3 + $0x450] sm:$0xff] }
 0xa41   :  { %v5202_v7 = vpop.f32.mrf.mxu2  ;;  %v4925_v28 = vld [vmem:[#allocation3 + $0x448] sm:$0xff] }
 0xa42   :  { %v5299_v45 = vadd.f32 %v5202_v7, %v4841_v15  ;;  %v5660_v4 = vpop.f32.mrf.mxu3  ;;  %v4746_v25 = vpop.f32.mrf.mxu1  ;;  %v16820_v15 = vld [vmem:[#allocation53_spill] sm:$0xff] }
 0xa43   :  { %v4842_v33 = vadd.f32 %v4746_v25, %v4384_v6  ;;  %v16822_v25 = vld [vmem:[#allocation55_spill] sm:$0xff] }
 0xa44   :  { %v15269_v32 = vadd.f32 %v5660_v4, %v5299_v45  ;;  %v5415_v45 = vpack.c.bf16 %v5382_v47, %v5381_v16  ;;  %v16821_v4 = vld [vmem:[#allocation54_spill] sm:$0xff]  ;;  %v4468_v47 = vld [vmem:[#allocation3 + $0x44f] sm:$0xff] }
 0xa45   :  { %v3900_v49 = vadd.f32 %v16822_v25, %v16821_v4  ;;  %v4500_v4 = vpack.c.bf16 %v4468_v47, %v4467_v2  ;;  %v4958_v25 = vpack.c.bf16 %v4926_v26, %v4925_v28  ;;  %v5781_v28 = vld [vmem:[#allocation3 + $0x4f] sm:$0xff] }
 0xa46   :  { %16817 = vst [vmem:[#allocation11_spill] sm:$0xff] %v15269_v32  ;;  %v6239_v26 = vld [vmem:[#allocation3 + $0x50] sm:$0xff] }
 0xa49   :  { %v5204_v38 = vpop.f32.mrf.mxu2 }
 0xa4a   :  { %v5300_v55 = vadd.f32 %v5204_v38, %v4842_v33  ;;  %v5662_v53 = vpop.f32.mrf.mxu3  ;;  %v4749_v13 = vpop.f32.mrf.mxu1 }
 0xa4b   :  { %v4843_v7 = vadd.f32 %v4749_v13, %v16820_v15 }
 0xa4c   :  { %v15272_v17 = vadd.f32 %v5662_v53, %v5300_v55  ;;  %v16824_v53 = vld [vmem:[#allocation56_spill] sm:$0xff] }
 0xa4d   :  { %11282 = vmatmul.msk.bf16.gmra.mxu1 %vm1990_vm3, %v4499_v50  ;;  %v4386_v13 = vadd.f32 %v16824_v53, %v3900_v49 }
 0xa4e   :  { %16819 = vst [vmem:[#allocation12_spill] sm:$0xff] %v15272_v17  ;;  %11338 = vmatmul.msk.bf16.gmra.mxu2 %vm1990_vm3, %v4957_v3  ;;  %v5383_v3 = vld [vmem:[#allocation3 + $0x449] sm:$0xff] }
 0xa4f   :  { %11394 = vmatmul.msk.bf16.gmra.mxu3 %vm1990_vm3, %v5415_v45  ;;  %v5384_v45 = vld [vmem:[#allocation3 + $0x451] sm:$0xff] }
 0xa51   :  { %v5207_v56 = vpop.f32.mrf.mxu2 }
 0xa52   :  { %v5301_v6 = vadd.f32 %v5207_v56, %v4843_v7  ;;  %v5665_v33 = vpop.f32.mrf.mxu3  ;;  %v4751_v38 = vpop.f32.mrf.mxu1  ;;  %v16826_v7 = vld [vmem:[#allocation57_spill] sm:$0xff] }
 0xa53   :  { %v4844_v0 = vadd.f32 %v4751_v38, %v4386_v13  ;;  %v16828_v38 = vld [vmem:[#allocation59_spill] sm:$0xff] }
 0xa54   :  { %v15280_v55 = vadd.f32 %v5665_v33, %v5301_v6  ;;  %v5416_v6 = vpack.c.bf16 %v5384_v45, %v5383_v3  ;;  %v16827_v33 = vld [vmem:[#allocation58_spill] sm:$0xff] }
 0xa55   :  { %v3905_v53 = vadd.f32 %v16828_v38, %v16827_v33 }
 0xa56   :  { %16823 = vst [vmem:[#allocation13_spill] sm:$0xff] %v15280_v55 }
 0xa59   :  { %v5209_v16 = vpop.f32.mrf.mxu2 }
 0xa5a   :  { %v5302_v15 = vadd.f32 %v5209_v16, %v4844_v0  ;;  %v5667_v50 = vpop.f32.mrf.mxu3  ;;  %v4754_v17 = vpop.f32.mrf.mxu1 }
 0xa5b   :  { %v4845_v56 = vadd.f32 %v4754_v17, %v16826_v7  ;;  %v6696_v7 = vld [vmem:[#allocation3 + $0x49] sm:$0xff] }
 0xa5c   :  { %v15283_v32 = vadd.f32 %v5667_v50, %v5302_v15  ;;  %v16830_v50 = vld [vmem:[#allocation60_spill] sm:$0xff] }
 0xa5d   :  { %11283 = vmatmul.msk.bf16.gmra.mxu1 %vm1990_vm3, %v4500_v4  ;;  %v4388_v17 = vadd.f32 %v16830_v50, %v3905_v53  ;;  %v6697_v4 = vld [vmem:[#allocation3 + $0x51] sm:$0xff] }
 0xa5e   :  { %16825 = vst [vmem:[#allocation14_spill] sm:$0xff] %v15283_v32  ;;  %11339 = vmatmul.msk.bf16.gmra.mxu2 %vm1990_vm3, %v4958_v25  ;;  %v6238_v32 = vld [vmem:[#allocation3 + $0x48] sm:$0xff] }
 0xa5f   :  { %11395 = vmatmul.msk.bf16.gmra.mxu3 %vm1990_vm3, %v5416_v6  ;;  %v5780_v6 = vld [vmem:[#allocation3 + $0x47] sm:$0xff]  ;;  %v6302_v38 = vpack.c.bf16 %v6239_v26, %v6238_v32  ;;  %v12913_v32 = vld [vmem:[%s16688_s5 + $0x38] sm:$0xff] }
 0xa60   :  { %v5844_v33 = vpack.c.bf16 %v5781_v28, %v5780_v6  ;;  %v12929_v28 = vld [vmem:[%s16688_s5 + $0xb8] sm:$0xff]  ;;  %7765 = vmatpush.bf16.msrb.mxu2 %v12913_v32  ;;  %v5783_v6 = vld [vmem:[#allocation3 + $0x6f] sm:$0xff] }
 0xa61   :  { %v5212_v49 = vpop.f32.mrf.mxu2  ;;  %v12921_v26 = vld [vmem:[%s16688_s5 + $0x78] sm:$0xff]  ;;  %7903 = vmatpush.bf16.msrb.mxu3 %v12929_v28  ;;  %v16839_v28 = vld [vmem:[#allocation66_spill] sm:$0xff] }
 0xa62   :  { %v5303_v13 = vadd.f32 %v5212_v49, %v4845_v56  ;;  %v5670_v0 = vpop.f32.mrf.mxu3  ;;  %v4756_v16 = vpop.f32.mrf.mxu1  ;;  %v16832_v56 = vld [vmem:[#allocation61_spill] sm:$0xff]  ;;  %7668 = vmatpush.bf16.msrb.mxu1 %v12921_v26  ;;  %v16840_v26 = vld [vmem:[#allocation67_spill] sm:$0xff] }
 0xa63   :  { %v4846_v2 = vadd.f32 %v4756_v16, %v4388_v17  ;;  %v16834_v16 = vld [vmem:[#allocation63_spill] sm:$0xff] }
 0xa64   :  { %v15291_v15 = vadd.f32 %v5670_v0, %v5303_v13  ;;  %v6760_v13 = vpack.c.bf16 %v6697_v4, %v6696_v7  ;;  %v16833_v0 = vld [vmem:[#allocation62_spill] sm:$0xff] }
 0xa65   :  { %v3910_v50 = vadd.f32 %v16834_v16, %v16833_v0  ;;  %v5782_v0 = vld [vmem:[#allocation3 + $0x67] sm:$0xff] }
 0xa66   :  { %16829 = vst [vmem:[#allocation15_spill] sm:$0xff] %v15291_v15  ;;  %v6240_v16 = vld [vmem:[#allocation3 + $0x68] sm:$0xff] }
 0xa69   :  { %v5214_v47 = vpop.f32.mrf.mxu2 }
 0xa6a   :  { %v5304_v3 = vadd.f32 %v5214_v47, %v4846_v2  ;;  %v5672_v45 = vpop.f32.mrf.mxu3  ;;  %v4759_v25 = vpop.f32.mrf.mxu1 }
 0xa6b   :  { %v4847_v49 = vadd.f32 %v4759_v25, %v16832_v56  ;;  %v6241_v56 = vld [vmem:[#allocation3 + $0x70] sm:$0xff] }
 0xa6c   :  { %v15294_v55 = vadd.f32 %v5672_v45, %v5304_v3  ;;  %v16836_v45 = vld [vmem:[#allocation64_spill] sm:$0xff] }
 0xa6d   :  { %11420 = vmatmul.msk.bf16.vlgmr.msra.gmra.mxu1 %vm1990_vm3, %v5844_v33  ;;  %v4390_v7 = vadd.f32 %v16836_v45, %v3910_v50  ;;  %v6303_v50 = vpack.c.bf16 %v6241_v56, %v6240_v16  ;;  %v3915_v45 = vadd.f32 %v16840_v26, %v16839_v28  ;;  %v6700_v16 = vld [vmem:[#allocation3 + $0x89] sm:$0xff] }
 0xa6e   :  { %16831 = vst [vmem:[#allocation16_spill] sm:$0xff] %v15294_v55  ;;  %11476 = vmatmul.msk.bf16.vlgmr.msra.gmra.mxu2 %vm1990_vm3, %v6302_v38  ;;  %v6698_v38 = vld [vmem:[#allocation3 + $0x69] sm:$0xff]  ;;  %v5845_v55 = vpack.c.bf16 %v5783_v6, %v5782_v0 }
 0xa6f   :  { %11532 = vmatmul.msk.bf16.vlgmr.msra.gmra.mxu3 %vm1990_vm3, %v6760_v13  ;;  %v6699_v13 = vld [vmem:[#allocation3 + $0x71] sm:$0xff] }
 0xa70   :  { %v6761_v32 = vpack.c.bf16 %v6699_v13, %v6698_v38  ;;  %v5785_v38 = vld [vmem:[#allocation3 + $0x8f] sm:$0xff] }
 0xa71   :  { %v5217_v53 = vpop.f32.mrf.mxu2  ;;  %v6243_v13 = vld [vmem:[#allocation3 + $0x90] sm:$0xff] }
 0xa72   :  { %v5305_v17 = vadd.f32 %v5217_v53, %v4847_v49  ;;  %v5675_v2 = vpop.f32.mrf.mxu3  ;;  %v4761_v47 = vpop.f32.mrf.mxu1 }
 0xa73   :  { %v4848_v4 = vadd.f32 %v4761_v47, %v4390_v7 }
 0xa74   :  { %v15302_v3 = vadd.f32 %v5675_v2, %v5305_v17  ;;  %v16838_v2 = vld [vmem:[#allocation65_spill] sm:$0xff] }
 0xa76   :  { %16835 = vst [vmem:[#allocation17_spill] sm:$0xff] %v15302_v3 }
 0xa79   :  { %v5219_v25 = vpop.f32.mrf.mxu2 }
 0xa7a   :  { %v5306_v49 = vadd.f32 %v5219_v25, %v4848_v4  ;;  %v5677_v33 = vpop.f32.mrf.mxu3  ;;  %v4764_v53 = vpop.f32.mrf.mxu1 }
 0xa7b   :  { %v4849_v3 = vadd.f32 %v4764_v53, %v16838_v2  ;;  %v6701_v2 = vld [vmem:[#allocation3 + $0x91] sm:$0xff] }
 0xa7c   :  { %v15314_v17 = vadd.f32 %v5677_v33, %v5306_v49  ;;  %v16842_v33 = vld [vmem:[#allocation68_spill] sm:$0xff] }
 0xa7d   :  { %11421 = vmatmul.msk.bf16.gmra.mxu1 %vm1990_vm3, %v5845_v55  ;;  %v4392_v53 = vadd.f32 %v16842_v33, %v3915_v45 }
 0xa7e   :  { %16837 = vst [vmem:[#allocation18_spill] sm:$0xff] %v15314_v17  ;;  %11477 = vmatmul.msk.bf16.gmra.mxu2 %vm1990_vm3, %v6303_v50  ;;  %v6242_v17 = vld [vmem:[#allocation3 + $0x88] sm:$0xff] }
 0xa7f   :  { %11533 = vmatmul.msk.bf16.gmra.mxu3 %vm1990_vm3, %v6761_v32  ;;  %v5784_v32 = vld [vmem:[#allocation3 + $0x87] sm:$0xff]  ;;  %v6304_v26 = vpack.c.bf16 %v6243_v13, %v6242_v17  ;;  %v5787_v13 = vld [vmem:[#allocation3 + $0xaf] sm:$0xff] }
 0xa80   :  { %v5846_v28 = vpack.c.bf16 %v5785_v38, %v5784_v32 }
 0xa81   :  { %v5222_v47 = vpop.f32.mrf.mxu2 }
 0xa82   :  { %v5307_v7 = vadd.f32 %v5222_v47, %v4849_v3  ;;  %v5680_v4 = vpop.f32.mrf.mxu3  ;;  %v4766_v25 = vpop.f32.mrf.mxu1  ;;  %v16844_v3 = vld [vmem:[#allocation69_spill] sm:$0xff] }
 0xa83   :  { %v4850_v6 = vadd.f32 %v4766_v25, %v4392_v53  ;;  %v16846_v25 = vld [vmem:[#allocation71_spill] sm:$0xff] }
 0xa84   :  { %v15322_v49 = vadd.f32 %v5680_v4, %v5307_v7  ;;  %v6762_v7 = vpack.c.bf16 %v6701_v2, %v6700_v16  ;;  %v16845_v4 = vld [vmem:[#allocation70_spill] sm:$0xff]  ;;  %v6245_v16 = vld [vmem:[#allocation3 + $0xb0] sm:$0xff] }
 0xa85   :  { %v3920_v33 = vadd.f32 %v16846_v25, %v16845_v4 }
 0xa86   :  { %16841 = vst [vmem:[#allocation19_spill] sm:$0xff] %v15322_v49 }
 0xa89   :  { %v5224_v56 = vpop.f32.mrf.mxu2 }
 0xa8a   :  { %v5308_v55 = vadd.f32 %v5224_v56, %v4850_v6  ;;  %v5682_v0 = vpop.f32.mrf.mxu3  ;;  %v4769_v50 = vpop.f32.mrf.mxu1 }
 0xa8b   :  { %v4851_v47 = vadd.f32 %v4769_v50, %v16844_v3  ;;  %v6702_v3 = vld [vmem:[#allocation3 + $0xa9] sm:$0xff] }
 0xa8c   :  { %v15325_v15 = vadd.f32 %v5682_v0, %v5308_v55  ;;  %v16848_v0 = vld [vmem:[#allocation72_spill] sm:$0xff] }
 0xa8d   :  { %11422 = vmatmul.msk.bf16.gmra.mxu1 %vm1990_vm3, %v5846_v28  ;;  %v4394_v50 = vadd.f32 %v16848_v0, %v3920_v33  ;;  %v6703_v28 = vld [vmem:[#allocation3 + $0xb1] sm:$0xff] }
 0xa8e   :  { %16843 = vst [vmem:[#allocation20_spill] sm:$0xff] %v15325_v15  ;;  %11478 = vmatmul.msk.bf16.gmra.mxu2 %vm1990_vm3, %v6304_v26  ;;  %v6244_v15 = vld [vmem:[#allocation3 + $0xa8] sm:$0xff]  ;;  %v13077_v33 = vld [vmem:[%s16690_s7 + $0x318] sm:$0xff] }
 0xa8f   :  { %11534 = vmatmul.msk.bf16.gmra.mxu3 %vm1990_vm3, %v6762_v7  ;;  %v5786_v7 = vld [vmem:[#allocation3 + $0xa7] sm:$0xff]  ;;  %v6305_v25 = vpack.c.bf16 %v6245_v16, %v6244_v15  ;;  %10137 = vmatpush.bf16.msrb.mxu0 %v13077_v33  ;;  %v16854_v16 = vld [vmem:[#allocation76_spill] sm:$0xff] }
 0xa90   :  { %v5847_v4 = vpack.c.bf16 %v5787_v13, %v5786_v7  ;;  %v16852_v0 = vld [vmem:[#allocation75_spill] sm:$0xff] }
 0xa91   :  { %v5227_v45 = vpop.f32.mrf.mxu2  ;;  %v5788_v33 = vld [vmem:[#allocation3 + $0xc7] sm:$0xff] }
 0xa92   :  { %v5309_v53 = vadd.f32 %v5227_v45, %v4851_v47  ;;  %v5685_v6 = vpop.f32.mrf.mxu3  ;;  %v4771_v56 = vpop.f32.mrf.mxu1  ;;  %v16850_v47 = vld [vmem:[#allocation73_spill] sm:$0xff] }
 0xa93   :  { %v4852_v38 = vadd.f32 %v4771_v56, %v4394_v50  ;;  %v16851_v56 = vld [vmem:[#allocation74_spill] sm:$0xff] }
 0xa94   :  { %v15333_v55 = vadd.f32 %v5685_v6, %v5309_v53  ;;  %v6763_v53 = vpack.c.bf16 %v6703_v28, %v6702_v3  ;;  %v3925_v50 = vadd.f32 %v16852_v0, %v16851_v56  ;;  %v5789_v28 = vld [vmem:[#allocation3 + $0xcf] sm:$0xff] }
 0xa95   :  { %v5848_v56 = vpack.c.bf16 %v5789_v28, %v5788_v33  ;;  %v12928_v28 = vld [vmem:[%s16688_s5 + $0xb0] sm:$0xff] }
 0xa96   :  { %16847 = vst [vmem:[#allocation21_spill] sm:$0xff] %v15333_v55  ;;  %7904 = vmatpush.bf16.msrb.mxu3 %v12928_v28  ;;  %v5791_v33 = vld [vmem:[#allocation3 + $0xef] sm:$0xff]  ;;  %v16863_v28 = vld [vmem:[#allocation82_spill] sm:$0xff] }
 0xa99   :  { %v5229_v17 = vpop.f32.mrf.mxu2 }
 0xa9a   :  { %v5310_v2 = vadd.f32 %v5229_v17, %v4852_v38  ;;  %v5687_v32 = vpop.f32.mrf.mxu3  ;;  %v4774_v26 = vpop.f32.mrf.mxu1 }
 0xa9b   :  { %v4853_v45 = vadd.f32 %v4774_v26, %v16850_v47  ;;  %v6247_v26 = vld [vmem:[#allocation3 + $0xd0] sm:$0xff] }
 0xa9c   :  { %v15336_v49 = vadd.f32 %v5687_v32, %v5310_v2  ;;  %v4396_v2 = vadd.f32 %v16854_v16, %v3925_v50 }
 0xa9d   :  { %11423 = vmatmul.msk.bf16.gmra.mxu1 %vm1990_vm3, %v5847_v4  ;;  %v6704_v4 = vld [vmem:[#allocation3 + $0xc9] sm:$0xff] }
 0xa9e   :  { %16849 = vst [vmem:[#allocation22_spill] sm:$0xff] %v15336_v49  ;;  %11479 = vmatmul.msk.bf16.gmra.mxu2 %vm1990_vm3, %v6305_v25  ;;  %v6705_v25 = vld [vmem:[#allocation3 + $0xd1] sm:$0xff]  ;;  %v6246_v49 = vld [vmem:[#allocation3 + $0xc8] sm:$0xff] }
 0xa9f   :  { %11535 = vmatmul.msk.bf16.gmra.mxu3 %vm1990_vm3, %v6763_v53  ;;  %v6306_v0 = vpack.c.bf16 %v6247_v26, %v6246_v49  ;;  %v12912_v49 = vld [vmem:[%s16688_s5 + $0x30] sm:$0xff] }
 0xaa0   :  { %v12920_v26 = vld [vmem:[%s16688_s5 + $0x70] sm:$0xff]  ;;  %7766 = vmatpush.bf16.msrb.mxu2 %v12912_v49 }
 0xaa1   :  { %v5232_v6 = vpop.f32.mrf.mxu2  ;;  %7669 = vmatpush.bf16.msrb.mxu1 %v12920_v26  ;;  %v16864_v26 = vld [vmem:[#allocation83_spill] sm:$0xff] }
 0xaa2   :  { %v5311_v38 = vadd.f32 %v5232_v6, %v4853_v45  ;;  %v5690_v17 = vpop.f32.mrf.mxu3  ;;  %v4776_v13 = vpop.f32.mrf.mxu1  ;;  %v16856_v45 = vld [vmem:[#allocation77_spill] sm:$0xff] }
 0xaa3   :  { %v4854_v32 = vadd.f32 %v4776_v13, %v4396_v2  ;;  %v16858_v13 = vld [vmem:[#allocation79_spill] sm:$0xff] }
 0xaa4   :  { %v15347_v15 = vadd.f32 %v5690_v17, %v5311_v38  ;;  %v6764_v38 = vpack.c.bf16 %v6705_v25, %v6704_v4  ;;  %v16857_v17 = vld [vmem:[#allocation78_spill] sm:$0xff] }
 0xaa5   :  { %v3930_v16 = vadd.f32 %v16858_v13, %v16857_v17  ;;  %v5790_v17 = vld [vmem:[#allocation3 + $0xe7] sm:$0xff] }
 0xaa6   :  { %16853 = vst [vmem:[#allocation23_spill] sm:$0xff] %v15347_v15  ;;  %v6248_v13 = vld [vmem:[#allocation3 + $0xe8] sm:$0xff] }
 0xaa9   :  { %v5234_v3 = vpop.f32.mrf.mxu2 }
 0xaaa   :  { %v5312_v7 = vadd.f32 %v5234_v3, %v4854_v32  ;;  %v5692_v47 = vpop.f32.mrf.mxu3  ;;  %v4779_v53 = vpop.f32.mrf.mxu1 }
 0xaab   :  { %v4855_v6 = vadd.f32 %v4779_v53, %v16856_v45  ;;  %v6249_v45 = vld [vmem:[#allocation3 + $0xf0] sm:$0xff] }
 0xaac   :  { %v15350_v55 = vadd.f32 %v5692_v47, %v5312_v7  ;;  %v16860_v47 = vld [vmem:[#allocation80_spill] sm:$0xff] }
 0xaad   :  { %11424 = vmatmul.msk.bf16.gmra.mxu1 %vm1990_vm3, %v5848_v56  ;;  %v4398_v4 = vadd.f32 %v16860_v47, %v3930_v16  ;;  %v6307_v16 = vpack.c.bf16 %v6249_v45, %v6248_v13  ;;  %v3935_v47 = vadd.f32 %v16864_v26, %v16863_v28  ;;  %v6708_v13 = vld [vmem:[#allocation3 + $0x109] sm:$0xff] }
 0xaae   :  { %16855 = vst [vmem:[#allocation24_spill] sm:$0xff] %v15350_v55  ;;  %11480 = vmatmul.msk.bf16.gmra.mxu2 %vm1990_vm3, %v6306_v0  ;;  %v6706_v0 = vld [vmem:[#allocation3 + $0xe9] sm:$0xff]  ;;  %v5849_v55 = vpack.c.bf16 %v5791_v33, %v5790_v17 }
 0xaaf   :  { %11536 = vmatmul.msk.bf16.gmra.mxu3 %vm1990_vm3, %v6764_v38  ;;  %v6707_v38 = vld [vmem:[#allocation3 + $0xf1] sm:$0xff] }
 0xab0   :  { %v6765_v49 = vpack.c.bf16 %v6707_v38, %v6706_v0  ;;  %v5793_v0 = vld [vmem:[#allocation3 + $0x10f] sm:$0xff] }
 0xab1   :  { %v5237_v50 = vpop.f32.mrf.mxu2  ;;  %v6251_v38 = vld [vmem:[#allocation3 + $0x110] sm:$0xff] }
 0xab2   :  { %v5313_v2 = vadd.f32 %v5237_v50, %v4855_v6  ;;  %v5695_v32 = vpop.f32.mrf.mxu3  ;;  %v4781_v3 = vpop.f32.mrf.mxu1 }
 0xab3   :  { %v4856_v25 = vadd.f32 %v4781_v3, %v4398_v4 }
 0xab4   :  { %v15358_v7 = vadd.f32 %v5695_v32, %v5313_v2  ;;  %v16862_v32 = vld [vmem:[#allocation81_spill] sm:$0xff] }
 0xab6   :  { %16859 = vst [vmem:[#allocation25_spill] sm:$0xff] %v15358_v7 }
 0xab9   :  { %v5239_v53 = vpop.f32.mrf.mxu2 }
 0xaba   :  { %v5314_v6 = vadd.f32 %v5239_v53, %v4856_v25  ;;  %v5697_v56 = vpop.f32.mrf.mxu3  ;;  %v4784_v50 = vpop.f32.mrf.mxu1 }
 0xabb   :  { %v4857_v7 = vadd.f32 %v4784_v50, %v16862_v32  ;;  %v6709_v32 = vld [vmem:[#allocation3 + $0x111] sm:$0xff] }
 0xabc   :  { %v15370_v2 = vadd.f32 %v5697_v56, %v5314_v6  ;;  %v16866_v56 = vld [vmem:[#allocation84_spill] sm:$0xff] }
 0xabd   :  { %11425 = vmatmul.msk.bf16.gmra.mxu1 %vm1990_vm3, %v5849_v55  ;;  %v4400_v50 = vadd.f32 %v16866_v56, %v3935_v47 }
 0xabe   :  { %16861 = vst [vmem:[#allocation26_spill] sm:$0xff] %v15370_v2  ;;  %11481 = vmatmul.msk.bf16.gmra.mxu2 %vm1990_vm3, %v6307_v16  ;;  %v6250_v2 = vld [vmem:[#allocation3 + $0x108] sm:$0xff] }
 0xabf   :  { %11537 = vmatmul.msk.bf16.gmra.mxu3 %vm1990_vm3, %v6765_v49  ;;  %v5792_v49 = vld [vmem:[#allocation3 + $0x107] sm:$0xff]  ;;  %v6308_v26 = vpack.c.bf16 %v6251_v38, %v6250_v2  ;;  %v5795_v38 = vld [vmem:[#allocation3 + $0x12f] sm:$0xff] }
 0xac0   :  { %v5850_v28 = vpack.c.bf16 %v5793_v0, %v5792_v49 }
 0xac1   :  { %v5242_v3 = vpop.f32.mrf.mxu2 }
 0xac2   :  { %v5315_v4 = vadd.f32 %v5242_v3, %v4857_v7  ;;  %v5700_v25 = vpop.f32.mrf.mxu3  ;;  %v4786_v53 = vpop.f32.mrf.mxu1  ;;  %v16868_v7 = vld [vmem:[#allocation85_spill] sm:$0xff] }
 0xac3   :  { %v4858_v33 = vadd.f32 %v4786_v53, %v4400_v50  ;;  %v16870_v53 = vld [vmem:[#allocation87_spill] sm:$0xff] }
 0xac4   :  { %v15378_v6 = vadd.f32 %v5700_v25, %v5315_v4  ;;  %v6766_v4 = vpack.c.bf16 %v6709_v32, %v6708_v13  ;;  %v16869_v25 = vld [vmem:[#allocation86_spill] sm:$0xff]  ;;  %v6253_v13 = vld [vmem:[#allocation3 + $0x130] sm:$0xff] }
 0xac5   :  { %v3940_v56 = vadd.f32 %v16870_v53, %v16869_v25 }
 0xac6   :  { %16865 = vst [vmem:[#allocation27_spill] sm:$0xff] %v15378_v6 }
 0xac9   :  { %v5244_v45 = vpop.f32.mrf.mxu2 }
 0xaca   :  { %v5316_v55 = vadd.f32 %v5244_v45, %v4858_v33  ;;  %v5702_v17 = vpop.f32.mrf.mxu3  ;;  %v4789_v16 = vpop.f32.mrf.mxu1 }
 0xacb   :  { %v4859_v3 = vadd.f32 %v4789_v16, %v16868_v7  ;;  %v6710_v7 = vld [vmem:[#allocation3 + $0x129] sm:$0xff] }
 0xacc   :  { %v15381_v15 = vadd.f32 %v5702_v17, %v5316_v55  ;;  %v16871_v17 = vld [vmem:[#allocation88_spill] sm:$0xff] }
 0xacd   :  { %11426 = vmatmul.msk.bf16.gmra.mxu1 %vm1990_vm3, %v5850_v28  ;;  %v4402_v16 = vadd.f32 %v16871_v17, %v3940_v56  ;;  %v6711_v28 = vld [vmem:[#allocation3 + $0x131] sm:$0xff] }
 0xace   :  { %16867 = vst [vmem:[#allocation28_spill] sm:$0xff] %v15381_v15  ;;  %11482 = vmatmul.msk.bf16.gmra.mxu2 %vm1990_vm3, %v6308_v26  ;;  %v6252_v15 = vld [vmem:[#allocation3 + $0x128] sm:$0xff] }
 0xacf   :  { %11538 = vmatmul.msk.bf16.gmra.mxu3 %vm1990_vm3, %v6766_v4  ;;  %v5794_v4 = vld [vmem:[#allocation3 + $0x127] sm:$0xff]  ;;  %v6309_v53 = vpack.c.bf16 %v6253_v13, %v6252_v15 }
 0xad0   :  { %v5851_v25 = vpack.c.bf16 %v5795_v38, %v5794_v4  ;;  %v6712_v13 = vld [vmem:[#allocation3 + $0x149] sm:$0xff] }
 0xad1   :  { %v5247_v47 = vpop.f32.mrf.mxu2  ;;  %v5796_v4 = vld [vmem:[#allocation3 + $0x147] sm:$0xff] }
 0xad2   :  { %v5317_v50 = vadd.f32 %v5247_v47, %v4859_v3  ;;  %v5705_v33 = vpop.f32.mrf.mxu3  ;;  %v4791_v45 = vpop.f32.mrf.mxu1  ;;  %v16872_v3 = vld [vmem:[#allocation89_spill] sm:$0xff] }
 0xad3   :  { %v4860_v0 = vadd.f32 %v4791_v45, %v4402_v16 }
 0xad4   :  { %v15389_v55 = vadd.f32 %v5705_v33, %v5317_v50  ;;  %v6767_v50 = vpack.c.bf16 %v6711_v28, %v6710_v7  ;;  %v6713_v7 = vld [vmem:[#allocation3 + $0x151] sm:$0xff] }
 0xad9   :  { %v5249_v2 = vpop.f32.mrf.mxu2 }
 0xada   :  { %v5318_v32 = vadd.f32 %v5249_v2, %v4860_v0  ;;  %v5707_v49 = vpop.f32.mrf.mxu3  ;;  %v4794_v26 = vpop.f32.mrf.mxu1  ;;  %v16873_v0 = vld [vmem:[#allocation90_spill] sm:$0xff] }
 0xadb   :  { %v4861_v47 = vadd.f32 %v4794_v26, %v16872_v3  ;;  %v6255_v26 = vld [vmem:[#allocation3 + $0x150] sm:$0xff]  ;;  %v6254_v3 = vld [vmem:[#allocation3 + $0x148] sm:$0xff] }
 0xadc   :  { %v15392_v6 = vadd.f32 %v5707_v49, %v5318_v32  ;;  %v5797_v49 = vld [vmem:[#allocation3 + $0x14f] sm:$0xff] }
 0xadd   :  { %11427 = vmatmul.msk.bf16.gmra.mxu1 %vm1990_vm3, %v5851_v25 }
 0xade   :  { %11483 = vmatmul.msk.bf16.gmra.mxu2 %vm1990_vm3, %v6309_v53  ;;  %v5852_v53 = vpack.c.bf16 %v5797_v49, %v5796_v4  ;;  %v6715_v4 = vld [vmem:[#allocation3 + $0x171] sm:$0xff] }
 0xadf   :  { %11539 = vmatmul.msk.bf16.gmra.mxu3 %vm1990_vm3, %v6767_v50  ;;  %v6768_v50 = vpack.c.bf16 %v6713_v7, %v6712_v13  ;;  %v6257_v13 = vld [vmem:[#allocation3 + $0x170] sm:$0xff] }
 0xae1   :  { %v5252_v56 = vpop.f32.mrf.mxu2 }
 0xae2   :  { %v5319_v33 = vadd.f32 %v5252_v56, %v4861_v47  ;;  %v5710_v45 = vpop.f32.mrf.mxu3  ;;  %v4796_v17 = vpop.f32.mrf.mxu1  ;;  %v6310_v47 = vpack.c.bf16 %v6255_v26, %v6254_v3 }
 0xae3   :  { %v4862_v2 = vadd.f32 %v4796_v17, %v16873_v0  ;;  %v15410_v0 = vld [vmem:[%s16687_s4] ss:$0 sm:$0xff] }
 0xae4   :  { %v15398_v16 = vadd.f32 %v5710_v45, %v5319_v33 }
 0xae9   :  { %v5254_v32 = vpop.f32.mrf.mxu2 }
 0xaea   :  { %v5320_v38 = vadd.f32 %v5254_v32, %v4862_v2  ;;  %v5712_v15 = vpop.f32.mrf.mxu3  ;;  %v6014_v28 = vpop.f32.mrf.mxu1 }
 0xaeb   :  { %v6174_v56 = vadd.f32 %v6014_v28, %v14978_v10  ;;  %v6714_v28 = vld [vmem:[#allocation3 + $0x169] sm:$0xff] }
 0xaec   :  { %v15401_v25 = vadd.f32 %v5712_v15, %v5320_v38  ;;  %v5799_v15 = vld [vmem:[#allocation3 + $0x16f] sm:$0xff] }
 0xaed   :  { %11428 = vmatmul.msk.bf16.gmra.mxu1 %vm1990_vm3, %v5852_v53  ;;  %v5798_v53 = vld [vmem:[#allocation3 + $0x167] sm:$0xff] }
 0xaee   :  { %16874 = vst [vmem:[#allocation29_spill] sm:$0xff] %v15401_v25  ;;  %11484 = vmatmul.msk.bf16.gmra.mxu2 %vm1990_vm3, %v6310_v47  ;;  %v6256_v47 = vld [vmem:[#allocation3 + $0x168] sm:$0xff]  ;;  %v6769_v25 = vpack.c.bf16 %v6715_v4, %v6714_v28 }
 0xaef   :  { %11540 = vmatmul.msk.bf16.gmra.mxu3 %vm1990_vm3, %v6768_v50  ;;  %v5801_v4 = vld [vmem:[#allocation3 + $0x18f] sm:$0xff] }
 0xaf1   :  { %v6472_v33 = vpop.f32.mrf.mxu2 }
 0xaf2   :  { %v6632_v45 = vadd.f32 %v6472_v33, %v6174_v56  ;;  %v6930_v17 = vpop.f32.mrf.mxu3  ;;  %v6016_v2 = vpop.f32.mrf.mxu1  ;;  %v5853_v56 = vpack.c.bf16 %v5799_v15, %v5798_v53  ;;  %v6311_v33 = vpack.c.bf16 %v6257_v13, %v6256_v47  ;;  %v6259_v53 = vld [vmem:[#allocation3 + $0x190] sm:$0xff] }
 0xaf3   :  { %v6175_v26 = vadd.f32 %v6016_v2, %v14981_v31  ;;  %v12911_v31 = vld [vmem:[%s16688_s5 + $0x28] sm:$0xff] }
 0xaf4   :  { %v7090_v32 = vadd.f32 %v6930_v17, %v6632_v45  ;;  %v12927_v17 = vld [vmem:[%s16688_s5 + $0xa8] sm:$0xff]  ;;  %7767 = vmatpush.bf16.msrb.mxu2 %v12911_v31 }
 0xaf5   :  { %v12919_v2 = vld [vmem:[%s16688_s5 + $0x68] sm:$0xff]  ;;  %7905 = vmatpush.bf16.msrb.mxu3 %v12927_v17 }
 0xaf6   :  { %v7158_v49 = vadd.f32 %v15410_v0, %v7090_v32  ;;  %7670 = vmatpush.bf16.msrb.mxu1 %v12919_v2 }
 0xaf8   :  { %7222 = vst [vmem:[#allocation4] sm:$0xff] %v7158_v49 }
 0xaf9   :  { %v6474_v38 = vpop.f32.mrf.mxu2 }
 0xafa   :  { %v6633_v7 = vadd.f32 %v6474_v38, %v6175_v26  ;;  %v6932_v10 = vpop.f32.mrf.mxu3  ;;  %v6019_v3 = vpop.f32.mrf.mxu1 }
 0xafb   :  { %v6176_v32 = vadd.f32 %v6019_v3, %v14989_v63  ;;  %v6717_v63 = vld [vmem:[#allocation3 + $0x191] sm:$0xff] }
 0xafc   :  { %v7091_v50 = vadd.f32 %v6932_v10, %v6633_v7 }
 0xafd   :  { %11429 = vmatmul.msk.bf16.gmra.mxu1 %vm1990_vm3, %v5853_v56  ;;  %v5800_v56 = vld [vmem:[#allocation3 + $0x187] sm:$0xff] }
 0xafe   :  { %v7159_v45 = vadd.f32 %v15410_v0, %v7091_v50  ;;  %11485 = vmatmul.msk.bf16.gmra.mxu2 %vm1990_vm3, %v6311_v33  ;;  %v6716_v50 = vld [vmem:[#allocation3 + $0x189] sm:$0xff]  ;;  %v5854_v31 = vpack.c.bf16 %v5801_v4, %v5800_v56 }
 0xaff   :  { %11541 = vmatmul.msk.bf16.gmra.mxu3 %vm1990_vm3, %v6769_v25  ;;  %v6258_v33 = vld [vmem:[#allocation3 + $0x188] sm:$0xff]  ;;  %v6770_v2 = vpack.c.bf16 %v6717_v63, %v6716_v50 }
 0xb00   :  { %7223 = vst [vmem:[#allocation4 + $0x8] sm:$0xff] %v7159_v45  ;;  %v6312_v17 = vpack.c.bf16 %v6259_v53, %v6258_v33  ;;  %v5803_v56 = vld [vmem:[#allocation3 + $0x1af] sm:$0xff] }
 0xb01   :  { %v6477_v49 = vpop.f32.mrf.mxu2  ;;  %v6261_v33 = vld [vmem:[#allocation3 + $0x1b0] sm:$0xff] }
 0xb02   :  { %v6634_v26 = vadd.f32 %v6477_v49, %v6176_v32  ;;  %v6935_v38 = vpop.f32.mrf.mxu3  ;;  %v6021_v15 = vpop.f32.mrf.mxu1 }
 0xb03   :  { %v6177_v10 = vadd.f32 %v6021_v15, %v14992_v5 }
 0xb04   :  { %v7092_v13 = vadd.f32 %v6935_v38, %v6634_v26 }
 0xb06   :  { %v7160_v7 = vadd.f32 %v15410_v0, %v7092_v13 }
 0xb08   :  { %7224 = vst [vmem:[#allocation4 + $0x10] sm:$0xff] %v7160_v7  ;;  %v7286_v7 = vld [vmem:[#allocation4] ss:$2 sm:$0xff] }
 0xb09   :  { %v6479_v28 = vpop.f32.mrf.mxu2 }
 0xb0a   :  { %v6635_v25 = vadd.f32 %v6479_v28, %v6177_v10  ;;  %v6937_v47 = vpop.f32.mrf.mxu3  ;;  %v6024_v3 = vpop.f32.mrf.mxu1  ;;  %v7350_v10 = vld [vmem:[#allocation4 + $0x1] ss:$2 sm:$0xff] }
 0xb0b   :  { %v6178_v5 = vadd.f32 %v6024_v3, %v15000_v36 }
 0xb0c   :  { %v7093_v45 = vadd.f32 %v6937_v47, %v6635_v25  ;;  %v7413_v25 = vmax.f32 %v7286_v7, %v7350_v10 }
 0xb0d   :  { %11430 = vmatmul.msk.bf16.gmra.mxu1 %vm1990_vm3, %v5854_v31  ;;  %v6718_v31 = vld [vmem:[#allocation3 + $0x1a9] sm:$0xff] }
 0xb0e   :  { %v7161_v32 = vadd.f32 %v15410_v0, %v7093_v45  ;;  %11486 = vmatmul.msk.bf16.gmra.mxu2 %vm1990_vm3, %v6312_v17  ;;  %v6719_v17 = vld [vmem:[#allocation3 + $0x1b1] sm:$0xff] }
 0xb0f   :  { %11542 = vmatmul.msk.bf16.gmra.mxu3 %vm1990_vm3, %v6770_v2  ;;  %v6771_v7 = vpack.c.bf16 %v6719_v17, %v6718_v31  ;;  %v6721_v31 = vld [vmem:[#allocation3 + $0x1d1] sm:$0xff] }
 0xb10   :  { %7225 = vst [vmem:[#allocation4 + $0x18] sm:$0xff] %v7161_v32  ;;  %v5802_v32 = vld [vmem:[#allocation3 + $0x1a7] sm:$0xff] }
 0xb11   :  { %v6482_v49 = vpop.f32.mrf.mxu2 }
 0xb12   :  { %v6636_v26 = vadd.f32 %v6482_v49, %v6178_v5  ;;  %v6940_v38 = vpop.f32.mrf.mxu3  ;;  %v6026_v15 = vpop.f32.mrf.mxu1  ;;  %v6260_v5 = vld [vmem:[#allocation3 + $0x1a8] sm:$0xff] }
 0xb13   :  { %v6179_v50 = vadd.f32 %v6026_v15, %v15003_v46 }
 0xb14   :  { %v7094_v13 = vadd.f32 %v6940_v38, %v6636_v26  ;;  %v5855_v38 = vpack.c.bf16 %v5803_v56, %v5802_v32  ;;  %v5805_v56 = vld [vmem:[#allocation3 + $0x1cf] sm:$0xff]  ;;  %v5804_v32 = vld [vmem:[#allocation3 + $0x1c7] sm:$0xff] }
 0xb16   :  { %v7162_v28 = vadd.f32 %v15410_v0, %v7094_v13  ;;  %v6313_v13 = vpack.c.bf16 %v6261_v33, %v6260_v5  ;;  %v6263_v33 = vld [vmem:[#allocation3 + $0x1d0] sm:$0xff]  ;;  %v5856_v5 = vpack.c.bf16 %v5805_v56, %v5804_v32 }
 0xb17   :  { %v7288_v4 = vld [vmem:[#allocation4 + $0x10] ss:$2 sm:$0xff]  ;;  %v7352_v53 = vld [vmem:[#allocation4 + $0x11] ss:$2 sm:$0xff] }
 0xb18   :  { %v7414_v47 = vmax.f32 %v7288_v4, %v7352_v53  ;;  %7226 = vst [vmem:[#allocation4 + $0x20] sm:$0xff] %v7162_v28 }
 0xb19   :  { %v6484_v63 = vpop.f32.mrf.mxu2 }
 0xb1a   :  { %v7445_v36 = vmax.f32 %v7413_v25, %v7414_v47  ;;  %v6637_v3 = vadd.f32 %v6484_v63, %v6179_v50  ;;  %v6942_v45 = vpop.f32.mrf.mxu3  ;;  %v6029_v2 = vpop.f32.mrf.mxu1 }
 0xb1b   :  { %v6180_v46 = vadd.f32 %v6029_v2, %v15011_v21  ;;  %v6262_v21 = vld [vmem:[#allocation3 + $0x1c8] sm:$0xff] }
 0xb1c   :  { %v7461_v49 = vmax.f32 %v7445_v36, 0.0  ;;  %v7095_v26 = vadd.f32 %v6942_v45, %v6637_v3  ;;  %v6720_v45 = vld [vmem:[#allocation3 + $0x1c9] sm:$0xff] }
 0xb1d   :  { %11431 = vmatmul.msk.bf16.gmra.mxu1 %vm1990_vm3, %v5855_v38 }
 0xb1e   :  { %7523 = vst [vmem:[#allocation5 + $0x20] sm:$0xff] %v7461_v49  ;;  %v7163_v10 = vadd.f32 %v15410_v0, %v7095_v26  ;;  %11487 = vmatmul.msk.bf16.gmra.mxu2 %vm1990_vm3, %v6313_v13  ;;  %v6314_v49 = vpack.c.bf16 %v6263_v33, %v6262_v21  ;;  %v6772_v26 = vpack.c.bf16 %v6721_v31, %v6720_v45  ;;  %v5806_v45 = vld [vmem:[#allocation3 + $0x1e7] sm:$0xff] }
 0xb1f   :  { %11543 = vmatmul.msk.bf16.gmra.mxu3 %vm1990_vm3, %v6771_v7  ;;  %v6264_v31 = vld [vmem:[#allocation3 + $0x1e8] sm:$0xff] }
 0xb20   :  { %7227 = vst [vmem:[#allocation4 + $0x28] sm:$0xff] %v7163_v10 }
 0xb21   :  { %v6487_v15 = vpop.f32.mrf.mxu2 }
 0xb22   :  { %v6638_v28 = vadd.f32 %v6487_v15, %v6180_v46  ;;  %v6945_v4 = vpop.f32.mrf.mxu3  ;;  %v6031_v53 = vpop.f32.mrf.mxu1 }
 0xb23   :  { %v6181_v50 = vadd.f32 %v6031_v53, %v15014_v27  ;;  %v12910_v53 = vld [vmem:[%s16688_s5 + $0x20] sm:$0xff] }
 0xb24   :  { %v7096_v25 = vadd.f32 %v6945_v4, %v6638_v28  ;;  %7768 = vmatpush.bf16.msrb.mxu2 %v12910_v53 }
 0xb26   :  { %v7164_v47 = vadd.f32 %v15410_v0, %v7096_v25  ;;  %v12926_v25 = vld [vmem:[%s16688_s5 + $0xa0] sm:$0xff] }
 0xb27   :  { %7906 = vmatpush.bf16.msrb.mxu3 %v12926_v25 }
 0xb28   :  { %7228 = vst [vmem:[#allocation4 + $0x30] sm:$0xff] %v7164_v47 }
 0xb29   :  { %v6489_v63 = vpop.f32.mrf.mxu2 }
 0xb2a   :  { %v6639_v36 = vadd.f32 %v6489_v63, %v6181_v50  ;;  %v6947_v3 = vpop.f32.mrf.mxu3  ;;  %v6034_v17 = vpop.f32.mrf.mxu1  ;;  %v5807_v50 = vld [vmem:[#allocation3 + $0x1ef] sm:$0xff] }
 0xb2b   :  { %v6182_v27 = vadd.f32 %v6034_v17, %v15022_v39  ;;  %v12918_v39 = vld [vmem:[%s16688_s5 + $0x60] sm:$0xff]  ;;  %v6265_v63 = vld [vmem:[#allocation3 + $0x1f0] sm:$0xff]  ;;  %v5857_v32 = vpack.c.bf16 %v5807_v50, %v5806_v45  ;;  %v6266_v45 = vld [vmem:[#allocation3 + $0x208] sm:$0xff] }
 0xb2c   :  { %v7097_v2 = vadd.f32 %v6947_v3, %v6639_v36  ;;  %v6722_v36 = vld [vmem:[#allocation3 + $0x1e9] sm:$0xff]  ;;  %v6723_v3 = vld [vmem:[#allocation3 + $0x1f1] sm:$0xff]  ;;  %7671 = vmatpush.bf16.msrb.mxu1 %v12918_v39  ;;  %v6315_v21 = vpack.c.bf16 %v6265_v63, %v6264_v31 }
 0xb2d   :  { %11432 = vmatmul.msk.bf16.gmra.mxu1 %vm1990_vm3, %v5856_v5  ;;  %v5809_v50 = vld [vmem:[#allocation3 + $0x20f] sm:$0xff] }
 0xb2e   :  { %v7165_v38 = vadd.f32 %v15410_v0, %v7097_v2  ;;  %11488 = vmatmul.msk.bf16.gmra.mxu2 %vm1990_vm3, %v6314_v49  ;;  %v6773_v2 = vpack.c.bf16 %v6723_v3, %v6722_v36  ;;  %v6267_v63 = vld [vmem:[#allocation3 + $0x210] sm:$0xff] }
 0xb2f   :  { %11544 = vmatmul.msk.bf16.gmra.mxu3 %vm1990_vm3, %v6772_v26  ;;  %v6725_v36 = vld [vmem:[#allocation3 + $0x211] sm:$0xff] }
 0xb30   :  { %7229 = vst [vmem:[#allocation4 + $0x38] sm:$0xff] %v7165_v38 }
 0xb31   :  { %v6492_v13 = vpop.f32.mrf.mxu2 }
 0xb32   :  { %v6640_v7 = vadd.f32 %v6492_v13, %v6182_v27  ;;  %v6950_v10 = vpop.f32.mrf.mxu3  ;;  %v6036_v46 = vpop.f32.mrf.mxu1 }
 0xb33   :  { %v6183_v4 = vadd.f32 %v6036_v46, %v15029_v60 }
 0xb34   :  { %v7098_v15 = vadd.f32 %v6950_v10, %v6640_v7 }
 0xb36   :  { %v7166_v28 = vadd.f32 %v15410_v0, %v7098_v15  ;;  %v7290_v15 = vld [vmem:[#allocation4 + $0x20] ss:$2 sm:$0xff] }
 0xb37   :  { %v7292_v7 = vld [vmem:[#allocation4 + $0x30] ss:$2 sm:$0xff]  ;;  %v7356_v10 = vld [vmem:[#allocation4 + $0x31] ss:$2 sm:$0xff] }
 0xb38   :  { %7230 = vst [vmem:[#allocation4 + $0x40] sm:$0xff] %v7166_v28  ;;  %v7354_v28 = vld [vmem:[#allocation4 + $0x21] ss:$2 sm:$0xff]  ;;  %v7416_v53 = vmax.f32 %v7292_v7, %v7356_v10 }
 0xb39   :  { %v6494_v47 = vpop.f32.mrf.mxu2  ;;  %v7415_v39 = vmax.f32 %v7290_v15, %v7354_v28  ;;  %v15479_v15 = vld [vmem:[#allocation5 + $0x1f] sm:$0xff] }
 0xb3a   :  { %v6641_v56 = vadd.f32 %v6494_v47, %v6183_v4  ;;  %v6952_v33 = vpop.f32.mrf.mxu3  ;;  %v6039_v60 = vpop.f32.mrf.mxu1  ;;  %v15481_v28 = vld [vmem:[#allocation5 + $0x21] sm:$0xff] }
 0xb3b   :  { %v6184_v49 = vadd.f32 %v6039_v60, %v15037_v11  ;;  %v5808_v60 = vld [vmem:[#allocation3 + $0x207] sm:$0xff]  ;;  %v7446_v31 = vmax.f32 %v7415_v39, %v7416_v53 }
 0xb3c   :  { %v7099_v17 = vadd.f32 %v6952_v33, %v6641_v56  ;;  %v6724_v33 = vld [vmem:[#allocation3 + $0x209] sm:$0xff] }
 0xb3d   :  { %11433 = vmatmul.msk.bf16.gmra.mxu1 %vm1990_vm3, %v5857_v32  ;;  %v5858_v32 = vpack.c.bf16 %v5809_v50, %v5808_v60  ;;  %v5810_v53 = vld [vmem:[#allocation3 + $0x227] sm:$0xff] }
 0xb3e   :  { %v7167_v5 = vadd.f32 %v15410_v0, %v7099_v17  ;;  %11489 = vmatmul.msk.bf16.gmra.mxu2 %vm1990_vm3, %v6315_v21  ;;  %v6316_v21 = vpack.c.bf16 %v6267_v63, %v6266_v45  ;;  %v6268_v50 = vld [vmem:[#allocation3 + $0x228] sm:$0xff]  ;;  %v6269_v63 = vld [vmem:[#allocation3 + $0x230] sm:$0xff] }
 0xb3f   :  { %11545 = vmatmul.msk.bf16.gmra.mxu3 %vm1990_vm3, %v6773_v2  ;;  %v6774_v2 = vpack.c.bf16 %v6725_v36, %v6724_v33  ;;  %v6726_v33 = vld [vmem:[#allocation3 + $0x229] sm:$0xff]  ;;  %v6727_v36 = vld [vmem:[#allocation3 + $0x231] sm:$0xff] }
 0xb40   :  { %7231 = vst [vmem:[#allocation4 + $0x48] sm:$0xff] %v7167_v5  ;;  %v15467_v5 = vmax.f32 %v7446_v31, 0.0 }
 0xb41   :  { %v6497_v26 = vpop.f32.mrf.mxu2 }
 0xb42   :  { %v6642_v38 = vadd.f32 %v6497_v26, %v6184_v49  ;;  %v6955_v27 = vpop.f32.mrf.mxu3  ;;  %v6041_v13 = vpop.f32.mrf.mxu1  ;;  %v15472_v49 = vld [vmem:[#allocation5 + $0x20] sm:$0xff]  ;;  %7524 = vst [vmem:[#allocation5 + $0x38] sm:$0xff] %v15467_v5 }
 0xb43   :  { %v6185_v25 = vadd.f32 %v6041_v13, %v15044_v12  ;;  %v8138_v26 = vpack.c.bf16 %v15467_v5, %v15472_v49 }
 0xb44   :  { %v7100_v46 = vadd.f32 %v6955_v27, %v6642_v38 }
 0xb46   :  { %v7168_v4 = vadd.f32 %v15410_v0, %v7100_v46 }
 0xb48   :  { %7232 = vst [vmem:[#allocation4 + $0x50] sm:$0xff] %v7168_v4 }
 0xb49   :  { %v6499_v47 = vpop.f32.mrf.mxu2  ;;  %v15486_v39 = vld [vmem:[#allocation5 + $0x39] sm:$0xff] }
 0xb4a   :  { %v6643_v11 = vadd.f32 %v6499_v47, %v6185_v25  ;;  %v6957_v56 = vpop.f32.mrf.mxu3  ;;  %v6044_v3 = vpop.f32.mrf.mxu1  ;;  %v15484_v25 = vld [vmem:[#allocation5 + $0x37] sm:$0xff]  ;;  %v5811_v47 = vld [vmem:[#allocation3 + $0x22f] sm:$0xff] }
 0xb4b   :  { %v6186_v38 = vadd.f32 %v6044_v3, %v15052_v24  ;;  %v7984_v24 = vpack.c.bf16 %v15484_v25, %v15479_v15  ;;  %v5859_v31 = vpack.c.bf16 %v5811_v47, %v5810_v53  ;;  %v7294_v53 = vld [vmem:[#allocation4 + $0x40] ss:$2 sm:$0xff]  ;;  %v7358_v47 = vld [vmem:[#allocation4 + $0x41] ss:$2 sm:$0xff] }
 0xb4c   :  { %v7101_v17 = vadd.f32 %v6957_v56, %v6643_v11  ;;  %v8292_v11 = vpack.c.bf16 %v15486_v39, %v15481_v28  ;;  %v12968_v28 = vld [vmem:[%s16688_s5 + $0x1f0] sm:$0xff] }
 0xb4d   :  { %11434 = vmatmul.msk.bf16.gmra.mxu1 %vm1990_vm3, %v5858_v32  ;;  %v12976_v39 = vld [vmem:[%s16688_s5 + $0x230] sm:$0xff] }
 0xb4e   :  { %v7169_v12 = vadd.f32 %v15410_v0, %v7101_v17  ;;  %11490 = vmatmul.msk.bf16.gmra.mxu2 %vm1990_vm3, %v6316_v21  ;;  %v6317_v17 = vpack.c.bf16 %v6269_v63, %v6268_v50  ;;  %v6775_v21 = vpack.c.bf16 %v6727_v36, %v6726_v33  ;;  %v7417_v33 = vmax.f32 %v7294_v53, %v7358_v47 }
 0xb4f   :  { %11546 = vmatmul.msk.bf16.gmra.mxu3 %vm1990_vm3, %v6774_v2 }
 0xb50   :  { %7233 = vst [vmem:[#allocation4 + $0x58] sm:$0xff] %v7169_v12 }
 0xb51   :  { %v6502_v27 = vpop.f32.mrf.mxu2 }
 0xb52   :  { %v6644_v13 = vadd.f32 %v6502_v27, %v6186_v38  ;;  %v6960_v7 = vpop.f32.mrf.mxu3  ;;  %v6046_v10 = vpop.f32.mrf.mxu1 }
 0xb53   :  { %v6187_v56 = vadd.f32 %v6046_v10, %v15059_v41 }
 0xb54   :  { %v7102_v46 = vadd.f32 %v6960_v7, %v6644_v13 }
 0xb56   :  { %v7170_v4 = vadd.f32 %v15410_v0, %v7102_v46 }
 0xb57   :  { %v7296_v10 = vld [vmem:[#allocation4 + $0x50] ss:$2 sm:$0xff]  ;;  %v7360_v46 = vld [vmem:[#allocation4 + $0x51] ss:$2 sm:$0xff] }
 0xb58   :  { %7234 = vst [vmem:[#allocation4 + $0x60] sm:$0xff] %v7170_v4  ;;  %v7418_v63 = vmax.f32 %v7296_v10, %v7360_v46 }
 0xb59   :  { %v6504_v3 = vpop.f32.mrf.mxu2 }
 0xb5a   :  { %v6645_v60 = vadd.f32 %v6504_v3, %v6187_v56  ;;  %v6962_v45 = vpop.f32.mrf.mxu3  ;;  %v6049_v32 = vpop.f32.mrf.mxu1  ;;  %v5813_v3 = vld [vmem:[#allocation3 + $0x28f] sm:$0xff] }
 0xb5b   :  { %v6188_v41 = vadd.f32 %v6049_v32, %v15067_v40 }
 0xb5c   :  { %v7103_v2 = vadd.f32 %v6962_v45, %v6645_v60  ;;  %v6271_v60 = vld [vmem:[#allocation3 + $0x290] sm:$0xff] }
 0xb5d   :  { %11435 = vmatmul.msk.bf16.gmra.mxu1 %vm1990_vm3, %v5859_v31  ;;  %v6728_v31 = vld [vmem:[#allocation3 + $0x289] sm:$0xff] }
 0xb5e   :  { %v7171_v12 = vadd.f32 %v15410_v0, %v7103_v2  ;;  %11491 = vmatmul.msk.bf16.gmra.mxu2 %vm1990_vm3, %v6317_v17  ;;  %v6729_v17 = vld [vmem:[#allocation3 + $0x291] sm:$0xff]  ;;  %v6270_v2 = vld [vmem:[#allocation3 + $0x288] sm:$0xff] }
 0xb5f   :  { %11547 = vmatmul.msk.bf16.gmra.mxu3 %vm1990_vm3, %v6775_v21  ;;  %v5812_v21 = vld [vmem:[#allocation3 + $0x287] sm:$0xff] }
 0xb60   :  { %7235 = vst [vmem:[#allocation4 + $0x68] sm:$0xff] %v7171_v12  ;;  %v7447_v12 = vmax.f32 %v7417_v33, %v7418_v63 }
 0xb61   :  { %v6507_v38 = vpop.f32.mrf.mxu2 }
 0xb62   :  { %v6646_v27 = vadd.f32 %v6507_v38, %v6188_v41  ;;  %v6965_v13 = vpop.f32.mrf.mxu3  ;;  %v6051_v7 = vpop.f32.mrf.mxu1  ;;  %v5860_v38 = vpack.c.bf16 %v5813_v3, %v5812_v21  ;;  %v15500_v10 = vmax.f32 %v7447_v12, 0.0  ;;  %v12925_v3 = vld [vmem:[%s16688_s5 + $0x98] sm:$0xff]  ;;  %v6272_v12 = vld [vmem:[#allocation3 + $0x2a8] sm:$0xff] }
 0xb63   :  { %v6189_v56 = vadd.f32 %v6051_v7, %v15077_v1  ;;  %v6731_v21 = vld [vmem:[#allocation3 + $0x2b1] sm:$0xff]  ;;  %7907 = vmatpush.bf16.msrb.mxu3 %v12925_v3 }
 0xb64   :  { %v7104_v4 = vadd.f32 %v6965_v13, %v6646_v27  ;;  %v6318_v27 = vpack.c.bf16 %v6271_v60, %v6270_v2  ;;  %v6776_v13 = vpack.c.bf16 %v6729_v17, %v6728_v31  ;;  %7525 = vst [vmem:[#allocation5 + $0x50] sm:$0xff] %v15500_v10  ;;  %v7596_v7 = vpack.c.bf16 %v15500_v10, %v15467_v5  ;;  %v5814_v2 = vld [vmem:[#allocation3 + $0x2a7] sm:$0xff] }
 0xb66   :  { %v7172_v50 = vadd.f32 %v15410_v0, %v7104_v4 }
 0xb67   :  { %v7362_v3 = vld [vmem:[#allocation4 + $0x61] ss:$2 sm:$0xff] }
 0xb68   :  { %7236 = vst [vmem:[#allocation4 + $0x70] sm:$0xff] %v7172_v50 }
 0xb69   :  { %v6509_v36 = vpop.f32.mrf.mxu2 }
 0xb6a   :  { %v6647_v40 = vadd.f32 %v6509_v36, %v6189_v56  ;;  %v6967_v45 = vpop.f32.mrf.mxu3  ;;  %v6054_v32 = vpop.f32.mrf.mxu1  ;;  %v12909_v36 = vld [vmem:[%s16688_s5 + $0x18] sm:$0xff] }
 0xb6b   :  { %v6190_v46 = vadd.f32 %v6054_v32, %v15091_v8  ;;  %v12917_v8 = vld [vmem:[%s16688_s5 + $0x58] sm:$0xff]  ;;  %v6730_v32 = vld [vmem:[#allocation3 + $0x2a9] sm:$0xff]  ;;  %7769 = vmatpush.bf16.msrb.mxu2 %v12909_v36 }
 0xb6c   :  { %v7105_v41 = vadd.f32 %v6967_v45, %v6647_v40  ;;  %v5815_v40 = vld [vmem:[#allocation3 + $0x2af] sm:$0xff]  ;;  %7672 = vmatpush.bf16.msrb.mxu1 %v12917_v8  ;;  %v7298_v36 = vld [vmem:[#allocation4 + $0x60] ss:$2 sm:$0xff] }
 0xb6d   :  { %11436 = vmatmul.msk.bf16.gmra.mxu1 %vm1990_vm3, %v5860_v38  ;;  %v6273_v45 = vld [vmem:[#allocation3 + $0x2b0] sm:$0xff]  ;;  %v5861_v38 = vpack.c.bf16 %v5815_v40, %v5814_v2 }
 0xb6e   :  { %v7173_v1 = vadd.f32 %v15410_v0, %v7105_v41  ;;  %11492 = vmatmul.msk.bf16.gmra.mxu2 %vm1990_vm3, %v6318_v27  ;;  %v6319_v27 = vpack.c.bf16 %v6273_v45, %v6272_v12  ;;  %v7419_v45 = vmax.f32 %v7298_v36, %v7362_v3  ;;  %v6733_v2 = vld [vmem:[#allocation3 + $0x2d1] sm:$0xff] }
 0xb6f   :  { %11548 = vmatmul.msk.bf16.gmra.mxu3 %vm1990_vm3, %v6776_v13  ;;  %v6777_v13 = vpack.c.bf16 %v6731_v21, %v6730_v32  ;;  %v6275_v32 = vld [vmem:[#allocation3 + $0x2d0] sm:$0xff] }
 0xb70   :  { %7237 = vst [vmem:[#allocation4 + $0x78] sm:$0xff] %v7173_v1 }
 0xb71   :  { %v6512_v4 = vpop.f32.mrf.mxu2 }
 0xb72   :  { %v6648_v53 = vadd.f32 %v6512_v4, %v6190_v46  ;;  %v6970_v47 = vpop.f32.mrf.mxu3  ;;  %v6056_v50 = vpop.f32.mrf.mxu1 }
 0xb73   :  { %v6191_v33 = vadd.f32 %v6056_v50, %v15094_v42 }
 0xb74   :  { %v7106_v63 = vadd.f32 %v6970_v47, %v6648_v53 }
 0xb76   :  { %v7174_v56 = vadd.f32 %v15410_v0, %v7106_v63 }
 0xb77   :  { %v7300_v63 = vld [vmem:[#allocation4 + $0x70] ss:$2 sm:$0xff] }
 0xb78   :  { %7238 = vst [vmem:[#allocation4 + $0x80] sm:$0xff] %v7174_v56  ;;  %v7364_v56 = vld [vmem:[#allocation4 + $0x71] ss:$2 sm:$0xff] }
 0xb79   :  { %v6514_v60 = vpop.f32.mrf.mxu2 }
 0xb7a   :  { %v6649_v31 = vadd.f32 %v6514_v60, %v6191_v33  ;;  %v6972_v17 = vpop.f32.mrf.mxu3  ;;  %v6059_v42 = vpop.f32.mrf.mxu1  ;;  %v7420_v60 = vmax.f32 %v7300_v63, %v7364_v56 }
 0xb7b   :  { %v6192_v46 = vadd.f32 %v6059_v42, %v15102_v44  ;;  %v6732_v42 = vld [vmem:[#allocation3 + $0x2c9] sm:$0xff] }
 0xb7c   :  { %v7107_v41 = vadd.f32 %v6972_v17, %v6649_v31  ;;  %v5817_v17 = vld [vmem:[#allocation3 + $0x2cf] sm:$0xff] }
 0xb7d   :  { %11437 = vmatmul.msk.bf16.gmra.mxu1 %vm1990_vm3, %v5861_v38  ;;  %v6274_v38 = vld [vmem:[#allocation3 + $0x2c8] sm:$0xff] }
 0xb7e   :  { %v7175_v1 = vadd.f32 %v15410_v0, %v7107_v41  ;;  %11493 = vmatmul.msk.bf16.gmra.mxu2 %vm1990_vm3, %v6319_v27  ;;  %v5816_v41 = vld [vmem:[#allocation3 + $0x2c7] sm:$0xff]  ;;  %v7448_v27 = vmax.f32 %v7419_v45, %v7420_v60 }
 0xb7f   :  { %11549 = vmatmul.msk.bf16.gmra.mxu3 %vm1990_vm3, %v6777_v13 }
 0xb80   :  { %7239 = vst [vmem:[#allocation4 + $0x88] sm:$0xff] %v7175_v1  ;;  %v5862_v1 = vpack.c.bf16 %v5817_v17, %v5816_v41  ;;  %v6734_v41 = vld [vmem:[#allocation3 + $0x2e9] sm:$0xff] }
 0xb81   :  { %v6517_v4 = vpop.f32.mrf.mxu2 }
 0xb82   :  { %v6650_v53 = vadd.f32 %v6517_v4, %v6192_v46  ;;  %v6975_v47 = vpop.f32.mrf.mxu3  ;;  %v6061_v50 = vpop.f32.mrf.mxu1  ;;  %v6320_v46 = vpack.c.bf16 %v6275_v32, %v6274_v38  ;;  %v6778_v4 = vpack.c.bf16 %v6733_v2, %v6732_v42  ;;  %v6277_v42 = vld [vmem:[#allocation3 + $0x2f0] sm:$0xff] }
 0xb83   :  { %v6193_v40 = vadd.f32 %v6061_v50, %v15105_v34  ;;  %v6735_v38 = vld [vmem:[#allocation3 + $0x2f1] sm:$0xff] }
 0xb84   :  { %v7108_v33 = vadd.f32 %v6975_v47, %v6650_v53  ;;  %v15528_v53 = vmax.f32 %v7448_v27, 0.0 }
 0xb86   :  { %v7176_v8 = vadd.f32 %v15410_v0, %v7108_v33  ;;  %7526 = vst [vmem:[#allocation5 + $0x68] sm:$0xff] %v15528_v53  ;;  %v8139_v47 = vpack.c.bf16 %v15528_v53, %v15500_v10 }
 0xb88   :  { %7240 = vst [vmem:[#allocation4 + $0x90] sm:$0xff] %v7176_v8  ;;  %v15538_v8 = vld [vmem:[#allocation5 + $0x4f] sm:$0xff] }
 0xb89   :  { %v6519_v31 = vpop.f32.mrf.mxu2 }
 0xb8a   :  { %v6651_v44 = vadd.f32 %v6519_v31, %v6193_v40  ;;  %v6977_v21 = vpop.f32.mrf.mxu3  ;;  %v6064_v12 = vpop.f32.mrf.mxu1  ;;  %v15541_v40 = vld [vmem:[#allocation5 + $0x51] sm:$0xff] }
 0xb8b   :  { %v6194_v50 = vadd.f32 %v6064_v12, %v15113_v51 }
 0xb8c   :  { %v7109_v13 = vadd.f32 %v6977_v21, %v6651_v44  ;;  %v5819_v21 = vld [vmem:[#allocation3 + $0x2ef] sm:$0xff] }
 0xb8d   :  { %11438 = vmatmul.msk.bf16.gmra.mxu1 %vm1990_vm3, %v5862_v1  ;;  %v15543_v45 = vld [vmem:[#allocation5 + $0x67] sm:$0xff] }
 0xb8e   :  { %v7177_v34 = vadd.f32 %v15410_v0, %v7109_v13  ;;  %11494 = vmatmul.msk.bf16.gmra.mxu2 %vm1990_vm3, %v6320_v46  ;;  %v15545_v31 = vld [vmem:[#allocation5 + $0x69] sm:$0xff]  ;;  %v7985_v17 = vpack.c.bf16 %v15543_v45, %v15538_v8 }
 0xb8f   :  { %11550 = vmatmul.msk.bf16.gmra.mxu3 %vm1990_vm3, %v6778_v4  ;;  %v8293_v51 = vpack.c.bf16 %v15545_v31, %v15541_v40  ;;  %v5818_v13 = vld [vmem:[#allocation3 + $0x2e7] sm:$0xff] }
 0xb90   :  { %7241 = vst [vmem:[#allocation4 + $0x98] sm:$0xff] %v7177_v34  ;;  %v6276_v1 = vld [vmem:[#allocation3 + $0x2e8] sm:$0xff]  ;;  %v5863_v4 = vpack.c.bf16 %v5819_v21, %v5818_v13 }
 0xb91   :  { %v6522_v63 = vpop.f32.mrf.mxu2  ;;  %v6321_v34 = vpack.c.bf16 %v6277_v42, %v6276_v1  ;;  %v7302_v21 = vld [vmem:[#allocation4 + $0x80] ss:$2 sm:$0xff]  ;;  %v7366_v42 = vld [vmem:[#allocation4 + $0x81] ss:$2 sm:$0xff]  ;;  %v6279_v1 = vld [vmem:[#allocation3 + $0x310] sm:$0xff] }
 0xb92   :  { %v6652_v56 = vadd.f32 %v6522_v63, %v6194_v50  ;;  %v6980_v33 = vpop.f32.mrf.mxu3  ;;  %v6066_v36 = vpop.f32.mrf.mxu1  ;;  %v6779_v50 = vpack.c.bf16 %v6735_v38, %v6734_v41  ;;  %v13076_v38 = vld [vmem:[%s16690_s7 + $0x310] sm:$0xff] }
 0xb93   :  { %v6195_v32 = vadd.f32 %v6066_v36, %v15116_v37  ;;  %v5821_v13 = vld [vmem:[#allocation3 + $0x30f] sm:$0xff]  ;;  %10138 = vmatpush.bf16.msrb.mxu0 %v13076_v38 }
 0xb94   :  { %v7110_v3 = vadd.f32 %v6980_v33, %v6652_v56 }
 0xb96   :  { %v7178_v60 = vadd.f32 %v15410_v0, %v7110_v3 }
 0xb98   :  { %7242 = vst [vmem:[#allocation4 + $0xa0] sm:$0xff] %v7178_v60  ;;  %v7304_v60 = vld [vmem:[#allocation4 + $0x90] ss:$2 sm:$0xff] }
 0xb99   :  { %v6524_v44 = vpop.f32.mrf.mxu2 }
 0xb9a   :  { %v6653_v2 = vadd.f32 %v6524_v44, %v6195_v32  ;;  %v6982_v12 = vpop.f32.mrf.mxu3  ;;  %v6069_v27 = vpop.f32.mrf.mxu1  ;;  %v7368_v32 = vld [vmem:[#allocation4 + $0x91] ss:$2 sm:$0xff] }
 0xb9b   :  { %v6196_v37 = vadd.f32 %v6069_v27, %v15127_v59  ;;  %v7421_v59 = vmax.f32 %v7302_v21, %v7366_v42 }
 0xb9c   :  { %v7111_v46 = vadd.f32 %v6982_v12, %v6653_v2  ;;  %v7422_v12 = vmax.f32 %v7304_v60, %v7368_v32 }
 0xb9d   :  { %11439 = vmatmul.msk.bf16.gmra.mxu1 %vm1990_vm3, %v5863_v4 }
 0xb9e   :  { %v7179_v63 = vadd.f32 %v15410_v0, %v7111_v46  ;;  %11495 = vmatmul.msk.bf16.gmra.mxu2 %vm1990_vm3, %v6321_v34  ;;  %v6736_v34 = vld [vmem:[#allocation3 + $0x309] sm:$0xff] }
 0xb9f   :  { %11551 = vmatmul.msk.bf16.gmra.mxu3 %vm1990_vm3, %v6779_v50  ;;  %v6737_v50 = vld [vmem:[#allocation3 + $0x311] sm:$0xff] }
 0xba0   :  { %7243 = vst [vmem:[#allocation4 + $0xa8] sm:$0xff] %v7179_v63 }
 0xba1   :  { %v6527_v56 = vpop.f32.mrf.mxu2 }
 0xba2   :  { %v6654_v33 = vadd.f32 %v6527_v56, %v6196_v37  ;;  %v6985_v36 = vpop.f32.mrf.mxu3  ;;  %v6071_v3 = vpop.f32.mrf.mxu1  ;;  %v5820_v37 = vld [vmem:[#allocation3 + $0x307] sm:$0xff] }
 0xba3   :  { %v6197_v41 = vadd.f32 %v6071_v3, %v15130_v35  ;;  %v6278_v56 = vld [vmem:[#allocation3 + $0x308] sm:$0xff]  ;;  %v5864_v60 = vpack.c.bf16 %v5821_v13, %v5820_v37  ;;  %v6780_v3 = vpack.c.bf16 %v6737_v50, %v6736_v34  ;;  %v6281_v50 = vld [vmem:[#allocation3 + $0x330] sm:$0xff] }
 0xba4   :  { %v7112_v44 = vadd.f32 %v6985_v36, %v6654_v33  ;;  %v7449_v33 = vmax.f32 %v7421_v59, %v7422_v12  ;;  %v6322_v35 = vpack.c.bf16 %v6279_v1, %v6278_v56  ;;  %v12908_v1 = vld [vmem:[%s16688_s5 + $0x10] sm:$0xff] }
 0xba5   :  { %v5823_v34 = vld [vmem:[#allocation3 + $0x32f] sm:$0xff]  ;;  %7770 = vmatpush.bf16.msrb.mxu2 %v12908_v1 }
 0xba6   :  { %v7180_v2 = vadd.f32 %v15410_v0, %v7112_v44  ;;  %v15562_v32 = vmax.f32 %v7449_v33, 0.0  ;;  %v6738_v56 = vld [vmem:[#allocation3 + $0x329] sm:$0xff]  ;;  %v6739_v33 = vld [vmem:[#allocation3 + $0x331] sm:$0xff] }
 0xba8   :  { %7244 = vst [vmem:[#allocation4 + $0xb0] sm:$0xff] %v7180_v2  ;;  %v7597_v21 = vpack.c.bf16 %v15562_v32, %v15528_v53 }
 0xba9   :  { %v6529_v27 = vpop.f32.mrf.mxu2  ;;  %7527 = vst [vmem:[#allocation5 + $0x80] sm:$0xff] %v15562_v32 }
 0xbaa   :  { %v6655_v46 = vadd.f32 %v6529_v27, %v6197_v41  ;;  %v6987_v4 = vpop.f32.mrf.mxu3  ;;  %v6074_v63 = vpop.f32.mrf.mxu1 }
 0xbab   :  { %v6198_v42 = vadd.f32 %v6074_v63, %v15138_v23  ;;  %v12916_v23 = vld [vmem:[%s16688_s5 + $0x50] sm:$0xff] }
 0xbac   :  { %v7113_v36 = vadd.f32 %v6987_v4, %v6655_v46  ;;  %v12924_v46 = vld [vmem:[%s16688_s5 + $0x90] sm:$0xff]  ;;  %7673 = vmatpush.bf16.msrb.mxu1 %v12916_v23  ;;  %v7306_v23 = vld [vmem:[#allocation4 + $0xa0] ss:$2 sm:$0xff] }
 0xbad   :  { %11440 = vmatmul.msk.bf16.gmra.mxu1 %vm1990_vm3, %v5864_v60  ;;  %7908 = vmatpush.bf16.msrb.mxu3 %v12924_v46  ;;  %v6280_v60 = vld [vmem:[#allocation3 + $0x328] sm:$0xff] }
 0xbae   :  { %v7181_v44 = vadd.f32 %v15410_v0, %v7113_v36  ;;  %11496 = vmatmul.msk.bf16.gmra.mxu2 %vm1990_vm3, %v6322_v35  ;;  %v5822_v36 = vld [vmem:[#allocation3 + $0x327] sm:$0xff] }
 0xbaf   :  { %11552 = vmatmul.msk.bf16.gmra.mxu3 %vm1990_vm3, %v6780_v3  ;;  %v5865_v3 = vpack.c.bf16 %v5823_v34, %v5822_v36  ;;  %v6283_v36 = vld [vmem:[#allocation3 + $0x350] sm:$0xff] }
 0xbb0   :  { %7245 = vst [vmem:[#allocation4 + $0xb8] sm:$0xff] %v7181_v44  ;;  %v6323_v44 = vpack.c.bf16 %v6281_v50, %v6280_v60  ;;  %v6740_v60 = vld [vmem:[#allocation3 + $0x349] sm:$0xff] }
 0xbb1   :  { %v6532_v2 = vpop.f32.mrf.mxu2 }
 0xbb2   :  { %v6656_v12 = vadd.f32 %v6532_v2, %v6198_v42  ;;  %v6990_v41 = vpop.f32.mrf.mxu3  ;;  %v6076_v38 = vpop.f32.mrf.mxu1  ;;  %v6781_v42 = vpack.c.bf16 %v6739_v33, %v6738_v56  ;;  %v5825_v33 = vld [vmem:[#allocation3 + $0x34f] sm:$0xff] }
 0xbb3   :  { %v6199_v13 = vadd.f32 %v6076_v38, %v15148_v48 }
 0xbb4   :  { %v7114_v59 = vadd.f32 %v6990_v41, %v6656_v12 }
 0xbb6   :  { %v7182_v27 = vadd.f32 %v15410_v0, %v7114_v59 }
 0xbb7   :  { %v7372_v1 = vld [vmem:[#allocation4 + $0xb1] ss:$2 sm:$0xff] }
 0xbb8   :  { %7246 = vst [vmem:[#allocation4 + $0xc0] sm:$0xff] %v7182_v27 }
 0xbb9   :  { %v6534_v4 = vpop.f32.mrf.mxu2 }
 0xbba   :  { %v6657_v63 = vadd.f32 %v6534_v4, %v6199_v13  ;;  %v6992_v37 = vpop.f32.mrf.mxu3  ;;  %v6079_v48 = vpop.f32.mrf.mxu1  ;;  %v7308_v13 = vld [vmem:[#allocation4 + $0xb0] ss:$2 sm:$0xff]  ;;  %v7370_v4 = vld [vmem:[#allocation4 + $0xa1] ss:$2 sm:$0xff] }
 0xbbb   :  { %v6200_v12 = vadd.f32 %v6079_v48, %v15158_v19  ;;  %v7424_v50 = vmax.f32 %v7308_v13, %v7372_v1 }
 0xbbc   :  { %v7115_v35 = vadd.f32 %v6992_v37, %v6657_v63  ;;  %v7423_v37 = vmax.f32 %v7306_v23, %v7370_v4 }
 0xbbd   :  { %11441 = vmatmul.msk.bf16.gmra.mxu1 %vm1990_vm3, %v5865_v3 }
 0xbbe   :  { %v7183_v2 = vadd.f32 %v15410_v0, %v7115_v35  ;;  %11497 = vmatmul.msk.bf16.gmra.mxu2 %vm1990_vm3, %v6323_v44  ;;  %v6741_v35 = vld [vmem:[#allocation3 + $0x351] sm:$0xff]  ;;  %v5824_v44 = vld [vmem:[#allocation3 + $0x347] sm:$0xff] }
 0xbbf   :  { %11553 = vmatmul.msk.bf16.gmra.mxu3 %vm1990_vm3, %v6781_v42  ;;  %v6282_v42 = vld [vmem:[#allocation3 + $0x348] sm:$0xff] }
 0xbc0   :  { %7247 = vst [vmem:[#allocation4 + $0xc8] sm:$0xff] %v7183_v2  ;;  %v7450_v2 = vmax.f32 %v7423_v37, %v7424_v50 }
 0xbc1   :  { %v6537_v41 = vpop.f32.mrf.mxu2 }
 0xbc2   :  { %v6658_v38 = vadd.f32 %v6537_v41, %v6200_v12  ;;  %v6995_v59 = vpop.f32.mrf.mxu3  ;;  %v6081_v27 = vpop.f32.mrf.mxu1  ;;  %v5866_v41 = vpack.c.bf16 %v5825_v33, %v5824_v44  ;;  %v15590_v13 = vmax.f32 %v7450_v2, 0.0  ;;  %v6743_v2 = vld [vmem:[#allocation3 + $0x371] sm:$0xff] }
 0xbc3   :  { %v6201_v63 = vadd.f32 %v6081_v27, %v15163_v43 }
 0xbc4   :  { %v7116_v46 = vadd.f32 %v6995_v59, %v6658_v38  ;;  %v6324_v38 = vpack.c.bf16 %v6283_v36, %v6282_v42  ;;  %v6782_v59 = vpack.c.bf16 %v6741_v35, %v6740_v60  ;;  %7528 = vst [vmem:[#allocation5 + $0x98] sm:$0xff] %v15590_v13  ;;  %v5827_v35 = vld [vmem:[#allocation3 + $0x36f] sm:$0xff] }
 0xbc5   :  { %v6742_v42 = vld [vmem:[#allocation3 + $0x369] sm:$0xff] }
 0xbc6   :  { %v7184_v34 = vadd.f32 %v15410_v0, %v7116_v46 }
 0xbc8   :  { %7248 = vst [vmem:[#allocation4 + $0xd0] sm:$0xff] %v7184_v34 }
 0xbc9   :  { %v6539_v56 = vpop.f32.mrf.mxu2 }
 0xbca   :  { %v6659_v19 = vadd.f32 %v6539_v56, %v6201_v63  ;;  %v6997_v48 = vpop.f32.mrf.mxu3  ;;  %v6084_v3 = vpop.f32.mrf.mxu1  ;;  %v15600_v63 = vld [vmem:[#allocation5 + $0x7f] sm:$0xff] }
 0xbcb   :  { %v6202_v1 = vadd.f32 %v6084_v3, %v15173_v14  ;;  %v15603_v56 = vld [vmem:[#allocation5 + $0x81] sm:$0xff]  ;;  %v15605_v33 = vld [vmem:[#allocation5 + $0x97] sm:$0xff] }
 0xbcc   :  { %v7117_v12 = vadd.f32 %v6997_v48, %v6659_v19  ;;  %v15607_v36 = vld [vmem:[#allocation5 + $0x99] sm:$0xff]  ;;  %v6285_v3 = vld [vmem:[#allocation3 + $0x370] sm:$0xff]  ;;  %v6286_v14 = vld [vmem:[#allocation3 + $0x388] sm:$0xff]  ;;  %v16895_v53 = vpack.c.bf16 %v15605_v33, %v15600_v63 }
 0xbcd   :  { %11442 = vmatmul.msk.bf16.gmra.mxu1 %vm1990_vm3, %v5866_v41  ;;  %v5826_v41 = vld [vmem:[#allocation3 + $0x367] sm:$0xff] }
 0xbce   :  { %v7185_v43 = vadd.f32 %v15410_v0, %v7117_v12  ;;  %11498 = vmatmul.msk.bf16.gmra.mxu2 %vm1990_vm3, %v6324_v38  ;;  %v6284_v38 = vld [vmem:[#allocation3 + $0x368] sm:$0xff] }
 0xbcf   :  { %11554 = vmatmul.msk.bf16.gmra.mxu3 %vm1990_vm3, %v6782_v59 }
 0xbd0   :  { %7249 = vst [vmem:[#allocation4 + $0xd8] sm:$0xff] %v7185_v43  ;;  %v5867_v43 = vpack.c.bf16 %v5827_v35, %v5826_v41 }
 0xbd1   :  { %v6542_v46 = vpop.f32.mrf.mxu2 }
 0xbd2   :  { %v6660_v23 = vadd.f32 %v6542_v46, %v6202_v1  ;;  %v7000_v4 = vpop.f32.mrf.mxu3  ;;  %v6086_v34 = vpop.f32.mrf.mxu1  ;;  %v6325_v1 = vpack.c.bf16 %v6285_v3, %v6284_v38  ;;  %v6783_v46 = vpack.c.bf16 %v6743_v2, %v6742_v42 }
 0xbd3   :  { %v6203_v48 = vadd.f32 %v6086_v34, %v15178_v29 }
 0xbd4   :  { %v7118_v50 = vadd.f32 %v7000_v4, %v6660_v23  ;;  %v15617_v23 = vld [vmem:[%s16687_s4] ss:$0 sm:$0xff] }
 0xbd6   :  { %v7186_v37 = vadd.f32 %v15410_v0, %v7118_v50 }
 0xbd7   :  { %v7376_v35 = vld [vmem:[#allocation4 + $0xd1] ss:$2 sm:$0xff] }
 0xbd8   :  { %7250 = vst [vmem:[#allocation4 + $0xe0] sm:$0xff] %v7186_v37 }
 0xbd9   :  { %v6544_v60 = vpop.f32.mrf.mxu2 }
 0xbda   :  { %v6661_v44 = vadd.f32 %v6544_v60, %v6203_v48  ;;  %v7002_v0 = vpop.f32.mrf.mxu3  ;;  %v6089_v12 = vpop.f32.mrf.mxu1  ;;  %v7312_v60 = vld [vmem:[#allocation4 + $0xd0] ss:$2 sm:$0xff] }
 0xbdb   :  { %v6204_v4 = vadd.f32 %v6089_v12, %v15188_v18  ;;  %v7426_v2 = vmax.f32 %v7312_v60, %v7376_v35 }
 0xbdc   :  { %v7119_v59 = vadd.f32 %v7002_v0, %v6661_v44  ;;  %v7310_v44 = vld [vmem:[#allocation4 + $0xc0] ss:$2 sm:$0xff]  ;;  %v7374_v0 = vld [vmem:[#allocation4 + $0xc1] ss:$2 sm:$0xff] }
 0xbdd   :  { %11443 = vmatmul.msk.bf16.gmra.mxu1 %vm1990_vm3, %v5867_v43  ;;  %v7425_v38 = vmax.f32 %v7310_v44, %v7374_v0  ;;  %v5829_v43 = vld [vmem:[#allocation3 + $0x38f] sm:$0xff] }
 0xbde   :  { %v7187_v29 = vadd.f32 %v15617_v23, %v7119_v59  ;;  %11499 = vmatmul.msk.bf16.gmra.mxu2 %vm1990_vm3, %v6325_v1  ;;  %v6287_v1 = vld [vmem:[#allocation3 + $0x390] sm:$0xff] }
 0xbdf   :  { %11555 = vmatmul.msk.bf16.gmra.mxu3 %vm1990_vm3, %v6783_v46  ;;  %v6744_v46 = vld [vmem:[#allocation3 + $0x389] sm:$0xff]  ;;  %v6326_v19 = vpack.c.bf16 %v6287_v1, %v6286_v14 }
 0xbe0   :  { %7251 = vst [vmem:[#allocation4 + $0xe8] sm:$0xff] %v7187_v29  ;;  %v6745_v29 = vld [vmem:[#allocation3 + $0x391] sm:$0xff] }
 0xbe1   :  { %v6547_v34 = vpop.f32.mrf.mxu2  ;;  %v6289_v1 = vld [vmem:[#allocation3 + $0x3b0] sm:$0xff] }
 0xbe2   :  { %v6662_v50 = vadd.f32 %v6547_v34, %v6204_v4  ;;  %v7005_v37 = vpop.f32.mrf.mxu3  ;;  %v6091_v48 = vpop.f32.mrf.mxu1  ;;  %v5828_v34 = vld [vmem:[#allocation3 + $0x387] sm:$0xff] }
 0xbe3   :  { %v6205_v41 = vadd.f32 %v6091_v48, %v15196_v30  ;;  %v5868_v27 = vpack.c.bf16 %v5829_v43, %v5828_v34  ;;  %v5831_v43 = vld [vmem:[#allocation3 + $0x3af] sm:$0xff] }
 0xbe4   :  { %v7120_v3 = vadd.f32 %v7005_v37, %v6662_v50  ;;  %v7451_v50 = vmax.f32 %v7425_v38, %v7426_v2  ;;  %v12923_v38 = vld [vmem:[%s16688_s5 + $0x88] sm:$0xff] }
 0xbe5   :  { %7909 = vmatpush.bf16.msrb.mxu3 %v12923_v38  ;;  %v6288_v34 = vld [vmem:[#allocation3 + $0x3a8] sm:$0xff] }
 0xbe6   :  { %v7188_v42 = vadd.f32 %v15617_v23, %v7120_v3  ;;  %v6784_v3 = vpack.c.bf16 %v6745_v29, %v6744_v46  ;;  %v15626_v60 = vmax.f32 %v7451_v50, 0.0  ;;  %v6746_v46 = vld [vmem:[#allocation3 + $0x3a9] sm:$0xff]  ;;  %v6747_v29 = vld [vmem:[#allocation3 + $0x3b1] sm:$0xff] }
 0xbe7   :  { %v7314_v38 = vld [vmem:[#allocation4 + $0xe0] ss:$2 sm:$0xff] }
 0xbe8   :  { %7252 = vst [vmem:[#allocation4 + $0xf0] sm:$0xff] %v7188_v42  ;;  %v7598_v48 = vpack.c.bf16 %v15626_v60, %v15590_v13 }
 0xbe9   :  { %v6549_v59 = vpop.f32.mrf.mxu2  ;;  %7529 = vst [vmem:[#allocation5 + $0xb0] sm:$0xff] %v15626_v60 }
 0xbea   :  { %v6663_v18 = vadd.f32 %v6549_v59, %v6205_v41  ;;  %v7007_v12 = vpop.f32.mrf.mxu3  ;;  %v6094_v4 = vpop.f32.mrf.mxu1 }
 0xbeb   :  { %v6206_v35 = vadd.f32 %v6094_v4, %v15213_v62  ;;  %v12915_v62 = vld [vmem:[%s16688_s5 + $0x48] sm:$0xff] }
 0xbec   :  { %v7121_v37 = vadd.f32 %v7007_v12, %v6663_v18  ;;  %v5830_v4 = vld [vmem:[#allocation3 + $0x3a7] sm:$0xff]  ;;  %7674 = vmatpush.bf16.msrb.mxu1 %v12915_v62 }
 0xbed   :  { %11444 = vmatmul.msk.bf16.gmra.mxu1 %vm1990_vm3, %v5868_v27  ;;  %v7378_v62 = vld [vmem:[#allocation4 + $0xe1] ss:$2 sm:$0xff] }
 0xbee   :  { %v7189_v30 = vadd.f32 %v15617_v23, %v7121_v37  ;;  %11500 = vmatmul.msk.bf16.gmra.mxu2 %vm1990_vm3, %v6326_v19  ;;  %v12907_v19 = vld [vmem:[%s16688_s5 + $0x8] sm:$0xff]  ;;  %v5869_v37 = vpack.c.bf16 %v5831_v43, %v5830_v4 }
 0xbef   :  { %11556 = vmatmul.msk.bf16.gmra.mxu3 %vm1990_vm3, %v6784_v3  ;;  %7771 = vmatpush.bf16.msrb.mxu2 %v12907_v19  ;;  %v6327_v3 = vpack.c.bf16 %v6289_v1, %v6288_v34  ;;  %v6748_v4 = vld [vmem:[#allocation3 + $0x3c9] sm:$0xff]  ;;  %v6749_v34 = vld [vmem:[#allocation3 + $0x3d1] sm:$0xff] }
 0xbf0   :  { %7253 = vst [vmem:[#allocation4 + $0xf8] sm:$0xff] %v7189_v30  ;;  %v6785_v30 = vpack.c.bf16 %v6747_v29, %v6746_v46  ;;  %v5833_v46 = vld [vmem:[#allocation3 + $0x3cf] sm:$0xff] }
 0xbf1   :  { %v6552_v14 = vpop.f32.mrf.mxu2  ;;  %v6291_v29 = vld [vmem:[#allocation3 + $0x3d0] sm:$0xff] }
 0xbf2   :  { %v6664_v44 = vadd.f32 %v6552_v14, %v6206_v35  ;;  %v7010_v0 = vpop.f32.mrf.mxu3  ;;  %v6096_v42 = vpop.f32.mrf.mxu1 }
 0xbf3   :  { %v6207_v27 = vadd.f32 %v6096_v42, %v15216_v22 }
 0xbf4   :  { %v7122_v2 = vadd.f32 %v7010_v0, %v6664_v44 }
 0xbf6   :  { %v7190_v41 = vadd.f32 %v15617_v23, %v7122_v2 }
 0xbf8   :  { %7254 = vst [vmem:[#allocation4 + $0x100] sm:$0xff] %v7190_v41  ;;  %v7316_v41 = vld [vmem:[#allocation4 + $0xf0] ss:$2 sm:$0xff] }
 0xbf9   :  { %v6554_v59 = vpop.f32.mrf.mxu2 }
 0xbfa   :  { %v6665_v18 = vadd.f32 %v6554_v59, %v6207_v27  ;;  %v7012_v12 = vpop.f32.mrf.mxu3  ;;  %v6099_v22 = vpop.f32.mrf.mxu1  ;;  %v7380_v27 = vld [vmem:[#allocation4 + $0xf1] ss:$2 sm:$0xff] }
 0xbfb   :  { %v6208_v14 = vadd.f32 %v6099_v22, %v15225_v52  ;;  %v7428_v43 = vmax.f32 %v7316_v41, %v7380_v27 }
 0xbfc   :  { %v7123_v50 = vadd.f32 %v7012_v12, %v6665_v18  ;;  %v7427_v18 = vmax.f32 %v7314_v38, %v7378_v62 }
 0xbfd   :  { %11445 = vmatmul.msk.bf16.gmra.mxu1 %vm1990_vm3, %v5869_v37  ;;  %v5832_v37 = vld [vmem:[#allocation3 + $0x3c7] sm:$0xff] }
 0xbfe   :  { %v7191_v35 = vadd.f32 %v15617_v23, %v7123_v50  ;;  %11501 = vmatmul.msk.bf16.gmra.mxu2 %vm1990_vm3, %v6327_v3  ;;  %v6290_v3 = vld [vmem:[#allocation3 + $0x3c8] sm:$0xff] }
 0xbff   :  { %11557 = vmatmul.msk.bf16.gmra.mxu3 %vm1990_vm3, %v6785_v30  ;;  %v7452_v30 = vmax.f32 %v7427_v18, %v7428_v43 }
 0xc00   :  { %7255 = vst [vmem:[#allocation4 + $0x108] sm:$0xff] %v7191_v35 }
 0xc01   :  { %v6557_v44 = vpop.f32.mrf.mxu2 }
 0xc02   :  { %v6666_v0 = vadd.f32 %v6557_v44, %v6208_v14  ;;  %v7015_v42 = vpop.f32.mrf.mxu3  ;;  %v6101_v2 = vpop.f32.mrf.mxu1  ;;  %v5870_v14 = vpack.c.bf16 %v5833_v46, %v5832_v37  ;;  %v6328_v44 = vpack.c.bf16 %v6291_v29, %v6290_v3  ;;  %v6293_v46 = vld [vmem:[#allocation3 + $0x3f0] sm:$0xff]  ;;  %v5834_v37 = vld [vmem:[#allocation3 + $0x3e7] sm:$0xff] }
 0xc03   :  { %v6209_v1 = vadd.f32 %v6101_v2, %v15228_v20 }
 0xc04   :  { %v7124_v19 = vadd.f32 %v7015_v42, %v6666_v0  ;;  %v6786_v0 = vpack.c.bf16 %v6749_v34, %v6748_v4  ;;  %v7468_v42 = vmax.f32 %v7452_v30, 0.0  ;;  %v6751_v4 = vld [vmem:[#allocation3 + $0x3f1] sm:$0xff] }
 0xc06   :  { %v7192_v59 = vadd.f32 %v15617_v23, %v7124_v19  ;;  %7530 = vst [vmem:[#allocation5 + $0xc8] sm:$0xff] %v7468_v42  ;;  %v15659_v20 = vpack.c.bf16 %v7468_v42, %v15626_v60  ;;  %v16889_v60 = vld [vmem:[#allocation24_spill] sm:$0xff] }
 0xc08   :  { %7256 = vst [vmem:[#allocation4 + $0x110] sm:$0xff] %v7192_v59 }
 0xc09   :  { %v6559_v12 = vpop.f32.mrf.mxu2 }
 0xc0a   :  { %v6667_v52 = vadd.f32 %v6559_v12, %v6209_v1  ;;  %v7017_v22 = vpop.f32.mrf.mxu3  ;;  %v6104_v50 = vpop.f32.mrf.mxu1  ;;  %v5835_v12 = vld [vmem:[#allocation3 + $0x3ef] sm:$0xff] }
 0xc0b   :  { %v6210_v2 = vadd.f32 %v6104_v50, %v15236_v61  ;;  %v6292_v61 = vld [vmem:[#allocation3 + $0x3e8] sm:$0xff]  ;;  %v5871_v3 = vpack.c.bf16 %v5835_v12, %v5834_v37 }
 0xc0c   :  { %v7125_v35 = vadd.f32 %v7017_v22, %v6667_v52  ;;  %v6750_v22 = vld [vmem:[#allocation3 + $0x3e9] sm:$0xff]  ;;  %v6329_v30 = vpack.c.bf16 %v6293_v46, %v6292_v61 }
 0xc0d   :  { %11446 = vmatmul.msk.bf16.gmra.mxu1 %vm1990_vm3, %v5870_v14  ;;  %v5837_v46 = vld [vmem:[#allocation3 + $0x40f] sm:$0xff]  ;;  %v5836_v37 = vld [vmem:[#allocation3 + $0x407] sm:$0xff] }
 0xc0e   :  { %v7193_v41 = vadd.f32 %v15617_v23, %v7125_v35  ;;  %11502 = vmatmul.msk.bf16.gmra.mxu2 %vm1990_vm3, %v6328_v44  ;;  %v6787_v35 = vpack.c.bf16 %v6751_v4, %v6750_v22  ;;  %v6752_v22 = vld [vmem:[#allocation3 + $0x409] sm:$0xff]  ;;  %v6753_v4 = vld [vmem:[#allocation3 + $0x411] sm:$0xff] }
 0xc0f   :  { %11558 = vmatmul.msk.bf16.gmra.mxu3 %vm1990_vm3, %v6786_v0  ;;  %v6294_v61 = vld [vmem:[#allocation3 + $0x408] sm:$0xff] }
 0xc10   :  { %7257 = vst [vmem:[#allocation4 + $0x118] sm:$0xff] %v7193_v41 }
 0xc11   :  { %v6562_v27 = vpop.f32.mrf.mxu2 }
 0xc12   :  { %v6668_v19 = vadd.f32 %v6562_v27, %v6210_v2  ;;  %v7020_v38 = vpop.f32.mrf.mxu3  ;;  %v6106_v62 = vpop.f32.mrf.mxu1 }
 0xc13   :  { %v6211_v1 = vadd.f32 %v6106_v62, %v15239_v54  ;;  %v7382_v62 = vld [vmem:[#allocation4 + $0x101] ss:$2 sm:$0xff] }
 0xc14   :  { %v7126_v59 = vadd.f32 %v7020_v38, %v6668_v19  ;;  %v7318_v38 = vld [vmem:[#allocation4 + $0x100] ss:$2 sm:$0xff] }
 0xc16   :  { %v7194_v43 = vadd.f32 %v15617_v23, %v7126_v59 }
 0xc17   :  { %v7320_v2 = vld [vmem:[#allocation4 + $0x110] ss:$2 sm:$0xff]  ;;  %v7384_v27 = vld [vmem:[#allocation4 + $0x111] ss:$2 sm:$0xff] }
 0xc18   :  { %7258 = vst [vmem:[#allocation4 + $0x120] sm:$0xff] %v7194_v43  ;;  %v7430_v43 = vmax.f32 %v7320_v2, %v7384_v27 }
 0xc19   :  { %v6564_v18 = vpop.f32.mrf.mxu2 }
 0xc1a   :  { %v6669_v29 = vadd.f32 %v6564_v18, %v6211_v1  ;;  %v7022_v52 = vpop.f32.mrf.mxu3  ;;  %v6109_v34 = vpop.f32.mrf.mxu1  ;;  %v7429_v18 = vmax.f32 %v7318_v38, %v7382_v62  ;;  %v16875_v38 = vld [vmem:[#allocation10_spill] sm:$0xff] }
 0xc1b   :  { %v6212_v54 = vadd.f32 %v6109_v34, %v15247_v58 }
 0xc1c   :  { %v7127_v50 = vadd.f32 %v7022_v52, %v6669_v29  ;;  %v6295_v29 = vld [vmem:[#allocation3 + $0x410] sm:$0xff] }
 0xc1d   :  { %11447 = vmatmul.msk.bf16.gmra.mxu1 %vm1990_vm3, %v5871_v3 }
 0xc1e   :  { %v7195_v14 = vadd.f32 %v15617_v23, %v7127_v50  ;;  %11503 = vmatmul.msk.bf16.gmra.mxu2 %vm1990_vm3, %v6329_v30  ;;  %v7453_v50 = vmax.f32 %v7429_v18, %v7430_v43  ;;  %v5872_v30 = vpack.c.bf16 %v5837_v46, %v5836_v37  ;;  %v12922_v43 = vld [vmem:[%s16688_s5 + $0x80] sm:$0xff]  ;;  %v5839_v18 = vld [vmem:[#allocation3 + $0x42f] sm:$0xff] }
 0xc1f   :  { %11559 = vmatmul.msk.bf16.gmra.mxu3 %vm1990_vm3, %v6787_v35  ;;  %v6330_v35 = vpack.c.bf16 %v6295_v29, %v6294_v61 }
 0xc20   :  { %7259 = vst [vmem:[#allocation4 + $0x128] sm:$0xff] %v7195_v14  ;;  %v6788_v14 = vpack.c.bf16 %v6753_v4, %v6752_v22  ;;  %7910 = vmatpush.bf16.msrb.mxu3 %v12922_v43  ;;  %v5838_v4 = vld [vmem:[#allocation3 + $0x427] sm:$0xff]  ;;  %v16877_v43 = vld [vmem:[#allocation12_spill] sm:$0xff] }
 0xc21   :  { %v6567_v44 = vpop.f32.mrf.mxu2  ;;  %v5873_v61 = vpack.c.bf16 %v5839_v18, %v5838_v4  ;;  %v6756_v4 = vld [vmem:[#allocation3 + $0x449] sm:$0xff] }
 0xc22   :  { %v6670_v0 = vadd.f32 %v6567_v44, %v6212_v54  ;;  %v7025_v42 = vpop.f32.mrf.mxu3  ;;  %v6111_v41 = vpop.f32.mrf.mxu1  ;;  %v15671_v54 = vmax.f32 %v7453_v50, 0.0 }
 0xc23   :  { %v6213_v1 = vadd.f32 %v6111_v41, %v15250_v9 }
 0xc24   :  { %v7128_v19 = vadd.f32 %v7025_v42, %v6670_v0  ;;  %7531 = vst [vmem:[#allocation5 + $0x110] sm:$0xff] %v15671_v54 }
 0xc26   :  { %v7196_v59 = vadd.f32 %v15617_v23, %v7128_v19 }
 0xc28   :  { %7260 = vst [vmem:[#allocation4 + $0x130] sm:$0xff] %v7196_v59  ;;  %v12906_v59 = vld [vmem:[%s16688_s5] sm:$0xff] }
 0xc29   :  { %v6569_v12 = vpop.f32.mrf.mxu2  ;;  %7772 = vmatpush.bf16.msrb.mxu2 %v12906_v59 }
 0xc2a   :  { %v6671_v58 = vadd.f32 %v6569_v12, %v6213_v1  ;;  %v7027_v52 = vpop.f32.mrf.mxu3  ;;  %v6114_v34 = vpop.f32.mrf.mxu1  ;;  %v6297_v12 = vld [vmem:[#allocation3 + $0x430] sm:$0xff] }
 0xc2b   :  { %v6214_v44 = vadd.f32 %v6114_v34, %v15258_v57  ;;  %v12914_v57 = vld [vmem:[%s16688_s5 + $0x40] sm:$0xff]  ;;  %v6296_v34 = vld [vmem:[#allocation3 + $0x428] sm:$0xff] }
 0xc2c   :  { %v7129_v3 = vadd.f32 %v7027_v52, %v6671_v58  ;;  %v6754_v58 = vld [vmem:[#allocation3 + $0x429] sm:$0xff]  ;;  %v6755_v52 = vld [vmem:[#allocation3 + $0x431] sm:$0xff]  ;;  %7675 = vmatpush.bf16.msrb.mxu1 %v12914_v57  ;;  %v6331_v50 = vpack.c.bf16 %v6297_v12, %v6296_v34 }
 0xc2d   :  { %11448 = vmatmul.msk.bf16.gmra.mxu1 %vm1990_vm3, %v5872_v30  ;;  %v6757_v34 = vld [vmem:[#allocation3 + $0x451] sm:$0xff] }
 0xc2e   :  { %v7197_v9 = vadd.f32 %v15617_v23, %v7129_v3  ;;  %11504 = vmatmul.msk.bf16.gmra.mxu2 %vm1990_vm3, %v6330_v35  ;;  %v6789_v3 = vpack.c.bf16 %v6755_v52, %v6754_v58  ;;  %v16876_v35 = vld [vmem:[#allocation11_spill] sm:$0xff] }
 0xc2f   :  { %11560 = vmatmul.msk.bf16.gmra.mxu3 %vm1990_vm3, %v6788_v14  ;;  %v6299_v58 = vld [vmem:[#allocation3 + $0x450] sm:$0xff] }
 0xc30   :  { %7261 = vst [vmem:[#allocation4 + $0x138] sm:$0xff] %v7197_v9 }
 0xc31   :  { %v6572_v0 = vpop.f32.mrf.mxu2 }
 0xc32   :  { %v6672_v42 = vadd.f32 %v6572_v0, %v6214_v44  ;;  %v7030_v41 = vpop.f32.mrf.mxu3  ;;  %v6116_v2 = vpop.f32.mrf.mxu1 }
 0xc33   :  { %v6215_v62 = vadd.f32 %v6116_v2, %v16875_v38  ;;  %v7386_v38 = vld [vmem:[#allocation4 + $0x121] ss:$2 sm:$0xff] }
 0xc34   :  { %v7130_v27 = vadd.f32 %v7030_v41, %v6672_v42 }
 0xc36   :  { %v7198_v19 = vadd.f32 %v15617_v23, %v7130_v27 }
 0xc37   :  { %v7324_v41 = vld [vmem:[#allocation4 + $0x130] ss:$2 sm:$0xff]  ;;  %v7388_v2 = vld [vmem:[#allocation4 + $0x131] ss:$2 sm:$0xff] }
 0xc38   :  { %7262 = vst [vmem:[#allocation4 + $0x140] sm:$0xff] %v7198_v19  ;;  %v7322_v19 = vld [vmem:[#allocation4 + $0x120] ss:$2 sm:$0xff]  ;;  %v7432_v59 = vmax.f32 %v7324_v41, %v7388_v2 }
 0xc39   :  { %v6574_v1 = vpop.f32.mrf.mxu2  ;;  %v7431_v18 = vmax.f32 %v7322_v19, %v7386_v38 }
 0xc3a   :  { %v6673_v46 = vadd.f32 %v6574_v1, %v6215_v62  ;;  %v7032_v29 = vpop.f32.mrf.mxu3  ;;  %v6119_v22 = vpop.f32.mrf.mxu1  ;;  %v5840_v1 = vld [vmem:[#allocation3 + $0x447] sm:$0xff] }
 0xc3b   :  { %v6216_v14 = vadd.f32 %v6119_v22, %v16876_v35  ;;  %v6790_v35 = vpack.c.bf16 %v6757_v34, %v6756_v4  ;;  %v6758_v34 = vld [vmem:[#allocation3 + $0x469] sm:$0xff] }
 0xc3c   :  { %v7131_v37 = vadd.f32 %v7032_v29, %v6673_v46  ;;  %v5841_v46 = vld [vmem:[#allocation3 + $0x44f] sm:$0xff] }
 0xc3d   :  { %11449 = vmatmul.msk.bf16.gmra.mxu1 %vm1990_vm3, %v5873_v61  ;;  %v6298_v29 = vld [vmem:[#allocation3 + $0x448] sm:$0xff]  ;;  %v7454_v61 = vmax.f32 %v7431_v18, %v7432_v59  ;;  %v15709_v59 = vld [vmem:[#allocation5 + $0x111] sm:$0xff] }
 0xc3e   :  { %v7199_v30 = vadd.f32 %v15617_v23, %v7131_v37  ;;  %11505 = vmatmul.msk.bf16.gmra.mxu2 %vm1990_vm3, %v6331_v50 }
 0xc3f   :  { %11561 = vmatmul.msk.bf16.gmra.mxu3 %vm1990_vm3, %v6789_v3  ;;  %v5874_v3 = vpack.c.bf16 %v5841_v46, %v5840_v1  ;;  %v6300_v46 = vld [vmem:[#allocation3 + $0x468] sm:$0xff] }
 0xc40   :  { %7263 = vst [vmem:[#allocation4 + $0x148] sm:$0xff] %v7199_v30  ;;  %v6332_v30 = vpack.c.bf16 %v6299_v58, %v6298_v29  ;;  %v6301_v29 = vld [vmem:[#allocation3 + $0x470] sm:$0xff] }
 0xc41   :  { %v6577_v9 = vpop.f32.mrf.mxu2 }
 0xc42   :  { %v6674_v44 = vadd.f32 %v6577_v9, %v6216_v14  ;;  %v7035_v0 = vpop.f32.mrf.mxu3  ;;  %v6121_v42 = vpop.f32.mrf.mxu1  ;;  %v15697_v14 = vmax.f32 %v7454_v61, 0.0 }
 0xc43   :  { %v6217_v57 = vadd.f32 %v6121_v42, %v16877_v43 }
 0xc44   :  { %v7132_v27 = vadd.f32 %v7035_v0, %v6674_v44  ;;  %7532 = vst [vmem:[#allocation5 + $0x128] sm:$0xff] %v15697_v14  ;;  %v16878_v0 = vld [vmem:[#allocation13_spill] sm:$0xff] }
 0xc46   :  { %v7200_v62 = vadd.f32 %v15617_v23, %v7132_v27 }
 0xc48   :  { %7264 = vst [vmem:[#allocation4 + $0x150] sm:$0xff] %v7200_v62  ;;  %v15707_v62 = vld [vmem:[#allocation5 + $0x10f] sm:$0xff] }
 0xc49   :  { %v6579_v12 = vpop.f32.mrf.mxu2 }
 0xc4a   :  { %v6675_v52 = vadd.f32 %v6579_v12, %v6217_v57  ;;  %v7037_v22 = vpop.f32.mrf.mxu3  ;;  %v6124_v37 = vpop.f32.mrf.mxu1  ;;  %v5842_v57 = vld [vmem:[#allocation3 + $0x467] sm:$0xff]  ;;  %v5843_v12 = vld [vmem:[#allocation3 + $0x46f] sm:$0xff] }
 0xc4b   :  { %v6218_v42 = vadd.f32 %v6124_v37, %v16878_v0  ;;  %v15712_v1 = vld [vmem:[#allocation5 + $0x127] sm:$0xff]  ;;  %v6759_v37 = vld [vmem:[#allocation3 + $0x471] sm:$0xff] }
 0xc4c   :  { %v7133_v50 = vadd.f32 %v7037_v22, %v6675_v52  ;;  %v15714_v18 = vld [vmem:[#allocation5 + $0x129] sm:$0xff]  ;;  %v6791_v0 = vpack.c.bf16 %v6759_v37, %v6758_v34  ;;  %v13121_v52 = vld [vmem:[#allocation5 + $0x1f] sm:$0xff] }
 0xc4d   :  { %11450 = vmatmul.msk.bf16.gmra.mxu1 %vm1990_vm3, %v5874_v3  ;;  %v16879_v22 = vld [vmem:[#allocation14_spill] sm:$0xff] }
 0xc4e   :  { %v7201_v9 = vadd.f32 %v15617_v23, %v7133_v50  ;;  %11506 = vmatmul.msk.bf16.gmra.mxu2 %vm1990_vm3, %v6332_v30  ;;  %v5875_v30 = vpack.c.bf16 %v5843_v12, %v5842_v57 }
 0xc4f   :  { %11562 = vmatmul.msk.bf16.gmra.mxu3 %vm1990_vm3, %v6790_v35  ;;  %v6333_v35 = vpack.c.bf16 %v6301_v29, %v6300_v46  ;;  %v7326_v29 = vld [vmem:[#allocation4 + $0x140] ss:$2 sm:$0xff] }
 0xc50   :  { %7265 = vst [vmem:[#allocation4 + $0x158] sm:$0xff] %v7201_v9 }
 0xc51   :  { %v6582_v41 = vpop.f32.mrf.mxu2 }
 0xc52   :  { %v6676_v2 = vadd.f32 %v6582_v41, %v6218_v42  ;;  %v7040_v27 = vpop.f32.mrf.mxu3  ;;  %v6126_v19 = vpop.f32.mrf.mxu1 }
 0xc53   :  { %v6219_v4 = vadd.f32 %v6126_v19, %v16879_v22 }
 0xc54   :  { %v7134_v38 = vadd.f32 %v7040_v27, %v6676_v2  ;;  %v16880_v2 = vld [vmem:[#allocation15_spill] sm:$0xff] }
 0xc56   :  { %v7202_v43 = vadd.f32 %v15617_v23, %v7134_v38 }
 0xc57   :  { %v7328_v57 = vld [vmem:[#allocation4 + $0x150] ss:$2 sm:$0xff]  ;;  %v7392_v12 = vld [vmem:[#allocation4 + $0x151] ss:$2 sm:$0xff] }
 0xc58   :  { %7266 = vst [vmem:[#allocation4 + $0x160] sm:$0xff] %v7202_v43  ;;  %v7434_v37 = vmax.f32 %v7328_v57, %v7392_v12  ;;  %v13122_v57 = vld [vmem:[#allocation5 + $0x21] sm:$0xff] }
 0xc59   :  { %v6584_v61 = vpop.f32.mrf.mxu2 }
 0xc5a   :  { %v6677_v50 = vadd.f32 %v6584_v61, %v6219_v4  ;;  %v7042_v3 = vpop.f32.mrf.mxu3  ;;  %v6129_v9 = vpop.f32.mrf.mxu1  ;;  %v7390_v4 = vld [vmem:[#allocation4 + $0x141] ss:$2 sm:$0xff]  ;;  %v16881_v61 = vld [vmem:[#allocation16_spill] sm:$0xff] }
 0xc5b   :  { %v6220_v27 = vadd.f32 %v6129_v9, %v16880_v2 }
 0xc5c   :  { %v7135_v42 = vadd.f32 %v7042_v3, %v6677_v50  ;;  %v7433_v3 = vmax.f32 %v7326_v29, %v7390_v4  ;;  %v16882_v4 = vld [vmem:[#allocation17_spill] sm:$0xff] }
 0xc5d   :  { %11451 = vmatmul.msk.bf16.gmra.mxu1 %vm1990_vm3, %v5875_v30 }
 0xc5e   :  { %v7203_v41 = vadd.f32 %v15617_v23, %v7135_v42  ;;  %11507 = vmatmul.msk.bf16.gmra.mxu2 %vm1990_vm3, %v6333_v35  ;;  %v7539_v35 = vld [vmem:[#allocation5 + $0x7] sm:$0xff]  ;;  %v7455_v2 = vmax.f32 %v7433_v3, %v7434_v37 }
 0xc5f   :  { %11563 = vmatmul.msk.bf16.gmra.mxu3 %vm1990_vm3, %v6791_v0  ;;  %v7814_v42 = vld [vmem:[#allocation5 + $0x9] sm:$0xff] }
 0xc60   :  { %7267 = vst [vmem:[#allocation4 + $0x168] sm:$0xff] %v7203_v41  ;;  %v7830_v12 = vpack.c.bf16 %v13122_v57, %v7814_v42  ;;  %v12945_v42 = vld [vmem:[%s16688_s5 + $0x138] sm:$0xff] }
 0xc61   :  { %v6587_v19 = vpop.f32.mrf.mxu2  ;;  %8211 = vmatpush.bf16.msra.mxu2 %v12945_v42 }
 0xc62   :  { %v6678_v38 = vadd.f32 %v6587_v19, %v6220_v27  ;;  %v7045_v43 = vpop.f32.mrf.mxu3  ;;  %v6131_v22 = vpop.f32.mrf.mxu1  ;;  %v15728_v19 = vld [vmem:[#allocation5] sm:$0xff] }
 0xc63   :  { %v6221_v50 = vadd.f32 %v6131_v22, %v16881_v61 }
 0xc64   :  { %v7136_v46 = vadd.f32 %v7045_v43, %v6678_v38  ;;  %v13120_v38 = vld [vmem:[#allocation5 + $0x20] sm:$0xff] }
 0xc65   :  { %v7595_v43 = vpack.c.bf16 %v13120_v38, %v15728_v19 }
 0xc66   :  { %v7204_v34 = vadd.f32 %v15617_v23, %v7136_v46  ;;  %v7555_v46 = vpack.c.bf16 %v13121_v52, %v7539_v35 }
 0xc68   :  { %7268 = vst [vmem:[#allocation4 + $0x170] sm:$0xff] %v7204_v34  ;;  %v15731_v34 = vmax.f32 %v7455_v2, 0.0  ;;  %v12953_v2 = vld [vmem:[%s16688_s5 + $0x178] sm:$0xff] }
 0xc69   :  { %v6589_v30 = vpop.f32.mrf.mxu2  ;;  %8365 = vmatpush.bf16.msra.mxu3 %v12953_v2 }
 0xc6a   :  { %v6679_v0 = vadd.f32 %v6589_v30, %v6221_v50  ;;  %v7047_v9 = vpop.f32.mrf.mxu3  ;;  %v6134_v41 = vpop.f32.mrf.mxu1  ;;  %7533 = vst [vmem:[#allocation5 + $0x140] sm:$0xff] %v15731_v34  ;;  %v7600_v29 = vpack.c.bf16 %v15731_v34, %v15697_v14 }
 0xc6b   :  { %v6222_v37 = vadd.f32 %v6134_v41, %v16882_v4  ;;  %v12937_v41 = vld [vmem:[%s16688_s5 + $0xf8] sm:$0xff] }
 0xc6c   :  { %v7137_v27 = vadd.f32 %v7047_v9, %v6679_v0  ;;  %v16883_v0 = vld [vmem:[#allocation18_spill] sm:$0xff]  ;;  %8057 = vmatpush.bf16.msra.mxu1 %v12937_v41  ;;  %v13124_v4 = vld [vmem:[#allocation5 + $0x39] sm:$0xff] }
 0xc6d   :  { %7676 = vmatmul.bf16.vlgmr.msrb.gmra.mxu1 %v7595_v43  ;;  %v7330_v41 = vld [vmem:[#allocation4 + $0x160] ss:$2 sm:$0xff] }
 0xc6e   :  { %v7205_v22 = vadd.f32 %v15617_v23, %v7137_v27  ;;  %7773 = vmatmul.bf16.vlgmr.msrb.gmra.mxu2 %v7555_v46 }
 0xc6f   :  { %7911 = vmatmul.bf16.vlgmr.msrb.gmra.mxu3 %v7830_v12  ;;  %v13123_v12 = vld [vmem:[#allocation5 + $0x37] sm:$0xff] }
 0xc70   :  { %7269 = vst [vmem:[#allocation4 + $0x178] sm:$0xff] %v7205_v22  ;;  %v7556_v22 = vpack.c.bf16 %v15538_v8, %v13123_v12  ;;  %v12944_v12 = vld [vmem:[%s16688_s5 + $0x130] sm:$0xff] }
 0xc71   :  { %v6592_v61 = vpop.f32.mrf.mxu2  ;;  %8212 = vmatpush.bf16.msra.mxu2 %v12944_v12 }
 0xc72   :  { %v6680_v50 = vadd.f32 %v6592_v61, %v6222_v37  ;;  %v7050_v52 = vpop.f32.mrf.mxu3  ;;  %v6136_v3 = vpop.f32.mrf.mxu1  ;;  %v7831_v37 = vpack.c.bf16 %v15541_v40, %v13124_v4 }
 0xc73   :  { %v6223_v9 = vadd.f32 %v6136_v3, %v16883_v0 }
 0xc74   :  { %v7138_v30 = vadd.f32 %v7050_v52, %v6680_v50  ;;  %v16884_v50 = vld [vmem:[#allocation19_spill] sm:$0xff] }
 0xc76   :  { %v7206_v35 = vadd.f32 %v15617_v23, %v7138_v30 }
 0xc77   :  { %v7396_v42 = vld [vmem:[#allocation4 + $0x171] ss:$2 sm:$0xff] }
 0xc78   :  { %7270 = vst [vmem:[#allocation4 + $0x180] sm:$0xff] %v7206_v35 }
 0xc79   :  { %v6594_v27 = vpop.f32.mrf.mxu2 }
 0xc7a   :  { %v6681_v38 = vadd.f32 %v6594_v27, %v6223_v9  ;;  %v7052_v43 = vpop.f32.mrf.mxu3  ;;  %v6139_v46 = vpop.f32.mrf.mxu1  ;;  %v7332_v9 = vld [vmem:[#allocation4 + $0x170] ss:$2 sm:$0xff]  ;;  %v7394_v27 = vld [vmem:[#allocation4 + $0x161] ss:$2 sm:$0xff] }
 0xc7b   :  { %v6224_v52 = vadd.f32 %v6139_v46, %v16884_v50  ;;  %v12952_v46 = vld [vmem:[%s16688_s5 + $0x170] sm:$0xff]  ;;  %v7435_v4 = vmax.f32 %v7330_v41, %v7394_v27  ;;  %v16886_v27 = vld [vmem:[#allocation21_spill] sm:$0xff] }
 0xc7c   :  { %v7139_v57 = vadd.f32 %v7052_v43, %v6681_v38  ;;  %v7436_v43 = vmax.f32 %v7332_v9, %v7396_v42  ;;  %8366 = vmatpush.bf16.msra.mxu3 %v12952_v46  ;;  %v13126_v9 = vld [vmem:[#allocation5 + $0x69] sm:$0xff] }
 0xc7d   :  { %7681 = vmatmul.bf16.gmra.mxu1 %v7596_v7  ;;  %v7832_v42 = vpack.c.bf16 %v15603_v56, %v13126_v9  ;;  %v12951_v9 = vld [vmem:[%s16688_s5 + $0x168] sm:$0xff] }
 0xc7e   :  { %v7207_v61 = vadd.f32 %v15617_v23, %v7139_v57  ;;  %7778 = vmatmul.bf16.gmra.mxu2 %v7556_v22  ;;  %v16885_v57 = vld [vmem:[#allocation20_spill] sm:$0xff] }
 0xc7f   :  { %7916 = vmatmul.bf16.gmra.mxu3 %v7831_v37  ;;  %v12936_v22 = vld [vmem:[%s16688_s5 + $0xf0] sm:$0xff] }
 0xc80   :  { %7271 = vst [vmem:[#allocation4 + $0x188] sm:$0xff] %v7207_v61  ;;  %8058 = vmatpush.bf16.msra.mxu1 %v12936_v22  ;;  %8367 = vmatpush.bf16.msra.mxu3 %v12951_v9 }
 0xc81   :  { %v6597_v3 = vpop.f32.mrf.mxu2 }
 0xc82   :  { %v6682_v30 = vadd.f32 %v6597_v3, %v6224_v52  ;;  %v7055_v35 = vpop.f32.mrf.mxu3  ;;  %v6141_v0 = vpop.f32.mrf.mxu1  ;;  %v7456_v3 = vmax.f32 %v7435_v4, %v7436_v43  ;;  %v15779_v4 = vld [vmem:[#allocation5 + $0x13f] sm:$0xff] }
 0xc83   :  { %v6225_v7 = vadd.f32 %v6141_v0, %v16885_v57 }
 0xc84   :  { %v7140_v2 = vadd.f32 %v7055_v35, %v6682_v30  ;;  %v13125_v35 = vld [vmem:[#allocation5 + $0x67] sm:$0xff] }
 0xc85   :  { %v7557_v0 = vpack.c.bf16 %v15600_v63, %v13125_v35  ;;  %v16896_v63 = vpack.c.bf16 %v15590_v13, %v15562_v32 }
 0xc86   :  { %v7208_v38 = vadd.f32 %v15617_v23, %v7140_v2  ;;  %v15769_v2 = vmax.f32 %v7456_v3, 0.0 }
 0xc87   :  { %v7334_v3 = vld [vmem:[#allocation4 + $0x180] ss:$2 sm:$0xff]  ;;  %v7398_v44 = vld [vmem:[#allocation4 + $0x181] ss:$2 sm:$0xff] }
 0xc88   :  { %7272 = vst [vmem:[#allocation4 + $0x190] sm:$0xff] %v7208_v38 }
 0xc89   :  { %v6599_v37 = vpop.f32.mrf.mxu2  ;;  %7534 = vst [vmem:[#allocation5 + $0x158] sm:$0xff] %v15769_v2 }
 0xc8a   :  { %v6683_v61 = vadd.f32 %v6599_v37, %v6225_v7  ;;  %v7057_v50 = vpop.f32.mrf.mxu3  ;;  %v6144_v52 = vpop.f32.mrf.mxu1 }
 0xc8b   :  { %v6226_v43 = vadd.f32 %v6144_v52, %v16886_v27  ;;  %v15802_v27 = vld [vmem:[#allocation5 + $0xaf] sm:$0xff] }
 0xc8c   :  { %v7141_v30 = vadd.f32 %v7057_v50, %v6683_v61 }
 0xc8d   :  { %7686 = vmatmul.bf16.gmra.mxu1 %v7597_v21  ;;  %v15782_v21 = vld [vmem:[#allocation5 + $0x141] sm:$0xff] }
 0xc8e   :  { %v7209_v38 = vadd.f32 %v15617_v23, %v7141_v30  ;;  %7783 = vmatmul.bf16.gmra.mxu2 %v7557_v0  ;;  %v16887_v30 = vld [vmem:[#allocation22_spill] sm:$0xff] }
 0xc8f   :  { %7921 = vmatmul.bf16.gmra.mxu3 %v7832_v42  ;;  %v12943_v0 = vld [vmem:[%s16688_s5 + $0x128] sm:$0xff] }
 0xc90   :  { %7273 = vst [vmem:[#allocation4 + $0x198] sm:$0xff] %v7209_v38  ;;  %v15784_v61 = vld [vmem:[#allocation5 + $0x157] sm:$0xff]  ;;  %v12935_v42 = vld [vmem:[%s16688_s5 + $0xe8] sm:$0xff]  ;;  %8213 = vmatpush.bf16.msra.mxu2 %v12943_v0 }
 0xc91   :  { %v6602_v57 = vpop.f32.mrf.mxu2  ;;  %v15786_v50 = vld [vmem:[#allocation5 + $0x159] sm:$0xff]  ;;  %8059 = vmatpush.bf16.msra.mxu1 %v12935_v42 }
 0xc92   :  { %v6684_v7 = vadd.f32 %v6602_v57, %v6226_v43  ;;  %v7060_v12 = vpop.f32.mrf.mxu3  ;;  %v6146_v46 = vpop.f32.mrf.mxu1 }
 0xc93   :  { %v6227_v35 = vadd.f32 %v6146_v46, %v16887_v30 }
 0xc94   :  { %v7142_v22 = vadd.f32 %v7060_v12, %v6684_v7  ;;  %v15804_v7 = vld [vmem:[#allocation5 + $0xb1] sm:$0xff] }
 0xc96   :  { %v7210_v37 = vadd.f32 %v15617_v23, %v7142_v22  ;;  %v7558_v22 = vpack.c.bf16 %v15802_v27, %v15605_v33  ;;  %v16897_v33 = vpack.c.bf16 %v15607_v36, %v15603_v56 }
 0xc97   :  { %v7400_v52 = vld [vmem:[#allocation4 + $0x191] ss:$2 sm:$0xff] }
 0xc98   :  { %7274 = vst [vmem:[#allocation4 + $0x1a0] sm:$0xff] %v7210_v37  ;;  %v7833_v37 = vpack.c.bf16 %v15804_v7, %v15607_v36  ;;  %v12966_v36 = vld [vmem:[%s16688_s5 + $0x1e0] sm:$0xff] }
 0xc99   :  { %v6604_v38 = vpop.f32.mrf.mxu2 }
 0xc9a   :  { %v6685_v43 = vadd.f32 %v6604_v38, %v6227_v35  ;;  %v7062_v57 = vpop.f32.mrf.mxu3  ;;  %v6149_v12 = vpop.f32.mrf.mxu1  ;;  %v16888_v35 = vld [vmem:[#allocation23_spill] sm:$0xff] }
 0xc9b   :  { %v6228_v0 = vadd.f32 %v6149_v12, %v16888_v35  ;;  %v12942_v12 = vld [vmem:[%s16688_s5 + $0x120] sm:$0xff] }
 0xc9c   :  { %v7143_v46 = vadd.f32 %v7062_v57, %v6685_v43  ;;  %v7336_v57 = vld [vmem:[#allocation4 + $0x190] ss:$2 sm:$0xff]  ;;  %8214 = vmatpush.bf16.msra.mxu2 %v12942_v12 }
 0xc9d   :  { %7691 = vmatmul.bf16.gmra.mxu1 %v7598_v48  ;;  %v7438_v58 = vmax.f32 %v7336_v57, %v7400_v52 }
 0xc9e   :  { %v7211_v30 = vadd.f32 %v15617_v23, %v7143_v46  ;;  %7788 = vmatmul.bf16.gmra.mxu2 %v7558_v22  ;;  %v13075_v22 = vld [vmem:[%s16690_s7 + $0x308] sm:$0xff] }
 0xc9f   :  { %7926 = vmatmul.bf16.gmra.mxu3 %v7833_v37  ;;  %v12950_v37 = vld [vmem:[%s16688_s5 + $0x160] sm:$0xff]  ;;  %10139 = vmatpush.bf16.msrb.mxu0 %v13075_v22 }
 0xca0   :  { %7275 = vst [vmem:[#allocation4 + $0x1a8] sm:$0xff] %v7211_v30  ;;  %v7437_v30 = vmax.f32 %v7334_v3, %v7398_v44  ;;  %8368 = vmatpush.bf16.msra.mxu3 %v12950_v37  ;;  %v16890_v22 = vld [vmem:[#allocation25_spill] sm:$0xff] }
 0xca1   :  { %v6607_v9 = vpop.f32.mrf.mxu2 }
 0xca2   :  { %v6686_v42 = vadd.f32 %v6607_v9, %v6228_v0  ;;  %v7065_v38 = vpop.f32.mrf.mxu3  ;;  %v6151_v43 = vpop.f32.mrf.mxu1  ;;  %v7547_v0 = vld [vmem:[#allocation5 + $0xf7] sm:$0xff] }
 0xca3   :  { %v6229_v48 = vadd.f32 %v6151_v43, %v16889_v60  ;;  %v7457_v43 = vmax.f32 %v7437_v30, %v7438_v58  ;;  %v7559_v44 = vpack.c.bf16 %v15707_v62, %v7547_v0 }
 0xca4   :  { %v7144_v41 = vadd.f32 %v7065_v38, %v6686_v42  ;;  %v7822_v42 = vld [vmem:[#allocation5 + $0xf9] sm:$0xff] }
 0xca5   :  { %v7834_v3 = vpack.c.bf16 %v15709_v59, %v7822_v42  ;;  %v15833_v60 = vmax.f32 %v7457_v43, 0.0  ;;  %v12949_v42 = vld [vmem:[%s16688_s5 + $0x158] sm:$0xff] }
 0xca6   :  { %v7212_v46 = vadd.f32 %v15617_v23, %v7144_v41  ;;  %v12934_v41 = vld [vmem:[%s16688_s5 + $0xe0] sm:$0xff]  ;;  %8369 = vmatpush.bf16.msra.mxu3 %v12949_v42 }
 0xca7   :  { %8060 = vmatpush.bf16.msra.mxu1 %v12934_v41  ;;  %7535 = vst [vmem:[#allocation5 + $0x170] sm:$0xff] %v15833_v60  ;;  %v16891_v41 = vld [vmem:[#allocation26_spill] sm:$0xff] }
 0xca8   :  { %7276 = vst [vmem:[#allocation4 + $0x1b0] sm:$0xff] %v7212_v46  ;;  %v7599_v46 = vpack.c.bf16 %v15671_v54, %v15728_v19 }
 0xca9   :  { %v6609_v35 = vpop.f32.mrf.mxu2 }
 0xcaa   :  { %v6687_v52 = vadd.f32 %v6609_v35, %v6229_v48  ;;  %v7067_v9 = vpop.f32.mrf.mxu3  ;;  %v6154_v38 = vpop.f32.mrf.mxu1 }
 0xcab   :  { %v6230_v58 = vadd.f32 %v6154_v38, %v16890_v22  ;;  %v12933_v38 = vld [vmem:[%s16688_s5 + $0xd8] sm:$0xff]  ;;  %v7835_v22 = vpack.c.bf16 %v15782_v21, %v15714_v18 }
 0xcac   :  { %v7145_v57 = vadd.f32 %v7067_v9, %v6687_v52  ;;  %v12941_v9 = vld [vmem:[%s16688_s5 + $0x118] sm:$0xff]  ;;  %8061 = vmatpush.bf16.msra.mxu1 %v12933_v38 }
 0xcad   :  { %7696 = vmatmul.bf16.gmra.mxu1 %v7599_v46  ;;  %8215 = vmatpush.bf16.msra.mxu2 %v12941_v9  ;;  %v7402_v9 = vld [vmem:[#allocation4 + $0x1a1] ss:$2 sm:$0xff] }
 0xcae   :  { %v7213_v48 = vadd.f32 %v15617_v23, %v7145_v57  ;;  %7793 = vmatmul.bf16.gmra.mxu2 %v7559_v44 }
 0xcaf   :  { %7931 = vmatmul.bf16.gmra.mxu3 %v7834_v3 }
 0xcb0   :  { %7277 = vst [vmem:[#allocation4 + $0x1b8] sm:$0xff] %v7213_v48  ;;  %v7560_v48 = vpack.c.bf16 %v15779_v4, %v15712_v1 }
 0xcb1   :  { %v6612_v12 = vpop.f32.mrf.mxu2 }
 0xcb2   :  { %v6688_v37 = vadd.f32 %v6612_v12, %v6230_v58  ;;  %v7070_v30 = vpop.f32.mrf.mxu3  ;;  %v6156_v19 = vpop.f32.mrf.mxu1  ;;  %v16892_v12 = vld [vmem:[#allocation27_spill] sm:$0xff] }
 0xcb3   :  { %v6231_v52 = vadd.f32 %v6156_v19, %v16891_v41 }
 0xcb4   :  { %v7146_v35 = vadd.f32 %v7070_v30, %v6688_v37 }
 0xcb6   :  { %v7214_v0 = vadd.f32 %v15617_v23, %v7146_v35 }
 0xcb7   :  { %v7340_v30 = vld [vmem:[#allocation4 + $0x1b0] ss:$2 sm:$0xff]  ;;  %v7404_v19 = vld [vmem:[#allocation4 + $0x1b1] ss:$2 sm:$0xff] }
 0xcb8   :  { %7278 = vst [vmem:[#allocation4 + $0x1c0] sm:$0xff] %v7214_v0  ;;  %v7440_v38 = vmax.f32 %v7340_v30, %v7404_v19  ;;  %v15871_v19 = vld [vmem:[#allocation5 + $0x171] sm:$0xff] }
 0xcb9   :  { %v6614_v43 = vpop.f32.mrf.mxu2 }
 0xcba   :  { %v6689_v57 = vadd.f32 %v6614_v43, %v6231_v52  ;;  %v7072_v46 = vpop.f32.mrf.mxu3  ;;  %v6159_v44 = vpop.f32.mrf.mxu1  ;;  %v7338_v52 = vld [vmem:[#allocation4 + $0x1a0] ss:$2 sm:$0xff] }
 0xcbb   :  { %v6232_v37 = vadd.f32 %v6159_v44, %v16892_v12  ;;  %v12940_v44 = vld [vmem:[%s16688_s5 + $0x110] sm:$0xff] }
 0xcbc   :  { %v7147_v3 = vadd.f32 %v7072_v46, %v6689_v57  ;;  %v7439_v57 = vmax.f32 %v7338_v52, %v7402_v9  ;;  %8216 = vmatpush.bf16.msra.mxu2 %v12940_v44  ;;  %v7601_v52 = vpack.c.bf16 %v15833_v60, %v15769_v2 }
 0xcbd   :  { %7701 = vmatmul.bf16.gmra.mxu1 %v7600_v29  ;;  %v16893_v29 = vld [vmem:[#allocation28_spill] sm:$0xff] }
 0xcbe   :  { %v7215_v58 = vadd.f32 %v15617_v23, %v7147_v3  ;;  %7798 = vmatmul.bf16.gmra.mxu2 %v7560_v48  ;;  %v12948_v48 = vld [vmem:[%s16688_s5 + $0x150] sm:$0xff] }
 0xcbf   :  { %7936 = vmatmul.bf16.gmra.mxu3 %v7835_v22  ;;  %v12932_v22 = vld [vmem:[%s16688_s5 + $0xd0] sm:$0xff] }
 0xcc0   :  { %7279 = vst [vmem:[#allocation4 + $0x1c8] sm:$0xff] %v7215_v58  ;;  %v7458_v58 = vmax.f32 %v7439_v57, %v7440_v38  ;;  %8370 = vmatpush.bf16.msra.mxu3 %v12948_v48  ;;  %8062 = vmatpush.bf16.msra.mxu1 %v12932_v22  ;;  %v15885_v38 = vld [vmem:[%s16687_s4] ss:$0 sm:$0xff] }
 0xcc1   :  { %v6617_v35 = vpop.f32.mrf.mxu2 }
 0xcc2   :  { %v6690_v0 = vadd.f32 %v6617_v35, %v6232_v37  ;;  %v7075_v41 = vpop.f32.mrf.mxu3  ;;  %v6161_v42 = vpop.f32.mrf.mxu1  ;;  %v15869_v37 = vld [vmem:[#allocation5 + $0x16f] sm:$0xff]  ;;  %v15873_v35 = vmax.f32 %v7458_v58, 0.0 }
 0xcc3   :  { %v6233_v3 = vadd.f32 %v6161_v42, %v16893_v29  ;;  %v7561_v9 = vpack.c.bf16 %v15869_v37, %v15784_v61  ;;  %v7836_v42 = vpack.c.bf16 %v15871_v19, %v15786_v50 }
 0xcc4   :  { %v7148_v43 = vadd.f32 %v7075_v41, %v6690_v0  ;;  %7536 = vst [vmem:[#allocation5 + $0x188] sm:$0xff] %v15873_v35 }
 0xcc6   :  { %v7216_v46 = vadd.f32 %v15617_v23, %v7148_v43 }
 0xcc8   :  { %7280 = vst [vmem:[#allocation4 + $0x1d0] sm:$0xff] %v7216_v46 }
 0xcc9   :  { %v6619_v12 = vpop.f32.mrf.mxu2 }
 0xcca   :  { %v6691_v23 = vadd.f32 %v6619_v12, %v6233_v3  ;;  %v7077_v30 = vpop.f32.mrf.mxu3  ;;  %v6164_v0 = vpop.f32.mrf.mxu1 }
 0xccb   :  { %v6234_v46 = vadd.f32 %v6164_v0, %v15389_v55  ;;  %v15891_v58 = vld [vmem:[#allocation5 + $0x187] sm:$0xff] }
 0xccc   :  { %v7149_v41 = vadd.f32 %v7077_v30, %v6691_v23  ;;  %v15893_v12 = vld [vmem:[#allocation5 + $0x189] sm:$0xff] }
 0xccd   :  { %7706 = vmatmul.bf16.gmra.mxu1 %v7601_v52  ;;  %v7342_v23 = vld [vmem:[#allocation4 + $0x1c0] ss:$2 sm:$0xff]  ;;  %v7406_v30 = vld [vmem:[#allocation4 + $0x1c1] ss:$2 sm:$0xff] }
 0xcce   :  { %v7217_v43 = vadd.f32 %v15885_v38, %v7149_v41  ;;  %7803 = vmatmul.bf16.gmra.mxu2 %v7561_v9  ;;  %v7441_v0 = vmax.f32 %v7342_v23, %v7406_v30 }
 0xccf   :  { %7941 = vmatmul.bf16.gmra.mxu3 %v7836_v42 }
 0xcd0   :  { %7281 = vst [vmem:[#allocation4 + $0x1d8] sm:$0xff] %v7217_v43 }
 0xcd1   :  { %v6622_v29 = vpop.f32.mrf.mxu2 }
 0xcd2   :  { %v6692_v3 = vadd.f32 %v6622_v29, %v6234_v46  ;;  %v7080_v44 = vpop.f32.mrf.mxu3  ;;  %v6166_v48 = vpop.f32.mrf.mxu1  ;;  %v12931_v29 = vld [vmem:[%s16688_s5 + $0xc8] sm:$0xff] }
 0xcd3   :  { %v6235_v46 = vadd.f32 %v6166_v48, %v15392_v6  ;;  %8063 = vmatpush.bf16.msra.mxu1 %v12931_v29  ;;  %v12930_v6 = vld [vmem:[%s16688_s5 + $0xc0] sm:$0xff] }
 0xcd4   :  { %v7150_v22 = vadd.f32 %v7080_v44, %v6692_v3  ;;  %v12939_v3 = vld [vmem:[%s16688_s5 + $0x108] sm:$0xff]  ;;  %v12938_v48 = vld [vmem:[%s16688_s5 + $0x100] sm:$0xff] }
 0xcd5   :  { %v12947_v44 = vld [vmem:[%s16688_s5 + $0x148] sm:$0xff]  ;;  %8217 = vmatpush.bf16.msra.mxu2 %v12939_v3 }
 0xcd6   :  { %v7218_v41 = vadd.f32 %v15885_v38, %v7150_v22  ;;  %8371 = vmatpush.bf16.msra.mxu3 %v12947_v44 }
 0xcd7   :  { %v7344_v52 = vld [vmem:[#allocation4 + $0x1d0] ss:$2 sm:$0xff]  ;;  %v7408_v9 = vld [vmem:[#allocation4 + $0x1d1] ss:$2 sm:$0xff]  ;;  %8064 = vmatpush.bf16.msra.mxu1 %v12930_v6 }
 0xcd8   :  { %v7442_v43 = vmax.f32 %v7344_v52, %v7408_v9  ;;  %7282 = vst [vmem:[#allocation4 + $0x1e0] sm:$0xff] %v7218_v41  ;;  %v12946_v41 = vld [vmem:[%s16688_s5 + $0x140] sm:$0xff] }
 0xcd9   :  { %v6624_v22 = vpop.f32.mrf.mxu2  ;;  %8218 = vmatpush.bf16.msra.mxu2 %v12938_v48  ;;  %v16894_v48 = vld [vmem:[#allocation29_spill] sm:$0xff] }
 0xcda   :  { %v6693_v57 = vadd.f32 %v6624_v22, %v6235_v46  ;;  %v7082_v55 = vpop.f32.mrf.mxu3  ;;  %v7459_v23 = vmax.f32 %v7441_v0, %v7442_v43  ;;  %v6169_v30 = vpop.f32.mrf.mxu1  ;;  %8372 = vmatpush.bf16.msra.mxu3 %v12946_v41 }
 0xcdb   :  { %v6236_v46 = vadd.f32 %v6169_v30, %v15398_v16 }
 0xcdc   :  { %v7151_v52 = vadd.f32 %v7082_v55, %v6693_v57  ;;  %v15919_v9 = vmax.f32 %v7459_v23, 0.0 }
 0xcde   :  { %v7219_v0 = vadd.f32 %v15885_v38, %v7151_v52  ;;  %7537 = vst [vmem:[#allocation5 + $0x1a0] sm:$0xff] %v15919_v9  ;;  %v15925_v43 = vpack.c.bf16 %v15919_v9, %v15873_v35 }
 0xce0   :  { %7283 = vst [vmem:[#allocation4 + $0x1e8] sm:$0xff] %v7219_v0  ;;  %7711 = vmatmul.bf16.gmra.mxu1 %v15925_v43 }
 0xce1   :  { %v6627_v29 = vpop.f32.mrf.mxu2 }
 0xce2   :  { %v6694_v57 = vadd.f32 %v6627_v29, %v6236_v46  ;;  %v7085_v55 = vpop.f32.mrf.mxu3  ;;  %v6171_v3 = vpop.f32.mrf.mxu1 }
 0xce3   :  { %v6237_v30 = vadd.f32 %v6171_v3, %v16894_v48 }
 0xce4   :  { %v7152_v44 = vadd.f32 %v7085_v55, %v6694_v57 }
 0xce5   :  { %v15929_v22 = vld [vmem:[#allocation5 + $0x19f] sm:$0xff] }
 0xce6   :  { %v15931_v23 = vld [vmem:[#allocation5 + $0x1a1] sm:$0xff]  ;;  %v7220_v52 = vadd.f32 %v15885_v38, %v7152_v44  ;;  %v15936_v6 = vpack.c.bf16 %v15929_v22, %v15891_v58 }
 0xce7   :  { %v15940_v16 = vpack.c.bf16 %v15931_v23, %v15893_v12  ;;  %v7346_v8 = vld [vmem:[#allocation4 + $0x1e0] ss:$2 sm:$0xff]  ;;  %v7410_v45 = vld [vmem:[#allocation4 + $0x1e1] ss:$2 sm:$0xff] }
 0xce8   :  { %7284 = vst [vmem:[#allocation4 + $0x1f0] sm:$0xff] %v7220_v52  ;;  %7808 = vmatmul.bf16.gmra.mxu2 %v15936_v6 }
 0xce9   :  { %7946 = vmatmul.bf16.gmra.mxu3 %v15940_v16  ;;  %v6629_v41 = vpop.f32.mrf.mxu2 }
 0xcea   :  { %v6695_v0 = vadd.f32 %v6629_v41, %v6237_v30  ;;  %v7087_v46 = vpop.f32.mrf.mxu3  ;;  %v7677_v29 = vpop.f32.mrf.mxu1  ;;  %v12969_v30 = vld [vmem:[%s16688_s5 + $0x1f8] sm:$0xff] }
 0xceb   :  { %v12977_v41 = vld [vmem:[%s16688_s5 + $0x238] sm:$0xff]  ;;  %8674 = vmatpush.bf16.msrb.mxu2 %v12969_v30 }
 0xcec   :  { %v7153_v57 = vadd.f32 %v7087_v46, %v6695_v0  ;;  %8828 = vmatpush.bf16.msrb.mxu3 %v12977_v41 }
 0xcee   :  { %v7221_v55 = vadd.f32 %v15885_v38, %v7153_v57  ;;  %v12961_v38 = vld [vmem:[%s16688_s5 + $0x1b8] sm:$0xff] }
 0xcef   :  { %8520 = vmatpush.bf16.msrb.mxu1 %v12961_v38  ;;  %8675 = vmatpush.bf16.msrb.mxu2 %v12968_v28  ;;  %v16015_v28 = vld [vmem:[#allocation5 + $0xc7] sm:$0xff] }
 0xcf0   :  { %7285 = vst [vmem:[#allocation4 + $0x1f8] sm:$0xff] %v7221_v55  ;;  %8065 = vmatmul.bf16.vlgmr.msra.gmra.mxu1 %v7984_v24  ;;  %8829 = vmatpush.bf16.msrb.mxu3 %v12976_v39 }
 0xcf1   :  { %v7774_v44 = vpop.f32.mrf.mxu2 }
 0xcf2   :  { %v7775_v52 = vadd.f32 %v7774_v44, %v7677_v29  ;;  %v7912_v42 = vpop.f32.mrf.mxu3  ;;  %v7679_v3 = vpop.f32.mrf.mxu1  ;;  %v7443_v44 = vmax.f32 %v7346_v8, %v7410_v45 }
 0xcf4   :  { %v15949_v48 = vadd.f32 %v7912_v42, %v7775_v52 }
 0xcf7   :  { %v7348_v55 = vld [vmem:[#allocation4 + $0x1f0] ss:$2 sm:$0xff]  ;;  %v7412_v5 = vld [vmem:[#allocation4 + $0x1f1] ss:$2 sm:$0xff] }
 0xcf8   :  { %8219 = vmatmul.bf16.vlgmr.msra.gmra.mxu2 %v8138_v26 }
 0xcf9   :  { %8373 = vmatmul.bf16.vlgmr.msra.gmra.mxu3 %v8292_v11  ;;  %v7776_v15 = vpop.f32.mrf.mxu2  ;;  %v12960_v11 = vld [vmem:[%s16688_s5 + $0x1b0] sm:$0xff] }
 0xcfa   :  { %v7777_v25 = vadd.f32 %v7776_v15, %v7679_v3  ;;  %v7914_v24 = vpop.f32.mrf.mxu3  ;;  %v7682_v42 = vpop.f32.mrf.mxu1  ;;  %8521 = vmatpush.bf16.msrb.mxu1 %v12960_v11  ;;  %v7987_v11 = vpack.c.bf16 %v16015_v28, %v15802_v27  ;;  %v12958_v27 = vld [vmem:[%s16688_s5 + $0x1a0] sm:$0xff] }
 0xcfc   :  { %v15966_v0 = vadd.f32 %v7914_v24, %v7777_v25 }
 0xd00   :  { %8070 = vmatmul.bf16.gmra.mxu1 %v7985_v17  ;;  %v7444_v17 = vmax.f32 %v7348_v55, %v7412_v5 }
 0xd01   :  { %v7779_v46 = vpop.f32.mrf.mxu2 }
 0xd02   :  { %v7780_v29 = vadd.f32 %v7779_v46, %v7682_v42  ;;  %v7917_v57 = vpop.f32.mrf.mxu3  ;;  %v7684_v49 = vpop.f32.mrf.mxu1  ;;  %v7460_v38 = vmax.f32 %v7443_v44, %v7444_v17  ;;  %v12967_v42 = vld [vmem:[%s16688_s5 + $0x1e8] sm:$0xff]  ;;  %v12974_v44 = vld [vmem:[%s16688_s5 + $0x220] sm:$0xff] }
 0xd03   :  { %v12975_v46 = vld [vmem:[%s16688_s5 + $0x228] sm:$0xff]  ;;  %8676 = vmatpush.bf16.msrb.mxu2 %v12967_v42 }
 0xd04   :  { %v15971_v26 = vadd.f32 %v7917_v57, %v7780_v29  ;;  %v15990_v25 = vmax.f32 %v7460_v38, 0.0  ;;  %v12959_v29 = vld [vmem:[%s16688_s5 + $0x1a8] sm:$0xff]  ;;  %8830 = vmatpush.bf16.msrb.mxu3 %v12975_v46  ;;  %v12973_v46 = vld [vmem:[%s16688_s5 + $0x218] sm:$0xff] }
 0xd05   :  { %8522 = vmatpush.bf16.msrb.mxu1 %v12959_v29  ;;  %v16021_v17 = vld [vmem:[#allocation5 + $0xc9] sm:$0xff]  ;;  %v12957_v29 = vld [vmem:[%s16688_s5 + $0x198] sm:$0xff] }
 0xd06   :  { %7538 = vst [vmem:[#allocation5 + $0x1b8] sm:$0xff] %v15990_v25  ;;  %v8145_v10 = vpack.c.bf16 %v15990_v25, %v15919_v9  ;;  %v8585_v9 = vld [vmem:[#allocation5 + $0x38] sm:$0xff] }
 0xd07   :  { %8677 = vmatpush.bf16.msrb.mxu2 %v12966_v36  ;;  %v16903_v36 = vpack.c.bf16 %v15786_v50, %v15782_v21 }
 0xd08   :  { %8224 = vmatmul.bf16.gmra.mxu2 %v8139_v47  ;;  %8831 = vmatpush.bf16.msrb.mxu3 %v12974_v44 }
 0xd09   :  { %8378 = vmatmul.bf16.gmra.mxu3 %v8293_v51  ;;  %v7781_v52 = vpop.f32.mrf.mxu2  ;;  %8523 = vmatpush.bf16.msrb.mxu1 %v12958_v27 }
 0xd0a   :  { %v7782_v3 = vadd.f32 %v7781_v52, %v7684_v49  ;;  %v7919_v30 = vpop.f32.mrf.mxu3  ;;  %v7687_v41 = vpop.f32.mrf.mxu1  ;;  %v8295_v52 = vpack.c.bf16 %v16021_v17, %v15804_v7 }
 0xd0c   :  { %v15988_v15 = vadd.f32 %v7919_v30, %v7782_v3  ;;  %8832 = vmatpush.bf16.msrb.mxu3 %v12973_v46 }
 0xd0d   :  { %8524 = vmatpush.bf16.msrb.mxu1 %v12957_v29  ;;  %v16112_v29 = vld [vmem:[#allocation5 + $0x1b7] sm:$0xff] }
 0xd10   :  { %8075 = vmatmul.bf16.gmra.mxu1 %v16895_v53 }
 0xd11   :  { %v7784_v47 = vpop.f32.mrf.mxu2 }
 0xd12   :  { %v7785_v40 = vadd.f32 %v7784_v47, %v7687_v41  ;;  %v7922_v31 = vpop.f32.mrf.mxu3  ;;  %v7689_v51 = vpop.f32.mrf.mxu1  ;;  %v16898_v47 = vpack.c.bf16 %v15712_v1, %v15707_v62  ;;  %v16899_v62 = vpack.c.bf16 %v15697_v14, %v15671_v54  ;;  %v16900_v1 = vpack.c.bf16 %v15714_v18, %v15709_v59  ;;  %v12956_v54 = vld [vmem:[%s16688_s5 + $0x190] sm:$0xff] }
 0xd13   :  { %8525 = vmatpush.bf16.msrb.mxu1 %v12956_v54  ;;  %v16901_v14 = vpack.c.bf16 %v15784_v61, %v15779_v4  ;;  %v12955_v61 = vld [vmem:[%s16688_s5 + $0x188] sm:$0xff] }
 0xd14   :  { %v15998_v24 = vadd.f32 %v7922_v31, %v7785_v40 }
 0xd17   :  { %8526 = vmatpush.bf16.msrb.mxu1 %v12955_v61  ;;  %v8434_v61 = vld [vmem:[#allocation5 + $0x7f] sm:$0xff] }
 0xd18   :  { %8229 = vmatmul.bf16.gmra.mxu2 %v16896_v63 }
 0xd19   :  { %8383 = vmatmul.bf16.gmra.mxu3 %v16897_v33  ;;  %v7786_v57 = vpop.f32.mrf.mxu2 }
 0xd1a   :  { %v7787_v55 = vadd.f32 %v7786_v57, %v7689_v51  ;;  %v7924_v5 = vpop.f32.mrf.mxu3  ;;  %v7692_v49 = vpop.f32.mrf.mxu1 }
 0xd1c   :  { %v16017_v39 = vadd.f32 %v7924_v5, %v7787_v55 }
 0xd20   :  { %8080 = vmatmul.bf16.gmra.mxu1 %v7987_v11  ;;  %v12972_v11 = vld [vmem:[%s16688_s5 + $0x210] sm:$0xff] }
 0xd21   :  { %v7789_v8 = vpop.f32.mrf.mxu2  ;;  %8833 = vmatpush.bf16.msrb.mxu3 %v12972_v11  ;;  %v8431_v11 = vld [vmem:[#allocation5 + $0x37] sm:$0xff] }
 0xd22   :  { %v7790_v45 = vadd.f32 %v7789_v8, %v7692_v49  ;;  %v7927_v32 = vpop.f32.mrf.mxu3  ;;  %v7694_v13 = vpop.f32.mrf.mxu1  ;;  %v12964_v49 = vld [vmem:[%s16688_s5 + $0x1d0] sm:$0xff] }
 0xd24   :  { %v16023_v56 = vadd.f32 %v7927_v32, %v7790_v45 }
 0xd28   :  { %8234 = vmatmul.bf16.gmra.mxu2 %v15659_v20  ;;  %v12965_v20 = vld [vmem:[%s16688_s5 + $0x1d8] sm:$0xff] }
 0xd29   :  { %8388 = vmatmul.bf16.gmra.mxu3 %v8295_v52  ;;  %v7791_v3 = vpop.f32.mrf.mxu2  ;;  %8678 = vmatpush.bf16.msrb.mxu2 %v12965_v20 }
 0xd2a   :  { %v7792_v30 = vadd.f32 %v7791_v3, %v7694_v13  ;;  %v7929_v41 = vpop.f32.mrf.mxu3  ;;  %v7697_v38 = vpop.f32.mrf.mxu1  ;;  %v16902_v13 = vpack.c.bf16 %v15769_v2, %v15731_v34  ;;  %v12971_v34 = vld [vmem:[%s16688_s5 + $0x208] sm:$0xff]  ;;  %v16904_v2 = vpack.c.bf16 %v15891_v58, %v15869_v37  ;;  %v12970_v37 = vld [vmem:[%s16688_s5 + $0x200] sm:$0xff]  ;;  %v16905_v58 = vpack.c.bf16 %v15873_v35, %v15833_v60 }
 0xd2b   :  { %8834 = vmatpush.bf16.msrb.mxu3 %v12971_v34  ;;  %v16118_v60 = vld [vmem:[#allocation5 + $0x1b9] sm:$0xff] }
 0xd2c   :  { %v16037_v53 = vadd.f32 %v7929_v41, %v7792_v30  ;;  %v12963_v30 = vld [vmem:[%s16688_s5 + $0x1c8] sm:$0xff] }
 0xd2d   :  { %8679 = vmatpush.bf16.msrb.mxu2 %v12964_v49 }
 0xd2f   :  { %8835 = vmatpush.bf16.msrb.mxu3 %v12970_v37  ;;  %v8742_v37 = vld [vmem:[#allocation5 + $0x81] sm:$0xff] }
 0xd30   :  { %8085 = vmatmul.bf16.gmra.mxu1 %v16898_v47 }
 0xd31   :  { %v7794_v40 = vpop.f32.mrf.mxu2  ;;  %8680 = vmatpush.bf16.msrb.mxu2 %v12963_v30 }
 0xd32   :  { %v7795_v31 = vadd.f32 %v7794_v40, %v7697_v38  ;;  %v7932_v51 = vpop.f32.mrf.mxu3  ;;  %v7699_v7 = vpop.f32.mrf.mxu1  ;;  %v12954_v40 = vld [vmem:[%s16688_s5 + $0x180] sm:$0xff] }
 0xd33   :  { %8527 = vmatpush.bf16.msrb.mxu1 %v12954_v40 }
 0xd34   :  { %v16042_v42 = vadd.f32 %v7932_v51, %v7795_v31  ;;  %v12962_v31 = vld [vmem:[%s16688_s5 + $0x1c0] sm:$0xff]  ;;  %v16906_v51 = vpack.c.bf16 %v15893_v12, %v15871_v19  ;;  %v8299_v19 = vpack.c.bf16 %v16118_v60, %v15931_v23  ;;  %v8586_v23 = vld [vmem:[#allocation5 + $0x50] sm:$0xff] }
 0xd35   :  { %8681 = vmatpush.bf16.msrb.mxu2 %v12962_v31  ;;  %v8588_v31 = vld [vmem:[#allocation5 + $0x80] sm:$0xff] }
 0xd38   :  { %8239 = vmatmul.bf16.gmra.mxu2 %v16899_v62 }
 0xd39   :  { %8393 = vmatmul.bf16.gmra.mxu3 %v16900_v1  ;;  %v7796_v63 = vpop.f32.mrf.mxu2 }
 0xd3a   :  { %v7797_v33 = vadd.f32 %v7796_v63, %v7699_v7  ;;  %v7934_v57 = vpop.f32.mrf.mxu3  ;;  %v7702_v55 = vpop.f32.mrf.mxu1  ;;  %v7991_v63 = vpack.c.bf16 %v16112_v29, %v15929_v22 }
 0xd3c   :  { %v16059_v5 = vadd.f32 %v7934_v57, %v7797_v33  ;;  %v8432_v57 = vld [vmem:[#allocation5 + $0x4f] sm:$0xff] }
 0xd40   :  { %8090 = vmatmul.bf16.gmra.mxu1 %v16901_v14  ;;  %v8447_v14 = vpack.c.bf16 %v8432_v57, %v8431_v11  ;;  %v8435_v57 = vld [vmem:[#allocation5 + $0x97] sm:$0xff] }
 0xd41   :  { %v7799_v59 = vpop.f32.mrf.mxu2 }
 0xd42   :  { %v7800_v18 = vadd.f32 %v7799_v59, %v7702_v55  ;;  %v7937_v8 = vpop.f32.mrf.mxu3  ;;  %v7704_v45 = vpop.f32.mrf.mxu1 }
 0xd44   :  { %v16073_v32 = vadd.f32 %v7937_v8, %v7800_v18  ;;  %v8740_v8 = vld [vmem:[#allocation5 + $0x51] sm:$0xff] }
 0xd48   :  { %8244 = vmatmul.bf16.gmra.mxu2 %v16902_v13 }
 0xd49   :  { %8398 = vmatmul.bf16.gmra.mxu3 %v16903_v36  ;;  %v7801_v44 = vpop.f32.mrf.mxu2 }
 0xd4a   :  { %v7802_v27 = vadd.f32 %v7801_v44, %v7704_v45  ;;  %v7939_v52 = vpop.f32.mrf.mxu3  ;;  %v7707_v3 = vpop.f32.mrf.mxu1  ;;  %v8601_v44 = vpack.c.bf16 %v8586_v23, %v8585_v9 }
 0xd4c   :  { %v16081_v4 = vadd.f32 %v7939_v52, %v7802_v27 }
 0xd50   :  { %8095 = vmatmul.bf16.gmra.mxu1 %v16904_v2  ;;  %v8433_v2 = vld [vmem:[#allocation5 + $0x67] sm:$0xff] }
 0xd51   :  { %v7804_v21 = vpop.f32.mrf.mxu2 }
 0xd52   :  { %v7805_v50 = vadd.f32 %v7804_v21, %v7707_v3  ;;  %v7942_v41 = vpop.f32.mrf.mxu3  ;;  %v7709_v47 = vpop.f32.mrf.mxu1 }
 0xd54   :  { %v16095_v38 = vadd.f32 %v7942_v41, %v7805_v50  ;;  %v8448_v41 = vpack.c.bf16 %v8434_v61, %v8433_v2  ;;  %v13074_v2 = vld [vmem:[%s16690_s7 + $0x300] sm:$0xff] }
 0xd55   :  { %10140 = vmatpush.bf16.msrb.mxu0 %v13074_v2  ;;  %v8749_v2 = vld [vmem:[#allocation5 + $0x159] sm:$0xff] }
 0xd58   :  { %8249 = vmatmul.bf16.gmra.mxu2 %v16905_v58 }
 0xd59   :  { %8403 = vmatmul.bf16.gmra.mxu3 %v16906_v51  ;;  %v7806_v7 = vpop.f32.mrf.mxu2  ;;  %v8741_v51 = vld [vmem:[#allocation5 + $0x69] sm:$0xff] }
 0xd5a   :  { %v7807_v20 = vadd.f32 %v7806_v7, %v7709_v47  ;;  %v7944_v46 = vpop.f32.mrf.mxu3 }
 0xd5c   :  { %v16114_v62 = vadd.f32 %v7944_v46, %v7807_v20 }
 0xd5d   :  { %v7712_v1 = vpop.f32.mrf.mxu1 }
 0xd60   :  { %8100 = vmatmul.bf16.gmra.mxu1 %v7991_v63 }
 0xd65   :  { %v7714_v35 = vpop.f32.mrf.mxu1 }
 0xd68   :  { %8254 = vmatmul.bf16.gmra.mxu2 %v8145_v10  ;;  %v8739_v10 = vld [vmem:[#allocation5 + $0x39] sm:$0xff] }
 0xd69   :  { %8408 = vmatmul.bf16.gmra.mxu3 %v8299_v19  ;;  %v8755_v27 = vpack.c.bf16 %v8740_v8, %v8739_v10  ;;  %v8436_v19 = vld [vmem:[#allocation5 + $0xaf] sm:$0xff]  ;;  %v8743_v8 = vld [vmem:[#allocation5 + $0x99] sm:$0xff] }
 0xd6a   :  { %v8449_v11 = vpack.c.bf16 %v8436_v19, %v8435_v57 }
 0xd6b   :  { %v7809_v12 = vpop.f32.mrf.mxu2 }
 0xd6c   :  { %v7947_v33 = vpop.f32.mrf.mxu3  ;;  %v7810_v55 = vadd.f32 %v7809_v12, %v7712_v1  ;;  %v8756_v1 = vpack.c.bf16 %v8742_v37, %v8741_v51  ;;  %v16152_v37 = vld [vmem:[#allocation5] sm:$0xff] }
 0xd6d   :  { %v8066_v49 = vpop.f32.mrf.mxu1 }
 0xd6e   :  { %v16125_v54 = vadd.f32 %v7947_v33, %v7810_v55  ;;  %v8106_v22 = vadd.f32 %v8066_v49, %v15949_v48 }
 0xd70   :  { %8528 = vmatmul.bf16.vlgmr.msrb.gmra.mxu1 %v8447_v14 }
 0xd73   :  { %v7811_v59 = vpop.f32.mrf.mxu2 }
 0xd74   :  { %v7949_v18 = vpop.f32.mrf.mxu3  ;;  %v7812_v45 = vadd.f32 %v7811_v59, %v7714_v35  ;;  %v8590_v59 = vld [vmem:[#allocation5 + $0xb0] sm:$0xff] }
 0xd75   :  { %v8068_v13 = vpop.f32.mrf.mxu1 }
 0xd76   :  { %v16128_v36 = vadd.f32 %v7949_v18, %v7812_v45  ;;  %v8107_v52 = vadd.f32 %v8068_v13, %v15966_v0  ;;  %v8587_v0 = vld [vmem:[#allocation5 + $0x68] sm:$0xff]  ;;  %v8744_v18 = vld [vmem:[#allocation5 + $0xb1] sm:$0xff] }
 0xd77   :  { %v8602_v46 = vpack.c.bf16 %v8588_v31, %v8587_v0  ;;  %v8757_v13 = vpack.c.bf16 %v8744_v18, %v8743_v8 }
 0xd78   :  { %8682 = vmatmul.bf16.vlgmr.msrb.gmra.mxu2 %v8601_v44 }
 0xd79   :  { %8836 = vmatmul.bf16.vlgmr.msrb.gmra.mxu3 %v8755_v27 }
 0xd7b   :  { %v8220_v3 = vpop.f32.mrf.mxu2 }
 0xd7c   :  { %v8374_v48 = vpop.f32.mrf.mxu3  ;;  %v8260_v30 = vadd.f32 %v8220_v3, %v8106_v22 }
 0xd7d   :  { %v8071_v34 = vpop.f32.mrf.mxu1 }
 0xd7e   :  { %v16131_v21 = vadd.f32 %v8374_v48, %v8260_v30  ;;  %v8108_v50 = vadd.f32 %v8071_v34, %v15971_v26 }
 0xd80   :  { %8533 = vmatmul.bf16.gmra.mxu1 %v8448_v41  ;;  %v8746_v41 = vld [vmem:[#allocation5 + $0xe1] sm:$0xff] }
 0xd83   :  { %v8222_v47 = vpop.f32.mrf.mxu2 }
 0xd84   :  { %v8376_v40 = vpop.f32.mrf.mxu3  ;;  %v8261_v58 = vadd.f32 %v8222_v47, %v8107_v52  ;;  %v8438_v52 = vld [vmem:[#allocation5 + $0xdf] sm:$0xff] }
 0xd85   :  { %v8073_v7 = vpop.f32.mrf.mxu1  ;;  %v8450_v34 = vpack.c.bf16 %v8438_v52, %v16015_v28  ;;  %v8758_v28 = vpack.c.bf16 %v8746_v41, %v16021_v17  ;;  %v8748_v17 = vld [vmem:[#allocation5 + $0x141] sm:$0xff] }
 0xd86   :  { %v16134_v20 = vadd.f32 %v8376_v40, %v8261_v58  ;;  %v8109_v63 = vadd.f32 %v8073_v7, %v15988_v15  ;;  %v8589_v15 = vld [vmem:[#allocation5 + $0x98] sm:$0xff]  ;;  %v13129_v58 = vld [vmem:[#allocation5 + $0xc8] sm:$0xff] }
 0xd87   :  { %v8603_v10 = vpack.c.bf16 %v8590_v59, %v8589_v15 }
 0xd88   :  { %8687 = vmatmul.bf16.gmra.mxu2 %v8602_v46  ;;  %v8440_v46 = vld [vmem:[#allocation5 + $0x13f] sm:$0xff] }
 0xd89   :  { %8841 = vmatmul.bf16.gmra.mxu3 %v8756_v1 }
 0xd8b   :  { %v8225_v35 = vpop.f32.mrf.mxu2 }
 0xd8c   :  { %v8379_v26 = vpop.f32.mrf.mxu3  ;;  %v8262_v12 = vadd.f32 %v8225_v35, %v8108_v50  ;;  %v8439_v35 = vld [vmem:[#allocation5 + $0x127] sm:$0xff] }
 0xd8d   :  { %v8076_v33 = vpop.f32.mrf.mxu1 }
 0xd8e   :  { %v16137_v55 = vadd.f32 %v8379_v26, %v8262_v12  ;;  %v8110_v49 = vadd.f32 %v8076_v33, %v15998_v24  ;;  %v8451_v12 = vpack.c.bf16 %v8440_v46, %v8439_v35 }
 0xd90   :  { %8538 = vmatmul.bf16.gmra.mxu1 %v8449_v11 }
 0xd93   :  { %v8227_v22 = vpop.f32.mrf.mxu2 }
 0xd94   :  { %v8381_v14 = vpop.f32.mrf.mxu3  ;;  %v8263_v23 = vadd.f32 %v8227_v22, %v8109_v63  ;;  %v8747_v22 = vld [vmem:[#allocation5 + $0x129] sm:$0xff] }
 0xd95   :  { %v8078_v45 = vpop.f32.mrf.mxu1 }
 0xd96   :  { %v16140_v9 = vadd.f32 %v8381_v14, %v8263_v23  ;;  %v8111_v44 = vadd.f32 %v8078_v45, %v16017_v39  ;;  %v8759_v23 = vpack.c.bf16 %v8748_v17, %v8747_v22  ;;  %v8608_v17 = vpack.c.bf16 %v16152_v37, %v15990_v25  ;;  %v12992_v25 = vld [vmem:[%s16690_s7 + $0x70] sm:$0xff] }
 0xd98   :  { %8692 = vmatmul.bf16.gmra.mxu2 %v8603_v10 }
 0xd99   :  { %8846 = vmatmul.bf16.gmra.mxu3 %v8757_v13  ;;  %v8441_v13 = vld [vmem:[#allocation5 + $0x157] sm:$0xff] }
 0xd9b   :  { %v8230_v27 = vpop.f32.mrf.mxu2 }
 0xd9c   :  { %v8384_v24 = vpop.f32.mrf.mxu3  ;;  %v8264_v3 = vadd.f32 %v8230_v27, %v8110_v49  ;;  %v8594_v49 = vld [vmem:[#allocation5 + $0x140] sm:$0xff] }
 0xd9d   :  { %v8081_v48 = vpop.f32.mrf.mxu1 }
 0xd9e   :  { %v16143_v61 = vadd.f32 %v8384_v24, %v8264_v3  ;;  %v8112_v30 = vadd.f32 %v8081_v48, %v16023_v56  ;;  %v8604_v56 = vpack.c.bf16 %v16152_v37, %v13129_v58  ;;  %v8596_v48 = vld [vmem:[#allocation5 + $0x170] sm:$0xff] }
 0xda0   :  { %8543 = vmatmul.bf16.gmra.mxu1 %v8450_v34  ;;  %v8595_v34 = vld [vmem:[#allocation5 + $0x158] sm:$0xff] }
 0xda3   :  { %v8232_v39 = vpop.f32.mrf.mxu2 }
 0xda4   :  { %v8386_v50 = vpop.f32.mrf.mxu3  ;;  %v8265_v47 = vadd.f32 %v8232_v39, %v8111_v44 }
 0xda5   :  { %v8083_v40 = vpop.f32.mrf.mxu1 }
 0xda6   :  { %v16150_v31 = vadd.f32 %v8386_v50, %v8265_v47  ;;  %v8113_v0 = vadd.f32 %v8083_v40, %v16037_v53  ;;  %v8593_v53 = vld [vmem:[#allocation5 + $0x128] sm:$0xff]  ;;  %v8606_v50 = vpack.c.bf16 %v8596_v48, %v8595_v34  ;;  %v16226_v48 = vld [vmem:[%s16689_s6] ss:$0 sm:$0xff]  ;;  %s10409_s6 = sshll.u32 %s13158_s27, 4  ;;  %s10410_s6 = int_to_ptr.vmem [resolvable:$true] %s10409_s6 }
 0xda7   :  { %v8605_v18 = vpack.c.bf16 %v8594_v49, %v8593_v53 }
 0xda8   :  { %8697 = vmatmul.bf16.gmra.mxu2 %v8604_v56 }
 0xda9   :  { %8851 = vmatmul.bf16.gmra.mxu3 %v8758_v28 }
 0xdab   :  { %v8235_v51 = vpop.f32.mrf.mxu2 }
 0xdac   :  { %v8389_v7 = vpop.f32.mrf.mxu3  ;;  %v8266_v1 = vadd.f32 %v8235_v51, %v8112_v30  ;;  %v8750_v30 = vld [vmem:[#allocation5 + $0x171] sm:$0xff] }
 0xdad   :  { %v8086_v63 = vpop.f32.mrf.mxu1  ;;  %v8760_v41 = vpack.c.bf16 %v8750_v30, %v8749_v2 }
 0xdae   :  { %v16157_v26 = vadd.f32 %v8389_v7, %v8266_v1  ;;  %v8114_v19 = vadd.f32 %v8086_v63, %v16042_v42  ;;  %v8442_v42 = vld [vmem:[#allocation5 + $0x16f] sm:$0xff] }
 0xdaf   :  { %v8452_v24 = vpack.c.bf16 %v8442_v42, %v8441_v13  ;;  %v8446_v63 = vld [vmem:[#allocation5 + $0x1cf] sm:$0xff] }
 0xdb0   :  { %8548 = vmatmul.bf16.gmra.mxu1 %v8451_v12  ;;  %v13000_v42 = vld [vmem:[%s16690_s7 + $0xb0] sm:$0xff] }
 0xdb3   :  { %v8237_v33 = vpop.f32.mrf.mxu2 }
 0xdb4   :  { %v8391_v57 = vpop.f32.mrf.mxu3  ;;  %v8267_v11 = vadd.f32 %v8237_v33, %v8113_v0  ;;  %v12985_v33 = vld [vmem:[%s16690_s7 + $0x38] sm:$0xff] }
 0xdb5   :  { %v16160_v14 = vpop.f32.mrf.mxu1  ;;  %9191 = vmatpush.bf16.msra.mxu2 %v12985_v33 }
 0xdb6   :  { %v16162_v59 = vadd.f32 %v8391_v57, %v8267_v11 }
 0xdb8   :  { %8702 = vmatmul.bf16.gmra.mxu2 %v8605_v18 }
 0xdb9   :  { %8856 = vmatmul.bf16.gmra.mxu3 %v8759_v23 }
 0xdbb   :  { %v8240_v15 = vpop.f32.mrf.mxu2 }
 0xdbc   :  { %v8394_v8 = vpop.f32.mrf.mxu3  ;;  %v8268_v45 = vadd.f32 %v8240_v15, %v8114_v19 }
 0xdbd   :  { %v8091_v10 = vpop.f32.mrf.mxu1 }
 0xdbe   :  { %v16164_v44 = vadd.f32 %v8394_v8, %v8268_v45  ;;  %v8116_v27 = vadd.f32 %v8091_v10, %v16073_v32  ;;  %v12984_v8 = vld [vmem:[%s16690_s7 + $0x30] sm:$0xff] }
 0xdbf   :  { %9192 = vmatpush.bf16.msra.mxu2 %v12984_v8  ;;  %v12989_v8 = vld [vmem:[%s16690_s7 + $0x58] sm:$0xff] }
 0xdc0   :  { %8553 = vmatmul.bf16.gmra.mxu1 %v8452_v24 }
 0xdc3   :  { %v16167_v52 = vpop.f32.mrf.mxu2 }
 0xdc4   :  { %v16169_v3 = vpop.f32.mrf.mxu3 }
 0xdc5   :  { %v16171_v39 = vpop.f32.mrf.mxu1 }
 0xdc8   :  { %8707 = vmatmul.bf16.gmra.mxu2 %v8606_v50 }
 0xdc9   :  { %8861 = vmatmul.bf16.gmra.mxu3 %v8760_v41  ;;  %v12983_v41 = vld [vmem:[%s16690_s7 + $0x28] sm:$0xff] }
 0xdca   :  { %9193 = vmatpush.bf16.msra.mxu2 %v12983_v41 }
 0xdcb   :  { %v8245_v47 = vpop.f32.mrf.mxu2 }
 0xdcc   :  { %v8399_v40 = vpop.f32.mrf.mxu3  ;;  %v8270_v58 = vadd.f32 %v8245_v47, %v8116_v27  ;;  %v12991_v47 = vld [vmem:[%s16690_s7 + $0x68] sm:$0xff] }
 0xdcd   :  { %v8096_v32 = vpop.f32.mrf.mxu1 }
 0xdce   :  { %v16173_v56 = vadd.f32 %v8399_v40, %v8270_v58  ;;  %v8118_v28 = vadd.f32 %v8096_v32, %v16095_v38 }
 0xdd0   :  { %8558 = vmatmul.bf16.gmra.mxu1 %v15936_v6  ;;  %v8454_v6 = vpack.c.bf16 %v8446_v63, %v16112_v29 }
 0xdd3   :  { %v16177_v0 = vpop.f32.mrf.mxu2 }
 0xdd4   :  { %v16179_v51 = vpop.f32.mrf.mxu3 }
 0xdd5   :  { %v16181_v7 = vpop.f32.mrf.mxu1 }
 0xdd8   :  { %8712 = vmatmul.bf16.gmra.mxu2 %v15925_v43  ;;  %v13001_v43 = vld [vmem:[%s16690_s7 + $0xb8] sm:$0xff] }
 0xdd9   :  { %8866 = vmatmul.bf16.gmra.mxu3 %v15940_v16  ;;  %v12993_v16 = vld [vmem:[%s16690_s7 + $0x78] sm:$0xff] }
 0xdda   :  { %9274 = vmatpush.bf16.msra.mxu3 %v13001_v43  ;;  %9126 = vmatpush.bf16.msra.mxu1 %v12993_v16  ;;  %v12982_v16 = vld [vmem:[%s16690_s7 + $0x20] sm:$0xff] }
 0xddb   :  { %v8250_v46 = vpop.f32.mrf.mxu2  ;;  %9194 = vmatpush.bf16.msra.mxu2 %v12982_v16 }
 0xddc   :  { %v8404_v1 = vpop.f32.mrf.mxu3  ;;  %v8272_v35 = vadd.f32 %v8250_v46, %v8118_v28 }
 0xddd   :  { %v8101_v19 = vpop.f32.mrf.mxu1 }
 0xdde   :  { %v16185_v12 = vadd.f32 %v8404_v1, %v8272_v35  ;;  %v8120_v38 = vadd.f32 %v8101_v19, %v16125_v54  ;;  %v8754_v54 = vld [vmem:[#allocation5 + $0x1d1] sm:$0xff]  ;;  %9275 = vmatpush.bf16.msra.mxu3 %v13000_v42  ;;  %9127 = vmatpush.bf16.msra.mxu1 %v12992_v25 }
 0xddf   :  { %v8762_v11 = vpack.c.bf16 %v8754_v54, %v16118_v60  ;;  %v12998_v54 = vld [vmem:[%s16690_s7 + $0xa0] sm:$0xff]  ;;  %v12981_v42 = vld [vmem:[%s16690_s7 + $0x18] sm:$0xff] }
 0xde0   :  { %8563 = vmatmul.bf16.gmra.mxu1 %v8454_v6  ;;  %v12997_v25 = vld [vmem:[%s16690_s7 + $0x98] sm:$0xff]  ;;  %9195 = vmatpush.bf16.msra.mxu2 %v12981_v42 }
 0xde2   :  { %9128 = vmatpush.bf16.msra.mxu1 %v12991_v47 }
 0xde3   :  { %v16198_v57 = vpop.f32.mrf.mxu2 }
 0xde4   :  { %v16200_v49 = vpop.f32.mrf.mxu3 }
 0xde5   :  { %v16202_v29 = vpop.f32.mrf.mxu1 }
 0xde8   :  { %8717 = vmatmul.bf16.gmra.mxu2 %v8608_v17 }
 0xde9   :  { %8871 = vmatmul.bf16.gmra.mxu3 %v8762_v11 }
 0xdeb   :  { %v8255_v53 = vpop.f32.mrf.mxu2 }
 0xdec   :  { %v8409_v22 = vpop.f32.mrf.mxu3  ;;  %v8274_v18 = vadd.f32 %v8255_v53, %v8120_v38 }
 0xded   :  { %v8529_v23 = vpop.f32.mrf.mxu1 }
 0xdee   :  { %v16207_v15 = vadd.f32 %v8409_v22, %v8274_v18  ;;  %v8569_v10 = vadd.f32 %v8529_v23, %v16131_v21  ;;  %v12999_v21 = vld [vmem:[%s16690_s7 + $0xa8] sm:$0xff] }
 0xdef   :  { %9276 = vmatpush.bf16.msra.mxu3 %v12999_v21 }
 0xdf3   :  { %v16218_v60 = vpop.f32.mrf.mxu2  ;;  %9277 = vmatpush.bf16.msra.mxu3 %v12998_v54  ;;  %v13008_v54 = vld [vmem:[%s16690_s7 + $0xf0] sm:$0xff] }
 0xdf4   :  { %v16220_v37 = vpop.f32.mrf.mxu3 }
 0xdf5   :  { %v8531_v45 = vpop.f32.mrf.mxu1 }
 0xdf6   :  { %v8570_v50 = vadd.f32 %v8531_v45, %v16134_v20 }
 0xdf7   :  { %9278 = vmatpush.bf16.msra.mxu3 %v12997_v25 }
 0xdfb   :  { %v8683_v13 = vpop.f32.mrf.mxu2 }
 0xdfc   :  { %v8837_v27 = vpop.f32.mrf.mxu3  ;;  %v8723_v24 = vadd.f32 %v8683_v13, %v8569_v10 }
 0xdfd   :  { %v8534_v30 = vpop.f32.mrf.mxu1 }
 0xdfe   :  { %v8877_v34 = vadd.f32 %v8837_v27, %v8723_v24  ;;  %v8571_v1 = vadd.f32 %v8534_v30, %v16137_v55  ;;  %v12990_v55 = vld [vmem:[%s16690_s7 + $0x60] sm:$0xff] }
 0xdff   :  { %9129 = vmatpush.bf16.msra.mxu1 %v12990_v55 }
 0xe00   :  { %v8897_v2 = vadd.f32 %v16226_v48, %v8877_v34  ;;  %v12988_v34 = vld [vmem:[%s16690_s7 + $0x50] sm:$0xff] }
 0xe02   :  { %8913 = vst [vmem:[#allocation6] sm:$0xff] %v8897_v2  ;;  %v12980_v2 = vld [vmem:[%s16690_s7 + $0x10] sm:$0xff] }
 0xe03   :  { %v8685_v40 = vpop.f32.mrf.mxu2  ;;  %9130 = vmatpush.bf16.msra.mxu1 %v12989_v8  ;;  %9196 = vmatpush.bf16.msra.mxu2 %v12980_v2  ;;  %v13013_v2 = vld [vmem:[%s16690_s7 + $0x118] sm:$0xff] }
 0xe04   :  { %v8839_v58 = vpop.f32.mrf.mxu3  ;;  %v8724_v32 = vadd.f32 %v8685_v40, %v8570_v50  ;;  %v12996_v50 = vld [vmem:[%s16690_s7 + $0x90] sm:$0xff]  ;;  %v12979_v40 = vld [vmem:[%s16690_s7 + $0x8] sm:$0xff] }
 0xe05   :  { %v8536_v28 = vpop.f32.mrf.mxu1  ;;  %9279 = vmatpush.bf16.msra.mxu3 %v12996_v50  ;;  %v13021_v50 = vld [vmem:[%s16690_s7 + $0x158] sm:$0xff] }
 0xe06   :  { %v8878_v20 = vadd.f32 %v8839_v58, %v8724_v32  ;;  %v8572_v43 = vadd.f32 %v8536_v28, %v16140_v9  ;;  %v12995_v32 = vld [vmem:[%s16690_s7 + $0x88] sm:$0xff] }
 0xe07   :  { %9131 = vmatpush.bf16.msra.mxu1 %v12988_v34  ;;  %9197 = vmatpush.bf16.msra.mxu2 %v12979_v40  ;;  %v13005_v34 = vld [vmem:[%s16690_s7 + $0xd8] sm:$0xff]  ;;  %v13012_v40 = vld [vmem:[%s16690_s7 + $0x110] sm:$0xff] }
 0xe08   :  { %v8898_v46 = vadd.f32 %v16226_v48, %v8878_v20 }
 0xe09   :  { %9280 = vmatpush.bf16.msra.mxu3 %v12995_v32 }
 0xe0a   :  { %8914 = vst [vmem:[#allocation6 + $0x8] sm:$0xff] %v8898_v46 }
 0xe0b   :  { %v8688_v63 = vpop.f32.mrf.mxu2 }
 0xe0c   :  { %v8842_v35 = vpop.f32.mrf.mxu3  ;;  %v8725_v19 = vadd.f32 %v8688_v63, %v8571_v1  ;;  %v12986_v1 = vld [vmem:[%s16690_s7 + $0x40] sm:$0xff]  ;;  %v13009_v63 = vld [vmem:[%s16690_s7 + $0xf8] sm:$0xff] }
 0xe0d   :  { %v8539_v38 = vpop.f32.mrf.mxu1 }
 0xe0e   :  { %v8879_v6 = vadd.f32 %v8842_v35, %v8725_v19  ;;  %v8573_v23 = vadd.f32 %v8539_v38, %v16143_v61  ;;  %v12978_v35 = vld [vmem:[%s16690_s7] sm:$0xff] }
 0xe0f   :  { %9198 = vmatpush.bf16.msra.mxu2 %v12978_v35 }
 0xe10   :  { %v8899_v33 = vadd.f32 %v16226_v48, %v8879_v6  ;;  %v12994_v6 = vld [vmem:[%s16690_s7 + $0x80] sm:$0xff] }
 0xe11   :  { %9281 = vmatpush.bf16.msra.mxu3 %v12994_v6  ;;  %v8961_v6 = vld [vmem:[#allocation6 + $0x1] ss:$2 sm:$0xf] }
 0xe12   :  { %8915 = vst [vmem:[#allocation6 + $0x10] sm:$0xff] %v8899_v33  ;;  %v13025_v33 = vld [vmem:[%s16690_s7 + $0x178] sm:$0xff] }
 0xe13   :  { %v8690_v17 = vpop.f32.mrf.mxu2 }
 0xe14   :  { %v8844_v11 = vpop.f32.mrf.mxu3  ;;  %v8726_v53 = vadd.f32 %v8690_v17, %v8572_v43  ;;  %v13016_v17 = vld [vmem:[%s16690_s7 + $0x130] sm:$0xff] }
 0xe15   :  { %v8541_v22 = vpop.f32.mrf.mxu1  ;;  %9532 = vmatpush.bf16.msrb.mxu3 %v13025_v33 }
 0xe16   :  { %v8880_v9 = vadd.f32 %v8844_v11, %v8726_v53  ;;  %v8574_v30 = vadd.f32 %v8541_v22, %v16150_v31  ;;  %v12987_v31 = vld [vmem:[%s16690_s7 + $0x48] sm:$0xff]  ;;  %v13024_v11 = vld [vmem:[%s16690_s7 + $0x170] sm:$0xff] }
 0xe17   :  { %9132 = vmatpush.bf16.msra.mxu1 %v12987_v31 }
 0xe18   :  { %v8900_v18 = vadd.f32 %v16226_v48, %v8880_v9  ;;  %v13007_v9 = vld [vmem:[%s16690_s7 + $0xe8] sm:$0xff] }
 0xe19   :  { %9533 = vmatpush.bf16.msrb.mxu3 %v13024_v11  ;;  %v13018_v11 = vld [vmem:[%s16690_s7 + $0x140] sm:$0xff] }
 0xe1a   :  { %8916 = vst [vmem:[#allocation6 + $0x18] sm:$0xff] %v8900_v18  ;;  %v13015_v18 = vld [vmem:[%s16690_s7 + $0x128] sm:$0xff] }
 0xe1b   :  { %v8693_v45 = vpop.f32.mrf.mxu2  ;;  %9133 = vmatpush.bf16.msra.mxu1 %v12986_v1  ;;  %v13003_v1 = vld [vmem:[%s16690_s7 + $0xc8] sm:$0xff] }
 0xe1c   :  { %v8847_v10 = vpop.f32.mrf.mxu3  ;;  %v8727_v13 = vadd.f32 %v8693_v45, %v8573_v23  ;;  %v13023_v23 = vld [vmem:[%s16690_s7 + $0x168] sm:$0xff] }
 0xe1d   :  { %v8544_v27 = vpop.f32.mrf.mxu1  ;;  %9534 = vmatpush.bf16.msrb.mxu3 %v13023_v23 }
 0xe1e   :  { %v8881_v61 = vadd.f32 %v8847_v10, %v8727_v13  ;;  %v8575_v46 = vadd.f32 %v8544_v27, %v16157_v26  ;;  %v13017_v26 = vld [vmem:[%s16690_s7 + $0x138] sm:$0xff]  ;;  %v13014_v13 = vld [vmem:[%s16690_s7 + $0x120] sm:$0xff] }
 0xe1f   :  { %9358 = vmatpush.bf16.msrb.mxu1 %v13009_v63  ;;  %9449 = vmatpush.bf16.msrb.mxu2 %v13017_v26  ;;  %v13022_v27 = vld [vmem:[%s16690_s7 + $0x160] sm:$0xff]  ;;  %v13011_v63 = vld [vmem:[%s16690_s7 + $0x108] sm:$0xff] }
 0xe20   :  { %v8901_v24 = vadd.f32 %v16226_v48, %v8881_v61 }
 0xe21   :  { %9535 = vmatpush.bf16.msrb.mxu3 %v13022_v27 }
 0xe22   :  { %8917 = vst [vmem:[#allocation6 + $0x20] sm:$0xff] %v8901_v24  ;;  %v8115_v24 = vadd.f32 %v16160_v14, %v16059_v5 }
 0xe23   :  { %v8695_v41 = vpop.f32.mrf.mxu2  ;;  %9359 = vmatpush.bf16.msrb.mxu1 %v13008_v54  ;;  %9450 = vmatpush.bf16.msrb.mxu2 %v13016_v17  ;;  %v13010_v17 = vld [vmem:[%s16690_s7 + $0x100] sm:$0xff] }
 0xe24   :  { %v8849_v21 = vpop.f32.mrf.mxu3  ;;  %v8728_v47 = vadd.f32 %v8695_v41, %v8574_v30  ;;  %v8269_v5 = vadd.f32 %v16167_v52, %v8115_v24 }
 0xe25   :  { %v8546_v58 = vpop.f32.mrf.mxu1  ;;  %9536 = vmatpush.bf16.msrb.mxu3 %v13021_v50 }
 0xe26   :  { %v8882_v28 = vadd.f32 %v8849_v21, %v8728_v47  ;;  %v8576_v22 = vadd.f32 %v8546_v58, %v16162_v59  ;;  %v13006_v59 = vld [vmem:[%s16690_s7 + $0xe0] sm:$0xff]  ;;  %v13004_v47 = vld [vmem:[%s16690_s7 + $0xd0] sm:$0xff]  ;;  %v8423_v52 = vadd.f32 %v16169_v3, %v8269_v5  ;;  %v13019_v3 = vld [vmem:[%s16690_s7 + $0x148] sm:$0xff] }
 0xe27   :  { %9360 = vmatpush.bf16.msrb.mxu1 %v13007_v9  ;;  %9451 = vmatpush.bf16.msrb.mxu2 %v13015_v18  ;;  %v13020_v58 = vld [vmem:[%s16690_s7 + $0x150] sm:$0xff]  ;;  %v8117_v9 = vadd.f32 %v16171_v39, %v16081_v4  ;;  %v8935_v39 = vld [vmem:[#allocation6 + $0x18] ss:$2 sm:$0xf] }
 0xe28   :  { %v8902_v20 = vadd.f32 %v16226_v48, %v8882_v28  ;;  %v8931_v28 = vld [vmem:[#allocation6 + $0x8] ss:$2 sm:$0xf]  ;;  %v8933_v5 = vld [vmem:[#allocation6 + $0x10] ss:$2 sm:$0xf] }
 0xe29   :  { %9537 = vmatpush.bf16.msrb.mxu3 %v13020_v58 }
 0xe2a   :  { %8918 = vst [vmem:[#allocation6 + $0x28] sm:$0xff] %v8902_v20  ;;  %v8963_v20 = vld [vmem:[#allocation6 + $0x9] ss:$2 sm:$0xf] }
 0xe2b   :  { %v8698_v19 = vpop.f32.mrf.mxu2  ;;  %9361 = vmatpush.bf16.msrb.mxu1 %v13006_v59  ;;  %9452 = vmatpush.bf16.msrb.mxu2 %v13014_v13  ;;  %v8993_v33 = vmax.f32 %v8931_v28, %v8963_v20 }
 0xe2c   :  { %v8852_v38 = vpop.f32.mrf.mxu3  ;;  %v8729_v43 = vadd.f32 %v8698_v19, %v8575_v46 }
 0xe2d   :  { %v8549_v16 = vpop.f32.mrf.mxu1  ;;  %9538 = vmatpush.bf16.msrb.mxu3 %v13019_v3 }
 0xe2e   :  { %v8883_v55 = vadd.f32 %v8852_v38, %v8729_v43  ;;  %v8577_v30 = vadd.f32 %v8549_v16, %v16164_v44  ;;  %v8929_v38 = vld [vmem:[#allocation6] ss:$2 sm:$0xf] }
 0xe2f   :  { %9362 = vmatpush.bf16.msrb.mxu1 %v13005_v34  ;;  %9453 = vmatpush.bf16.msrb.mxu2 %v13013_v2  ;;  %v13002_v43 = vld [vmem:[%s16690_s7 + $0xc0] sm:$0xff] }
 0xe30   :  { %v8903_v53 = vadd.f32 %v16226_v48, %v8883_v55  ;;  %v8992_v55 = vmax.f32 %v8929_v38, %v8961_v6 }
 0xe31   :  { %9539 = vmatpush.bf16.msrb.mxu3 %v13018_v11 }
 0xe32   :  { %8919 = vst [vmem:[#allocation6 + $0x30] sm:$0xff] %v8903_v53 }
 0xe33   :  { %v8700_v8 = vpop.f32.mrf.mxu2  ;;  %9363 = vmatpush.bf16.msrb.mxu1 %v13004_v47  ;;  %9454 = vmatpush.bf16.msrb.mxu2 %v13012_v40 }
 0xe34   :  { %v8854_v42 = vpop.f32.mrf.mxu3  ;;  %v8730_v25 = vadd.f32 %v8700_v8, %v8576_v22  ;;  %v9008_v22 = vmax.f32 %v8992_v55, %v8993_v33 }
 0xe35   :  { %v8551_v45 = vpop.f32.mrf.mxu1 }
 0xe36   :  { %v8884_v10 = vadd.f32 %v8854_v42, %v8730_v25  ;;  %v8578_v46 = vadd.f32 %v8551_v45, %v8423_v52  ;;  %v8271_v42 = vadd.f32 %v16177_v0, %v8117_v9  ;;  %v9016_v45 = vmax.f32 %v9008_v22, 0.0 }
 0xe37   :  { %9364 = vmatpush.bf16.msrb.mxu1 %v13003_v1  ;;  %9455 = vmatpush.bf16.msrb.mxu2 %v13011_v63  ;;  %v8119_v1 = vadd.f32 %v16181_v7, %v16114_v62  ;;  %v13033_v7 = vld [vmem:[%s16690_s7 + $0x1b8] sm:$0xff] }
 0xe38   :  { %v8904_v61 = vadd.f32 %v16226_v48, %v8884_v10  ;;  %v8425_v27 = vadd.f32 %v16179_v51, %v8271_v42  ;;  %v9024_v4 = vpack.c.bf16 %v9016_v45, %v9016_v45  ;;  %v13049_v42 = vld [vmem:[%s16690_s7 + $0x238] sm:$0xff] }
 0xe3a   :  { %8920 = vst [vmem:[#allocation6 + $0x38] sm:$0xff] %v8904_v61 }
 0xe3b   :  { %v8703_v41 = vpop.f32.mrf.mxu2  ;;  %9365 = vmatpush.bf16.msrb.mxu1 %v13002_v43  ;;  %9456 = vmatpush.bf16.msrb.mxu2 %v13010_v17 }
 0xe3c   :  { %v8857_v21 = vpop.f32.mrf.mxu3  ;;  %v8731_v14 = vadd.f32 %v8703_v41, %v8577_v30  ;;  %v8967_v30 = vld [vmem:[#allocation6 + $0x19] ss:$2 sm:$0xf] }
 0xe3d   :  { %v8554_v44 = vpop.f32.mrf.mxu1  ;;  %v8995_v51 = vmax.f32 %v8935_v39, %v8967_v30 }
 0xe3e   :  { %v8885_v31 = vadd.f32 %v8857_v21, %v8731_v14  ;;  %v8579_v18 = vadd.f32 %v8554_v44, %v16173_v56  ;;  %v8965_v14 = vld [vmem:[#allocation6 + $0x11] ss:$2 sm:$0xf] }
 0xe3f   :  { %v8994_v52 = vmax.f32 %v8933_v5, %v8965_v14  ;;  %v8937_v14 = vld [vmem:[#allocation6 + $0x20] ss:$2 sm:$0xf] }
 0xe40   :  { %v8905_v32 = vadd.f32 %v16226_v48, %v8885_v31  ;;  %v9067_v31 = vunpack.c.l.b16 %v9024_v4 }
 0xe42   :  { %8921 = vst [vmem:[#allocation6 + $0x40] sm:$0xff] %v8905_v32  ;;  %v16383_v20 = vunpack.i.l.s16 %v9067_v31 }
 0xe43   :  { %v8705_v35 = vpop.f32.mrf.mxu2 }
 0xe44   :  { %v8859_v19 = vpop.f32.mrf.mxu3  ;;  %v8732_v26 = vadd.f32 %v8705_v35, %v8578_v46  ;;  %v9009_v46 = vmax.f32 %v8994_v52, %v8995_v51  ;;  %v9073_v43 = vrot.slane %v16383_v20, 1  ;;  %v13039_v51 = vld [vmem:[%s16690_s7 + $0x1e8] sm:$0xff] }
 0xe45   :  { %v8556_v54 = vpop.f32.mrf.mxu1 }
 0xe46   :  { %v8886_v16 = vadd.f32 %v8859_v19, %v8732_v26  ;;  %v8580_v2 = vadd.f32 %v8556_v54, %v8425_v27  ;;  %v8273_v19 = vadd.f32 %v16198_v57, %v8119_v1  ;;  %v9221_v54 = vrot.slane %v16383_v20, 2  ;;  %v13032_v27 = vld [vmem:[%s16690_s7 + $0x1b0] sm:$0xff] }
 0xe48   :  { %v8906_v53 = vadd.f32 %v16226_v48, %v8886_v16  ;;  %v9017_v16 = vmax.f32 %v9009_v46, 0.0  ;;  %v8427_v17 = vadd.f32 %v16200_v49, %v8273_v19  ;;  %v8121_v46 = vadd.f32 %v16202_v29, %v16128_v36  ;;  %v13038_v36 = vld [vmem:[%s16690_s7 + $0x1e0] sm:$0xff] }
 0xe49   :  { %v8945_v10 = vld [vmem:[#allocation6 + $0x40] ss:$2 sm:$0xf]  ;;  %v8977_v13 = vld [vmem:[#allocation6 + $0x41] ss:$2 sm:$0xf] }
 0xe4a   :  { %8922 = vst [vmem:[#allocation6 + $0x48] sm:$0xff] %v8906_v53  ;;  %v9000_v50 = vmax.f32 %v8945_v10, %v8977_v13  ;;  %v13046_v29 = vld [vmem:[%s16690_s7 + $0x220] sm:$0xff] }
 0xe4b   :  { %v8708_v23 = vpop.f32.mrf.mxu2 }
 0xe4c   :  { %v8862_v8 = vpop.f32.mrf.mxu3  ;;  %v8733_v25 = vadd.f32 %v8708_v23, %v8579_v18 }
 0xe4d   :  { %v8559_v24 = vpop.f32.mrf.mxu1 }
 0xe4e   :  { %v8887_v59 = vadd.f32 %v8862_v8, %v8733_v25  ;;  %v8581_v63 = vadd.f32 %v8559_v24, %v16185_v12  ;;  %v13041_v8 = vld [vmem:[%s16690_s7 + $0x1f8] sm:$0xff]  ;;  %v9025_v25 = vpack.c.bf16 %v9017_v16, %v9017_v16 }
 0xe50   :  { %v8907_v61 = vadd.f32 %v16226_v48, %v8887_v59 }
 0xe51   :  { %v8947_v56 = vld [vmem:[#allocation6 + $0x48] ss:$2 sm:$0xf]  ;;  %v8979_v34 = vld [vmem:[#allocation6 + $0x49] ss:$2 sm:$0xf] }
 0xe52   :  { %8923 = vst [vmem:[#allocation6 + $0x50] sm:$0xff] %v8907_v61  ;;  %v9001_v41 = vmax.f32 %v8947_v56, %v8979_v34  ;;  %v13040_v56 = vld [vmem:[%s16690_s7 + $0x1f0] sm:$0xff] }
 0xe53   :  { %v8710_v0 = vpop.f32.mrf.mxu2  ;;  %v13048_v34 = vld [vmem:[%s16690_s7 + $0x230] sm:$0xff] }
 0xe54   :  { %v8864_v21 = vpop.f32.mrf.mxu3  ;;  %v8734_v44 = vadd.f32 %v8710_v0, %v8580_v2  ;;  %v9012_v47 = vmax.f32 %v9000_v50, %v9001_v41  ;;  %v9391_v50 = vunpack.c.l.b16 %v9025_v25 }
 0xe55   :  { %v8561_v3 = vpop.f32.mrf.mxu1 }
 0xe56   :  { %v8888_v40 = vadd.f32 %v8864_v21, %v8734_v44  ;;  %v9020_v58 = vmax.f32 %v9012_v47, 0.0  ;;  %v8582_v13 = vadd.f32 %v8561_v3, %v8427_v17  ;;  %v13031_v21 = vld [vmem:[%s16690_s7 + $0x1a8] sm:$0xff]  ;;  %v9305_v3 = vrot.slane %v16383_v20, 3 }
 0xe57   :  { %v8939_v44 = vld [vmem:[#allocation6 + $0x28] ss:$2 sm:$0xf]  ;;  %v8971_v47 = vld [vmem:[#allocation6 + $0x29] ss:$2 sm:$0xf] }
 0xe58   :  { %v8908_v32 = vadd.f32 %v16226_v48, %v8888_v40  ;;  %v9028_v28 = vpack.c.bf16 %v9020_v58, %v9020_v58  ;;  %v13047_v40 = vld [vmem:[%s16690_s7 + $0x228] sm:$0xff]  ;;  %v8997_v19 = vmax.f32 %v8939_v44, %v8971_v47  ;;  %v8941_v47 = vld [vmem:[#allocation6 + $0x30] ss:$2 sm:$0xf] }
 0xe59   :  { %v8949_v53 = vld [vmem:[#allocation6 + $0x50] ss:$2 sm:$0xf]  ;;  %v8981_v22 = vld [vmem:[#allocation6 + $0x51] ss:$2 sm:$0xf] }
 0xe5a   :  { %8924 = vst [vmem:[#allocation6 + $0x58] sm:$0xff] %v8908_v32  ;;  %v9068_v35 = vunpack.c.l.b16 %v9028_v28  ;;  %v9002_v61 = vmax.f32 %v8949_v53, %v8981_v22  ;;  %v16431_v32 = vunpack.i.l.s16 %v9391_v50  ;;  %v8969_v28 = vld [vmem:[#allocation6 + $0x21] ss:$2 sm:$0xf] }
 0xe5b   :  { %v8713_v38 = vpop.f32.mrf.mxu2 }
 0xe5c   :  { %v8867_v6 = vpop.f32.mrf.mxu3  ;;  %v8735_v26 = vadd.f32 %v8713_v38, %v8581_v63  ;;  %v16389_v33 = vunpack.i.l.s16 %v9068_v35  ;;  %v13030_v63 = vld [vmem:[%s16690_s7 + $0x1a0] sm:$0xff]  ;;  %v8275_v38 = vadd.f32 %v16218_v60, %v8121_v46  ;;  %v9480_v60 = vrot.slane %v16431_v32, 1  ;;  %v13057_v46 = vld [vmem:[%s16690_s7 + $0x278] sm:$0xff] }
 0xe5d   :  { %v8564_v41 = vpop.f32.mrf.mxu1 }
 0xe5e   :  { %v8889_v55 = vadd.f32 %v8867_v6, %v8735_v26  ;;  %v9075_v62 = vsel %vm9074_vm4, %v16389_v33, %v9073_v43  ;;  %v9139_v12 = vrot.slane %v16389_v33, 7  ;;  %v9222_v57 = vrot.slane %v16389_v33, 1 }
 0xe5f   :  { %v9076_v11 = vpack.c.b16 %v9075_v62, %v9075_v62  ;;  %v9306_v58 = vrot.slane %v16389_v33, 2  ;;  %v8583_v1 = vadd.f32 %v8564_v41, %v16207_v15  ;;  %v8996_v33 = vmax.f32 %v8937_v14, %v8969_v28  ;;  %v8943_v41 = vld [vmem:[#allocation6 + $0x38] ss:$2 sm:$0xf]  ;;  %v13043_v14 = vld [vmem:[%s16690_s7 + $0x208] sm:$0xff] }
 0xe60   :  { %v8909_v9 = vadd.f32 %v16226_v48, %v8889_v55  ;;  %v9140_v18 = vsel %vm9074_vm4, %v9139_v12, %v16383_v20  ;;  %v9223_v23 = vsel %vm9074_vm4, %v9222_v57, %v9221_v54  ;;  %v13029_v54 = vld [vmem:[%s16690_s7 + $0x198] sm:$0xff]  ;;  %v8429_v53 = vadd.f32 %v16220_v37, %v8275_v38 }
 0xe61   :  { %9134 = vmatmul.bf16.vlgmr.msra.gmra.mxu1 %v9076_v11  ;;  %v9141_v49 = vpack.c.b16 %v9140_v18, %v9140_v18  ;;  %v9224_v45 = vpack.c.b16 %v9223_v23, %v9223_v23  ;;  %v8951_v59 = vld [vmem:[#allocation6 + $0x58] ss:$2 sm:$0xf]  ;;  %v8983_v10 = vld [vmem:[#allocation6 + $0x59] ss:$2 sm:$0xf]  ;;  %v9307_v15 = vsel %vm9074_vm4, %v9306_v58, %v9305_v3 }
 0xe62   :  { %8925 = vst [vmem:[#allocation6 + $0x60] sm:$0xff] %v8909_v9  ;;  %9616 = vmatpush.bf16.msra.mxu1 %v13033_v7  ;;  %v9003_v24 = vmax.f32 %v8951_v59, %v8983_v10  ;;  %v9010_v7 = vmax.f32 %v8996_v33, %v8997_v19  ;;  %v9308_v57 = vpack.c.b16 %v9307_v15, %v9307_v15  ;;  %v13037_v18 = vld [vmem:[%s16690_s7 + $0x1d8] sm:$0xff]  ;;  %v13042_v3 = vld [vmem:[%s16690_s7 + $0x200] sm:$0xff] }
 0xe63   :  { %v8715_v4 = vpop.f32.mrf.mxu2  ;;  %9199 = vmatmul.bf16.vlgmr.msra.gmra.mxu2 %v9141_v49  ;;  %9282 = vmatmul.bf16.vlgmr.msra.gmra.mxu3 %v9224_v45  ;;  %v13045_v23 = vld [vmem:[%s16690_s7 + $0x218] sm:$0xff]  ;;  %v13028_v45 = vld [vmem:[%s16690_s7 + $0x190] sm:$0xff] }
 0xe64   :  { %v8869_v39 = vpop.f32.mrf.mxu3  ;;  %v8736_v30 = vadd.f32 %v8715_v4, %v8582_v13  ;;  %9700 = vmatpush.bf16.msra.mxu2 %v13041_v8  ;;  %9791 = vmatpush.bf16.msra.mxu3 %v13049_v42  ;;  %v9013_v2 = vmax.f32 %v9002_v61, %v9003_v24  ;;  %v9018_v13 = vmax.f32 %v9010_v7, 0.0  ;;  %v13036_v24 = vld [vmem:[%s16690_s7 + $0x1d0] sm:$0xff] }
 0xe65   :  { %v8566_v12 = vpop.f32.mrf.mxu1  ;;  %v13044_v4 = vld [vmem:[%s16690_s7 + $0x210] sm:$0xff] }
 0xe66   :  { %v8890_v0 = vadd.f32 %v8869_v39, %v8736_v30  ;;  %9617 = vmatpush.bf16.msra.mxu1 %v13032_v27  ;;  %v9021_v5 = vmax.f32 %v9013_v2, 0.0  ;;  %v8584_v49 = vadd.f32 %v8566_v12, %v8429_v53  ;;  %v9026_v50 = vpack.c.bf16 %v9018_v13, %v9018_v13 }
 0xe68   :  { %v8910_v31 = vadd.f32 %v16226_v48, %v8890_v0  ;;  %9701 = vmatpush.bf16.msra.mxu2 %v13040_v56  ;;  %9792 = vmatpush.bf16.msra.mxu3 %v13048_v34  ;;  %v9029_v52 = vpack.c.bf16 %v9021_v5, %v9021_v5  ;;  %v13027_v34 = vld [vmem:[%s16690_s7 + $0x188] sm:$0xff]  ;;  %v8975_v0 = vld [vmem:[#allocation6 + $0x39] ss:$2 sm:$0xf]  ;;  %v9733_v58 = vunpack.c.l.b16 %v9026_v50  ;;  %v13060_v50 = vld [vmem:[%s16690_s7 + $0x290] sm:$0xff] }
 0xe69   :  { %v8953_v17 = vld [vmem:[#allocation6 + $0x60] ss:$2 sm:$0xf]  ;;  %v8985_v11 = vld [vmem:[#allocation6 + $0x61] ss:$2 sm:$0xf]  ;;  %v8999_v28 = vmax.f32 %v8943_v41, %v8975_v0 }
 0xe6a   :  { %8926 = vst [vmem:[#allocation6 + $0x68] sm:$0xff] %v8910_v31  ;;  %9618 = vmatpush.bf16.msra.mxu1 %v13031_v21  ;;  %v9392_v35 = vunpack.c.l.b16 %v9029_v52  ;;  %v9004_v59 = vmax.f32 %v8953_v17, %v8985_v11  ;;  %v13035_v5 = vld [vmem:[%s16690_s7 + $0x1c8] sm:$0xff]  ;;  %v13068_v41 = vld [vmem:[%s16690_s7 + $0x2d0] sm:$0xff] }
 0xe6b   :  { %v8718_v6 = vpop.f32.mrf.mxu2  ;;  %v13051_v0 = vld [vmem:[%s16690_s7 + $0x248] sm:$0xff] }
 0xe6c   :  { %v8872_v26 = vpop.f32.mrf.mxu3  ;;  %v8737_v43 = vadd.f32 %v8718_v6, %v8583_v1  ;;  %9702 = vmatpush.bf16.msra.mxu2 %v13039_v51  ;;  %9793 = vmatpush.bf16.msra.mxu3 %v13047_v40  ;;  %v16448_v20 = vunpack.i.l.s16 %v9392_v35  ;;  %v8973_v51 = vld [vmem:[#allocation6 + $0x31] ss:$2 sm:$0xf]  ;;  %v9563_v1 = vrot.slane %v16431_v32, 2  ;;  %v9647_v35 = vrot.slane %v16431_v32, 3  ;;  %v13065_v6 = vld [vmem:[%s16690_s7 + $0x2b8] sm:$0xff] }
 0xe6d   :  { %v8998_v38 = vmax.f32 %v8941_v47, %v8973_v51  ;;  %v13089_v51 = vld [vmem:[%s16690_s7 + $0x378] sm:$0xff] }
 0xe6e   :  { %v8891_v16 = vadd.f32 %v8872_v26, %v8737_v43  ;;  %9619 = vmatpush.bf16.msra.mxu1 %v13030_v63  ;;  %v9397_v55 = vrot.slane %v16448_v20, 7  ;;  %v9481_v62 = vsel %vm9074_vm4, %v16448_v20, %v9480_v60  ;;  %v9564_v31 = vrot.slane %v16448_v20, 1  ;;  %v13034_v63 = vld [vmem:[%s16690_s7 + $0x1c0] sm:$0xff]  ;;  %v13073_v26 = vld [vmem:[%s16690_s7 + $0x2f8] sm:$0xff]  ;;  %v13056_v43 = vld [vmem:[%s16690_s7 + $0x270] sm:$0xff] }
 0xe6f   :  { %v9482_v42 = vpack.c.b16 %v9481_v62, %v9481_v62  ;;  %v9648_v40 = vrot.slane %v16448_v20, 2  ;;  %v9011_v15 = vmax.f32 %v8998_v38, %v8999_v28  ;;  %v13072_v62 = vld [vmem:[%s16690_s7 + $0x2f0] sm:$0xff] }
 0xe70   :  { %v8911_v22 = vadd.f32 %v16226_v48, %v8891_v16  ;;  %9703 = vmatpush.bf16.msra.mxu2 %v13038_v36  ;;  %9794 = vmatpush.bf16.msra.mxu3 %v13046_v29  ;;  %v9398_v9 = vsel %vm9074_vm4, %v9397_v55, %v16431_v32  ;;  %v9565_v33 = vsel %vm9074_vm4, %v9564_v31, %v9563_v1  ;;  %v16515_v36 = vunpack.i.l.s16 %v9733_v58  ;;  %v13064_v55 = vld [vmem:[%s16690_s7 + $0x2b0] sm:$0xff]  ;;  %v13105_v1 = vld [vmem:[%s16690_s7 + $0x3f8] sm:$0xff] }
 0xe71   :  { %9366 = vmatmul.bf16.vlgmr.msrb.gmra.mxu1 %v9308_v57  ;;  %v9399_v8 = vpack.c.b16 %v9398_v9, %v9398_v9  ;;  %v8955_v25 = vld [vmem:[#allocation6 + $0x68] ss:$2 sm:$0xf]  ;;  %v8987_v37 = vld [vmem:[#allocation6 + $0x69] ss:$2 sm:$0xf]  ;;  %v9649_v32 = vsel %vm9074_vm4, %v9648_v40, %v9647_v35  ;;  %v9566_v16 = vpack.c.b16 %v9565_v33, %v9565_v33 }
 0xe72   :  { %8927 = vst [vmem:[#allocation6 + $0x70] sm:$0xff] %v8911_v22  ;;  %9620 = vmatpush.bf16.msra.mxu1 %v13029_v54  ;;  %v9005_v10 = vmax.f32 %v8955_v25, %v8987_v37  ;;  %v9650_v7 = vpack.c.b16 %v9649_v32, %v9649_v32  ;;  %v9019_v22 = vmax.f32 %v9011_v15, 0.0  ;;  %v13055_v9 = vld [vmem:[%s16690_s7 + $0x268] sm:$0xff]  ;;  %v13054_v37 = vld [vmem:[%s16690_s7 + $0x260] sm:$0xff]  ;;  %v9989_v28 = vrot.slane %v16515_v36, 3  ;;  %v13104_v33 = vld [vmem:[%s16690_s7 + $0x3f0] sm:$0xff] }
 0xe73   :  { %v8720_v27 = vpop.f32.mrf.mxu2  ;;  %9457 = vmatmul.bf16.vlgmr.msrb.gmra.mxu2 %v9399_v8  ;;  %9540 = vmatmul.bf16.vlgmr.msrb.gmra.mxu3 %v9482_v42  ;;  %v13071_v8 = vld [vmem:[%s16690_s7 + $0x2e8] sm:$0xff]  ;;  %v13066_v40 = vld [vmem:[%s16690_s7 + $0x2c0] sm:$0xff] }
 0xe74   :  { %v8738_v61 = vadd.f32 %v8720_v27, %v8584_v49  ;;  %9704 = vmatpush.bf16.msra.mxu2 %v13037_v18  ;;  %9795 = vmatpush.bf16.msra.mxu3 %v13045_v23  ;;  %v9014_v39 = vmax.f32 %v9004_v59, %v9005_v10  ;;  %v8874_v30 = vpop.f32.mrf.mxu3  ;;  %v13063_v23 = vld [vmem:[%s16690_s7 + $0x2a8] sm:$0xff]  ;;  %v9027_v25 = vpack.c.bf16 %v9019_v22, %v9019_v22  ;;  %v13070_v59 = vld [vmem:[%s16690_s7 + $0x2e0] sm:$0xff]  ;;  %v13053_v27 = vld [vmem:[%s16690_s7 + $0x258] sm:$0xff] }
 0xe75   :  { %v13095_v32 = vld [vmem:[%s16690_s7 + $0x3a8] sm:$0xff]  ;;  %v13094_v15 = vld [vmem:[%s16690_s7 + $0x3a0] sm:$0xff] }
 0xe76   :  { %v8892_v56 = vadd.f32 %v8874_v30, %v8738_v61  ;;  %9621 = vmatpush.bf16.msra.mxu1 %v13028_v45  ;;  %v9022_v2 = vmax.f32 %v9014_v39, 0.0  ;;  %v13062_v45 = vld [vmem:[%s16690_s7 + $0x2a0] sm:$0xff]  ;;  %v10075_v10 = vunpack.c.l.b16 %v9027_v25 }
 0xe78   :  { %v8912_v21 = vadd.f32 %v16226_v48, %v8892_v56  ;;  %9705 = vmatpush.bf16.msra.mxu2 %v13036_v24  ;;  %9796 = vmatpush.bf16.msra.mxu3 %v13044_v4  ;;  %v9030_v44 = vpack.c.bf16 %v9022_v2, %v9022_v2  ;;  %v13026_v48 = vld [vmem:[%s16690_s7 + $0x180] sm:$0xff]  ;;  %v13061_v24 = vld [vmem:[%s16690_s7 + $0x298] sm:$0xff]  ;;  %v16555_v39 = vunpack.i.l.s16 %v10075_v10  ;;  %v13052_v56 = vld [vmem:[%s16690_s7 + $0x250] sm:$0xff] }
 0xe79   :  { %v8957_v20 = vld [vmem:[#allocation6 + $0x70] ss:$2 sm:$0xf]  ;;  %v8989_v60 = vld [vmem:[#allocation6 + $0x71] ss:$2 sm:$0xf] }
 0xe7a   :  { %8928 = vst [vmem:[#allocation6 + $0x78] sm:$0xff] %v8912_v21  ;;  %9622 = vmatpush.bf16.msra.mxu1 %v13027_v34  ;;  %v9734_v52 = vunpack.c.l.b16 %v9030_v44  ;;  %v9006_v11 = vmax.f32 %v8957_v20, %v8989_v60  ;;  %v13069_v4 = vld [vmem:[%s16690_s7 + $0x2d8] sm:$0xff]  ;;  %v13059_v21 = vld [vmem:[%s16690_s7 + $0x288] sm:$0xff]  ;;  %v9822_v44 = vrot.slane %v16515_v36, 1  ;;  %v13102_v20 = vld [vmem:[%s16690_s7 + $0x3e0] sm:$0xff]  ;;  %v10164_v22 = vrot.slane %v16555_v39, 1 }
 0xe7b   :  { %v13085_v60 = vld [vmem:[%s16690_s7 + $0x358] sm:$0xff]  ;;  %v10331_v25 = vrot.slane %v16555_v39, 3 }
 0xe7c   :  { %9706 = vmatpush.bf16.msra.mxu2 %v13035_v5  ;;  %9797 = vmatpush.bf16.msra.mxu3 %v13043_v14  ;;  %v16502_v19 = vunpack.i.l.s16 %v9734_v52  ;;  %v13067_v5 = vld [vmem:[%s16690_s7 + $0x2c8] sm:$0xff]  ;;  %v13050_v14 = vld [vmem:[%s16690_s7 + $0x240] sm:$0xff]  ;;  %v9905_v52 = vrot.slane %v16515_v36, 2 }
 0xe7e   :  { %9623 = vmatpush.bf16.msra.mxu1 %v13026_v48  ;;  %v9739_v29 = vrot.slane %v16502_v19, 7  ;;  %v9906_v47 = vrot.slane %v16502_v19, 1  ;;  %v9990_v31 = vrot.slane %v16502_v19, 2  ;;  %v13058_v48 = vld [vmem:[%s16690_s7 + $0x280] sm:$0xff]  ;;  %v9823_v58 = vsel %vm9074_vm4, %v16502_v19, %v9822_v44  ;;  %v13088_v19 = vld [vmem:[%s16690_s7 + $0x370] sm:$0xff] }
 0xe7f   :  { %v9824_v35 = vpack.c.b16 %v9823_v58, %v9823_v58 }
 0xe80   :  { %9707 = vmatpush.bf16.msra.mxu2 %v13034_v63  ;;  %9798 = vmatpush.bf16.msra.mxu3 %v13042_v3  ;;  %v9740_v54 = vsel %vm9074_vm4, %v9739_v29, %v16515_v36  ;;  %v9907_v63 = vsel %vm9074_vm4, %v9906_v47, %v9905_v52  ;;  %v9991_v3 = vsel %vm9074_vm4, %v9990_v31, %v9989_v28  ;;  %v13103_v36 = vld [vmem:[%s16690_s7 + $0x3e8] sm:$0xff]  ;;  %v13086_v29 = vld [vmem:[%s16690_s7 + $0x360] sm:$0xff] }
 0xe81   :  { %v9741_v12 = vpack.c.b16 %v9740_v54, %v9740_v54  ;;  %v8959_v57 = vld [vmem:[#allocation6 + $0x78] ss:$2 sm:$0xf]  ;;  %v8991_v17 = vld [vmem:[#allocation6 + $0x79] ss:$2 sm:$0xf]  ;;  %9624 = vmatmul.bf16.vlgmr.msra.gmra.mxu1 %v9566_v16  ;;  %v9908_v38 = vpack.c.b16 %v9907_v63, %v9907_v63 }
 0xe82   :  { %9874 = vmatpush.bf16.msrb.mxu1 %v13057_v46  ;;  %v9007_v53 = vmax.f32 %v8959_v57, %v8991_v17  ;;  %v13097_v46 = vld [vmem:[%s16690_s7 + $0x3b8] sm:$0xff]  ;;  %v13091_v57 = vld [vmem:[%s16690_s7 + $0x388] sm:$0xff] }
 0xe83   :  { %9708 = vmatmul.bf16.vlgmr.msra.gmra.mxu2 %v9650_v7  ;;  %9799 = vmatmul.bf16.vlgmr.msra.gmra.mxu3 %v9741_v12  ;;  %v13093_v16 = vld [vmem:[%s16690_s7 + $0x398] sm:$0xff]  ;;  %v13100_v7 = vld [vmem:[%s16690_s7 + $0x3d0] sm:$0xff]  ;;  %v13083_v12 = vld [vmem:[%s16690_s7 + $0x348] sm:$0xff] }
 0xe84   :  { %9958 = vmatpush.bf16.msrb.mxu2 %v13065_v6  ;;  %10042 = vmatpush.bf16.msrb.mxu3 %v13073_v26  ;;  %v9015_v18 = vmax.f32 %v9006_v11, %v9007_v53  ;;  %v9992_v6 = vpack.c.b16 %v9991_v3, %v9991_v3  ;;  %v13096_v26 = vld [vmem:[%s16690_s7 + $0x3b0] sm:$0xff]  ;;  %v13101_v54 = vld [vmem:[%s16690_s7 + $0x3d8] sm:$0xff]  ;;  %v13099_v17 = vld [vmem:[%s16690_s7 + $0x3c8] sm:$0xff] }
 0xe85   :  { %v13082_v53 = vld [vmem:[%s16690_s7 + $0x340] sm:$0xff] }
 0xe86   :  { %9875 = vmatpush.bf16.msrb.mxu1 %v13056_v43  ;;  %v9023_v42 = vmax.f32 %v9015_v18, 0.0  ;;  %v13087_v43 = vld [vmem:[%s16690_s7 + $0x368] sm:$0xff]  ;;  %v13090_v18 = vld [vmem:[%s16690_s7 + $0x380] sm:$0xff] }
 0xe88   :  { %9959 = vmatpush.bf16.msrb.mxu2 %v13064_v55  ;;  %10043 = vmatpush.bf16.msrb.mxu3 %v13072_v62  ;;  %v9031_v49 = vpack.c.bf16 %v9023_v42, %v9023_v42  ;;  %v13084_v55 = vld [vmem:[%s16690_s7 + $0x350] sm:$0xff] }
 0xe89   :  { %v13092_v62 = vld [vmem:[%s16690_s7 + $0x390] sm:$0xff] }
 0xe8a   :  { %9876 = vmatpush.bf16.msrb.mxu1 %v13055_v9  ;;  %v10076_v13 = vunpack.c.l.b16 %v9031_v49 }
 0xe8c   :  { %9960 = vmatpush.bf16.msrb.mxu2 %v13063_v23  ;;  %10044 = vmatpush.bf16.msrb.mxu3 %v13071_v8  ;;  %v16547_v61 = vunpack.i.l.s16 %v10076_v13  ;;  %v10247_v23 = vrot.slane %v16555_v39, 2  ;;  %v13098_v8 = vld [vmem:[%s16690_s7 + $0x3c0] sm:$0xff] }
 0xe8e   :  { %9877 = vmatpush.bf16.msrb.mxu1 %v13054_v37  ;;  %v10081_v30 = vrot.slane %v16547_v61, 7  ;;  %v10248_v11 = vrot.slane %v16547_v61, 1  ;;  %v10332_v9 = vrot.slane %v16547_v61, 2  ;;  %v10165_v42 = vsel %vm9074_vm4, %v16547_v61, %v10164_v22 }
 0xe90   :  { %9961 = vmatpush.bf16.msrb.mxu2 %v13062_v45  ;;  %10045 = vmatpush.bf16.msrb.mxu3 %v13070_v59  ;;  %v10082_v34 = vsel %vm9074_vm4, %v10081_v30, %v16555_v39  ;;  %v10249_v37 = vsel %vm9074_vm4, %v10248_v11, %v10247_v23  ;;  %v10333_v49 = vsel %vm9074_vm4, %v10332_v9, %v10331_v25 }
 0xe91   :  { %v10083_v2 = vpack.c.b16 %v10082_v34, %v10082_v34  ;;  %v10166_v45 = vpack.c.b16 %v10165_v42, %v10165_v42  ;;  %v10250_v59 = vpack.c.b16 %v10249_v37, %v10249_v37  ;;  %v10334_v10 = vpack.c.b16 %v10333_v49, %v10333_v49 }
 0xe92   :  { %9878 = vmatpush.bf16.msrb.mxu1 %v13053_v27 }
 0xe93   :  { %10141 = vmatmul.bf16.vlgmr.msrb.gmra.mxu0 %v10083_v2 }
 0xe94   :  { %9962 = vmatpush.bf16.msrb.mxu2 %v13061_v24  ;;  %10046 = vmatpush.bf16.msrb.mxu3 %v13069_v4 }
 0xe96   :  { %9879 = vmatpush.bf16.msrb.mxu1 %v13052_v56 }
 0xe98   :  { %9963 = vmatpush.bf16.msrb.mxu2 %v13060_v50  ;;  %10047 = vmatpush.bf16.msrb.mxu3 %v13068_v41 }
 0xe9a   :  { %9880 = vmatpush.bf16.msrb.mxu1 %v13051_v0 }
 0xe9c   :  { %9964 = vmatpush.bf16.msrb.mxu2 %v13059_v21  ;;  %10048 = vmatpush.bf16.msrb.mxu3 %v13067_v5 }
 0xe9e   :  { %9881 = vmatpush.bf16.msrb.mxu1 %v13050_v14 }
 0xea0   :  { %9965 = vmatpush.bf16.msrb.mxu2 %v13058_v48  ;;  %10049 = vmatpush.bf16.msrb.mxu3 %v13066_v40 }
 0xea1   :  { %9882 = vmatmul.bf16.vlgmr.msrb.gmra.mxu1 %v9824_v35 }
 0xea2   :  { %10216 = vmatpush.bf16.msra.mxu1 %v13089_v51 }
 0xea3   :  { %9966 = vmatmul.bf16.vlgmr.msrb.gmra.mxu2 %v9908_v38  ;;  %10050 = vmatmul.bf16.vlgmr.msrb.gmra.mxu3 %v9992_v6 }
 0xea4   :  { %10300 = vmatpush.bf16.msra.mxu2 %v13097_v46  ;;  %10384 = vmatpush.bf16.msra.mxu3 %v13105_v1 }
 0xea6   :  { %10217 = vmatpush.bf16.msra.mxu1 %v13088_v19 }
 0xea8   :  { %10301 = vmatpush.bf16.msra.mxu2 %v13096_v26  ;;  %10385 = vmatpush.bf16.msra.mxu3 %v13104_v33 }
 0xeaa   :  { %10218 = vmatpush.bf16.msra.mxu1 %v13087_v43 }
 0xeac   :  { %10302 = vmatpush.bf16.msra.mxu2 %v13095_v32  ;;  %10386 = vmatpush.bf16.msra.mxu3 %v13103_v36 }
 0xeae   :  { %10219 = vmatpush.bf16.msra.mxu1 %v13086_v29 }
 0xeb0   :  { %10303 = vmatpush.bf16.msra.mxu2 %v13094_v15  ;;  %10387 = vmatpush.bf16.msra.mxu3 %v13102_v20 }
 0xeb2   :  { %10220 = vmatpush.bf16.msra.mxu1 %v13085_v60 }
 0xeb4   :  { %10304 = vmatpush.bf16.msra.mxu2 %v13093_v16  ;;  %10388 = vmatpush.bf16.msra.mxu3 %v13101_v54 }
 0xeb6   :  { %10221 = vmatpush.bf16.msra.mxu1 %v13084_v55  ;;  %v13112_v55 = vld [vmem:[%s16691_s8] ss:$0 sm:$0xff] }
 0xeb8   :  { %10305 = vmatpush.bf16.msra.mxu2 %v13092_v62  ;;  %10389 = vmatpush.bf16.msra.mxu3 %v13100_v7 }
 0xeba   :  { %10222 = vmatpush.bf16.msra.mxu1 %v13083_v12 }
 0xebc   :  { %10306 = vmatpush.bf16.msra.mxu2 %v13091_v57  ;;  %10390 = vmatpush.bf16.msra.mxu3 %v13099_v17 }
 0xebe   :  { %10223 = vmatpush.bf16.msra.mxu1 %v13082_v53 }
 0xec0   :  { %10307 = vmatpush.bf16.msra.mxu2 %v13090_v18  ;;  %10391 = vmatpush.bf16.msra.mxu3 %v13098_v8 }
 0xec1   :  { %10224 = vmatmul.bf16.vlgmr.msra.gmra.mxu1 %v10166_v45 }
 0xec3   :  { %10308 = vmatmul.bf16.vlgmr.msra.gmra.mxu2 %v10250_v59  ;;  %10392 = vmatmul.bf16.vlgmr.msra.gmra.mxu3 %v10334_v10 }
 0xede   :  { %v9135_v13 = vpop.f32.mrf.mxu1 }
 0xee6   :  { %v9137_v27 = vpop.f32.mrf.mxu1  ;;  %v9200_v24 = vpop.f32.mrf.mxu2 }
 0xee7   :  { %v9201_v4 = vadd.f32 %v9200_v24, %v9135_v13  ;;  %v9283_v61 = vpop.f32.mrf.mxu3 }
 0xee9   :  { %v9287_v30 = vadd.f32 %v9283_v61, %v9201_v4 }
 0xeee   :  { %v9202_v39 = vpop.f32.mrf.mxu2  ;;  %v9367_v56 = vpop.f32.mrf.mxu1 }
 0xeef   :  { %v9285_v34 = vpop.f32.mrf.mxu3  ;;  %v9371_v52 = vadd.f32 %v9367_v56, %v9287_v30 }
 0xef6   :  { %v9369_v2 = vpop.f32.mrf.mxu1  ;;  %v9458_v50 = vpop.f32.mrf.mxu2 }
 0xef7   :  { %v9541_v41 = vpop.f32.mrf.mxu3  ;;  %v9462_v63 = vadd.f32 %v9458_v50, %v9371_v52 }
 0xef9   :  { %v9545_v3 = vadd.f32 %v9541_v41, %v9462_v63 }
 0xefe   :  { %v9460_v0 = vpop.f32.mrf.mxu2  ;;  %v9625_v5 = vpop.f32.mrf.mxu1 }
 0xeff   :  { %v9543_v21 = vpop.f32.mrf.mxu3  ;;  %v9629_v35 = vadd.f32 %v9625_v5, %v9545_v3 }
 0xf06   :  { %v9709_v14 = vpop.f32.mrf.mxu2  ;;  %v9627_v44 = vpop.f32.mrf.mxu1 }
 0xf07   :  { %v9800_v47 = vpop.f32.mrf.mxu3  ;;  %v9713_v6 = vadd.f32 %v9709_v14, %v9629_v35 }
 0xf09   :  { %v9804_v26 = vadd.f32 %v9800_v47, %v9713_v6 }
 0xf0e   :  { %v9711_v31 = vpop.f32.mrf.mxu2 }
 0xf0f   :  { %v9802_v51 = vpop.f32.mrf.mxu3 }
 0xf10   :  { %v10142_v48 = vpop.f32.mrf.mxu0 }
 0xf18   :  { %v10144_v40 = vpop.f32.mrf.mxu0 }
 0xf1e   :  { %v9883_v58 = vpop.f32.mrf.mxu1 }
 0xf1f   :  { %v9887_v33 = vadd.f32 %v9883_v58, %v9804_v26 }
 0xf26   :  { %v9885_v28 = vpop.f32.mrf.mxu1  ;;  %v9967_v46 = vpop.f32.mrf.mxu2 }
 0xf27   :  { %v10051_v1 = vpop.f32.mrf.mxu3  ;;  %v9971_v43 = vadd.f32 %v9967_v46, %v9887_v33 }
 0xf29   :  { %v10055_v32 = vadd.f32 %v10051_v1, %v9971_v43 }
 0xf2b   :  { %v10146_v29 = vadd.f32 %v10142_v48, %v10055_v32 }
 0xf2e   :  { %v9969_v19 = vpop.f32.mrf.mxu2 }
 0xf2f   :  { %v10053_v38 = vpop.f32.mrf.mxu3 }
 0xf3e   :  { %v10225_v36 = vpop.f32.mrf.mxu1 }
 0xf3f   :  { %v10229_v15 = vadd.f32 %v10225_v36, %v10146_v29 }
 0xf46   :  { %v10309_v20 = vpop.f32.mrf.mxu2  ;;  %v10227_v60 = vpop.f32.mrf.mxu1 }
 0xf47   :  { %v10313_v16 = vadd.f32 %v10309_v20, %v10229_v15  ;;  %v10393_v54 = vpop.f32.mrf.mxu3 }
 0xf49   :  { %v10397_v62 = vadd.f32 %v10393_v54, %v10313_v16 }
 0xf4b   :  { %v10402_v7 = vadd.f32 %v13112_v55, %v10397_v62 }
 0xf4d   :  { %10403 = vst [vmem:[#allocation7] sm:$0x3] %v10402_v7 }
 0xf4e   :  { %v10311_v12 = vpop.f32.mrf.mxu2  ;;  %10414 = dma.vmem_to_hbm [thread:$0]  %s10410_s6, 32, %s10412_s3, [#allocation8]  }
 0xf4f   :  { %v10395_v57 = vpop.f32.mrf.mxu3 }
 0xf50   :  { %13154 = dma.done.wait [#allocation8], 32  }
 0xf51   :  { %13155 = vsyncadd [#allocation8], 4294967264 }
 0xf52   :  { %10419 = vsyncpa [#allocation8], 1 }

</bundles_post_ra>
